<compile_context>
chip_gen: v7x
topology: tpu7x:2x2x1
jax: 0.10.0
libtpu: 0.0.40
codegen_flags: <defaults>
</compile_context>

<pallas_src>
import functools

import numpy as np
import jax
import jax.numpy as jnp
from jax import lax
from jax.experimental import pallas as pl
from jax.experimental.pallas import tpu as pltpu

OUTPUT_DIM = 28 * 28
EPS = 1e-5                    # PyTorch BatchNorm default eps (training mode => batch stats)
MATMUL_DTYPE = jnp.bfloat16   # MXU operand dtype (accumulation stays f32)


# --------------------------------------------------------------------- kernel

def _generator_kernel(z_ref, fcw_ref, fcb_ref, g1_ref, be1_ref,
                      m1_ref, b1_ref, a1_ref, a1t_ref, g2_ref, be2_ref,
                      m2_ref, b2_ref, a2_ref, a2t_ref, g3_ref, be3_ref,
                      m3_ref, b3_ref, o_ref, *, use_bn):
    """Entire generator forward in one kernel; activations never leave VMEM."""
    f32 = jnp.float32
    mm = m1_ref.dtype  # matmul operand dtype (bf16)

    def bn_features(x, g_ref, be_ref):
        # BatchNorm1d (training mode): per-column stats over the batch, one pass.
        inv_n = 1.0 / x.shape[0]
        s1 = jnp.sum(x, axis=0, keepdims=True)
        s2 = jnp.sum(x * x, axis=0, keepdims=True)
        mu = s1 * inv_n
        var = s2 * inv_n - mu * mu
        return (x - mu) * (lax.rsqrt(var + EPS) * g_ref[...]) + be_ref[...]

    def bn_channels(y, a_ref, at_ref, g_ref, be_ref):
        # BatchNorm2d (training mode) on a flattened (B, C*OH*OW) activation.
        # A (N, C) is a 0/1 channel-membership matrix: per-channel sum /
        # sum-of-squares and the mapping of per-channel scale/shift back onto
        # columns are gather-free MXU matmuls -> lane-dense epilogue.
        n_cols, n_ch = a_ref.shape
        inv_cnt = 1.0 / (y.shape[0] * (n_cols // n_ch))
        cs1 = jnp.sum(y, axis=0, keepdims=True)                                # (1, N)
        cs2 = jnp.sum(y * y, axis=0, keepdims=True)                            # (1, N)
        s1 = jnp.dot(cs1, a_ref[...], preferred_element_type=f32)              # (1, C)
        s2 = jnp.dot(cs2, a_ref[...], preferred_element_type=f32)              # (1, C)
        mu = s1 * inv_cnt
        var = s2 * inv_cnt - mu * mu
        scale = g_ref[...] * lax.rsqrt(var + EPS)                              # (1, C)
        shift = be_ref[...] - mu * scale                                       # (1, C)
        scale_cols = jnp.dot(scale, at_ref[...], preferred_element_type=f32)   # (1, N)
        shift_cols = jnp.dot(shift, at_ref[...], preferred_element_type=f32)   # (1, N)
        return y * scale_cols + shift_cols

    # fc (+BN1d) + relu.  (Under BN the fc bias cancels exactly -> skipped.)
    h = jnp.dot(z_ref[...].astype(mm), fcw_ref[...], preferred_element_type=f32)
    h = bn_features(h, g1_ref, be1_ref) if use_bn else h + fcb_ref[...]
    h = jnp.maximum(h, 0.0)

    # deconv1 (+BN2d) + relu.  Output is the full 7x7 map (the [:7,:7] crop is a no-op).
    y1 = jnp.dot(h.astype(mm), m1_ref[...], preferred_element_type=f32)
    y1 = bn_channels(y1, a1_ref, a1t_ref, g2_ref, be2_ref) if use_bn else y1 + b1_ref[...]
    y1 = jnp.maximum(y1, 0.0)

    # deconv2 (+BN2d) + relu.  Full 15x15 map (BN needs it); the [:14,:14] crop is
    # folded into M3 (rows of cropped positions are zero there).
    y2 = jnp.dot(y1.astype(mm), m2_ref[...], preferred_element_type=f32)
    y2 = bn_channels(y2, a2_ref, a2t_ref, g3_ref, be3_ref) if use_bn else y2 + b2_ref[...]
    y2 = jnp.maximum(y2, 0.0)

    # deconv3 + sigmoid.  M3 columns are restricted to the kept 28x28 pixels, so the
    # result is written directly as a lane-dense (B, 784) slab.
    y3 = jnp.dot(y2.astype(mm), m3_ref[...], preferred_element_type=f32) + b3_ref[...]
    o_ref[...] = jax.nn.sigmoid(y3)


# ------------------------------------------- one-time parameter layout (host)

def _dense_deconv_matrix(w, in_full, in_keep, stride, padding, out_keep=None):
    """Fold a ConvTranspose2d (PyTorch NCHW) into a dense (Cin*Hf*Wf, Cout*OHk*OWk) matrix.

    Rows are indexed over the *full* channel-major (NCHW-flattened) input map of
    the previous layer; only positions inside `in_keep` (the PyTorch crop)
    contribute, so cropped rows stay zero.  `out_keep` optionally restricts the
    columns to the kept output window (used to fold the final [:28,:28] crop).
    """
    w = np.asarray(w, np.float32)                       # (Cin, Cout, K, K)
    cin, cout, K, _ = w.shape
    hf, wf = in_full
    hk, wk = in_keep
    oh_full = (hk - 1) * stride - 2 * padding + K
    ow_full = (wk - 1) * stride - 2 * padding + K
    ohk, owk = (oh_full, ow_full) if out_keep is None else out_keep
    m = np.zeros((cin * hf * wf, cout * ohk * owk), np.float32)
    ci = np.arange(cin)
    co = np.arange(cout)
    for ih in range(hk):
        for iw in range(wk):
            for kh in range(K):
                for kw in range(K):
                    oh = ih * stride - padding + kh
                    ow = iw * stride - padding + kw
                    if 0 <= oh < ohk and 0 <= ow < owk:
                        rows = (ci * hf + ih) * wf + iw
                        cols = (co * ohk + oh) * owk + ow
                        m[np.ix_(rows, cols)] += w[:, :, kh, kw]
    return m, (oh_full, ow_full)


def _channel_matrices(channels, spatial):
    a = np.kron(np.eye(channels, dtype=np.float32), np.ones((spatial, 1), np.float32))
    return jnp.asarray(a), jnp.asarray(np.ascontiguousarray(a.T))


def prepare_generator_params(params, *, dim, compute_dtype=MATMUL_DTYPE):
    """Hoisted, one-time parameter-layout step (not part of the forward path)."""
    m1, (oh1, ow1) = _dense_deconv_matrix(params["dc1_w"], (4, 4), (4, 4),
                                          stride=2, padding=2)                 # -> 7x7
    m2, (oh2, ow2) = _dense_deconv_matrix(params["dc2_w"], (oh1, ow1), (7, 7),
                                          stride=2, padding=1)                 # -> 15x15
    m3, _ = _dense_deconv_matrix(params["dc3_w"], (oh2, ow2), (14, 14),
                                 stride=2, padding=1, out_keep=(28, 28))       # -> 28x28

    a1, a1t = _channel_matrices(2 * dim, oh1 * ow1)
    a2, a2t = _channel_matrices(dim, oh2 * ow2)

    row = lambda v: jnp.asarray(v, jnp.float32).reshape(1, -1)
    return {
        "fc_w": params["fc_w_t"].astype(compute_dtype),
        "fc_b": row(params["fc_b"]),
        "bn1_g": row(params["bn1_g"]), "bn1_b": row(params["bn1_b"]),
        "m1": jnp.asarray(m1, compute_dtype),
        "b1": row(jnp.repeat(params["dc1_b"], oh1 * ow1)),
        "a1": a1, "a1t": a1t,
        "bn2_g": row(params["bn2_g"]), "bn2_b": row(params["bn2_b"]),
        "m2": jnp.asarray(m2, compute_dtype),
        "b2": row(jnp.repeat(params["dc2_b"], oh2 * ow2)),
        "a2": a2, "a2t": a2t,
        "bn3_g": row(params["bn3_g"]), "bn3_b": row(params["bn3_b"]),
        "m3": jnp.asarray(m3, compute_dtype),
        "b3": row(jnp.repeat(params["dc3_b"], OUTPUT_DIM)),
    }


# ------------------------------------------------------------------- wrapper

_VMEM = pl.BlockSpec(memory_space=pltpu.MemorySpace.VMEM)


def generator_forward(prep, noise, *, mode):
    use_bn = (mode == "WGAN")
    B = noise.shape[0]
    kernel = functools.partial(_generator_kernel, use_bn=use_bn)
    args = (noise, prep["fc_w"], prep["fc_b"], prep["bn1_g"], prep["bn1_b"],
            prep["m1"], prep["b1"], prep["a1"], prep["a1t"], prep["bn2_g"], prep["bn2_b"],
            prep["m2"], prep["b2"], prep["a2"], prep["a2t"], prep["bn3_g"], prep["bn3_b"],
            prep["m3"], prep["b3"])
    # Single grid-less program: total weights (~6.5 MiB bf16) + activations fit VMEM
    # on all generations (v7x 64 MiB physical included).  BN couples the whole batch,
    # so no batch grid is used here; for large non-BN batches a ("parallel",) batch
    # grid would engage v7x's second TensorCore.
    return pl.pallas_call(
        kernel,
        out_shape=jax.ShapeDtypeStruct((B, OUTPUT_DIM), jnp.float32),
        in_specs=[_VMEM] * len(args),
        out_specs=_VMEM,
        compiler_params=pltpu.CompilerParams(vmem_limit_bytes=48 * 1024 * 1024),
    )(*args)


# ----------------------------------------------------------------- init / ref

def init_generator_params(key, dim, z_size):
    F = 4 * 4 * 4 * dim
    ks = jax.random.split(key, 14)
    n = lambda k, shp, s=0.05: s * jax.random.normal(k, shp, jnp.float32)
    return {
        "fc_w_t": n(ks[0], (z_size, F)),
        "fc_b":   n(ks[1], (F,)),
        "bn1_g":  1.0 + n(ks[2], (F,), 0.1),
        "bn1_b":  n(ks[3], (F,), 0.1),
        "dc1_w":  n(ks[4], (4 * dim, 2 * dim, 5, 5)),
        "dc1_b":  n(ks[5], (2 * dim,)),
        "bn2_g":  1.0 + n(ks[6], (2 * dim,), 0.1),
        "bn2_b":  n(ks[7], (2 * dim,), 0.1),
        "dc2_w":  n(ks[8], (2 * dim, dim, 5, 5)),
        "dc2_b":  n(ks[9], (dim,)),
        "bn3_g":  1.0 + n(ks[10], (dim,), 0.1),
        "bn3_b":  n(ks[11], (dim,), 0.1),
        "dc3_w":  n(ks[12], (dim, 1, 5, 5)),
        "dc3_b":  n(ks[13], (1,)),
    }


def _ref_forward(params, noise, *, mode, dim):
    """Independent pure-JAX reference (lax.conv with lhs dilation), all f32."""
    use_bn = (mode == "WGAN")

    def bn(x, g, b, axes):
        mu = jnp.mean(x, axes, keepdims=True)
        var = jnp.mean(jnp.square(x - mu), axes, keepdims=True)
        shp = [1] * x.ndim
        shp[1] = -1
        return (x - mu) / jnp.sqrt(var + EPS) * g.reshape(shp) + b.reshape(shp)

    def deconv(x, w, b, padding):
        K = w.shape[-1]
        pad = K - 1 - padding
        wf = jnp.transpose(jnp.flip(w, (2, 3)), (1, 0, 2, 3))
        y = lax.conv_general_dilated(x, wf, (1, 1), [(pad, pad), (pad, pad)],
                                     lhs_dilation=(2, 2),
                                     dimension_numbers=("NCHW", "OIHW", "NCHW"))
        return y + b[None, :, None, None]

    x = noise @ params["fc_w_t"] + params["fc_b"]
    if use_bn:
        x = bn(x, params["bn1_g"], params["bn1_b"], (0,))
    x = jnp.maximum(x, 0.0).reshape(-1, 4 * dim, 4, 4)
    x = deconv(x, params["dc1_w"], params["dc1_b"], 2)
    if use_bn:
        x = bn(x, params["bn2_g"], params["bn2_b"], (0, 2, 3))
    x = jnp.maximum(x, 0.0)[:, :, :7, :7]
    x = deconv(x, params["dc2_w"], params["dc2_b"], 1)
    if use_bn:
        x = bn(x, params["bn3_g"], params["bn3_b"], (0, 2, 3))
    x = jnp.maximum(x, 0.0)[:, :, :14, :14]
    x = deconv(x, params["dc3_w"], params["dc3_b"], 1)
    x = jax.nn.sigmoid(x)[:, :, :28, :28]
    return x.reshape(-1, OUTPUT_DIM)


# --------------------------------------------------------------------- main

if __name__ == "__main__":
    DIM, Z_SIZE, BATCH = 8, 32, 2

    key = jax.random.PRNGKey(0)
    pkey, nkey = jax.random.split(key)
    params = init_generator_params(pkey, DIM, Z_SIZE)
    noise = jax.random.normal(nkey, (BATCH, Z_SIZE), jnp.float32)

    prep = prepare_generator_params(params, dim=DIM)   # one-time layout step

    for mode in ("WGAN", "DCGAN"):                     # with and without BatchNorm
        fwd = jax.jit(functools.partial(generator_forward, mode=mode))
        out = jax.block_until_ready(fwd(prep, noise))
        ref = _ref_forward(params, noise, mode=mode, dim=DIM)
        assert out.shape == (BATCH, OUTPUT_DIM), out.shape
        max_err = float(jnp.max(jnp.abs(out - ref)))
        # bf16 matmul operands (f32 accumulation); a structural bug gives O(0.1+) error.
        assert max_err < 2e-2, f"{mode}: mismatch vs reference: {max_err}"
    print("KERNEL_OK")
</pallas_src>

<mosaic_0001>
module attributes {stable_mosaic.version = 11 : i64} {
  func.func @_generator_kernel(%arg0: memref<2x32xf32, #tpu.memory_space<vmem>>, %arg1: memref<32x512xbf16, #tpu.memory_space<vmem>>, %arg2: memref<1x512xf32, #tpu.memory_space<vmem>>, %arg3: memref<1x512xf32, #tpu.memory_space<vmem>>, %arg4: memref<1x512xf32, #tpu.memory_space<vmem>>, %arg5: memref<512x784xbf16, #tpu.memory_space<vmem>>, %arg6: memref<1x784xf32, #tpu.memory_space<vmem>>, %arg7: memref<784x16xf32, #tpu.memory_space<vmem>>, %arg8: memref<16x784xf32, #tpu.memory_space<vmem>>, %arg9: memref<1x16xf32, #tpu.memory_space<vmem>>, %arg10: memref<1x16xf32, #tpu.memory_space<vmem>>, %arg11: memref<784x1800xbf16, #tpu.memory_space<vmem>>, %arg12: memref<1x1800xf32, #tpu.memory_space<vmem>>, %arg13: memref<1800x8xf32, #tpu.memory_space<vmem>>, %arg14: memref<8x1800xf32, #tpu.memory_space<vmem>>, %arg15: memref<1x8xf32, #tpu.memory_space<vmem>>, %arg16: memref<1x8xf32, #tpu.memory_space<vmem>>, %arg17: memref<1800x784xbf16, #tpu.memory_space<vmem>>, %arg18: memref<1x784xf32, #tpu.memory_space<vmem>>, %arg19: memref<2x784xf32, #tpu.memory_space<vmem>>) attributes {dimension_semantics = [], scalar_prefetch = 0 : i64, scratch_operands = 0 : i64, tpu.core_type = #tpu.core_type<tc>} {
    %c0 = arith.constant 0 : index
    %c0_0 = arith.constant 0 : index
    %0 = vector.load %arg0[%c0, %c0_0] : memref<2x32xf32, #tpu.memory_space<vmem>>, vector<2x32xf32>
    %1 = arith.truncf %0 : vector<2x32xf32> to vector<2x32xbf16>
    %c0_1 = arith.constant 0 : index
    %c0_2 = arith.constant 0 : index
    %2 = vector.load %arg1[%c0_1, %c0_2] : memref<32x512xbf16, #tpu.memory_space<vmem>>, vector<32x512xbf16>
    %cst = arith.constant dense<0.000000e+00> : vector<2x512xf32>
    %3 = tpu.matmul %1, %2, %cst {dimension_numbers = #tpu.dot_dimension_numbers<[1], [0], [0], [1], [0, 0, 1, 1], [], []>} : vector<2x32xbf16>, vector<32x512xbf16>, vector<2x512xf32> -> vector<2x512xf32>
    %cst_3 = arith.constant dense<0.000000e+00> : vector<512xf32>
    %4 = vector.multi_reduction <add>, %3, %cst_3 [0] : vector<2x512xf32> to vector<512xf32>
    %5 = vector.shape_cast %4 : vector<512xf32> to vector<1x512xf32>
    %6 = arith.mulf %3, %3 : vector<2x512xf32>
    %cst_4 = arith.constant dense<0.000000e+00> : vector<512xf32>
    %7 = vector.multi_reduction <add>, %6, %cst_4 [0] : vector<2x512xf32> to vector<512xf32>
    %8 = vector.shape_cast %7 : vector<512xf32> to vector<1x512xf32>
    %cst_5 = arith.constant 5.000000e-01 : f32
    %9 = vector.broadcast %cst_5 : f32 to vector<1x512xf32>
    %10 = arith.mulf %5, %9 : vector<1x512xf32>
    %cst_6 = arith.constant 5.000000e-01 : f32
    %11 = vector.broadcast %cst_6 : f32 to vector<1x512xf32>
    %12 = arith.mulf %8, %11 : vector<1x512xf32>
    %13 = arith.mulf %10, %10 : vector<1x512xf32>
    %14 = arith.subf %12, %13 : vector<1x512xf32>
    %15 = vector.broadcast %10 : vector<1x512xf32> to vector<2x512xf32>
    %16 = arith.subf %3, %15 : vector<2x512xf32>
    %cst_7 = arith.constant 9.99999974E-6 : f32
    %17 = vector.broadcast %cst_7 : f32 to vector<1x512xf32>
    %18 = arith.addf %14, %17 : vector<1x512xf32>
    %19 = math.rsqrt %18 : vector<1x512xf32>
    %c0_8 = arith.constant 0 : index
    %c0_9 = arith.constant 0 : index
    %20 = vector.load %arg3[%c0_8, %c0_9] : memref<1x512xf32, #tpu.memory_space<vmem>>, vector<1x512xf32>
    %21 = arith.mulf %19, %20 : vector<1x512xf32>
    %22 = vector.broadcast %21 : vector<1x512xf32> to vector<2x512xf32>
    %23 = arith.mulf %16, %22 : vector<2x512xf32>
    %c0_10 = arith.constant 0 : index
    %c0_11 = arith.constant 0 : index
    %24 = vector.load %arg4[%c0_10, %c0_11] : memref<1x512xf32, #tpu.memory_space<vmem>>, vector<1x512xf32>
    %25 = vector.broadcast %24 : vector<1x512xf32> to vector<2x512xf32>
    %26 = arith.addf %23, %25 : vector<2x512xf32>
    %cst_12 = arith.constant 0.000000e+00 : f32
    %27 = vector.broadcast %cst_12 : f32 to vector<2x512xf32>
    %28 = arith.maximumf %26, %27 : vector<2x512xf32>
    %29 = arith.truncf %28 : vector<2x512xf32> to vector<2x512xbf16>
    %c0_13 = arith.constant 0 : index
    %c0_14 = arith.constant 0 : index
    %30 = vector.load %arg5[%c0_13, %c0_14] : memref<512x784xbf16, #tpu.memory_space<vmem>>, vector<512x784xbf16>
    %cst_15 = arith.constant dense<0.000000e+00> : vector<2x784xf32>
    %31 = tpu.matmul %29, %30, %cst_15 {dimension_numbers = #tpu.dot_dimension_numbers<[1], [0], [0], [1], [0, 0, 1, 1], [], []>} : vector<2x512xbf16>, vector<512x784xbf16>, vector<2x784xf32> -> vector<2x784xf32>
    %cst_16 = arith.constant dense<0.000000e+00> : vector<784xf32>
    %32 = vector.multi_reduction <add>, %31, %cst_16 [0] : vector<2x784xf32> to vector<784xf32>
    %33 = vector.shape_cast %32 : vector<784xf32> to vector<1x784xf32>
    %34 = arith.mulf %31, %31 : vector<2x784xf32>
    %cst_17 = arith.constant dense<0.000000e+00> : vector<784xf32>
    %35 = vector.multi_reduction <add>, %34, %cst_17 [0] : vector<2x784xf32> to vector<784xf32>
    %36 = vector.shape_cast %35 : vector<784xf32> to vector<1x784xf32>
    %c0_18 = arith.constant 0 : index
    %c0_19 = arith.constant 0 : index
    %37 = vector.load %arg7[%c0_18, %c0_19] : memref<784x16xf32, #tpu.memory_space<vmem>>, vector<784x16xf32>
    %cst_20 = arith.constant dense<0.000000e+00> : vector<1x16xf32>
    %38 = tpu.matmul %33, %37, %cst_20 {dimension_numbers = #tpu.dot_dimension_numbers<[1], [0], [0], [1], [0, 0, 1, 1], [], []>} : vector<1x784xf32>, vector<784x16xf32>, vector<1x16xf32> -> vector<1x16xf32>
    %c0_21 = arith.constant 0 : index
    %c0_22 = arith.constant 0 : index
    %39 = vector.load %arg7[%c0_21, %c0_22] : memref<784x16xf32, #tpu.memory_space<vmem>>, vector<784x16xf32>
    %cst_23 = arith.constant dense<0.000000e+00> : vector<1x16xf32>
    %40 = tpu.matmul %36, %39, %cst_23 {dimension_numbers = #tpu.dot_dimension_numbers<[1], [0], [0], [1], [0, 0, 1, 1], [], []>} : vector<1x784xf32>, vector<784x16xf32>, vector<1x16xf32> -> vector<1x16xf32>
    %cst_24 = arith.constant 0.0102040814 : f32
    %41 = vector.broadcast %cst_24 : f32 to vector<1x16xf32>
    %42 = arith.mulf %38, %41 : vector<1x16xf32>
    %cst_25 = arith.constant 0.0102040814 : f32
    %43 = vector.broadcast %cst_25 : f32 to vector<1x16xf32>
    %44 = arith.mulf %40, %43 : vector<1x16xf32>
    %45 = arith.mulf %42, %42 : vector<1x16xf32>
    %46 = arith.subf %44, %45 : vector<1x16xf32>
    %c0_26 = arith.constant 0 : index
    %c0_27 = arith.constant 0 : index
    %47 = vector.load %arg9[%c0_26, %c0_27] : memref<1x16xf32, #tpu.memory_space<vmem>>, vector<1x16xf32>
    %cst_28 = arith.constant 9.99999974E-6 : f32
    %48 = vector.broadcast %cst_28 : f32 to vector<1x16xf32>
    %49 = arith.addf %46, %48 : vector<1x16xf32>
    %50 = math.rsqrt %49 : vector<1x16xf32>
    %51 = arith.mulf %47, %50 : vector<1x16xf32>
    %c0_29 = arith.constant 0 : index
    %c0_30 = arith.constant 0 : index
    %52 = vector.load %arg10[%c0_29, %c0_30] : memref<1x16xf32, #tpu.memory_space<vmem>>, vector<1x16xf32>
    %53 = arith.mulf %42, %51 : vector<1x16xf32>
    %54 = arith.subf %52, %53 : vector<1x16xf32>
    %c0_31 = arith.constant 0 : index
    %c0_32 = arith.constant 0 : index
    %55 = vector.load %arg8[%c0_31, %c0_32] : memref<16x784xf32, #tpu.memory_space<vmem>>, vector<16x784xf32>
    %cst_33 = arith.constant dense<0.000000e+00> : vector<1x784xf32>
    %56 = tpu.matmul %51, %55, %cst_33 {dimension_numbers = #tpu.dot_dimension_numbers<[1], [0], [0], [1], [0, 0, 1, 1], [], []>} : vector<1x16xf32>, vector<16x784xf32>, vector<1x784xf32> -> vector<1x784xf32>
    %c0_34 = arith.constant 0 : index
    %c0_35 = arith.constant 0 : index
    %57 = vector.load %arg8[%c0_34, %c0_35] : memref<16x784xf32, #tpu.memory_space<vmem>>, vector<16x784xf32>
    %cst_36 = arith.constant dense<0.000000e+00> : vector<1x784xf32>
    %58 = tpu.matmul %54, %57, %cst_36 {dimension_numbers = #tpu.dot_dimension_numbers<[1], [0], [0], [1], [0, 0, 1, 1], [], []>} : vector<1x16xf32>, vector<16x784xf32>, vector<1x784xf32> -> vector<1x784xf32>
    %59 = vector.broadcast %56 : vector<1x784xf32> to vector<2x784xf32>
    %60 = arith.mulf %31, %59 : vector<2x784xf32>
    %61 = vector.broadcast %58 : vector<1x784xf32> to vector<2x784xf32>
    %62 = arith.addf %60, %61 : vector<2x784xf32>
    %cst_37 = arith.constant 0.000000e+00 : f32
    %63 = vector.broadcast %cst_37 : f32 to vector<2x784xf32>
    %64 = arith.maximumf %62, %63 : vector<2x784xf32>
    %65 = arith.truncf %64 : vector<2x784xf32> to vector<2x784xbf16>
    %c0_38 = arith.constant 0 : index
    %c0_39 = arith.constant 0 : index
    %66 = vector.load %arg11[%c0_38, %c0_39] : memref<784x1800xbf16, #tpu.memory_space<vmem>>, vector<784x1800xbf16>
    %cst_40 = arith.constant dense<0.000000e+00> : vector<2x1800xf32>
    %67 = tpu.matmul %65, %66, %cst_40 {dimension_numbers = #tpu.dot_dimension_numbers<[1], [0], [0], [1], [0, 0, 1, 1], [], []>} : vector<2x784xbf16>, vector<784x1800xbf16>, vector<2x1800xf32> -> vector<2x1800xf32>
    %cst_41 = arith.constant dense<0.000000e+00> : vector<1800xf32>
    %68 = vector.multi_reduction <add>, %67, %cst_41 [0] : vector<2x1800xf32> to vector<1800xf32>
    %69 = vector.shape_cast %68 : vector<1800xf32> to vector<1x1800xf32>
    %70 = arith.mulf %67, %67 : vector<2x1800xf32>
    %cst_42 = arith.constant dense<0.000000e+00> : vector<1800xf32>
    %71 = vector.multi_reduction <add>, %70, %cst_42 [0] : vector<2x1800xf32> to vector<1800xf32>
    %72 = vector.shape_cast %71 : vector<1800xf32> to vector<1x1800xf32>
    %c0_43 = arith.constant 0 : index
    %c0_44 = arith.constant 0 : index
    %73 = vector.load %arg13[%c0_43, %c0_44] : memref<1800x8xf32, #tpu.memory_space<vmem>>, vector<1800x8xf32>
    %cst_45 = arith.constant dense<0.000000e+00> : vector<1x8xf32>
    %74 = tpu.matmul %69, %73, %cst_45 {dimension_numbers = #tpu.dot_dimension_numbers<[1], [0], [0], [1], [0, 0, 1, 1], [], []>} : vector<1x1800xf32>, vector<1800x8xf32>, vector<1x8xf32> -> vector<1x8xf32>
    %c0_46 = arith.constant 0 : index
    %c0_47 = arith.constant 0 : index
    %75 = vector.load %arg13[%c0_46, %c0_47] : memref<1800x8xf32, #tpu.memory_space<vmem>>, vector<1800x8xf32>
    %cst_48 = arith.constant dense<0.000000e+00> : vector<1x8xf32>
    %76 = tpu.matmul %72, %75, %cst_48 {dimension_numbers = #tpu.dot_dimension_numbers<[1], [0], [0], [1], [0, 0, 1, 1], [], []>} : vector<1x1800xf32>, vector<1800x8xf32>, vector<1x8xf32> -> vector<1x8xf32>
    %cst_49 = arith.constant 0.00222222228 : f32
    %77 = vector.broadcast %cst_49 : f32 to vector<1x8xf32>
    %78 = arith.mulf %74, %77 : vector<1x8xf32>
    %cst_50 = arith.constant 0.00222222228 : f32
    %79 = vector.broadcast %cst_50 : f32 to vector<1x8xf32>
    %80 = arith.mulf %76, %79 : vector<1x8xf32>
    %81 = arith.mulf %78, %78 : vector<1x8xf32>
    %82 = arith.subf %80, %81 : vector<1x8xf32>
    %c0_51 = arith.constant 0 : index
    %c0_52 = arith.constant 0 : index
    %83 = vector.load %arg15[%c0_51, %c0_52] : memref<1x8xf32, #tpu.memory_space<vmem>>, vector<1x8xf32>
    %cst_53 = arith.constant 9.99999974E-6 : f32
    %84 = vector.broadcast %cst_53 : f32 to vector<1x8xf32>
    %85 = arith.addf %82, %84 : vector<1x8xf32>
    %86 = math.rsqrt %85 : vector<1x8xf32>
    %87 = arith.mulf %83, %86 : vector<1x8xf32>
    %c0_54 = arith.constant 0 : index
    %c0_55 = arith.constant 0 : index
    %88 = vector.load %arg16[%c0_54, %c0_55] : memref<1x8xf32, #tpu.memory_space<vmem>>, vector<1x8xf32>
    %89 = arith.mulf %78, %87 : vector<1x8xf32>
    %90 = arith.subf %88, %89 : vector<1x8xf32>
    %c0_56 = arith.constant 0 : index
    %c0_57 = arith.constant 0 : index
    %91 = vector.load %arg14[%c0_56, %c0_57] : memref<8x1800xf32, #tpu.memory_space<vmem>>, vector<8x1800xf32>
    %cst_58 = arith.constant dense<0.000000e+00> : vector<1x1800xf32>
    %92 = tpu.matmul %87, %91, %cst_58 {dimension_numbers = #tpu.dot_dimension_numbers<[1], [0], [0], [1], [0, 0, 1, 1], [], []>} : vector<1x8xf32>, vector<8x1800xf32>, vector<1x1800xf32> -> vector<1x1800xf32>
    %c0_59 = arith.constant 0 : index
    %c0_60 = arith.constant 0 : index
    %93 = vector.load %arg14[%c0_59, %c0_60] : memref<8x1800xf32, #tpu.memory_space<vmem>>, vector<8x1800xf32>
    %cst_61 = arith.constant dense<0.000000e+00> : vector<1x1800xf32>
    %94 = tpu.matmul %90, %93, %cst_61 {dimension_numbers = #tpu.dot_dimension_numbers<[1], [0], [0], [1], [0, 0, 1, 1], [], []>} : vector<1x8xf32>, vector<8x1800xf32>, vector<1x1800xf32> -> vector<1x1800xf32>
    %95 = vector.broadcast %92 : vector<1x1800xf32> to vector<2x1800xf32>
    %96 = arith.mulf %67, %95 : vector<2x1800xf32>
    %97 = vector.broadcast %94 : vector<1x1800xf32> to vector<2x1800xf32>
    %98 = arith.addf %96, %97 : vector<2x1800xf32>
    %cst_62 = arith.constant 0.000000e+00 : f32
    %99 = vector.broadcast %cst_62 : f32 to vector<2x1800xf32>
    %100 = arith.maximumf %98, %99 : vector<2x1800xf32>
    %101 = arith.truncf %100 : vector<2x1800xf32> to vector<2x1800xbf16>
    %c0_63 = arith.constant 0 : index
    %c0_64 = arith.constant 0 : index
    %102 = vector.load %arg17[%c0_63, %c0_64] : memref<1800x784xbf16, #tpu.memory_space<vmem>>, vector<1800x784xbf16>
    %cst_65 = arith.constant dense<0.000000e+00> : vector<2x784xf32>
    %103 = tpu.matmul %101, %102, %cst_65 {dimension_numbers = #tpu.dot_dimension_numbers<[1], [0], [0], [1], [0, 0, 1, 1], [], []>} : vector<2x1800xbf16>, vector<1800x784xbf16>, vector<2x784xf32> -> vector<2x784xf32>
    %c0_66 = arith.constant 0 : index
    %c0_67 = arith.constant 0 : index
    %104 = vector.load %arg18[%c0_66, %c0_67] : memref<1x784xf32, #tpu.memory_space<vmem>>, vector<1x784xf32>
    %105 = vector.broadcast %104 : vector<1x784xf32> to vector<2x784xf32>
    %106 = arith.addf %103, %105 : vector<2x784xf32>
    %107 = arith.negf %106 : vector<2x784xf32>
    %108 = math.exp %107 : vector<2x784xf32>
    %cst_68 = arith.constant 1.000000e+00 : f32
    %109 = vector.broadcast %cst_68 : f32 to vector<2x784xf32>
    %110 = arith.addf %109, %108 : vector<2x784xf32>
    %111 = arith.divf %109, %110 : vector<2x784xf32>
    %c0_69 = arith.constant 0 : index
    %c0_70 = arith.constant 0 : index
    %112 = vector.load %arg19[%c0_69, %c0_70] : memref<2x784xf32, #tpu.memory_space<vmem>>, vector<2x784xf32>
    tpu.vector_store %arg19[%c0_69, %c0_70], %111 {strides = array<i32>} : memref<2x784xf32, #tpu.memory_space<vmem>>, vector<2x784xf32>,
    return
  }
}

</mosaic_0001>

<bundles_post_ra>
// kernel: generator_forward.1
= control target key start
LH: loop header
LB: loop body
LE: loop exit
PB: predicated region body
PF: predicated region fallthrough
CT: control target
= control target key end

     0   :  { %s32808_s0 = inlined_call_operand.vmem [shape: f32[2,32], index: 0, kind: input, shape index: {}]   ;;  %s32809_s1 = inlined_call_operand.vmem [shape: bf16[32,512], index: 1, kind: input, shape index: {}]   ;;  %s32810_s2 = inlined_call_operand.vmem [shape: f32[1,512], index: 2, kind: input, shape index: {}]   ;;  %s32811_s3 = inlined_call_operand.vmem [shape: f32[1,512], index: 3, kind: input, shape index: {}]   ;;  %s32812_s4 = inlined_call_operand.vmem [shape: f32[1,512], index: 4, kind: input, shape index: {}]   ;;  %s32813_s5 = inlined_call_operand.vmem [shape: bf16[512,784], index: 5, kind: input, shape index: {}]   ;;  %s32814_s6 = inlined_call_operand.vmem [shape: f32[1,784], index: 6, kind: input, shape index: {}]   ;;  %s32815_s7 = inlined_call_operand.vmem [shape: f32[784,16], index: 7, kind: input, shape index: {}]   ;;  %s32816_s8 = inlined_call_operand.vmem [shape: f32[16,784], index: 8, kind: input, shape index: {}]   ;;  %s32817_s9 = inlined_call_operand.vmem [shape: f32[1,16], index: 9, kind: input, shape index: {}]   ;;  %s32818_s10 = inlined_call_operand.vmem [shape: f32[1,16], index: 10, kind: input, shape index: {}]   ;;  %s32819_s11 = inlined_call_operand.vmem [shape: bf16[784,1800], index: 11, kind: input, shape index: {}]   ;;  %s32820_s12 = inlined_call_operand.vmem [shape: f32[1,1800], index: 12, kind: input, shape index: {}]   ;;  %s32821_s13 = inlined_call_operand.vmem [shape: f32[1800,8], index: 13, kind: input, shape index: {}]   ;;  %s32822_s14 = inlined_call_operand.vmem [shape: f32[8,1800], index: 14, kind: input, shape index: {}]   ;;  %s32823_s15 = inlined_call_operand.vmem [shape: f32[1,8], index: 15, kind: input, shape index: {}]   ;;  %s32824_s16 = inlined_call_operand.vmem [shape: f32[1,8], index: 16, kind: input, shape index: {}]   ;;  %s32825_s17 = inlined_call_operand.vmem [shape: bf16[1800,784], index: 17, kind: input, shape index: {}]   ;;  %s32826_s18 = inlined_call_operand.vmem [shape: f32[1,784], index: 18, kind: input, shape index: {}]   ;;  %s32827_s19 = inlined_call_operand.hbm [shape: f32[2,784], index: 19, kind: output, shape index: {}]  }
   0x1   :  { %32924 = sst [smem:[#allocation85_spill]] %s32808_s0 }
   0x2   :  { %32925 = sst [smem:[#allocation86_spill]] %s32809_s1 }
   0x3   :  { %32926 = sst [smem:[#allocation87_spill]] %s32811_s3 }
   0x4   :  { %s32927_s0 = sld [smem:[#allocation86_spill]]  ;;  %v32829_v2 = vmov 0   ;;  %s32928_s24 = sld [smem:[#allocation85_spill]]  ;;  %v22454_v8 = vld [vmem:[%s32813_s5 + $0x4] ss:$28 sps:$4 sm:$0xff]   ;;  %vm114_vm0 = vcmask 261120  }
   0x5   :  { %150 = vmatprep.mubr.bf16.mxu0 %v32829_v2  ;;  %1777 = vmatprep.subr.bf16.mxu1 %v22454_v8  ;;  %v22459_v11 = vld [vmem:[%s32813_s5] ss:$28 sps:$4 sm:$0xff]   ;;  %v22465_v14 = vld [vmem:[%s32813_s5 + $0x38] ss:$28 sps:$4 sm:$0xff]   ;;  %v22471_v17 = vld [vmem:[%s32813_s5 + $0x70] ss:$28 sps:$4 sm:$0xff]  }
   0x6   :  { %v22460_v12 = vld [vmem:[%s32813_s5 + $0x3c] ss:$28 sps:$4 sm:$0xff]   ;;  %1778 = vmatpush1.bf16.msra.mxu1 %v22459_v11  ;;  %v22466_v15 = vld [vmem:[%s32813_s5 + $0x74] ss:$28 sps:$4 sm:$0xff]   ;;  %v22472_v19 = vld [vmem:[%s32813_s5 + $0xac] ss:$28 sps:$4 sm:$0xff]  }
   0x7   :  { %v22458_v16 = vld [vmem:[%s32813_s5 + $0x14] ss:$28 sps:$4 sm:$0xff]   ;;  %1779 = vmatprep.subr.bf16.mxu1 %v22460_v12  ;;  %v22464_v20 = vld [vmem:[%s32813_s5 + $0x4c] ss:$28 sps:$4 sm:$0xff]   ;;  %v22470_v22 = vld [vmem:[%s32813_s5 + $0x84] ss:$28 sps:$4 sm:$0xff]  }
   0x8   :  { %v22456_v18 = vld [vmem:[%s32813_s5 + $0x10] ss:$28 sps:$4 sm:$0xff]   ;;  %v22462_v21 = vld [vmem:[%s32813_s5 + $0x48] ss:$28 sps:$4 sm:$0xff]   ;;  %v22483_v25 = vld [vmem:[%s32813_s5 + $0xe0] ss:$28 sps:$4 sm:$0xff]  }
   0x9   :  { %v22477_v23 = vld [vmem:[%s32813_s5 + $0xa8] ss:$28 sps:$4 sm:$0xff]   ;;  %v22468_v26 = vld [vmem:[%s32813_s5 + $0x80] ss:$28 sps:$4 sm:$0xff]   ;;  %v22474_v28 = vld [vmem:[%s32813_s5 + $0xb8] ss:$28 sps:$4 sm:$0xff]  }
   0xa   :  { %v22442_v0 = vld [vmem:[%s32927_s0 + $0x4] ss:$16 sps:$4 sm:$0xff]   ;;  %v22444_v1 = vld [vmem:[%s32927_s0] ss:$16 sps:$4 sm:$0xff]   ;;  %v22450_v6 = vld [vmem:[%s32927_s0 + $0xc] ss:$16 sps:$4 sm:$0xff]   ;;  %1780 = vmatpush1.bf16.msra.mxu1 %v22465_v14 }
   0xb   :  { %118 = vmatprep.subr.bf16.mxu0 %v22442_v0  ;;  %v22445_v3 = vld [vmem:[%s32927_s0 + $0x24] ss:$16 sps:$4 sm:$0xff]   ;;  %v22447_v4 = vld [vmem:[%s32927_s0 + $0x20] ss:$16 sps:$4 sm:$0xff]   ;;  %v22448_v9 = vld [vmem:[%s32927_s0 + $0x8] ss:$16 sps:$4 sm:$0xff]   ;;  %1781 = vmatprep.subr.bf16.mxu1 %v22466_v15 }
   0xc   :  { %119 = vmatpush1.bf16.msra.mxu0 %v22444_v1  ;;  %v64_v5 = vld [vmem:[%s32928_s24] sm:$0x3]  ;;  %v22453_v10 = vld [vmem:[%s32927_s0 + $0x2c] ss:$16 sps:$4 sm:$0xff]   ;;  %v22451_v13 = vld [vmem:[%s32927_s0 + $0x28] ss:$16 sps:$4 sm:$0xff]  }
   0xd   :  { %120 = vmatprep.subr.bf16.mxu0 %v22445_v3  ;;  %v65_v7 = vpack.c.bf16 %v64_v5, %v64_v5  ;;  %v22478_v24 = vld [vmem:[%s32813_s5 + $0xe4] ss:$28 sps:$4 sm:$0xff]   ;;  %v22476_v27 = vld [vmem:[%s32813_s5 + $0xbc] ss:$28 sps:$4 sm:$0xff]   ;;  %v22482_v29 = vld [vmem:[%s32813_s5 + $0xf4] ss:$28 sps:$4 sm:$0xff]  }
   0xe   :  { %1782 = vmatpush1.bf16.msra.mxu1 %v22471_v17  ;;  %v22480_v30 = vld [vmem:[%s32813_s5 + $0xf0] ss:$28 sps:$4 sm:$0xff]   ;;  %v22484_v31 = vld [vmem:[%s32813_s5 + $0x11c] ss:$28 sps:$4 sm:$0xff]   ;;  %v22486_v33 = vld [vmem:[%s32813_s5 + $0x128] ss:$28 sps:$4 sm:$0xff]  }
   0xf   :  { %1783 = vmatprep.subr.bf16.mxu1 %v22472_v19  ;;  %v22488_v32 = vld [vmem:[%s32813_s5 + $0x12c] ss:$28 sps:$4 sm:$0xff]   ;;  %v22489_v34 = vld [vmem:[%s32813_s5 + $0x118] ss:$28 sps:$4 sm:$0xff]   ;;  %v22494_v36 = vld [vmem:[%s32813_s5 + $0x164] ss:$28 sps:$4 sm:$0xff]  }
  0x10   :  { %121 = vmatpush1.bf16.msra.mxu0 %v22447_v4  ;;  %v22490_v35 = vld [vmem:[%s32813_s5 + $0x154] ss:$28 sps:$4 sm:$0xff]   ;;  %v22492_v37 = vld [vmem:[%s32813_s5 + $0x160] ss:$28 sps:$4 sm:$0xff]   ;;  %v22496_v39 = vld [vmem:[%s32813_s5 + $0x18c] ss:$28 sps:$4 sm:$0xff]  }
  0x11   :  { %159 = vmatprep.subr.bf16.mxu0 %v22450_v6  ;;  %v22495_v38 = vld [vmem:[%s32813_s5 + $0x150] ss:$28 sps:$4 sm:$0xff]   ;;  %v22500_v40 = vld [vmem:[%s32813_s5 + $0x19c] ss:$28 sps:$4 sm:$0xff]   ;;  %v22501_v42 = vld [vmem:[%s32813_s5 + $0x188] ss:$28 sps:$4 sm:$0xff]  }
  0x12   :  { %1784 = vmatpush1.bf16.msra.mxu1 %v22477_v23  ;;  %v22498_v41 = vld [vmem:[%s32813_s5 + $0x198] ss:$28 sps:$4 sm:$0xff]   ;;  %v22502_v43 = vld [vmem:[%s32813_s5 + $0x1c4] ss:$28 sps:$4 sm:$0xff]   ;;  %v22504_v45 = vld [vmem:[%s32813_s5 + $0x1d0] ss:$28 sps:$4 sm:$0xff]  }
  0x13   :  { %18726 = vmatmul.mubr.msk.bf16.vlgmr.msra.gmra.mrb[0].mxu0 %vm114_vm0, %v65_v7  ;;  %1785 = vmatprep.subr.bf16.mxu1 %v22478_v24  ;;  %v22506_v44 = vld [vmem:[%s32813_s5 + $0x1d4] ss:$28 sps:$4 sm:$0xff]   ;;  %v22507_v46 = vld [vmem:[%s32813_s5 + $0x1c0] ss:$28 sps:$4 sm:$0xff]   ;;  %v22512_v48 = vld [vmem:[%s32813_s5 + $0x20c] ss:$28 sps:$4 sm:$0xff]  }
  0x14   :  { %160 = vmatpush1.bf16.msra.mxu0 %v22448_v9  ;;  %191 = vmatprep.mubr.bf16.mxu0 %v32829_v2  ;;  %v22508_v47 = vld [vmem:[%s32813_s5 + $0x1fc] ss:$28 sps:$4 sm:$0xff]   ;;  %v22510_v49 = vld [vmem:[%s32813_s5 + $0x208] ss:$28 sps:$4 sm:$0xff]   ;;  %v22514_v51 = vld [vmem:[%s32813_s5 + $0x234] ss:$28 sps:$4 sm:$0xff]  }
  0x15   :  { %161 = vmatprep.subr.bf16.mxu0 %v22453_v10  ;;  %v22513_v50 = vld [vmem:[%s32813_s5 + $0x1f8] ss:$28 sps:$4 sm:$0xff]   ;;  %v22518_v52 = vld [vmem:[%s32813_s5 + $0x244] ss:$28 sps:$4 sm:$0xff]   ;;  %v22519_v54 = vld [vmem:[%s32813_s5 + $0x230] ss:$28 sps:$4 sm:$0xff]  }
  0x16   :  { %1786 = vmatpush1.bf16.msra.mxu1 %v22483_v25  ;;  %v22516_v53 = vld [vmem:[%s32813_s5 + $0x240] ss:$28 sps:$4 sm:$0xff]   ;;  %v22520_v55 = vld [vmem:[%s32813_s5 + $0x26c] ss:$28 sps:$4 sm:$0xff]   ;;  %v22522_v57 = vld [vmem:[%s32813_s5 + $0x278] ss:$28 sps:$4 sm:$0xff]  }
  0x17   :  { %1787 = vmatprep.subr.bf16.mxu1 %v22484_v31  ;;  %v22524_v56 = vld [vmem:[%s32813_s5 + $0x27c] ss:$28 sps:$4 sm:$0xff]   ;;  %v22525_v58 = vld [vmem:[%s32813_s5 + $0x268] ss:$28 sps:$4 sm:$0xff]   ;;  %v22530_v60 = vld [vmem:[%s32813_s5 + $0x2b4] ss:$28 sps:$4 sm:$0xff]  }
  0x18   :  { %162 = vmatpush1.bf16.msra.mxu0 %v22451_v13  ;;  %v22526_v59 = vld [vmem:[%s32813_s5 + $0x2a4] ss:$28 sps:$4 sm:$0xff]   ;;  %v22528_v61 = vld [vmem:[%s32813_s5 + $0x2b0] ss:$28 sps:$4 sm:$0xff]   ;;  %v22532_v63 = vld [vmem:[%s32813_s5 + $0x2dc] ss:$28 sps:$4 sm:$0xff]  }
  0x19   :  { %1941 = vmatprep.subr.bf16.mxu0 %v22458_v16  ;;  %v22531_v62 = vld [vmem:[%s32813_s5 + $0x2a0] ss:$28 sps:$4 sm:$0xff]   ;;  %v22536_v0 = vld [vmem:[%s32813_s5 + $0x2ec] ss:$28 sps:$4 sm:$0xff]   ;;  %v22537_v3 = vld [vmem:[%s32813_s5 + $0x2d8] ss:$28 sps:$4 sm:$0xff]  }
  0x1a   :  { %1788 = vmatpush1.bf16.msra.mxu1 %v22489_v34  ;;  %v22534_v1 = vld [vmem:[%s32813_s5 + $0x2e8] ss:$28 sps:$4 sm:$0xff]   ;;  %v22538_v4 = vld [vmem:[%s32813_s5 + $0x314] ss:$28 sps:$4 sm:$0xff]   ;;  %v22540_v6 = vld [vmem:[%s32813_s5 + $0x320] ss:$28 sps:$4 sm:$0xff]  }
  0x1b   :  { %18727 = vmatmul.mubr.msk.bf16.vlgmr.msra.gmra.mrb[4].mxu0 %vm114_vm0, %v65_v7  ;;  %1789 = vmatprep.subr.bf16.mxu1 %v22490_v35  ;;  %v22542_v5 = vld [vmem:[%s32813_s5 + $0x324] ss:$28 sps:$4 sm:$0xff]   ;;  %v22543_v7 = vld [vmem:[%s32813_s5 + $0x310] ss:$28 sps:$4 sm:$0xff]   ;;  %v22548_v9 = vld [vmem:[%s32813_s5 + $0x35c] ss:$28 sps:$4 sm:$0xff]  }
  0x1c   :  { %1942 = vmatpush1.bf16.msra.mxu0 %v22456_v18  ;;  %v22544_v8 = vld [vmem:[%s32813_s5 + $0x34c] ss:$28 sps:$4 sm:$0xff]   ;;  %v22546_v10 = vld [vmem:[%s32813_s5 + $0x358] ss:$28 sps:$4 sm:$0xff]   ;;  %v22552_v12 = vld [vmem:[%s32813_s5 + $0x384] ss:$28 sps:$4 sm:$0xff]  }
  0x1d   :  { %1943 = vmatprep.subr.bf16.mxu0 %v22464_v20  ;;  %v22549_v11 = vld [vmem:[%s32813_s5 + $0x348] ss:$28 sps:$4 sm:$0xff]   ;;  %v22555_v13 = vld [vmem:[%s32813_s5 + $0x394] ss:$28 sps:$4 sm:$0xff]   ;;  %vm200_vm1 = vcmask 1041408   ;;  %s32930_s29 = sld [smem:[#allocation87_spill]] }
  0x1e   :  { %1790 = vmatpush1.bf16.msra.mxu1 %v22495_v38  ;;  %vm25045_vm2 = vmmov 0   ;;  %vm2145_vm3 = vcmask 123904   ;;  %vm2307_vm4 = vcmask 130048  }
  0x1f   :  { %1791 = vmatprep.subr.bf16.mxu1 %v22496_v39 }
  0x20   :  { %1944 = vmatpush1.bf16.msra.mxu0 %v22462_v21 }
  0x21   :  { %1945 = vmatprep.subr.bf16.mxu0 %v22470_v22 }
  0x22   :  { %1792 = vmatpush1.bf16.msra.mxu1 %v22501_v42 }
  0x23   :  { %1793 = vmatprep.subr.bf16.mxu1 %v22502_v43 }
  0x24   :  { %1946 = vmatpush1.bf16.msra.mxu0 %v22468_v26 }
  0x25   :  { %1947 = vmatprep.subr.bf16.mxu0 %v22476_v27 }
  0x26   :  { %1794 = vmatpush1.bf16.msra.mxu1 %v22507_v46 }
  0x27   :  { %1795 = vmatprep.subr.bf16.mxu1 %v22508_v47 }
  0x28   :  { %1948 = vmatpush1.bf16.msra.mxu0 %v22474_v28 }
  0x29   :  { %1949 = vmatprep.subr.bf16.mxu0 %v22482_v29 }
  0x2a   :  { %1796 = vmatpush1.bf16.msra.mxu1 %v22513_v50 }
  0x2b   :  { %1797 = vmatprep.subr.bf16.mxu1 %v22514_v51 }
  0x2c   :  { %1950 = vmatpush1.bf16.msra.mxu0 %v22480_v30 }
  0x2d   :  { %1951 = vmatprep.subr.bf16.mxu0 %v22488_v32 }
  0x2e   :  { %1798 = vmatpush1.bf16.msra.mxu1 %v22519_v54 }
  0x2f   :  { %1799 = vmatprep.subr.bf16.mxu1 %v22520_v55 }
  0x30   :  { %1952 = vmatpush1.bf16.msra.mxu0 %v22486_v33 }
  0x31   :  { %1953 = vmatprep.subr.bf16.mxu0 %v22494_v36 }
  0x32   :  { %1800 = vmatpush1.bf16.msra.mxu1 %v22525_v58 }
  0x33   :  { %1801 = vmatprep.subr.bf16.mxu1 %v22526_v59 }
  0x34   :  { %1954 = vmatpush1.bf16.msra.mxu0 %v22492_v37 }
  0x35   :  { %1955 = vmatprep.subr.bf16.mxu0 %v22500_v40 }
  0x36   :  { %1802 = vmatpush1.bf16.msra.mxu1 %v22531_v62 }
  0x37   :  { %1803 = vmatprep.subr.bf16.mxu1 %v22532_v63 }
  0x38   :  { %1956 = vmatpush1.bf16.msra.mxu0 %v22498_v41 }
  0x39   :  { %1957 = vmatprep.subr.bf16.mxu0 %v22506_v44 }
  0x3a   :  { %1804 = vmatpush1.bf16.msra.mxu1 %v22537_v3 }
  0x3b   :  { %1805 = vmatprep.subr.bf16.mxu1 %v22538_v4 }
  0x3c   :  { %1958 = vmatpush1.bf16.msra.mxu0 %v22504_v45 }
  0x3d   :  { %1959 = vmatprep.subr.bf16.mxu0 %v22512_v48 }
  0x3e   :  { %1806 = vmatpush1.bf16.msra.mxu1 %v22543_v7 }
  0x3f   :  { %1807 = vmatprep.subr.bf16.mxu1 %v22544_v8  ;;  %v291_v8 = vlaneseq }
  0x40   :  { %1960 = vmatpush1.bf16.msra.mxu0 %v22510_v49 }
  0x41   :  { %1961 = vmatprep.subr.bf16.mxu0 %v22518_v52 }
  0x42   :  { %1808 = vmatpush1.bf16.msra.mxu1 %v22549_v11 }
  0x43   :  { %1818 = vmatprep.subr.bf16.mxu1 %v22552_v12 }
  0x44   :  { %1962 = vmatpush1.bf16.msra.mxu0 %v22516_v53 }
  0x45   :  { %1963 = vmatprep.subr.bf16.mxu0 %v22524_v56 }
  0x48   :  { %1964 = vmatpush1.bf16.msra.mxu0 %v22522_v57 }
  0x49   :  { %1965 = vmatprep.subr.bf16.mxu0 %v22530_v60 }
  0x4c   :  { %1966 = vmatpush1.bf16.msra.mxu0 %v22528_v61 }
  0x4d   :  { %1967 = vmatprep.subr.bf16.mxu0 %v22536_v0 }
  0x50   :  { %1968 = vmatpush1.bf16.msra.mxu0 %v22534_v1 }
  0x51   :  { %1969 = vmatprep.subr.bf16.mxu0 %v22542_v5 }
  0x54   :  { %1970 = vmatpush1.bf16.msra.mxu0 %v22540_v6 }
  0x55   :  { %1971 = vmatprep.subr.bf16.mxu0 %v22548_v9 }
  0x58   :  { %1972 = vmatpush1.bf16.msra.mxu0 %v22546_v10 }
  0x59   :  { %1982 = vmatprep.subr.bf16.mxu0 %v22555_v13 }
  0xe6   :  { %v25378_v14 = vpop.f32.mrb[0].mxu0 }
  0xe7   :  { %v201_v15 = vsel %vm200_vm1, %v25378_v14, 0.0  ;;  %v229_v16 = vmul.f32 %v25378_v14, %v25378_v14  ;;  %v25384_v17 = vpop.f32.mrb[1].mxu0 }
  0xe8   :  { %v202_v18 = vrot.slane %v201_v15, 4  ;;  %v208_v19 = vsel %vm200_vm1, %v25384_v17, 0.0  ;;  %v230_v20 = vmul.f32 %v25384_v17, %v25384_v17  ;;  %v156_v21 = vpop.f32.mrb[2].mxu0 }
  0xe9   :  { %v233_v22 = vsel %vm200_vm1, %v229_v16, 0.0  ;;  %v209_v23 = vrot.slane %v208_v19, 4  ;;  %v157_v24 = vpop.f32.mrb[3].mxu0 }
  0xea   :  { %v203_v25 = vadd.f32 %v202_v18, %v201_v15  ;;  %v234_v26 = vrot.slane %v233_v22, 4  ;;  %v240_v27 = vsel %vm200_vm1, %v230_v20, 0.0  ;;  %v25410_v24 = vshrl.u32 %v291_v8, 7 }
  0xeb   :  { %v210_v28 = vadd.f32 %v209_v23, %v208_v19  ;;  %v241_v29 = vrot.slane %v240_v27, 4 }
  0xec   :  { %v204_v30 = vrot.slane %v203_v25, 2  ;;  %v235_v31 = vadd.f32 %v234_v26, %v233_v22  ;;  %32929 = vst [vmem:[#allocation5_spill] sm:$0xff] %v25410_v24 }
  0xed   :  { %v211_v32 = vrot.slane %v210_v28, 2  ;;  %v242_v33 = vadd.f32 %v241_v29, %v240_v27 }
  0xee   :  { %v205_v34 = vadd.f32 %v204_v30, %v203_v25  ;;  %v236_v35 = vrot.slane %v235_v31, 2  ;;  %v25392_v36 = vpop.f32.mrb[4].mxu0 }
  0xef   :  { %v212_v37 = vadd.f32 %v211_v32, %v210_v28  ;;  %v243_v38 = vrot.slane %v242_v33, 2  ;;  %v215_v39 = vsel %vm200_vm1, %v25392_v36, 0.0  ;;  %v231_v40 = vmul.f32 %v25392_v36, %v25392_v36  ;;  %v25398_v41 = vpop.f32.mrb[5].mxu0 }
  0xf0   :  { %v206_v42 = vrot.slane %v205_v34, 1  ;;  %v237_v43 = vadd.f32 %v236_v35, %v235_v31  ;;  %v216_v44 = vrot.slane %v215_v39, 4  ;;  %v222_v45 = vsel %vm200_vm1, %v25398_v41, 0.0  ;;  %v197_v46 = vpop.f32.mrb[6].mxu0  ;;  %v289_v31 = vld [vmem:[%s32930_s29] sm:$0xf] }
  0xf1   :  { %v213_v47 = vrot.slane %v212_v37, 1  ;;  %v244_v48 = vadd.f32 %v243_v38, %v242_v33  ;;  %v247_v49 = vsel %vm200_vm1, %v231_v40, 0.0  ;;  %v223_v50 = vrot.slane %v222_v45, 4  ;;  %v198_v51 = vpop.f32.mrb[7].mxu0 }
  0xf2   :  { %v207_v52 = vadd.f32 %v206_v42, %v205_v34  ;;  %v238_v53 = vrot.slane %v237_v43, 1  ;;  %v217_v54 = vadd.f32 %v216_v44, %v215_v39  ;;  %v248_v55 = vrot.slane %v247_v49, 4 }
  0xf3   :  { %v214_v56 = vadd.f32 %v213_v47, %v212_v37  ;;  %v245_v57 = vrot.slane %v244_v48, 1  ;;  %v224_v58 = vadd.f32 %v223_v50, %v222_v45  ;;  %v232_v59 = vmul.f32 %v25398_v41, %v25398_v41 }
  0xf4   :  { %v239_v60 = vadd.f32 %v238_v53, %v237_v43  ;;  %v25405_v61 = vmul.f32 0.5, %v207_v52  ;;  %v218_v62 = vrot.slane %v217_v54, 2  ;;  %v249_v63 = vadd.f32 %v248_v55, %v247_v49  ;;  %v335_v49 = vld [vmem:[%s32812_s4] sm:$0xf] }
  0xf5   :  { %v246_v0 = vadd.f32 %v245_v57, %v244_v48  ;;  %v262_v1 = vmul.f32 0.5, %v214_v56  ;;  %v225_v3 = vrot.slane %v224_v58, 2  ;;  %v254_v4 = vsel %vm200_vm1, %v232_v59, 0.0 }
  0xf6   :  { %v265_v5 = vmul.f32 0.5, %v239_v60  ;;  %v269_v6 = vmul.f32 %v25405_v61, %v25405_v61  ;;  %v219_v7 = vadd.f32 %v218_v62, %v217_v54  ;;  %v250_v11 = vrot.slane %v249_v63, 2 }
  0xf7   :  { %v266_v9 = vmul.f32 0.5, %v246_v0  ;;  %v270_v10 = vmul.f32 %v262_v1, %v262_v1  ;;  %v226_v15 = vadd.f32 %v225_v3, %v224_v58  ;;  %v255_v16 = vrot.slane %v254_v4, 4 }
  0xf8   :  { %v273_v12 = vsub.f32 %v265_v5, %v269_v6  ;;  %v220_v13 = vrot.slane %v219_v7, 1  ;;  %v251_v19 = vadd.f32 %v250_v11, %v249_v63  ;;  %v25418_v35 = vsub.s32 0, %v25410_v24  ;;  %v22558_v11 = vld [vmem:[%s32813_s5 + $0x3bc] ss:$28 sps:$4 sm:$0xff]  }
  0xf9   :  { %v274_v18 = vsub.f32 %v266_v9, %v270_v10  ;;  %v227_v22 = vrot.slane %v226_v15, 1  ;;  %v256_v23 = vadd.f32 %v255_v16, %v254_v4  ;;  %v25421_v38 = vsub.s32 1, %v25410_v24  ;;  %v22553_v9 = vld [vmem:[%s32813_s5 + $0x390] ss:$28 sps:$4 sm:$0xff]  }
  0xfa   :  { %v281_v20 = vadd.f32 1e-05, %v273_v12  ;;  %v221_v21 = vadd.f32 %v220_v13, %v219_v7  ;;  %v252_v26 = vrot.slane %v251_v19, 1  ;;  %32931 = vst [vmem:[#allocation6_spill] sm:$0xff] %v25418_v35  ;;  %v294_v44 = vrot.slane %v289_v31, %v25418_v35  ;;  %v22561_v16 = vld [vmem:[%s32813_s5 + $0x3cc] ss:$28 sps:$4 sm:$0xff]  }
  0xfb   :  { %v282_v25 = vadd.f32 1e-05, %v274_v18  ;;  %v228_v28 = vadd.f32 %v227_v22, %v226_v15  ;;  %v257_v29 = vrot.slane %v256_v23, 2  ;;  %32932 = vst [vmem:[#allocation7_spill] sm:$0xff] %v25421_v38  ;;  %v298_v46 = vrot.slane %v289_v31, %v25421_v38 }
  0xfc   :  { %24979 = vrsqrt.f32 %v281_v20  ;;  %v263_v27 = vmul.f32 0.5, %v221_v21  ;;  %v253_v30 = vadd.f32 %v252_v26, %v251_v19  ;;  %v25431_v54 = vsub.s32 2, %v25410_v24  ;;  %v22556_v20 = vld [vmem:[%s32813_s5 + $0x3b8] ss:$28 sps:$4 sm:$0xff]   ;;  %v22559_v21 = vld [vmem:[%s32813_s5 + $0x3c8] ss:$28 sps:$4 sm:$0xff]  }
  0xfd   :  { %24981 = vrsqrt.f32 %v282_v25  ;;  %v258_v33 = vadd.f32 %v257_v29, %v256_v23  ;;  %v25415_v34 = vmul.f32 0.5, %v228_v28  ;;  %v277_v56 = vsub.f32 %v25378_v14, %v25405_v61  ;;  %v22564_v26 = vld [vmem:[%s32813_s5 + $0x3f4] ss:$28 sps:$4 sm:$0xff]  }
  0xfe   :  { %v271_v32 = vmul.f32 %v263_v27, %v263_v27  ;;  %v267_v37 = vmul.f32 0.5, %v253_v30  ;;  %32933 = vst [vmem:[#allocation8_spill] sm:$0xff] %v25431_v54  ;;  %v340_v58 = vrot.slane %v335_v49, %v25418_v35  ;;  %v278_v59 = vsub.f32 %v25384_v17, %v262_v1  ;;  %v22550_v1 = vld [vmem:[%s32813_s5 + $0x380] ss:$28 sps:$4 sm:$0xff]   ;;  %v22562_v29 = vld [vmem:[%s32813_s5 + $0x3f0] ss:$28 sps:$4 sm:$0xff]  }
  0xff   :  { %v259_v39 = vrot.slane %v258_v33, 1  ;;  %v272_v43 = vmul.f32 %v25415_v34, %v25415_v34  ;;  %v344_v62 = vrot.slane %v335_v49, %v25421_v38  ;;  %v302_v3 = vrot.slane %v289_v31, %v25431_v54  ;;  %v22565_v30 = vld [vmem:[%s32813_s5 + $0x400] ss:$28 sps:$4 sm:$0xff]  }
 0x100   :  { %v275_v40 = vsub.f32 %v267_v37, %v271_v32  ;;  %v25442_v5 = vsub.s32 3, %v25410_v24  ;;  %v279_v7 = vsub.f32 %v25392_v36, %v263_v27  ;;  %v348_v36 = vrot.slane %v335_v49, %v25431_v54  ;;  %v22567_v27 = vld [vmem:[%s32813_s5 + $0x404] ss:$28 sps:$4 sm:$0xff]   ;;  %v22570_v32 = vld [vmem:[%s32813_s5 + $0x42c] ss:$28 sps:$4 sm:$0xff]  }
 0x101   :  { %v260_v42 = vadd.f32 %v259_v39, %v258_v33  ;;  %v280_v22 = vsub.f32 %v25398_v41, %v25415_v34  ;;  %v22573_v33 = vld [vmem:[%s32813_s5 + $0x43c] ss:$28 sps:$4 sm:$0xff]   ;;  %v22568_v37 = vld [vmem:[%s32813_s5 + $0x428] ss:$28 sps:$4 sm:$0xff]   ;;  %v32835_v24 = vmov 0.0  }
 0x102   :  { %v283_v45 = vadd.f32 1e-05, %v275_v40  ;;  %32934 = vst [vmem:[#allocation9_spill] sm:$0xff] %v25442_v5  ;;  %v306_v10 = vrot.slane %v289_v31, %v25442_v5  ;;  %v352_v41 = vrot.slane %v335_v49, %v25442_v5  ;;  %v22571_v39 = vld [vmem:[%s32813_s5 + $0x438] ss:$28 sps:$4 sm:$0xff]  }
 0x103   :  { %v268_v47 = vmul.f32 0.5, %v260_v42  ;;  %v22576_v42 = vld [vmem:[%s32813_s5 + $0x464] ss:$28 sps:$4 sm:$0xff]   ;;  %v22580_v49 = vld [vmem:[%s32813_s5 + $0x498] ss:$28 sps:$4 sm:$0xff]  }
 0x104   :  { %24983 = vrsqrt.f32 %v283_v45  ;;  %v22574_v45 = vld [vmem:[%s32813_s5 + $0x460] ss:$28 sps:$4 sm:$0xff]  }
 0x105   :  { %v276_v50 = vsub.f32 %v268_v47, %v272_v43  ;;  %v22579_v43 = vld [vmem:[%s32813_s5 + $0x474] ss:$28 sps:$4 sm:$0xff]   ;;  %v22582_v47 = vld [vmem:[%s32813_s5 + $0x49c] ss:$28 sps:$4 sm:$0xff]  }
 0x106   :  { %v24980_v48 = vpop.eup %24979 }
 0x107   :  { %v24982_v51 = vpop.eup %24981  ;;  %v311_v52 = vmul.f32 %v24980_v48, %v294_v44  ;;  %v284_v55 = vadd.f32 1e-05, %v276_v50  ;;  %v22585_v48 = vld [vmem:[%s32813_s5 + $0x4ac] ss:$28 sps:$4 sm:$0xff]  }
 0x108   :  { %v312_v53 = vmul.f32 %v24982_v51, %v298_v46  ;;  %v22577_v46 = vld [vmem:[%s32813_s5 + $0x470] ss:$28 sps:$4 sm:$0xff]   ;;  %v22583_v50 = vld [vmem:[%s32813_s5 + $0x4a8] ss:$28 sps:$4 sm:$0xff]  }
 0x109   :  { %v318_v57 = vrot.slane %v311_v52, %v25418_v35  ;;  %24985 = vrsqrt.f32 %v284_v55  ;;  %v22588_v51 = vld [vmem:[%s32813_s5 + $0x4d4] ss:$28 sps:$4 sm:$0xff]   ;;  %v22591_v52 = vld [vmem:[%s32813_s5 + $0x4e4] ss:$28 sps:$4 sm:$0xff]  }
 0x10a   :  { %v322_v60 = vrot.slane %v312_v53, %v25418_v35  ;;  %v22586_v53 = vld [vmem:[%s32813_s5 + $0x4d0] ss:$28 sps:$4 sm:$0xff]   ;;  %v22589_v55 = vld [vmem:[%s32813_s5 + $0x4e0] ss:$28 sps:$4 sm:$0xff]  }
 0x10b   :  { %v331_v63 = vmul.f32 %v318_v57, %v277_v56  ;;  %v22594_v56 = vld [vmem:[%s32813_s5 + $0x50c] ss:$28 sps:$4 sm:$0xff]   ;;  %v22597_v57 = vld [vmem:[%s32813_s5 + $0x51c] ss:$28 sps:$4 sm:$0xff]  }
 0x10c   :  { %v332_v0 = vmul.f32 %v322_v60, %v278_v59  ;;  %v22595_v59 = vld [vmem:[%s32813_s5 + $0x518] ss:$28 sps:$4 sm:$0xff]   ;;  %v22600_v60 = vld [vmem:[%s32813_s5 + $0x544] ss:$28 sps:$4 sm:$0xff]  }
 0x10d   :  { %v357_v4 = vadd.f32 %v340_v58, %v331_v63  ;;  %v22592_v58 = vld [vmem:[%s32813_s5 + $0x508] ss:$28 sps:$4 sm:$0xff]   ;;  %v22598_v63 = vld [vmem:[%s32813_s5 + $0x540] ss:$28 sps:$4 sm:$0xff]  }
 0x10e   :  { %v358_v14 = vadd.f32 %v344_v62, %v332_v0  ;;  %v24984_v61 = vpop.eup %24983  ;;  %v22603_v62 = vld [vmem:[%s32813_s5 + $0x554] ss:$28 sps:$4 sm:$0xff]  }
 0x10f   :  { %v361_v6 = vmax.f32 %v357_v4, 0.0  ;;  %v313_v8 = vmul.f32 %v24984_v61, %v302_v3  ;;  %v22601_v0 = vld [vmem:[%s32813_s5 + $0x550] ss:$28 sps:$4 sm:$0xff]   ;;  %v22606_v3 = vld [vmem:[%s32813_s5 + $0x57c] ss:$28 sps:$4 sm:$0xff]  }
 0x110   :  { %v362_v17 = vmax.f32 %v358_v14, 0.0  ;;  %v22609_v4 = vld [vmem:[%s32813_s5 + $0x58c] ss:$28 sps:$4 sm:$0xff]   ;;  %v22604_v14 = vld [vmem:[%s32813_s5 + $0x578] ss:$28 sps:$4 sm:$0xff]  }
 0x111   :  { %v326_v12 = vrot.slane %v313_v8, %v25418_v35  ;;  %v25459_v15 = vpack.c.bf16 %v361_v6, %v361_v6  ;;  %v22607_v61 = vld [vmem:[%s32813_s5 + $0x588] ss:$28 sps:$4 sm:$0xff]   ;;  %v22612_v6 = vld [vmem:[%s32813_s5 + $0x5b4] ss:$28 sps:$4 sm:$0xff]  }
 0x112   :  { %v25457_v13 = vpack.c.bf16 %v362_v17, %v362_v17  ;;  %v22610_v8 = vld [vmem:[%s32813_s5 + $0x5b0] ss:$28 sps:$4 sm:$0xff]   ;;  %v22613_v17 = vld [vmem:[%s32813_s5 + $0x5c0] ss:$28 sps:$4 sm:$0xff]  }
 0x113   :  { %v24986_v18 = vpop.eup %24985  ;;  %v333_v19 = vmul.f32 %v326_v12, %v279_v7  ;;  %v22615_v7 = vld [vmem:[%s32813_s5 + $0x5c4] ss:$28 sps:$4 sm:$0xff]  }
 0x114   :  { %1809 = vmatprep.mubr.bf16.mxu1 %v25457_v13  ;;  %1973 = vmatprep.mubr.bf16.mxu0 %v25457_v13  ;;  %v314_v23 = vmul.f32 %v24986_v18, %v306_v10  ;;  %v22616_v10 = vld [vmem:[%s32813_s5 + $0x5e8] ss:$28 sps:$4 sm:$0xff]   ;;  %v22625_v18 = vld [vmem:[%s32813_s5 + $0x630] ss:$28 sps:$4 sm:$0xff]  }
 0x115   :  { %1810 = vmatmul.mubr.bf16.vlgmr.msra.gmra.mrb[0].mxu1 %v25459_v15  ;;  %1974 = vmatmul.mubr.bf16.vlgmr.msra.gmra.mrb[8].mxu0 %v25459_v15  ;;  %v25476_v25 = vadd.f32 %v348_v36, %v333_v19  ;;  %v22624_v12 = vld [vmem:[%s32813_s5 + $0x624] ss:$28 sps:$4 sm:$0xff]   ;;  %v22627_v36 = vld [vmem:[%s32813_s5 + $0x634] ss:$28 sps:$4 sm:$0xff]   ;;  %v22630_v19 = vld [vmem:[%s32813_s5 + $0x65c] ss:$28 sps:$4 sm:$0xff]  }
 0x116   :  { %1819 = vmatpush1.bf16.msra.mxu1 %v22550_v1  ;;  %1983 = vmatpush1.bf16.msra.mxu0 %v22553_v9  ;;  %v330_v28 = vrot.slane %v314_v23, %v25418_v35  ;;  %v22618_v1 = vld [vmem:[%s32813_s5 + $0x5ec] ss:$28 sps:$4 sm:$0xff]   ;;  %v22621_v9 = vld [vmem:[%s32813_s5 + $0x5fc] ss:$28 sps:$4 sm:$0xff]   ;;  %v22636_v23 = vld [vmem:[%s32813_s5 + $0x694] ss:$28 sps:$4 sm:$0xff]  }
 0x117   :  { %1820 = vmatprep.subr.bf16.mxu1 %v22558_v11  ;;  %1984 = vmatprep.subr.bf16.mxu0 %v22561_v16  ;;  %v22619_v11 = vld [vmem:[%s32813_s5 + $0x5f8] ss:$28 sps:$4 sm:$0xff]   ;;  %v22622_v16 = vld [vmem:[%s32813_s5 + $0x620] ss:$28 sps:$4 sm:$0xff]  }
 0x118   :  { %v334_v31 = vmul.f32 %v330_v28, %v280_v22  ;;  %v22631_v22 = vld [vmem:[%s32813_s5 + $0x668] ss:$28 sps:$4 sm:$0xff]   ;;  %v22637_v28 = vld [vmem:[%s32813_s5 + $0x6a0] ss:$28 sps:$4 sm:$0xff]  }
 0x11a   :  { %1821 = vmatpush1.bf16.msra.mxu1 %v22556_v20  ;;  %1985 = vmatpush1.bf16.msra.mxu0 %v22559_v21  ;;  %v360_v34 = vadd.f32 %v352_v41, %v334_v31  ;;  %v22633_v20 = vld [vmem:[%s32813_s5 + $0x66c] ss:$28 sps:$4 sm:$0xff]   ;;  %v22628_v21 = vld [vmem:[%s32813_s5 + $0x658] ss:$28 sps:$4 sm:$0xff]  }
 0x11b   :  { %1822 = vmatprep.subr.bf16.mxu1 %v22564_v26  ;;  %1986 = vmatprep.subr.bf16.mxu0 %v22567_v27  ;;  %v22639_v26 = vld [vmem:[%s32813_s5 + $0x6a4] ss:$28 sps:$4 sm:$0xff]   ;;  %v22634_v27 = vld [vmem:[%s32813_s5 + $0x690] ss:$28 sps:$4 sm:$0xff]   ;;  %v22643_v31 = vld [vmem:[%s32813_s5 + $0x6d8] ss:$28 sps:$4 sm:$0xff]  }
 0x11c   :  { %v364_v40 = vmax.f32 %v360_v34, 0.0  ;;  %v22642_v41 = vld [vmem:[%s32813_s5 + $0x6cc] ss:$28 sps:$4 sm:$0xff]  }
 0x11d   :  { %v22646_v34 = vld [vmem:[%s32813_s5 + $0x8] ss:$28 sps:$4 sm:$0xff]  }
 0x11e   :  { %1823 = vmatpush1.bf16.msra.mxu1 %v22562_v29  ;;  %1987 = vmatpush1.bf16.msra.mxu0 %v22565_v30  ;;  %v25510_v44 = vpack.c.bf16 %v364_v40, %v364_v40  ;;  %v22645_v29 = vld [vmem:[%s32813_s5 + $0x6dc] ss:$28 sps:$4 sm:$0xff]   ;;  %v22640_v30 = vld [vmem:[%s32813_s5 + $0x6c8] ss:$28 sps:$4 sm:$0xff]  }
 0x11f   :  { %1824 = vmatprep.subr.bf16.mxu1 %v22570_v32  ;;  %1988 = vmatprep.subr.bf16.mxu0 %v22573_v33  ;;  %v22648_v32 = vld [vmem:[%s32813_s5 + $0xc] ss:$28 sps:$4 sm:$0xff]   ;;  %v363_v33 = vmax.f32 %v25476_v25, 0.0  ;;  %v22649_v25 = vld [vmem:[%s32813_s5 + $0x40] ss:$28 sps:$4 sm:$0xff]  }
 0x120   :  { %1850 = vmatprep.mubr.bf16.mxu1 %v25510_v44  ;;  %2014 = vmatprep.mubr.bf16.mxu0 %v25510_v44  ;;  %v22654_v40 = vld [vmem:[%s32813_s5 + $0x7c] ss:$28 sps:$4 sm:$0xff]  }
 0x122   :  { %1825 = vmatpush1.bf16.msra.mxu1 %v22568_v37  ;;  %1989 = vmatpush1.bf16.msra.mxu0 %v22571_v39  ;;  %v25659_v37 = vpack.c.bf16 %v363_v33, %v363_v33  ;;  %v22651_v39 = vld [vmem:[%s32813_s5 + $0x44] ss:$28 sps:$4 sm:$0xff]   ;;  %v22703_v33 = vld [vmem:[%s32813_s5 + $0x430] ss:$28 sps:$4 sm:$0xff]  }
 0x123   :  { %1826 = vmatprep.subr.bf16.mxu1 %v22576_v42  ;;  %1990 = vmatprep.subr.bf16.mxu0 %v22579_v43  ;;  %v22652_v42 = vld [vmem:[%s32813_s5 + $0x78] ss:$28 sps:$4 sm:$0xff]  }
 0x124   :  { %v22657_v43 = vld [vmem:[%s32813_s5 + $0xb4] ss:$28 sps:$4 sm:$0xff]  }
 0x126   :  { %1827 = vmatpush1.bf16.msra.mxu1 %v22574_v45  ;;  %1991 = vmatpush1.bf16.msra.mxu0 %v22577_v46  ;;  %v22655_v45 = vld [vmem:[%s32813_s5 + $0xb0] ss:$28 sps:$4 sm:$0xff]  }
 0x127   :  { %1828 = vmatprep.subr.bf16.mxu1 %v22582_v47  ;;  %1992 = vmatprep.subr.bf16.mxu0 %v22585_v48  ;;  %v22660_v46 = vld [vmem:[%s32813_s5 + $0xec] ss:$28 sps:$4 sm:$0xff]   ;;  %v22663_v48 = vld [vmem:[%s32813_s5 + $0x124] ss:$28 sps:$4 sm:$0xff]  }
 0x128   :  { %v22658_v47 = vld [vmem:[%s32813_s5 + $0xe8] ss:$28 sps:$4 sm:$0xff]  }
 0x12a   :  { %1829 = vmatpush1.bf16.msra.mxu1 %v22580_v49  ;;  %1993 = vmatpush1.bf16.msra.mxu0 %v22583_v50  ;;  %v22661_v49 = vld [vmem:[%s32813_s5 + $0x120] ss:$28 sps:$4 sm:$0xff]  }
 0x12b   :  { %1830 = vmatprep.subr.bf16.mxu1 %v22588_v51  ;;  %1994 = vmatprep.subr.bf16.mxu0 %v22591_v52  ;;  %v22666_v50 = vld [vmem:[%s32813_s5 + $0x15c] ss:$28 sps:$4 sm:$0xff]   ;;  %v22669_v52 = vld [vmem:[%s32813_s5 + $0x194] ss:$28 sps:$4 sm:$0xff]  }
 0x12c   :  { %v22664_v51 = vld [vmem:[%s32813_s5 + $0x158] ss:$28 sps:$4 sm:$0xff]  }
 0x12e   :  { %1831 = vmatpush1.bf16.msra.mxu1 %v22586_v53  ;;  %1995 = vmatpush1.bf16.msra.mxu0 %v22589_v55  ;;  %v22667_v53 = vld [vmem:[%s32813_s5 + $0x190] ss:$28 sps:$4 sm:$0xff]  }
 0x12f   :  { %1832 = vmatprep.subr.bf16.mxu1 %v22594_v56  ;;  %1996 = vmatprep.subr.bf16.mxu0 %v22597_v57  ;;  %v22672_v55 = vld [vmem:[%s32813_s5 + $0x1cc] ss:$28 sps:$4 sm:$0xff]   ;;  %v22675_v57 = vld [vmem:[%s32813_s5 + $0x204] ss:$28 sps:$4 sm:$0xff]  }
 0x130   :  { %v22670_v56 = vld [vmem:[%s32813_s5 + $0x1c8] ss:$28 sps:$4 sm:$0xff]  }
 0x132   :  { %1833 = vmatpush1.bf16.msra.mxu1 %v22592_v58  ;;  %1997 = vmatpush1.bf16.msra.mxu0 %v22595_v59  ;;  %v22673_v58 = vld [vmem:[%s32813_s5 + $0x200] ss:$28 sps:$4 sm:$0xff]  }
 0x133   :  { %1834 = vmatprep.subr.bf16.mxu1 %v22600_v60  ;;  %1998 = vmatprep.subr.bf16.mxu0 %v22603_v62  ;;  %v22678_v59 = vld [vmem:[%s32813_s5 + $0x23c] ss:$28 sps:$4 sm:$0xff]   ;;  %v22681_v62 = vld [vmem:[%s32813_s5 + $0x274] ss:$28 sps:$4 sm:$0xff]  }
 0x134   :  { %v22676_v60 = vld [vmem:[%s32813_s5 + $0x238] ss:$28 sps:$4 sm:$0xff]  }
 0x136   :  { %1835 = vmatpush1.bf16.msra.mxu1 %v22598_v63  ;;  %1999 = vmatpush1.bf16.msra.mxu0 %v22601_v0  ;;  %v22679_v63 = vld [vmem:[%s32813_s5 + $0x270] ss:$28 sps:$4 sm:$0xff]  }
 0x137   :  { %1836 = vmatprep.subr.bf16.mxu1 %v22606_v3  ;;  %2000 = vmatprep.subr.bf16.mxu0 %v22609_v4  ;;  %v22684_v0 = vld [vmem:[%s32813_s5 + $0x2ac] ss:$28 sps:$4 sm:$0xff]   ;;  %v22687_v4 = vld [vmem:[%s32813_s5 + $0x2e4] ss:$28 sps:$4 sm:$0xff]  }
 0x138   :  { %v22682_v3 = vld [vmem:[%s32813_s5 + $0x2a8] ss:$28 sps:$4 sm:$0xff]  }
 0x13a   :  { %1837 = vmatpush1.bf16.msra.mxu1 %v22604_v14  ;;  %2001 = vmatpush1.bf16.msra.mxu0 %v22607_v61  ;;  %v22685_v14 = vld [vmem:[%s32813_s5 + $0x2e0] ss:$28 sps:$4 sm:$0xff]  }
 0x13b   :  { %1838 = vmatprep.subr.bf16.mxu1 %v22612_v6  ;;  %2002 = vmatprep.subr.bf16.mxu0 %v22615_v7  ;;  %v22690_v61 = vld [vmem:[%s32813_s5 + $0x31c] ss:$28 sps:$4 sm:$0xff]   ;;  %v22693_v7 = vld [vmem:[%s32813_s5 + $0x354] ss:$28 sps:$4 sm:$0xff]  }
 0x13c   :  { %v22688_v6 = vld [vmem:[%s32813_s5 + $0x318] ss:$28 sps:$4 sm:$0xff]  }
 0x13e   :  { %1839 = vmatpush1.bf16.msra.mxu1 %v22610_v8  ;;  %2003 = vmatpush1.bf16.msra.mxu0 %v22613_v17  ;;  %v22691_v8 = vld [vmem:[%s32813_s5 + $0x350] ss:$28 sps:$4 sm:$0xff]  }
 0x13f   :  { %1840 = vmatprep.subr.bf16.mxu1 %v22618_v1  ;;  %2004 = vmatprep.subr.bf16.mxu0 %v22621_v9  ;;  %v22696_v17 = vld [vmem:[%s32813_s5 + $0x38c] ss:$28 sps:$4 sm:$0xff]   ;;  %v22699_v9 = vld [vmem:[%s32813_s5 + $0x3c4] ss:$28 sps:$4 sm:$0xff]  }
 0x140   :  { %v22694_v1 = vld [vmem:[%s32813_s5 + $0x388] ss:$28 sps:$4 sm:$0xff]  }
 0x142   :  { %1841 = vmatpush1.bf16.msra.mxu1 %v22616_v10  ;;  %2005 = vmatpush1.bf16.msra.mxu0 %v22619_v11  ;;  %v2289_v10 = vld [vmem:[%s32815_s7 + $0x280] sm:$0xff] }
 0x143   :  { %1842 = vmatprep.subr.bf16.mxu1 %v22624_v12  ;;  %2006 = vmatprep.subr.bf16.mxu0 %v22627_v36  ;;  %v22697_v11 = vld [vmem:[%s32813_s5 + $0x3c0] ss:$28 sps:$4 sm:$0xff]   ;;  %v2290_v12 = vld [vmem:[%s32815_s7 + $0x288] sm:$0xff] }
 0x144   :  { %v22702_v36 = vld [vmem:[%s32813_s5 + $0x3fc] ss:$28 sps:$4 sm:$0xff]  }
 0x146   :  { %1843 = vmatpush1.bf16.msra.mxu1 %v22622_v16  ;;  %2007 = vmatpush1.bf16.msra.mxu0 %v22625_v18  ;;  %v25777_v16 = vpack.c.bf16 %v2290_v12, %v2289_v10  ;;  %v2273_v18 = vld [vmem:[%s32815_s7 + $0x200] sm:$0xff]  ;;  %v2286_v12 = vld [vmem:[%s32815_s7 + $0x268] sm:$0xff] }
 0x147   :  { %1844 = vmatprep.subr.bf16.mxu1 %v22630_v19  ;;  %2008 = vmatprep.subr.bf16.mxu0 %v22633_v20  ;;  %v2274_v19 = vld [vmem:[%s32815_s7 + $0x208] sm:$0xff] }
 0x148   :  { %v25785_v20 = vpack.c.bf16 %v2274_v19, %v2273_v18  ;;  %v2303_v18 = vld [vmem:[%s32815_s7 + $0x2f0] sm:$0xff]  ;;  %v2304_v19 = vld [vmem:[%s32815_s7 + $0x2f8] sm:$0xff] }
 0x14a   :  { %1845 = vmatpush1.bf16.msra.mxu1 %v22628_v21  ;;  %2009 = vmatpush1.bf16.msra.mxu0 %v22631_v22  ;;  %v2291_v21 = vld [vmem:[%s32815_s7 + $0x290] sm:$0xff]  ;;  %v2292_v22 = vld [vmem:[%s32815_s7 + $0x298] sm:$0xff] }
 0x14b   :  { %1846 = vmatprep.subr.bf16.mxu1 %v22636_v23  ;;  %2010 = vmatprep.subr.bf16.mxu0 %v22639_v26  ;;  %v25794_v23 = vpack.c.bf16 %v2292_v22, %v2291_v21  ;;  %v22700_v26 = vld [vmem:[%s32813_s5 + $0x3f8] ss:$28 sps:$4 sm:$0xff]   ;;  %v22721_v21 = vld [vmem:[%s32813_s5 + $0x580] ss:$28 sps:$4 sm:$0xff]  }
 0x14c   :  { %v22726_v22 = vld [vmem:[%s32813_s5 + $0x5bc] ss:$28 sps:$4 sm:$0xff]  }
 0x14e   :  { %1847 = vmatpush1.bf16.msra.mxu1 %v22634_v27  ;;  %2011 = vmatpush1.bf16.msra.mxu0 %v22637_v28  ;;  %v2275_v27 = vld [vmem:[%s32815_s7 + $0x210] sm:$0xff]  ;;  %v2276_v28 = vld [vmem:[%s32815_s7 + $0x218] sm:$0xff] }
 0x14f   :  { %1848 = vmatprep.subr.bf16.mxu1 %v22642_v41  ;;  %2012 = vmatprep.subr.bf16.mxu0 %v22645_v29  ;;  %v22705_v41 = vld [vmem:[%s32813_s5 + $0x434] ss:$28 sps:$4 sm:$0xff]   ;;  %v25810_v29 = vpack.c.bf16 %v2276_v28, %v2275_v27  ;;  %v2288_v28 = vld [vmem:[%s32815_s7 + $0x278] sm:$0xff] }
 0x150   :  { %v2287_v27 = vld [vmem:[%s32815_s7 + $0x270] sm:$0xff] }
 0x152   :  { %1849 = vmatpush1.bf16.msra.mxu1 %v22640_v30  ;;  %2013 = vmatpush1.bf16.msra.mxu0 %v22643_v31  ;;  %v2293_v30 = vld [vmem:[%s32815_s7 + $0x2a0] sm:$0xff]  ;;  %v2294_v31 = vld [vmem:[%s32815_s7 + $0x2a8] sm:$0xff] }
 0x153   :  { %1859 = vmatprep.subr.bf16.mxu1 %v22648_v32  ;;  %21641 = vmatprep.subr.bf16.mxu0 %v25777_v16  ;;  %v25818_v32 = vpack.c.bf16 %v2294_v31, %v2293_v30  ;;  %v22724_v30 = vld [vmem:[%s32813_s5 + $0x5b8] ss:$28 sps:$4 sm:$0xff]   ;;  %v2257_v31 = vld [vmem:[%s32815_s7 + $0x180] sm:$0xff] }
 0x155   :  { %1851 = vmatmul.mubr.bf16.vlgmr.msra.gmra.mrb[0].mxu1 %v25659_v37  ;;  %2015 = vmatmul.mubr.bf16.vlgmr.msra.gmra.mrb[8].mxu0 %v25659_v37 }
 0x156   :  { %1860 = vmatpush1.bf16.msra.mxu1 %v22646_v34  ;;  %1891 = vmatprep.mubr.bf16.mxu1 %v25457_v13  ;;  %v2277_v34 = vld [vmem:[%s32815_s7 + $0x220] sm:$0xff] }
 0x157   :  { %1861 = vmatprep.subr.bf16.mxu1 %v22651_v39  ;;  %21643 = vmatpush3.bf16.msra.mxu0 %v25785_v20  ;;  %v2278_v39 = vld [vmem:[%s32815_s7 + $0x228] sm:$0xff] }
 0x158   :  { %21645 = vmatprep.subr.bf16.mxu0 %v25794_v23 }
 0x15a   :  { %1862 = vmatpush1.bf16.msra.mxu1 %v22649_v25  ;;  %v22708_v25 = vld [vmem:[%s32813_s5 + $0x46c] ss:$28 sps:$4 sm:$0xff]  }
 0x15b   :  { %1863 = vmatprep.subr.bf16.mxu1 %v22654_v40  ;;  %21647 = vmatpush3.bf16.msra.mxu0 %v25810_v29  ;;  %v25834_v40 = vpack.c.bf16 %v2278_v39, %v2277_v34  ;;  %v22729_v34 = vld [vmem:[%s32813_s5 + $0x5f4] ss:$28 sps:$4 sm:$0xff]  }
 0x15c   :  { %21649 = vmatprep.subr.bf16.mxu0 %v25818_v32 }
 0x15e   :  { %1864 = vmatpush1.bf16.msra.mxu1 %v22652_v42  ;;  %v2295_v42 = vld [vmem:[%s32815_s7 + $0x2b0] sm:$0xff] }
 0x15f   :  { %1865 = vmatprep.subr.bf16.mxu1 %v22657_v43  ;;  %v2296_v43 = vld [vmem:[%s32815_s7 + $0x2b8] sm:$0xff]  ;;  %21651 = vmatpush3.bf16.msra.mxu0 %v25834_v40 }
 0x162   :  { %1866 = vmatpush1.bf16.msra.mxu1 %v22655_v45  ;;  %v22706_v45 = vld [vmem:[%s32813_s5 + $0x468] ss:$28 sps:$4 sm:$0xff]  }
 0x163   :  { %1867 = vmatprep.subr.bf16.mxu1 %v22660_v46  ;;  %v25845_v46 = vpack.c.bf16 %v2296_v43, %v2295_v42  ;;  %v22732_v42 = vld [vmem:[%s32813_s5 + $0x62c] ss:$28 sps:$4 sm:$0xff]  }
 0x164   :  { %v22730_v43 = vld [vmem:[%s32813_s5 + $0x628] ss:$28 sps:$4 sm:$0xff]  }
 0x165   :  { %21653 = vmatprep.subr.bf16.mxu0 %v25845_v46 }
 0x166   :  { %1868 = vmatpush1.bf16.msra.mxu1 %v22658_v47  ;;  %v22711_v47 = vld [vmem:[%s32813_s5 + $0x4a4] ss:$28 sps:$4 sm:$0xff]  }
 0x167   :  { %1869 = vmatprep.subr.bf16.mxu1 %v22663_v48  ;;  %v2279_v48 = vld [vmem:[%s32815_s7 + $0x230] sm:$0xff] }
 0x16a   :  { %1870 = vmatpush1.bf16.msra.mxu1 %v22661_v49  ;;  %v2280_v49 = vld [vmem:[%s32815_s7 + $0x238] sm:$0xff] }
 0x16b   :  { %1871 = vmatprep.subr.bf16.mxu1 %v22666_v50  ;;  %v25858_v50 = vpack.c.bf16 %v2280_v49, %v2279_v48  ;;  %v22738_v48 = vld [vmem:[%s32813_s5 + $0x69c] ss:$28 sps:$4 sm:$0xff]  }
 0x16c   :  { %v22736_v49 = vld [vmem:[%s32813_s5 + $0x698] ss:$28 sps:$4 sm:$0xff]  }
 0x16d   :  { %21655 = vmatpush3.bf16.msra.mxu0 %v25858_v50 }
 0x16e   :  { %1872 = vmatpush1.bf16.msra.mxu1 %v22664_v51  ;;  %v22709_v51 = vld [vmem:[%s32813_s5 + $0x4a0] ss:$28 sps:$4 sm:$0xff]  }
 0x16f   :  { %1873 = vmatprep.subr.bf16.mxu1 %v22669_v52  ;;  %v22714_v52 = vld [vmem:[%s32813_s5 + $0x4dc] ss:$28 sps:$4 sm:$0xff]  }
 0x172   :  { %1874 = vmatpush1.bf16.msra.mxu1 %v22667_v53  ;;  %v2297_v53 = vld [vmem:[%s32815_s7 + $0x2c0] sm:$0xff] }
 0x173   :  { %1875 = vmatprep.subr.bf16.mxu1 %v22672_v55  ;;  %v2298_v55 = vld [vmem:[%s32815_s7 + $0x2c8] sm:$0xff] }
 0x176   :  { %1876 = vmatpush1.bf16.msra.mxu1 %v22670_v56  ;;  %v25873_v56 = vpack.c.bf16 %v2298_v55, %v2297_v53  ;;  %v22742_v53 = vld [vmem:[%s32813_s5 + $0x1d8] ss:$28 sps:$4 sm:$0xff]  }
 0x177   :  { %1877 = vmatprep.subr.bf16.mxu1 %v22675_v57  ;;  %v22712_v57 = vld [vmem:[%s32813_s5 + $0x4d8] ss:$28 sps:$4 sm:$0xff]  }
 0x178   :  { %21657 = vmatprep.subr.bf16.mxu0 %v25873_v56  ;;  %v22743_v55 = vld [vmem:[%s32813_s5 + $0x18] ss:$28 sps:$4 sm:$0xff]  }
 0x17a   :  { %1878 = vmatpush1.bf16.msra.mxu1 %v22673_v58  ;;  %v22717_v58 = vld [vmem:[%s32813_s5 + $0x514] ss:$28 sps:$4 sm:$0xff]  }
 0x17b   :  { %1879 = vmatprep.subr.bf16.mxu1 %v22678_v59  ;;  %v2281_v59 = vld [vmem:[%s32815_s7 + $0x240] sm:$0xff] }
 0x17e   :  { %1880 = vmatpush1.bf16.msra.mxu1 %v22676_v60  ;;  %v2282_v60 = vld [vmem:[%s32815_s7 + $0x248] sm:$0xff] }
 0x17f   :  { %1881 = vmatprep.subr.bf16.mxu1 %v22681_v62  ;;  %v25888_v62 = vpack.c.bf16 %v2282_v60, %v2281_v59  ;;  %v22746_v59 = vld [vmem:[%s32813_s5 + $0x248] ss:$28 sps:$4 sm:$0xff]  }
 0x180   :  { %v22747_v60 = vld [vmem:[%s32813_s5 + $0x88] ss:$28 sps:$4 sm:$0xff]  }
 0x181   :  { %21659 = vmatpush3.bf16.msra.mxu0 %v25888_v62 }
 0x182   :  { %1882 = vmatpush1.bf16.msra.mxu1 %v22679_v63  ;;  %v2299_v63 = vld [vmem:[%s32815_s7 + $0x2d0] sm:$0xff] }
 0x183   :  { %1883 = vmatprep.subr.bf16.mxu1 %v22684_v0  ;;  %v22715_v0 = vld [vmem:[%s32813_s5 + $0x510] ss:$28 sps:$4 sm:$0xff]  }
 0x186   :  { %1884 = vmatpush1.bf16.msra.mxu1 %v22682_v3  ;;  %v22720_v3 = vld [vmem:[%s32813_s5 + $0x54c] ss:$28 sps:$4 sm:$0xff]  }
 0x187   :  { %1885 = vmatprep.subr.bf16.mxu1 %v22687_v4  ;;  %v2300_v4 = vld [vmem:[%s32815_s7 + $0x2d8] sm:$0xff] }
 0x18a   :  { %1886 = vmatpush1.bf16.msra.mxu1 %v22685_v14  ;;  %v25903_v14 = vpack.c.bf16 %v2300_v4, %v2299_v63  ;;  %v22748_v63 = vld [vmem:[%s32813_s5 + $0x280] ss:$28 sps:$4 sm:$0xff]   ;;  %v22752_v4 = vld [vmem:[%s32813_s5 + $0x2f0] ss:$28 sps:$4 sm:$0xff]  }
 0x18b   :  { %1887 = vmatprep.subr.bf16.mxu1 %v22690_v61  ;;  %v2283_v61 = vld [vmem:[%s32815_s7 + $0x250] sm:$0xff] }
 0x18c   :  { %21661 = vmatprep.subr.bf16.mxu0 %v25903_v14 }
 0x18e   :  { %1888 = vmatpush1.bf16.msra.mxu1 %v22688_v6  ;;  %v2284_v6 = vld [vmem:[%s32815_s7 + $0x258] sm:$0xff] }
 0x18f   :  { %1889 = vmatprep.subr.bf16.mxu1 %v22693_v7  ;;  %v25911_v7 = vpack.c.bf16 %v2284_v6, %v2283_v61  ;;  %v22753_v61 = vld [vmem:[%s32813_s5 + $0x130] ss:$28 sps:$4 sm:$0xff]   ;;  %v22754_v6 = vld [vmem:[%s32813_s5 + $0x328] ss:$28 sps:$4 sm:$0xff]  }
 0x191   :  { %21663 = vmatpush3.bf16.msra.mxu0 %v25911_v7 }
 0x192   :  { %1890 = vmatpush1.bf16.msra.mxu1 %v22691_v8  ;;  %v2301_v8 = vld [vmem:[%s32815_s7 + $0x2e0] sm:$0xff] }
 0x193   :  { %1900 = vmatprep.subr.bf16.mxu1 %v22696_v17  ;;  %v22718_v17 = vld [vmem:[%s32813_s5 + $0x548] ss:$28 sps:$4 sm:$0xff]  }
 0x195   :  { %1892 = vmatmul.mubr.bf16.vlgmr.msra.gmra.mrb[4].mxu1 %v25459_v15 }
 0x196   :  { %1901 = vmatpush1.bf16.msra.mxu1 %v22694_v1  ;;  %1932 = vmatprep.mubr.bf16.mxu1 %v25510_v44  ;;  %v2302_v1 = vld [vmem:[%s32815_s7 + $0x2e8] sm:$0xff] }
 0x197   :  { %1902 = vmatprep.subr.bf16.mxu1 %v22699_v9  ;;  %v22723_v9 = vld [vmem:[%s32813_s5 + $0x584] ss:$28 sps:$4 sm:$0xff]   ;;  %v25927_v10 = vpack.c.bf16 %v2302_v1, %v2301_v8 }
 0x198   :  { %v22755_v8 = vld [vmem:[%s32813_s5 + $0x168] ss:$28 sps:$4 sm:$0xff]   ;;  %v22757_v1 = vld [vmem:[%s32813_s5 + $0x1a0] ss:$28 sps:$4 sm:$0xff]  }
 0x199   :  { %21665 = vmatprep.subr.bf16.mxu0 %v25927_v10 }
 0x19a   :  { %1903 = vmatpush1.bf16.msra.mxu1 %v22697_v11  ;;  %v2285_v11 = vld [vmem:[%s32815_s7 + $0x260] sm:$0xff] }
 0x19b   :  { %1904 = vmatprep.subr.bf16.mxu1 %v22702_v36  ;;  %v25935_v36 = vpack.c.bf16 %v2286_v12, %v2285_v11  ;;  %v22759_v11 = vld [vmem:[%s32813_s5 + $0x398] ss:$28 sps:$4 sm:$0xff]   ;;  %v22760_v12 = vld [vmem:[%s32813_s5 + $0x590] ss:$28 sps:$4 sm:$0xff]  }
 0x19d   :  { %21667 = vmatpush3.bf16.msra.mxu0 %v25935_v36 }
 0x19e   :  { %1905 = vmatpush1.bf16.msra.mxu1 %v22700_v26  ;;  %v25950_v26 = vpack.c.bf16 %v2304_v19, %v2303_v18  ;;  %v22761_v18 = vld [vmem:[%s32813_s5 + $0x3d0] ss:$28 sps:$4 sm:$0xff]   ;;  %v22762_v19 = vld [vmem:[%s32813_s5 + $0x5c8] ss:$28 sps:$4 sm:$0xff]  }
 0x19f   :  { %1906 = vmatprep.subr.bf16.mxu1 %v22705_v41  ;;  %v25960_v41 = vpack.c.bf16 %v2288_v28, %v2287_v27  ;;  %v22766_v27 = vld [vmem:[%s32813_s5 + $0x638] ss:$28 sps:$4 sm:$0xff]   ;;  %v22768_v28 = vld [vmem:[%s32813_s5 + $0x670] ss:$28 sps:$4 sm:$0xff]  }
 0x1a0   :  { %21669 = vmatprep.subr.bf16.mxu0 %v25950_v26 }
 0x1a1   :  { %21671 = vmatpush3.bf16.msra.mxu0 %v25960_v41 }
 0x1a2   :  { %1907 = vmatpush1.bf16.msra.mxu1 %v22703_v33  ;;  %v2258_v33 = vld [vmem:[%s32815_s7 + $0x188] sm:$0xff] }
 0x1a3   :  { %1908 = vmatprep.subr.bf16.mxu1 %v22708_v25  ;;  %v25975_v39 = vpack.c.bf16 %v2258_v33, %v2257_v31  ;;  %v22727_v25 = vld [vmem:[%s32813_s5 + $0x5f0] ss:$28 sps:$4 sm:$0xff]   ;;  %v22770_v31 = vld [vmem:[%s32813_s5 + $0x6a8] ss:$28 sps:$4 sm:$0xff]  }
 0x1a4   :  { %v22771_v33 = vld [vmem:[%s32813_s5 + $0x4e8] ss:$28 sps:$4 sm:$0xff]  }
 0x1a5   :  { %21708 = vmatprep.subr.bf16.mxu0 %v25975_v39 }
 0x1a6   :  { %1909 = vmatpush1.bf16.msra.mxu1 %v22706_v45  ;;  %v22735_v45 = vld [vmem:[%s32813_s5 + $0x664] ss:$28 sps:$4 sm:$0xff]  }
 0x1a7   :  { %1910 = vmatprep.subr.bf16.mxu1 %v22711_v47  ;;  %v22733_v47 = vld [vmem:[%s32813_s5 + $0x660] ss:$28 sps:$4 sm:$0xff]  }
 0x1aa   :  { %1911 = vmatpush1.bf16.msra.mxu1 %v22709_v51  ;;  %v22741_v51 = vld [vmem:[%s32813_s5 + $0x6d4] ss:$28 sps:$4 sm:$0xff]  }
 0x1ab   :  { %1912 = vmatprep.subr.bf16.mxu1 %v22714_v52  ;;  %v22739_v52 = vld [vmem:[%s32813_s5 + $0x6d0] ss:$28 sps:$4 sm:$0xff]  }
 0x1ae   :  { %1913 = vmatpush1.bf16.msra.mxu1 %v22712_v57  ;;  %v22744_v57 = vld [vmem:[%s32813_s5 + $0x210] ss:$28 sps:$4 sm:$0xff]  }
 0x1af   :  { %1914 = vmatprep.subr.bf16.mxu1 %v22717_v58  ;;  %v22745_v58 = vld [vmem:[%s32813_s5 + $0x50] ss:$28 sps:$4 sm:$0xff]  }
 0x1b2   :  { %1915 = vmatpush1.bf16.msra.mxu1 %v22715_v0  ;;  %v22749_v0 = vld [vmem:[%s32813_s5 + $0xc0] ss:$28 sps:$4 sm:$0xff]  }
 0x1b3   :  { %1916 = vmatprep.subr.bf16.mxu1 %v22720_v3  ;;  %v22750_v3 = vld [vmem:[%s32813_s5 + $0x2b8] ss:$28 sps:$4 sm:$0xff]  }
 0x1b6   :  { %1917 = vmatpush1.bf16.msra.mxu1 %v22718_v17  ;;  %v22756_v17 = vld [vmem:[%s32813_s5 + $0x360] ss:$28 sps:$4 sm:$0xff]  }
 0x1b7   :  { %1918 = vmatprep.subr.bf16.mxu1 %v22723_v9  ;;  %v22758_v9 = vld [vmem:[%s32813_s5 + $0x558] ss:$28 sps:$4 sm:$0xff]  }
 0x1ba   :  { %1919 = vmatpush1.bf16.msra.mxu1 %v22721_v21  ;;  %v22763_v21 = vld [vmem:[%s32813_s5 + $0x408] ss:$28 sps:$4 sm:$0xff]  }
 0x1bb   :  { %1920 = vmatprep.subr.bf16.mxu1 %v22726_v22  ;;  %v22764_v22 = vld [vmem:[%s32813_s5 + $0x600] ss:$28 sps:$4 sm:$0xff]  }
 0x1be   :  { %1921 = vmatpush1.bf16.msra.mxu1 %v22724_v30  ;;  %v22769_v30 = vld [vmem:[%s32813_s5 + $0x4b0] ss:$28 sps:$4 sm:$0xff]  }
 0x1bf   :  { %1922 = vmatprep.subr.bf16.mxu1 %v22729_v34  ;;  %v22772_v34 = vld [vmem:[%s32813_s5 + $0x6e0] ss:$28 sps:$4 sm:$0xff]  }
 0x1c2   :  { %1923 = vmatpush1.bf16.msra.mxu1 %v22727_v25  ;;  %v2225_v25 = vld [vmem:[%s32815_s7 + $0x80] sm:$0xff] }
 0x1c3   :  { %1924 = vmatprep.subr.bf16.mxu1 %v22732_v42  ;;  %v2226_v42 = vld [vmem:[%s32815_s7 + $0x88] sm:$0xff] }
 0x1c6   :  { %1925 = vmatpush1.bf16.msra.mxu1 %v22730_v43  ;;  %v22773_v43 = vld [vmem:[%s32813_s5 + $0x520] ss:$28 sps:$4 sm:$0xff]  }
 0x1c7   :  { %1926 = vmatprep.subr.bf16.mxu1 %v22735_v45  ;;  %v2209_v45 = vld [vmem:[%s32815_s7] sm:$0xff] }
 0x1ca   :  { %1927 = vmatpush1.bf16.msra.mxu1 %v22733_v47  ;;  %v2210_v47 = vld [vmem:[%s32815_s7 + $0x8] sm:$0xff] }
 0x1cb   :  { %1928 = vmatprep.subr.bf16.mxu1 %v22738_v48  ;;  %v2227_v48 = vld [vmem:[%s32815_s7 + $0x90] sm:$0xff] }
 0x1ce   :  { %1929 = vmatpush1.bf16.msra.mxu1 %v22736_v49  ;;  %v2228_v49 = vld [vmem:[%s32815_s7 + $0x98] sm:$0xff] }
 0x1cf   :  { %1930 = vmatprep.subr.bf16.mxu1 %v22741_v51  ;;  %v26123_v51 = vpack.c.bf16 %v2226_v42, %v2225_v25  ;;  %v2239_v25 = vld [vmem:[%s32815_s7 + $0xf0] sm:$0xff]  ;;  %v2240_v42 = vld [vmem:[%s32815_s7 + $0xf8] sm:$0xff] }
 0x1d2   :  { %1931 = vmatpush1.bf16.msra.mxu1 %v22739_v52  ;;  %v2211_v52 = vld [vmem:[%s32815_s7 + $0x10] sm:$0xff] }
 0x1d3   :  { %20528 = vmatprep.subr.bf16.mxu1 %v22742_v53  ;;  %v2212_v53 = vld [vmem:[%s32815_s7 + $0x18] sm:$0xff] }
 0x1d5   :  { %1933 = vmatmul.mubr.bf16.vlgmr.msra.gmra.mrb[4].mxu1 %v25659_v37 }
 0x1d6   :  { %20529 = vmatpush3.bf16.msra.mxu1 %v22743_v55  ;;  %2055 = vmatprep.mubr.bf16.mxu1 %v25457_v13  ;;  %v22751_v13 = vld [vmem:[%s32813_s5 + $0xf8] ss:$28 sps:$4 sm:$0xff]   ;;  %v26131_v55 = vpack.c.bf16 %v2210_v47, %v2209_v45 }
 0x1d7   :  { %20530 = vmatprep.subr.bf16.mxu1 %v22744_v57  ;;  %v2229_v57 = vld [vmem:[%s32815_s7 + $0xa0] sm:$0xff] }
 0x1da   :  { %20531 = vmatpush3.bf16.msra.mxu1 %v22745_v58  ;;  %v2230_v58 = vld [vmem:[%s32815_s7 + $0xa8] sm:$0xff] }
 0x1db   :  { %20532 = vmatprep.subr.bf16.mxu1 %v22746_v59  ;;  %v26140_v59 = vpack.c.bf16 %v2228_v49, %v2227_v48 }
 0x1de   :  { %20533 = vmatpush3.bf16.msra.mxu1 %v22747_v60  ;;  %v2213_v60 = vld [vmem:[%s32815_s7 + $0x20] sm:$0xff] }
 0x1df   :  { %20534 = vmatprep.subr.bf16.mxu1 %v22748_v63  ;;  %v2214_v63 = vld [vmem:[%s32815_s7 + $0x28] sm:$0xff] }
 0x1e2   :  { %20535 = vmatpush3.bf16.msra.mxu1 %v22749_v0  ;;  %v26150_v0 = vpack.c.bf16 %v2212_v53, %v2211_v52 }
 0x1e3   :  { %20536 = vmatprep.subr.bf16.mxu1 %v22750_v3  ;;  %v2231_v3 = vld [vmem:[%s32815_s7 + $0xb0] sm:$0xff] }
 0x1e6   :  { %20537 = vmatpush3.bf16.msra.mxu1 %v22751_v13  ;;  %v26159_v13 = vpack.c.bf16 %v2230_v58, %v2229_v57 }
 0x1e7   :  { %20538 = vmatprep.subr.bf16.mxu1 %v22752_v4  ;;  %v2215_v4 = vld [vmem:[%s32815_s7 + $0x30] sm:$0xff] }
 0x1ea   :  { %20539 = vmatpush3.bf16.msra.mxu1 %v22753_v61  ;;  %v2216_v61 = vld [vmem:[%s32815_s7 + $0x38] sm:$0xff] }
 0x1eb   :  { %20540 = vmatprep.subr.bf16.mxu1 %v22754_v6  ;;  %v26168_v6 = vpack.c.bf16 %v2214_v63, %v2213_v60 }
 0x1ee   :  { %20541 = vmatpush3.bf16.msra.mxu1 %v22755_v8  ;;  %v2233_v8 = vld [vmem:[%s32815_s7 + $0xc0] sm:$0xff] }
 0x1ef   :  { %20542 = vmatprep.subr.bf16.mxu1 %v22756_v17  ;;  %v2234_v17 = vld [vmem:[%s32815_s7 + $0xc8] sm:$0xff] }
 0x1f2   :  { %20543 = vmatpush3.bf16.msra.mxu1 %v22757_v1 }
 0x1f3   :  { %20550 = vmatprep.subr.bf16.mxu1 %v22758_v9  ;;  %v2217_v9 = vld [vmem:[%s32815_s7 + $0x40] sm:$0xff] }
 0x1f5   :  { %2056 = vmatmul.mubr.bf16.vlgmr.msra.gmra.mrb[8].mxu1 %v25459_v15  ;;  %v22765_v15 = vld [vmem:[%s32813_s5 + $0x440] ss:$28 sps:$4 sm:$0xff]  }
 0x1f6   :  { %20551 = vmatpush3.bf16.msra.mxu1 %v22759_v11  ;;  %2095 = vmatprep.mubr.bf16.mxu1 %v25510_v44  ;;  %v22767_v44 = vld [vmem:[%s32813_s5 + $0x478] ss:$28 sps:$4 sm:$0xff]   ;;  %v2218_v11 = vld [vmem:[%s32815_s7 + $0x48] sm:$0xff] }
 0x1f7   :  { %20552 = vmatprep.subr.bf16.mxu1 %v22760_v12  ;;  %v26186_v12 = vpack.c.bf16 %v2216_v61, %v2215_v4 }
 0x1fa   :  { %20553 = vmatpush3.bf16.msra.mxu1 %v22761_v18  ;;  %v2235_v18 = vld [vmem:[%s32815_s7 + $0xd0] sm:$0xff] }
 0x1fb   :  { %20554 = vmatprep.subr.bf16.mxu1 %v22762_v19  ;;  %v2236_v19 = vld [vmem:[%s32815_s7 + $0xd8] sm:$0xff] }
 0x1fe   :  { %20555 = vmatpush3.bf16.msra.mxu1 %v22763_v21  ;;  %v26195_v21 = vpack.c.bf16 %v2234_v17, %v2233_v8 }
 0x1ff   :  { %20556 = vmatprep.subr.bf16.mxu1 %v22764_v22  ;;  %v2219_v22 = vld [vmem:[%s32815_s7 + $0x50] sm:$0xff] }
 0x202   :  { %20557 = vmatpush3.bf16.msra.mxu1 %v22765_v15  ;;  %v2220_v15 = vld [vmem:[%s32815_s7 + $0x58] sm:$0xff] }
 0x203   :  { %20558 = vmatprep.subr.bf16.mxu1 %v22766_v27  ;;  %v26204_v27 = vpack.c.bf16 %v2218_v11, %v2217_v9  ;;  %v26253_v9 = vpack.c.bf16 %v2240_v42, %v2239_v25  ;;  %v2223_v11 = vld [vmem:[%s32815_s7 + $0x70] sm:$0xff] }
 0x206   :  { %20559 = vmatpush3.bf16.msra.mxu1 %v22767_v44  ;;  %v2237_v44 = vld [vmem:[%s32815_s7 + $0xe0] sm:$0xff] }
 0x207   :  { %20560 = vmatprep.subr.bf16.mxu1 %v22768_v28  ;;  %v2238_v28 = vld [vmem:[%s32815_s7 + $0xe8] sm:$0xff] }
 0x20a   :  { %20561 = vmatpush3.bf16.msra.mxu1 %v22769_v30  ;;  %v26213_v30 = vpack.c.bf16 %v2236_v19, %v2235_v18  ;;  %v2224_v18 = vld [vmem:[%s32815_s7 + $0x78] sm:$0xff] }
 0x20b   :  { %20562 = vmatprep.subr.bf16.mxu1 %v22770_v31  ;;  %v2221_v31 = vld [vmem:[%s32815_s7 + $0x60] sm:$0xff] }
 0x20e   :  { %20563 = vmatpush3.bf16.msra.mxu1 %v22771_v33  ;;  %v2222_v33 = vld [vmem:[%s32815_s7 + $0x68] sm:$0xff] }
 0x20f   :  { %20564 = vmatprep.subr.bf16.mxu1 %v22772_v34  ;;  %v26222_v34 = vpack.c.bf16 %v2220_v15, %v2219_v22 }
 0x212   :  { %20565 = vmatpush3.bf16.msra.mxu1 %v22773_v43  ;;  %v26231_v43 = vpack.c.bf16 %v2238_v28, %v2237_v44 }
 0x213   :  { %21577 = vmatprep.subr.bf16.mxu1 %v26123_v51 }
 0x215   :  { %2096 = vmatmul.mubr.bf16.vlgmr.msra.gmra.mrb[12].mxu1 %v25659_v37  ;;  %v2232_v37 = vld [vmem:[%s32815_s7 + $0xb8] sm:$0xff] }
 0x216   :  { %21579 = vmatpush3.bf16.msra.mxu1 %v26131_v55  ;;  %v26177_v1 = vpack.c.bf16 %v2232_v37, %v2231_v3  ;;  %v26248_v37 = vpack.c.bf16 %v2222_v33, %v2221_v31  ;;  %v26262_v33 = vpack.c.bf16 %v2224_v18, %v2223_v11  ;;  %v2243_v11 = vld [vmem:[%s32815_s7 + $0x110] sm:$0xff]  ;;  %v2244_v18 = vld [vmem:[%s32815_s7 + $0x118] sm:$0xff] }
 0x217   :  { %21581 = vmatprep.subr.bf16.mxu1 %v26140_v59 }
 0x21a   :  { %21583 = vmatpush3.bf16.msra.mxu1 %v26150_v0 }
 0x21b   :  { %21585 = vmatprep.subr.bf16.mxu1 %v26159_v13 }
 0x21e   :  { %21587 = vmatpush3.bf16.msra.mxu1 %v26168_v6 }
 0x21f   :  { %21589 = vmatprep.subr.bf16.mxu1 %v26177_v1 }
 0x222   :  { %21591 = vmatpush3.bf16.msra.mxu1 %v26186_v12 }
 0x223   :  { %21593 = vmatprep.subr.bf16.mxu1 %v26195_v21 }
 0x226   :  { %21595 = vmatpush3.bf16.msra.mxu1 %v26204_v27 }
 0x227   :  { %21597 = vmatprep.subr.bf16.mxu1 %v26213_v30 }
 0x228   :  { %v26233_v45 = vpop.f32.mrb[0].mxu1  ;;  %v26235_v47 = vpop.f32.mrb[8].mxu0 }
 0x229   :  { %v2103_v48 = vsel %vm200_vm1, %v26233_v45, 0.0  ;;  %v2131_v49 = vsel %vm200_vm1, %v26235_v47, 0.0  ;;  %v26241_v52 = vpop.f32.mrb[1].mxu1  ;;  %v26243_v53 = vpop.f32.mrb[9].mxu0 }
 0x22a   :  { %v2104_v57 = vrot.slane %v2103_v48, 4  ;;  %v2132_v58 = vrot.slane %v2131_v49, 4  ;;  %v2110_v60 = vsel %vm200_vm1, %v26241_v52, 0.0  ;;  %v1856_v63 = vpop.f32.mrb[2].mxu1  ;;  %v2020_v3 = vpop.f32.mrb[10].mxu0  ;;  %21599 = vmatpush3.bf16.msra.mxu1 %v26222_v34  ;;  %v2138_v61 = vsel %vm200_vm1, %v26243_v53, 0.0 }
 0x22b   :  { %v2111_v4 = vrot.slane %v2110_v60, 4  ;;  %v1857_v8 = vpop.f32.mrb[3].mxu1  ;;  %v2021_v17 = vpop.f32.mrb[11].mxu0  ;;  %21601 = vmatprep.subr.bf16.mxu1 %v26231_v43  ;;  %v2139_v44 = vrot.slane %v2138_v61, 4 }
 0x22c   :  { %v2105_v19 = vadd.f32 %v2104_v57, %v2103_v48  ;;  %v2133_v22 = vadd.f32 %v2132_v58, %v2131_v49  ;;  %v2241_v48 = vld [vmem:[%s32815_s7 + $0x100] sm:$0xff]  ;;  %v2242_v49 = vld [vmem:[%s32815_s7 + $0x108] sm:$0xff] }
 0x22d   :  { %v2112_v15 = vadd.f32 %v2111_v4, %v2110_v60  ;;  %v2140_v42 = vadd.f32 %v2139_v44, %v2138_v61  ;;  %v2259_v60 = vld [vmem:[%s32815_s7 + $0x190] sm:$0xff]  ;;  %v2260_v4 = vld [vmem:[%s32815_s7 + $0x198] sm:$0xff]  ;;  %v2262_v44 = vld [vmem:[%s32815_s7 + $0x1a8] sm:$0xff] }
 0x22e   :  { %v2106_v28 = vrot.slane %v2105_v19, 2  ;;  %v2134_v31 = vrot.slane %v2133_v22, 2  ;;  %21603 = vmatpush3.bf16.msra.mxu1 %v26248_v37 }
 0x22f   :  { %v2113_v25 = vrot.slane %v2112_v15, 2  ;;  %21605 = vmatprep.subr.bf16.mxu1 %v26253_v9  ;;  %v2141_v8 = vrot.slane %v2140_v42, 2 }
 0x230   :  { %v2107_v63 = vadd.f32 %v2106_v28, %v2105_v19  ;;  %v2135_v3 = vadd.f32 %v2134_v31, %v2133_v22  ;;  %v21612_v31 = vpack.c.bf16 %v2260_v4, %v2259_v60  ;;  %v2265_v60 = vld [vmem:[%s32815_s7 + $0x1c0] sm:$0xff]  ;;  %v2266_v4 = vld [vmem:[%s32815_s7 + $0x1c8] sm:$0xff] }
 0x231   :  { %v2114_v17 = vadd.f32 %v2113_v25, %v2112_v15  ;;  %v2142_v58 = vadd.f32 %v2141_v8, %v2140_v42  ;;  %v2261_v15 = vld [vmem:[%s32815_s7 + $0x1a0] sm:$0xff] }
 0x232   :  { %v2108_v2 = vrot.slane %v2107_v63, 1  ;;  %21607 = vmatpush3.bf16.msra.mxu1 %v26262_v33  ;;  %v2136_v61 = vrot.slane %v2135_v3, 1  ;;  %v2245_v8 = vld [vmem:[%s32815_s7 + $0x120] sm:$0xff] }
 0x233   :  { %v2115_v57 = vrot.slane %v2114_v17, 1  ;;  %21609 = vmatprep.subr.bf16.mxu1 %v25975_v39  ;;  %v2143_v22 = vrot.slane %v2142_v58, 1  ;;  %v21610_v39 = vpack.c.bf16 %v2242_v49, %v2241_v48  ;;  %v21614_v48 = vpack.c.bf16 %v2244_v18, %v2243_v11  ;;  %v2247_v49 = vld [vmem:[%s32815_s7 + $0x130] sm:$0xff]  ;;  %v2249_v11 = vld [vmem:[%s32815_s7 + $0x140] sm:$0xff]  ;;  %v2250_v18 = vld [vmem:[%s32815_s7 + $0x148] sm:$0xff] }
 0x234   :  { %v2109_v28 = vadd.f32 %v2108_v2, %v2107_v63  ;;  %v2137_v42 = vadd.f32 %v2136_v61, %v2135_v3  ;;  %v2263_v2 = vld [vmem:[%s32815_s7 + $0x1b0] sm:$0xff]  ;;  %v2264_v63 = vld [vmem:[%s32815_s7 + $0x1b8] sm:$0xff]  ;;  %v21616_v3 = vpack.c.bf16 %v2262_v44, %v2261_v15  ;;  %v21624_v15 = vpack.c.bf16 %v2266_v4, %v2265_v60 }
 0x235   :  { %v2116_v19 = vadd.f32 %v2115_v57, %v2114_v17  ;;  %v2144_v25 = vadd.f32 %v2143_v22, %v2142_v58  ;;  %v2246_v17 = vld [vmem:[%s32815_s7 + $0x128] sm:$0xff]  ;;  %v2248_v57 = vld [vmem:[%s32815_s7 + $0x138] sm:$0xff]  ;;  %v21620_v61 = vpack.c.bf16 %v2264_v63, %v2263_v2  ;;  %v2267_v22 = vld [vmem:[%s32815_s7 + $0x1d0] sm:$0xff] }
 0x236   :  { %v21618_v58 = vpack.c.bf16 %v2246_v17, %v2245_v8  ;;  %v2251_v44 = vld [vmem:[%s32815_s7 + $0x150] sm:$0xff]  ;;  %v2253_v17 = vld [vmem:[%s32815_s7 + $0x160] sm:$0xff] }
 0x237   :  { %2375 = vmatprep.mubr.f32.mxu1 %v2116_v19  ;;  %2515 = vmatprep.mubr.f32.mxu0 %v2144_v25  ;;  %v21622_v19 = vpack.c.bf16 %v2248_v57, %v2247_v49  ;;  %v2269_v25 = vld [vmem:[%s32815_s7 + $0x1e0] sm:$0xff]  ;;  %v2271_v63 = vld [vmem:[%s32815_s7 + $0x1f0] sm:$0xff] }
 0x238   :  { %2376 = vmatmul.mubr.f32.vlgmr.msra.gmra.mrb[16].mxu1 %v2109_v28  ;;  %2516 = vmatmul.mubr.f32.vlgmr.msra.gmra.mrb[12].mxu0 %v2137_v42  ;;  %v2252_v28 = vld [vmem:[%s32815_s7 + $0x158] sm:$0xff]  ;;  %v2270_v42 = vld [vmem:[%s32815_s7 + $0x1e8] sm:$0xff]  ;;  %v2255_v57 = vld [vmem:[%s32815_s7 + $0x170] sm:$0xff] }
 0x239   :  { %21611 = vmatpush3.bf16.msra.mxu1 %v21610_v39  ;;  %21710 = vmatpush3.bf16.msra.mxu0 %v21610_v39  ;;  %v2268_v39 = vld [vmem:[%s32815_s7 + $0x1d8] sm:$0xff]  ;;  %v21630_v2 = vpack.c.bf16 %v2252_v28, %v2251_v44  ;;  %v21632_v49 = vpack.c.bf16 %v2270_v42, %v2269_v25 }
 0x23a   :  { %21613 = vmatprep.subr.bf16.mxu1 %v21612_v31  ;;  %21712 = vmatprep.subr.bf16.mxu0 %v21612_v31  ;;  %v21626_v31 = vpack.c.bf16 %v2250_v18, %v2249_v11  ;;  %v21628_v8 = vpack.c.bf16 %v2268_v39, %v2267_v22  ;;  %v32831_v11 = vmov 0.0|0.0  }
 0x23d   :  { %21615 = vmatpush3.bf16.msra.mxu1 %v21614_v48  ;;  %21714 = vmatpush3.bf16.msra.mxu0 %v21614_v48  ;;  %v2254_v48 = vld [vmem:[%s32815_s7 + $0x168] sm:$0xff] }
 0x23e   :  { %21617 = vmatprep.subr.bf16.mxu1 %v21616_v3  ;;  %21716 = vmatprep.subr.bf16.mxu0 %v21616_v3  ;;  %v2272_v3 = vld [vmem:[%s32815_s7 + $0x1f8] sm:$0xff]  ;;  %v21634_v60 = vpack.c.bf16 %v2254_v48, %v2253_v17 }
 0x23f   :  { %v21636_v4 = vpack.c.bf16 %v2272_v3, %v2271_v63 }
 0x241   :  { %21619 = vmatpush3.bf16.msra.mxu1 %v21618_v58  ;;  %21718 = vmatpush3.bf16.msra.mxu0 %v21618_v58  ;;  %v2256_v58 = vld [vmem:[%s32815_s7 + $0x178] sm:$0xff] }
 0x242   :  { %21621 = vmatprep.subr.bf16.mxu1 %v21620_v61  ;;  %21720 = vmatprep.subr.bf16.mxu0 %v21620_v61  ;;  %v21638_v61 = vpack.c.bf16 %v2256_v58, %v2255_v57 }
 0x245   :  { %21623 = vmatpush3.bf16.msra.mxu1 %v21622_v19  ;;  %21722 = vmatpush3.bf16.msra.mxu0 %v21622_v19 }
 0x246   :  { %21625 = vmatprep.subr.bf16.mxu1 %v21624_v15  ;;  %21724 = vmatprep.subr.bf16.mxu0 %v21624_v15 }
 0x249   :  { %21627 = vmatpush3.bf16.msra.mxu1 %v21626_v31  ;;  %21726 = vmatpush3.bf16.msra.mxu0 %v21626_v31 }
 0x24a   :  { %21629 = vmatprep.subr.bf16.mxu1 %v21628_v8  ;;  %21728 = vmatprep.subr.bf16.mxu0 %v21628_v8 }
 0x24d   :  { %21631 = vmatpush3.bf16.msra.mxu1 %v21630_v2  ;;  %21730 = vmatpush3.bf16.msra.mxu0 %v21630_v2 }
 0x24e   :  { %21633 = vmatprep.subr.bf16.mxu1 %v21632_v49  ;;  %21732 = vmatprep.subr.bf16.mxu0 %v21632_v49 }
 0x251   :  { %21635 = vmatpush3.bf16.msra.mxu1 %v21634_v60  ;;  %21734 = vmatpush3.bf16.msra.mxu0 %v21634_v60 }
 0x252   :  { %21637 = vmatprep.subr.bf16.mxu1 %v21636_v4  ;;  %21736 = vmatprep.subr.bf16.mxu0 %v21636_v4 }
 0x255   :  { %21639 = vmatpush3.bf16.msra.mxu1 %v21638_v61  ;;  %21738 = vmatpush3.bf16.msra.mxu0 %v21638_v61 }
 0x256   :  { %21672 = vmatprep.subr.bf16.mxu1 %v32831_v11  ;;  %21771 = vmatprep.subr.bf16.mxu0 %v32831_v11 }
 0x2a8   :  { %v26359_v18 = vpop.f32.mrb[4].mxu1 }
 0x2a9   :  { %v2117_v19 = vsel %vm200_vm1, %v26359_v18, 0.0  ;;  %v2155_v22 = vmul.f32 %v26359_v18, %v26359_v18  ;;  %v26365_v39 = vpop.f32.mrb[5].mxu1 }
 0x2aa   :  { %v2118_v15 = vrot.slane %v2117_v19, 4  ;;  %v2124_v44 = vsel %vm200_vm1, %v26365_v39, 0.0  ;;  %v2156_v28 = vmul.f32 %v26365_v39, %v26365_v39  ;;  %v1938_v31 = vpop.f32.mrb[6].mxu1 }
 0x2ab   :  { %v2174_v25 = vsel %vm200_vm1, %v2155_v22, 0.0  ;;  %v2125_v42 = vrot.slane %v2124_v44, 4  ;;  %v1939_v8 = vpop.f32.mrb[7].mxu1  ;;  %v2305_v31 = vld [vmem:[%s32815_s7 + $0x300] sm:$0xff]  ;;  %v2306_v22 = vld [vmem:[%s32815_s7 + $0x308] sm:$0xff] }
 0x2ac   :  { %v2119_v17 = vadd.f32 %v2118_v15, %v2117_v19  ;;  %v2175_v48 = vrot.slane %v2174_v25, 4  ;;  %v2181_v2 = vsel %vm200_vm1, %v2156_v28, 0.0 }
 0x2ad   :  { %v2126_v63 = vadd.f32 %v2125_v42, %v2124_v44  ;;  %v2182_v3 = vrot.slane %v2181_v2, 4 }
 0x2ae   :  { %v2120_v49 = vrot.slane %v2119_v17, 2  ;;  %v2176_v57 = vadd.f32 %v2175_v48, %v2174_v25 }
 0x2af   :  { %v2127_v58 = vrot.slane %v2126_v63, 2  ;;  %v2183_v60 = vadd.f32 %v2182_v3, %v2181_v2  ;;  %v21673_v2 = vpack.c.bf16 %v2306_v22, %v2305_v31 }
 0x2b0   :  { %v2121_v4 = vadd.f32 %v2120_v49, %v2119_v17  ;;  %v2177_v61 = vrot.slane %v2176_v57, 2 }
 0x2b1   :  { %v2128_v19 = vadd.f32 %v2127_v58, %v2126_v63  ;;  %v2184_v15 = vrot.slane %v2183_v60, 2 }
 0x2b2   :  { %v2122_v8 = vrot.slane %v2121_v4, 1  ;;  %v2178_v28 = vadd.f32 %v2177_v61, %v2176_v57 }
 0x2b3   :  { %v2129_v44 = vrot.slane %v2128_v19, 1  ;;  %v2185_v42 = vadd.f32 %v2184_v15, %v2183_v60 }
 0x2b4   :  { %v2179_v11 = vrot.slane %v2178_v28, 1  ;;  %v2123_v17 = vadd.f32 %v2122_v8, %v2121_v4 }
 0x2b5   :  { %v2130_v25 = vadd.f32 %v2129_v44, %v2128_v19  ;;  %v2186_v48 = vrot.slane %v2185_v42, 1 }
 0x2b6   :  { %v2180_v49 = vadd.f32 %v2179_v11, %v2178_v28  ;;  %v2154_v11 = vmul.f32 %v26241_v52, %v26241_v52 }
 0x2b7   :  { %2445 = vmatprep.mubr.f32.mxu1 %v2130_v25  ;;  %v2187_v3 = vadd.f32 %v2186_v48, %v2185_v42 }
 0x2b8   :  { %2446 = vmatmul.mubr.f32.vlgmr.msra.gmra.mrb[18].mxu1 %v2123_v17  ;;  %v2167_v61 = vsel %vm200_vm1, %v2154_v11, 0.0 }
 0x2b9   :  { %2728 = vmatprep.mubr.f32.mxu0 %v2187_v3  ;;  %21674 = vmatpush3.bf16.msra.mxu1 %v21673_v2  ;;  %v2168_v31 = vrot.slane %v2167_v61, 4 }
 0x2ba   :  { %2729 = vmatmul.mubr.f32.vlgmr.msra.gmra.mrb[14].mxu0 %v2180_v49  ;;  %21520 = vmatprep.mubr.msk.f32.mxu1 %vm25045_vm2, %v32835_v24 }
 0x2bb   :  { %21676 = vmatprep.subr.bf16.mxu1 %v26123_v51  ;;  %21773 = vmatpush3.bf16.msra.mxu0 %v21673_v2  ;;  %v2169_v15 = vadd.f32 %v2168_v31, %v2167_v61 }
 0x2bc   :  { %21527 = vmatprep.mubr.msk.f32.mxu0 %vm25045_vm2, %v32835_v24 }
 0x2bd   :  { %v2170_v48 = vrot.slane %v2169_v15, 2 }
 0x2c8   :  { %v20544_v63 = vpop.f32.mrb[8].mxu1 }
 0x2c9   :  { %v20545_v57 = vpop.f32.mrb[9].mxu1 }
 0x2ca   :  { %v20546_v58 = vadd.f32 %v20545_v57, %v20544_v63  ;;  %v20547_v60 = vpop.f32.mrb[10].mxu1  ;;  %v2171_v63 = vadd.f32 %v2170_v48, %v2169_v15  ;;  %v2153_v15 = vmul.f32 %v26233_v45, %v26233_v45 }
 0x2cb   :  { %v20548_v4 = vpop.f32.mrb[11].mxu1 }
 0x2cc   :  { %v2172_v61 = vrot.slane %v2171_v63, 1 }
 0x2e8   :  { %v20566_v22 = vpop.f32.mrb[12].mxu1 }
 0x2e9   :  { %v20567_v19 = vpop.f32.mrb[13].mxu1 }
 0x2ea   :  { %v20568_v8 = vadd.f32 %v20567_v19, %v20566_v22  ;;  %v20569_v51 = vpop.f32.mrb[14].mxu1 }
 0x2eb   :  { %v20570_v28 = vpop.f32.mrb[15].mxu1 }
 0x2ec   :  { %v26387_v44 = vadd.f32 %v20568_v8, %v20546_v58  ;;  %v2173_v8 = vadd.f32 %v2172_v61, %v2171_v63  ;;  %v2158_v28 = vmul.f32 %v26243_v53, %v26243_v53 }
 0x2ee   :  { %v2146_v42 = vsel %vm2145_vm3, %v26387_v44, 0.0  ;;  %v2159_v25 = vmul.f32 %v26387_v44, %v26387_v44 }
 0x2ef   :  { %v2147_v2 = vrot.slane %v2146_v42, 4 }
 0x2f0   :  { %v2202_v17 = vsel %vm2145_vm3, %v2159_v25, 0.0 }
 0x2f1   :  { %v2148_v3 = vadd.f32 %v2147_v2, %v2146_v42  ;;  %v2203_v49 = vrot.slane %v2202_v17, 4  ;;  %v2160_v42 = vsel %vm200_vm1, %v2153_v15, 0.0 }
 0x2f2   :  { %v2161_v25 = vrot.slane %v2160_v42, 4 }
 0x2f3   :  { %v2149_v57 = vrot.slane %v2148_v3, 2  ;;  %v2204_v60 = vadd.f32 %v2203_v49, %v2202_v17 }
 0x2f5   :  { %v2150_v4 = vadd.f32 %v2149_v57, %v2148_v3  ;;  %v2205_v11 = vrot.slane %v2204_v60, 2 }
 0x2f7   :  { %v2151_v31 = vrot.slane %v2150_v4, 1  ;;  %v2206_v22 = vadd.f32 %v2205_v11, %v2204_v60 }
 0x2f9   :  { %v2152_v58 = vadd.f32 %v2151_v31, %v2150_v4  ;;  %v2207_v19 = vrot.slane %v2206_v22, 1 }
 0x2fb   :  { %21521 = vmatmul.mubr.msk.f32.vlgmr.msra.gmra.mrb[20].mxu1 %vm2307_vm4, %v2152_v58  ;;  %v2208_v51 = vadd.f32 %v2207_v19, %v2206_v22 }
 0x2fc   :  { %21678 = vmatpush3.bf16.msra.mxu1 %v26131_v55  ;;  %2658 = vmatprep.mubr.f32.mxu1 %v2173_v8  ;;  %v2195_v55 = vsel %vm200_vm1, %v2158_v28, 0.0 }
 0x2fd   :  { %21528 = vmatmul.mubr.msk.f32.vlgmr.msra.gmra.mrb[16].mxu0 %vm2307_vm4, %v2208_v51  ;;  %21680 = vmatprep.subr.bf16.mxu1 %v26140_v59 }
 0x2fe   :  { %2966 = vmatprep.mubr.f32.mxu0 %v32835_v24 }
 0x300   :  { %21682 = vmatpush3.bf16.msra.mxu1 %v26150_v0 }
 0x301   :  { %21684 = vmatprep.subr.bf16.mxu1 %v26159_v13 }
 0x304   :  { %21686 = vmatpush3.bf16.msra.mxu1 %v26168_v6 }
 0x305   :  { %21688 = vmatprep.subr.bf16.mxu1 %v26177_v1 }
 0x306   :  { %24 = vsyncpa [#allocation3], 0  ;;  %v2196_v59 = vrot.slane %v2195_v55, 4  ;;  %v2162_v48 = vadd.f32 %v2161_v25, %v2160_v42  ;;  %v2885_v4 = vld [vmem:[%s32816_s8] sm:$0xff]  ;;  %v2892_v11 = vld [vmem:[%s32816_s8 + $0x38] sm:$0xff]  ;;  %v32935_v8 = vmov 0.0|0.0  }
 0x307   :  { %v21776_v31 = vpack.c.bf16 %v2892_v11, %v2885_v4  ;;  %v2887_v22 = vld [vmem:[%s32816_s8 + $0x10] sm:$0xff]  ;;  %v2894_v58 = vld [vmem:[%s32816_s8 + $0x48] sm:$0xff]  ;;  %v2897_v15 = vld [vmem:[%s32816_s8 + $0x60] sm:$0xff]  ;;  %vm9472_vm5 = vcmask 58368   ;;  %vm9825_vm6 = vcmask 64512   ;;  %vm17288_vm7 = vcmask 1043456  }
 0x308   :  { %21690 = vmatpush3.bf16.msra.mxu1 %v26186_v12  ;;  %v2197_v2 = vadd.f32 %v2196_v59, %v2195_v55  ;;  %v2163_v17 = vrot.slane %v2162_v48, 2  ;;  %v21780_v19 = vpack.c.bf16 %v2894_v58, %v2887_v22  ;;  %v2890_v51 = vld [vmem:[%s32816_s8 + $0x28] sm:$0xff]  ;;  %v22789_v11 = vld [vmem:[%s32819_s11 + $0xf8] ss:$60 sps:$4 sm:$0xff]   ;;  %vm18699_vm8 = vcmask 1043458  }
 0x309   :  { %21692 = vmatprep.subr.bf16.mxu1 %v26195_v21  ;;  %v21782_v28 = vpack.c.bf16 %v2897_v15, %v2890_v51  ;;  %v22786_v4 = vld [vmem:[%s32819_s11 + $0xf0] ss:$60 sps:$4 sm:$0xff]   ;;  %v22792_v22 = vld [vmem:[%s32819_s11 + $0x168] ss:$60 sps:$4 sm:$0xff]   ;;  %v22798_v51 = vld [vmem:[%s32819_s11 + $0x1e0] ss:$60 sps:$4 sm:$0xff]  }
 0x30a   :  { %v2198_v63 = vrot.slane %v2197_v2, 2  ;;  %v2164_v57 = vadd.f32 %v2163_v17, %v2162_v48  ;;  %v22795_v58 = vld [vmem:[%s32819_s11 + $0x170] ss:$60 sps:$4 sm:$0xff]   ;;  %v22801_v15 = vld [vmem:[%s32819_s11 + $0x1e8] ss:$60 sps:$4 sm:$0xff]   ;;  %vm18700_vm9 = vmor %vm18699_vm8, %vm200_vm1  ;;  %vm18701_vm10 = vcmask 128004  }
 0x30b   :  { %v20604_v0 = vpop.f32.mrb[16].mxu1  ;;  %v20674_v3 = vpop.f32.mrb[12].mxu0  ;;  %v9673_v54 = vld [vmem:[%s32821_s13 + $0x248] sm:$0xff]  ;;  %vm18702_vm11 = vmor %vm18701_vm10, %vm18700_vm9 }
 0x30c   :  { %21694 = vmatpush3.bf16.msra.mxu1 %v26204_v27  ;;  %v20605_v13 = vpop.f32.mrb[17].mxu1  ;;  %v20675_v6 = vpop.f32.mrb[13].mxu0  ;;  %v2199_v12 = vadd.f32 %v2198_v63, %v2197_v2  ;;  %v2165_v21 = vrot.slane %v2164_v57, 1 }
 0x30d   :  { %v20606_v49 = vadd.f32 %v20605_v13, %v20604_v0  ;;  %21696 = vmatprep.subr.bf16.mxu1 %v26213_v30  ;;  %v20676_v1 = vadd.f32 %v20675_v6, %v20674_v3 }
 0x30e   :  { %v2200_v27 = vrot.slane %v2199_v12, 1  ;;  %v2166_v60 = vadd.f32 %v2165_v21, %v2164_v57 }
 0x310   :  { %21698 = vmatpush3.bf16.msra.mxu1 %v26222_v34  ;;  %v2201_v30 = vadd.f32 %v2200_v27, %v2199_v12  ;;  %v2157_v34 = vmul.f32 %v26235_v47, %v26235_v47 }
 0x311   :  { %21700 = vmatprep.subr.bf16.mxu1 %v26231_v43 }
 0x312   :  { %v2188_v43 = vsel %vm200_vm1, %v2157_v34, 0.0  ;;  %v2896_v34 = vld [vmem:[%s32816_s8 + $0x58] sm:$0xff] }
 0x314   :  { %21702 = vmatpush3.bf16.msra.mxu1 %v26248_v37  ;;  %v2189_v37 = vrot.slane %v2188_v43, 4 }
 0x315   :  { %21704 = vmatprep.subr.bf16.mxu1 %v26253_v9 }
 0x318   :  { %21706 = vmatpush3.bf16.msra.mxu1 %v26262_v33  ;;  %v2895_v33 = vld [vmem:[%s32816_s8 + $0x50] sm:$0xff] }
 0x319   :  { %21740 = vmatprep.subr.bf16.mxu1 %v25777_v16  ;;  %v2190_v16 = vadd.f32 %v2189_v37, %v2188_v43  ;;  %v2891_v43 = vld [vmem:[%s32816_s8 + $0x30] sm:$0xff]  ;;  %v2898_v37 = vld [vmem:[%s32816_s8 + $0x68] sm:$0xff] }
 0x31b   :  { %2659 = vmatmul.mubr.f32.vlgmr.msra.gmra.mrb[22].mxu1 %v2166_v60 }
 0x31c   :  { %21742 = vmatpush3.bf16.msra.mxu1 %v25785_v20  ;;  %2798 = vmatprep.mubr.f32.mxu1 %v2201_v30  ;;  %v2191_v20 = vrot.slane %v2190_v16, 2  ;;  %v2889_v30 = vld [vmem:[%s32816_s8 + $0x20] sm:$0xff] }
 0x31d   :  { %21744 = vmatprep.subr.bf16.mxu1 %v25794_v23 }
 0x31e   :  { %v2192_v23 = vadd.f32 %v2191_v20, %v2190_v16  ;;  %v2878_v16 = vld [vmem:[%s32817_s9] sm:$0x1] }
 0x320   :  { %21746 = vmatpush3.bf16.msra.mxu1 %v25810_v29  ;;  %v2193_v29 = vrot.slane %v2192_v23, 1 }
 0x321   :  { %21748 = vmatprep.subr.bf16.mxu1 %v25818_v32 }
 0x322   :  { %v2194_v32 = vadd.f32 %v2193_v29, %v2192_v23  ;;  %v21784_v23 = vpack.c.bf16 %v2896_v34, %v2889_v30  ;;  %v21787_v29 = vpack.c.bf16 %v2898_v37, %v2891_v43  ;;  %v22836_v30 = vld [vmem:[%s32819_s11 + $0x4b4] ss:$60 sps:$4 sm:$0xff]   ;;  %v22839_v34 = vld [vmem:[%s32819_s11 + $0x4bc] ss:$60 sps:$4 sm:$0xff]  }
 0x323   :  { %v22834_v43 = vld [vmem:[%s32819_s11 + $0x4b0] ss:$60 sps:$4 sm:$0xff]   ;;  %v22837_v37 = vld [vmem:[%s32819_s11 + $0x4b8] ss:$60 sps:$4 sm:$0xff]  }
 0x324   :  { %21750 = vmatpush3.bf16.msra.mxu1 %v25834_v40 }
 0x325   :  { %21752 = vmatprep.subr.bf16.mxu1 %v25845_v46 }
 0x328   :  { %21754 = vmatpush3.bf16.msra.mxu1 %v25858_v50 }
 0x329   :  { %21756 = vmatprep.subr.bf16.mxu1 %v25873_v56 }
 0x32c   :  { %21758 = vmatpush3.bf16.msra.mxu1 %v25888_v62 }
 0x32d   :  { %21760 = vmatprep.subr.bf16.mxu1 %v25903_v14 }
 0x330   :  { %21762 = vmatpush3.bf16.msra.mxu1 %v25911_v7 }
 0x331   :  { %21764 = vmatprep.subr.bf16.mxu1 %v25927_v10  ;;  %v2886_v10 = vld [vmem:[%s32816_s8 + $0x8] sm:$0xff] }
 0x334   :  { %21766 = vmatpush3.bf16.msra.mxu1 %v25935_v36  ;;  %v2893_v36 = vld [vmem:[%s32816_s8 + $0x40] sm:$0xff] }
 0x335   :  { %21768 = vmatprep.subr.bf16.mxu1 %v25950_v26  ;;  %v2888_v26 = vld [vmem:[%s32816_s8 + $0x18] sm:$0xff] }
 0x336   :  { %v21778_v61 = vpack.c.bf16 %v2895_v33, %v2888_v26  ;;  %v22783_v26 = vld [vmem:[%s32819_s11 + $0x80] ss:$60 sps:$4 sm:$0xff]  }
 0x337   :  { %v22791_v33 = vld [vmem:[%s32819_s11 + $0xfc] ss:$60 sps:$4 sm:$0xff]  }
 0x338   :  { %21770 = vmatpush3.bf16.msra.mxu1 %v25960_v41  ;;  %v21774_v41 = vpack.c.bf16 %v2893_v36, %v2886_v10  ;;  %v22785_v10 = vld [vmem:[%s32819_s11 + $0x84] ss:$60 sps:$4 sm:$0xff]   ;;  %v22780_v36 = vld [vmem:[%s32819_s11 + $0x78] ss:$60 sps:$4 sm:$0xff]  }
 0x339   :  { %21779 = vmatprep.subr.bf16.mxu1 %v21778_v61 }
 0x33a   :  { %21775 = vmatprep.subr.bf16.mxu0 %v21774_v41 }
 0x33b   :  { %2799 = vmatmul.mubr.f32.vlgmr.msra.gmra.mrb[24].mxu1 %v2194_v32  ;;  %21777 = vmatpush1.bf16.msra.mxu0 %v21776_v31 }
 0x33c   :  { %3037 = vmatprep.mubr.f32.mxu1 %v32835_v24  ;;  %21781 = vmatpush1.bf16.msra.mxu1 %v21780_v19 }
 0x33d   :  { %21786 = vmatprep.subr.bf16.mxu1 %v32935_v8  ;;  %21783 = vmatprep.subr.bf16.mxu0 %v21782_v28 }
 0x38b   :  { %v20639_v40 = vpop.f32.mrb[18].mxu1 }
 0x38c   :  { %v20640_v46 = vpop.f32.mrb[19].mxu1 }
 0x38d   :  { %v20641_v50 = vadd.f32 %v20640_v46, %v20639_v40  ;;  %v20747_v56 = vpop.f32.mrb[14].mxu0  ;;  %v2882_v46 = vld [vmem:[%s32818_s10] sm:$0x1] }
 0x38e   :  { %v20748_v62 = vpop.f32.mrb[15].mxu0 }
 0x38f   :  { %v2448_v14 = vadd.f32 %v20641_v50, %v20606_v49  ;;  %v20749_v7 = vadd.f32 %v20748_v62, %v20747_v56  ;;  %v22776_v56 = vld [vmem:[%s32819_s11 + $0x4] ss:$60 sps:$4 sm:$0xff]   ;;  %v22779_v62 = vld [vmem:[%s32819_s11 + $0xc] ss:$60 sps:$4 sm:$0xff]  }
 0x391   :  { %v2518_v9 = vadd.f32 %v20676_v1, %v2448_v14  ;;  %v22774_v14 = vld [vmem:[%s32819_s11] ss:$60 sps:$4 sm:$0xff]  }
 0x3ce   :  { %v2587_v42 = vpop.f32.mrb[20].mxu1 }
 0x3cf   :  { %v2588_v55 = vadd.f32 %v2587_v42, %v2518_v9  ;;  %v21522_v25 = vpop.f32.mrb[21].mxu1  ;;  %v22782_v9 = vld [vmem:[%s32819_s11 + $0x7c] ss:$60 sps:$4 sm:$0xff]   ;;  %v22809_v42 = vld [vmem:[%s32819_s11 + $0x264] ss:$60 sps:$4 sm:$0xff]  }
 0x3d0   :  { %v2870_v59 = vpop.f32.mrb[16].mxu0  ;;  %v22807_v25 = vld [vmem:[%s32819_s11 + $0x260] ss:$60 sps:$4 sm:$0xff]  }
 0x3d1   :  { %v21529_v48 = vpop.f32.mrb[17].mxu0  ;;  %v2874_v63 = vmul.f32 0.010204081, %v2588_v55  ;;  %v22804_v55 = vld [vmem:[%s32819_s11 + $0x258] ss:$60 sps:$4 sm:$0xff]  }
 0x3d2   :  { %v22815_v48 = vld [vmem:[%s32819_s11 + $0x2dc] ss:$60 sps:$4 sm:$0xff]  }
 0x3d3   :  { %v2876_v12 = vmul.f32 %v2874_v63, %v2874_v63 }
 0x3ee   :  { %v20712_v2 = vpop.f32.mrb[22].mxu1 }
 0x3ef   :  { %v20713_v0 = vpop.f32.mrb[23].mxu1 }
 0x3f0   :  { %v20714_v13 = vadd.f32 %v20713_v0, %v20712_v2  ;;  %v22810_v2 = vld [vmem:[%s32819_s11 + $0x2d0] ss:$60 sps:$4 sm:$0xff]   ;;  %v22813_v0 = vld [vmem:[%s32819_s11 + $0x2d8] ss:$60 sps:$4 sm:$0xff]  }
 0x3f2   :  { %v2731_v17 = vadd.f32 %v20749_v7, %v20714_v13  ;;  %v22777_v7 = vld [vmem:[%s32819_s11 + $0x8] ss:$60 sps:$4 sm:$0xff]  }
 0x3f3   :  { %v22818_v13 = vld [vmem:[%s32819_s11 + $0x34c] ss:$60 sps:$4 sm:$0xff]  }
 0x40e   :  { %v20782_v3 = vpop.f32.mrb[24].mxu1 }
 0x40f   :  { %v20783_v49 = vpop.f32.mrb[25].mxu1 }
 0x410   :  { %v20784_v6 = vadd.f32 %v20783_v49, %v20782_v3  ;;  %v22816_v3 = vld [vmem:[%s32819_s11 + $0x348] ss:$60 sps:$4 sm:$0xff]   ;;  %v22819_v49 = vld [vmem:[%s32819_s11 + $0x350] ss:$60 sps:$4 sm:$0xff]  }
 0x412   :  { %v2801_v1 = vadd.f32 %v20784_v6, %v2731_v17  ;;  %v22821_v17 = vld [vmem:[%s32819_s11 + $0x354] ss:$60 sps:$4 sm:$0xff]   ;;  %v22824_v6 = vld [vmem:[%s32819_s11 + $0x3c4] ss:$60 sps:$4 sm:$0xff]  }
 0x414   :  { %v2871_v57 = vadd.f32 %v2870_v59, %v2801_v1  ;;  %v22812_v59 = vld [vmem:[%s32819_s11 + $0x2d4] ss:$60 sps:$4 sm:$0xff]   ;;  %v22822_v1 = vld [vmem:[%s32819_s11 + $0x3c0] ss:$60 sps:$4 sm:$0xff]  }
 0x416   :  { %v2875_v21 = vmul.f32 0.010204081, %v2871_v57  ;;  %v22825_v57 = vld [vmem:[%s32819_s11 + $0x3c8] ss:$60 sps:$4 sm:$0xff]  }
 0x418   :  { %v2877_v27 = vsub.f32 %v2875_v21, %v2876_v12  ;;  %v22830_v12 = vld [vmem:[%s32819_s11 + $0x43c] ss:$60 sps:$4 sm:$0xff]   ;;  %v22833_v21 = vld [vmem:[%s32819_s11 + $0x444] ss:$60 sps:$4 sm:$0xff]  }
 0x41a   :  { %v2879_v60 = vadd.f32 1e-05, %v2877_v27  ;;  %v22828_v27 = vld [vmem:[%s32819_s11 + $0x438] ss:$60 sps:$4 sm:$0xff]  }
 0x41c   :  { %24987 = vrsqrt.f32 %v2879_v60  ;;  %v22831_v60 = vld [vmem:[%s32819_s11 + $0x440] ss:$60 sps:$4 sm:$0xff]  }
 0x426   :  { %v24988_v20 = vpop.eup %24987 }
 0x427   :  { %v2881_v32 = vmul.f32 %v24988_v20, %v2878_v16  ;;  %v22842_v16 = vld [vmem:[%s32819_s11 + $0x52c] ss:$60 sps:$4 sm:$0xff]   ;;  %v22845_v20 = vld [vmem:[%s32819_s11 + $0x534] ss:$60 sps:$4 sm:$0xff]  }
 0x429   :  { %18954 = vmatmul.mubr.msk.f32.vlgmr.msra.gmra.mrb[18].mxu0 %vm2307_vm4, %v2881_v32  ;;  %18955 = vmatmul.mubr.msk.f32.vlgmr.msra.gmra.mrb[26].mxu1 %vm2307_vm4, %v2881_v32  ;;  %v2883_v40 = vmul.f32 %v2881_v32, %v2874_v63  ;;  %v22827_v63 = vld [vmem:[%s32819_s11 + $0x3cc] ss:$60 sps:$4 sm:$0xff]  }
 0x42a   :  { %21785 = vmatpush1.bf16.msra.mxu0 %v21784_v23  ;;  %21788 = vmatpush3.bf16.msra.mxu1 %v21787_v29 }
 0x42b   :  { %3108 = vmatprep.mubr.f32.mxu0 %v32835_v24  ;;  %21534 = vmatprep.mubr.msk.f32.mxu1 %vm25045_vm2, %v32835_v24  ;;  %v2884_v50 = vsub.f32 %v2882_v46, %v2883_v40  ;;  %v22848_v40 = vld [vmem:[%s32819_s11 + $0x5a4] ss:$60 sps:$4 sm:$0xff]  }
 0x42c   :  { %21790 = vmatprep.subr.bf16.mxu0 %v21774_v41  ;;  %21794 = vmatprep.subr.bf16.mxu1 %v21778_v61  ;;  %v22788_v41 = vld [vmem:[%s32819_s11 + $0xf4] ss:$60 sps:$4 sm:$0xff]   ;;  %v22794_v61 = vld [vmem:[%s32819_s11 + $0x16c] ss:$60 sps:$4 sm:$0xff]  }
 0x42d   :  { %18956 = vmatmul.mubr.msk.f32.vlgmr.msra.gmra.mrb[20].mxu0 %vm2307_vm4, %v2881_v32  ;;  %21535 = vmatmul.mubr.msk.f32.vlgmr.msra.gmra.mrb[28].mxu1 %vm2307_vm4, %v2881_v32  ;;  %v22846_v32 = vld [vmem:[%s32819_s11 + $0x5a0] ss:$60 sps:$4 sm:$0xff]   ;;  %v22849_v46 = vld [vmem:[%s32819_s11 + $0x5a8] ss:$60 sps:$4 sm:$0xff]  }
 0x42e   :  { %21792 = vmatpush1.bf16.msra.mxu0 %v21776_v31  ;;  %21796 = vmatpush1.bf16.msra.mxu1 %v21780_v19  ;;  %v22797_v31 = vld [vmem:[%s32819_s11 + $0x174] ss:$60 sps:$4 sm:$0xff]   ;;  %v22800_v19 = vld [vmem:[%s32819_s11 + $0x1e4] ss:$60 sps:$4 sm:$0xff]  }
 0x42f   :  { %3252 = vmatprep.mubr.f32.mxu0 %v32835_v24  ;;  %3323 = vmatprep.mubr.f32.mxu1 %v32835_v24 }
 0x430   :  { %21798 = vmatprep.subr.bf16.mxu0 %v21782_v28  ;;  %21801 = vmatprep.subr.bf16.mxu1 %v32935_v8  ;;  %v22803_v8 = vld [vmem:[%s32819_s11 + $0x1ec] ss:$60 sps:$4 sm:$0xff]   ;;  %v22806_v28 = vld [vmem:[%s32819_s11 + $0x25c] ss:$60 sps:$4 sm:$0xff]  }
 0x431   :  { %18958 = vmatmul.mubr.msk.f32.vlgmr.msra.gmra.mrb[22].mxu0 %vm2307_vm4, %v2884_v50  ;;  %18959 = vmatmul.mubr.msk.f32.vlgmr.msra.gmra.mrb[30].mxu1 %vm2307_vm4, %v2884_v50 }
 0x432   :  { %21800 = vmatpush1.bf16.msra.mxu0 %v21784_v23  ;;  %21803 = vmatpush3.bf16.msra.mxu1 %v21787_v29  ;;  %v22840_v23 = vld [vmem:[%s32819_s11 + $0x528] ss:$60 sps:$4 sm:$0xff]   ;;  %v22843_v29 = vld [vmem:[%s32819_s11 + $0x530] ss:$60 sps:$4 sm:$0xff]  }
 0x433   :  { %3394 = vmatprep.mubr.f32.mxu0 %v32835_v24  ;;  %21541 = vmatprep.mubr.msk.f32.mxu1 %vm25045_vm2, %v32835_v24 }
 0x434   :  { %8066 = vmatprep.subr.bf16.mxu0 %v22776_v56  ;;  %8230 = vmatprep.subr.bf16.mxu1 %v22779_v62  ;;  %v22852_v56 = vld [vmem:[%s32819_s11 + $0x618] ss:$60 sps:$4 sm:$0xff]  }
 0x435   :  { %18960 = vmatmul.mubr.msk.f32.vlgmr.msra.gmra.mrb[24].mxu0 %vm2307_vm4, %v2884_v50  ;;  %21542 = vmatmul.mubr.msk.f32.vlgmr.msra.gmra.mrb[32].mxu1 %vm2307_vm4, %v2884_v50  ;;  %v22851_v50 = vld [vmem:[%s32819_s11 + $0x5ac] ss:$60 sps:$4 sm:$0xff]   ;;  %v22854_v62 = vld [vmem:[%s32819_s11 + $0x61c] ss:$60 sps:$4 sm:$0xff]  }
 0x436   :  { %8067 = vmatpush1.bf16.msra.mxu0 %v22774_v14  ;;  %8231 = vmatpush1.bf16.msra.mxu1 %v22777_v7  ;;  %v22855_v14 = vld [vmem:[%s32819_s11 + $0x620] ss:$60 sps:$4 sm:$0xff]  }
 0x437   :  { %8068 = vmatprep.subr.bf16.mxu0 %v22782_v9  ;;  %8232 = vmatprep.subr.bf16.mxu1 %v22785_v10  ;;  %v22857_v7 = vld [vmem:[%s32819_s11 + $0x624] ss:$60 sps:$4 sm:$0xff]   ;;  %v22860_v9 = vld [vmem:[%s32819_s11 + $0x694] ss:$60 sps:$4 sm:$0xff]   ;;  %v22863_v10 = vld [vmem:[%s32819_s11 + $0x69c] ss:$60 sps:$4 sm:$0xff]  }
 0x43a   :  { %8069 = vmatpush1.bf16.msra.mxu0 %v22780_v36  ;;  %8233 = vmatpush1.bf16.msra.mxu1 %v22783_v26  ;;  %v22858_v36 = vld [vmem:[%s32819_s11 + $0x690] ss:$60 sps:$4 sm:$0xff]   ;;  %v22861_v26 = vld [vmem:[%s32819_s11 + $0x698] ss:$60 sps:$4 sm:$0xff]  }
 0x43b   :  { %8070 = vmatprep.subr.bf16.mxu0 %v22788_v41  ;;  %8234 = vmatprep.subr.bf16.mxu1 %v22791_v33  ;;  %v22866_v41 = vld [vmem:[%s32819_s11 + $0x70c] ss:$60 sps:$4 sm:$0xff]   ;;  %v22869_v33 = vld [vmem:[%s32819_s11 + $0x714] ss:$60 sps:$4 sm:$0xff]  }
 0x43e   :  { %8071 = vmatpush1.bf16.msra.mxu0 %v22786_v4  ;;  %8235 = vmatpush1.bf16.msra.mxu1 %v22789_v11  ;;  %v22864_v4 = vld [vmem:[%s32819_s11 + $0x708] ss:$60 sps:$4 sm:$0xff]   ;;  %v22867_v11 = vld [vmem:[%s32819_s11 + $0x710] ss:$60 sps:$4 sm:$0xff]  }
 0x43f   :  { %8072 = vmatprep.subr.bf16.mxu0 %v22794_v61  ;;  %8236 = vmatprep.subr.bf16.mxu1 %v22797_v31  ;;  %v22872_v61 = vld [vmem:[%s32819_s11 + $0x784] ss:$60 sps:$4 sm:$0xff]   ;;  %v22875_v31 = vld [vmem:[%s32819_s11 + $0x78c] ss:$60 sps:$4 sm:$0xff]  }
 0x442   :  { %8073 = vmatpush1.bf16.msra.mxu0 %v22792_v22  ;;  %8237 = vmatpush1.bf16.msra.mxu1 %v22795_v58 }
 0x443   :  { %8074 = vmatprep.subr.bf16.mxu0 %v22800_v19  ;;  %8238 = vmatprep.subr.bf16.mxu1 %v22803_v8 }
 0x446   :  { %8075 = vmatpush1.bf16.msra.mxu0 %v22798_v51  ;;  %8239 = vmatpush1.bf16.msra.mxu1 %v22801_v15 }
 0x447   :  { %8076 = vmatprep.subr.bf16.mxu0 %v22806_v28  ;;  %8240 = vmatprep.subr.bf16.mxu1 %v22809_v42 }
 0x44a   :  { %8077 = vmatpush1.bf16.msra.mxu0 %v22804_v55  ;;  %8241 = vmatpush1.bf16.msra.mxu1 %v22807_v25 }
 0x44b   :  { %8078 = vmatprep.subr.bf16.mxu0 %v22812_v59  ;;  %8242 = vmatprep.subr.bf16.mxu1 %v22815_v48 }
 0x44e   :  { %8079 = vmatpush1.bf16.msra.mxu0 %v22810_v2  ;;  %8243 = vmatpush1.bf16.msra.mxu1 %v22813_v0 }
 0x44f   :  { %8080 = vmatprep.subr.bf16.mxu0 %v22818_v13  ;;  %8244 = vmatprep.subr.bf16.mxu1 %v22821_v17 }
 0x452   :  { %8081 = vmatpush1.bf16.msra.mxu0 %v22816_v3  ;;  %8245 = vmatpush1.bf16.msra.mxu1 %v22819_v49 }
 0x453   :  { %8082 = vmatprep.subr.bf16.mxu0 %v22824_v6  ;;  %8246 = vmatprep.subr.bf16.mxu1 %v22827_v63 }
 0x456   :  { %8083 = vmatpush1.bf16.msra.mxu0 %v22822_v1  ;;  %8247 = vmatpush1.bf16.msra.mxu1 %v22825_v57 }
 0x457   :  { %8084 = vmatprep.subr.bf16.mxu0 %v22830_v12  ;;  %8248 = vmatprep.subr.bf16.mxu1 %v22833_v21 }
 0x45a   :  { %8085 = vmatpush1.bf16.msra.mxu0 %v22828_v27  ;;  %8249 = vmatpush1.bf16.msra.mxu1 %v22831_v60 }
 0x45b   :  { %8086 = vmatprep.subr.bf16.mxu0 %v22836_v30  ;;  %8250 = vmatprep.subr.bf16.mxu1 %v22839_v34 }
 0x45e   :  { %8087 = vmatpush1.bf16.msra.mxu0 %v22834_v43  ;;  %8251 = vmatpush1.bf16.msra.mxu1 %v22837_v37 }
 0x45f   :  { %8088 = vmatprep.subr.bf16.mxu0 %v22842_v16  ;;  %8252 = vmatprep.subr.bf16.mxu1 %v22845_v20 }
 0x462   :  { %8089 = vmatpush1.bf16.msra.mxu0 %v22840_v23  ;;  %8253 = vmatpush1.bf16.msra.mxu1 %v22843_v29 }
 0x463   :  { %8090 = vmatprep.subr.bf16.mxu0 %v22848_v40  ;;  %8254 = vmatprep.subr.bf16.mxu1 %v22851_v50 }
 0x466   :  { %8091 = vmatpush1.bf16.msra.mxu0 %v22846_v32  ;;  %8255 = vmatpush1.bf16.msra.mxu1 %v22849_v46 }
 0x467   :  { %8092 = vmatprep.subr.bf16.mxu0 %v22854_v62  ;;  %8256 = vmatprep.subr.bf16.mxu1 %v22857_v7 }
 0x46a   :  { %8093 = vmatpush1.bf16.msra.mxu0 %v22852_v56  ;;  %8257 = vmatpush1.bf16.msra.mxu1 %v22855_v14 }
 0x46b   :  { %8094 = vmatprep.subr.bf16.mxu0 %v22860_v9  ;;  %8258 = vmatprep.subr.bf16.mxu1 %v22863_v10  ;;  %v22873_v9 = vld [vmem:[%s32819_s11 + $0x788] ss:$60 sps:$4 sm:$0xff]  }
 0x46e   :  { %8095 = vmatpush1.bf16.msra.mxu0 %v22858_v36  ;;  %8259 = vmatpush1.bf16.msra.mxu1 %v22861_v26  ;;  %v22878_v36 = vld [vmem:[%s32819_s11 + $0x7fc] ss:$60 sps:$4 sm:$0xff]   ;;  %v22881_v26 = vld [vmem:[%s32819_s11 + $0x804] ss:$60 sps:$4 sm:$0xff]  }
 0x46f   :  { %8096 = vmatprep.subr.bf16.mxu0 %v22866_v41  ;;  %8260 = vmatprep.subr.bf16.mxu1 %v22869_v33  ;;  %v22876_v33 = vld [vmem:[%s32819_s11 + $0x7f8] ss:$60 sps:$4 sm:$0xff]  }
 0x472   :  { %8097 = vmatpush1.bf16.msra.mxu0 %v22864_v4  ;;  %8261 = vmatpush1.bf16.msra.mxu1 %v22867_v11  ;;  %v22879_v4 = vld [vmem:[%s32819_s11 + $0x800] ss:$60 sps:$4 sm:$0xff]   ;;  %v22884_v11 = vld [vmem:[%s32819_s11 + $0x874] ss:$60 sps:$4 sm:$0xff]  }
 0x473   :  { %8107 = vmatprep.subr.bf16.mxu0 %v22872_v61  ;;  %8271 = vmatprep.subr.bf16.mxu1 %v22875_v31  ;;  %v22887_v61 = vld [vmem:[%s32819_s11 + $0x87c] ss:$60 sps:$4 sm:$0xff]   ;;  %v22882_v31 = vld [vmem:[%s32819_s11 + $0x870] ss:$60 sps:$4 sm:$0xff]  }
 0x4fc   :  { %v2968_v22 = vpop.f32.mrb[18].mxu0  ;;  %v3039_v58 = vpop.f32.mrb[26].mxu1 }
 0x4fd   :  { %v3474_v19 = vrot.slane %v2968_v22, %v25418_v35  ;;  %v3482_v8 = vrot.slane %v3039_v58, %v25418_v35  ;;  %v2970_v51 = vpop.f32.mrb[19].mxu0  ;;  %v3041_v15 = vpop.f32.mrb[27].mxu1  ;;  %v22885_v22 = vld [vmem:[%s32819_s11 + $0x878] ss:$60 sps:$4 sm:$0xff]   ;;  %v22890_v58 = vld [vmem:[%s32819_s11 + $0x8ec] ss:$60 sps:$4 sm:$0xff]  }
 0x4fe   :  { %v3478_v28 = vrot.slane %v2970_v51, %v25418_v35  ;;  %v3486_v42 = vrot.slane %v3041_v15, %v25418_v35  ;;  %v22891_v51 = vld [vmem:[%s32819_s11 + $0x8f0] ss:$60 sps:$4 sm:$0xff]   ;;  %v22896_v15 = vld [vmem:[%s32819_s11 + $0x964] ss:$60 sps:$4 sm:$0xff]  }
 0x4ff   :  { %v3499_v55 = vmul.f32 %v3474_v19, %v26233_v45  ;;  %v3501_v25 = vmul.f32 %v3482_v8, %v26359_v18  ;;  %v22893_v19 = vld [vmem:[%s32819_s11 + $0x8f4] ss:$60 sps:$4 sm:$0xff]   ;;  %v22888_v8 = vld [vmem:[%s32819_s11 + $0x8e8] ss:$60 sps:$4 sm:$0xff]  }
 0x500   :  { %v3500_v59 = vmul.f32 %v3478_v28, %v26241_v52  ;;  %v3502_v48 = vmul.f32 %v3486_v42, %v26365_v39  ;;  %v3110_v2 = vpop.f32.mrb[20].mxu0  ;;  %v3181_v0 = vpop.f32.mrb[28].mxu1  ;;  %v22899_v28 = vld [vmem:[%s32819_s11 + $0x96c] ss:$60 sps:$4 sm:$0xff]   ;;  %v22894_v42 = vld [vmem:[%s32819_s11 + $0x960] ss:$60 sps:$4 sm:$0xff]  }
 0x501   :  { %v3490_v13 = vrot.slane %v3110_v2, %v25418_v35  ;;  %v3112_v17 = vpop.f32.mrb[21].mxu0  ;;  %v21536_v3 = vpop.f32.mrb[29].mxu1  ;;  %v3498_v18 = vrot.slane %v3181_v0, %v25418_v35  ;;  %v22903_v2 = vld [vmem:[%s32819_s11 + $0x9e0] ss:$60 sps:$4 sm:$0xff]   ;;  %v22908_v0 = vld [vmem:[%s32819_s11 + $0xa54] ss:$60 sps:$4 sm:$0xff]  }
 0x502   :  { %v3494_v49 = vrot.slane %v3112_v17, %v25418_v35  ;;  %v22906_v17 = vld [vmem:[%s32819_s11 + $0xa50] ss:$60 sps:$4 sm:$0xff]   ;;  %v22909_v3 = vld [vmem:[%s32819_s11 + $0xa58] ss:$60 sps:$4 sm:$0xff]  }
 0x503   :  { %v3503_v6 = vmul.f32 %v3490_v13, %v26235_v47  ;;  %v3505_v37 = vmul.f32 %v3498_v18, %v26387_v44  ;;  %v22870_v44 = vld [vmem:[%s32819_s11 + $0x780] ss:$60 sps:$4 sm:$0xff]   ;;  %v22923_v18 = vld [vmem:[%s32819_s11 + $0xb4c] ss:$60 sps:$4 sm:$0xff]  }
 0x504   :  { %v3504_v63 = vmul.f32 %v3494_v49, %v26243_v53  ;;  %v3254_v1 = vpop.f32.mrb[22].mxu0  ;;  %v3325_v45 = vpop.f32.mrb[30].mxu1  ;;  %v22911_v13 = vld [vmem:[%s32819_s11 + $0xa5c] ss:$60 sps:$4 sm:$0xff]   ;;  %v22914_v49 = vld [vmem:[%s32819_s11 + $0xacc] ss:$60 sps:$4 sm:$0xff]  }
 0x505   :  { %v3509_v52 = vrot.slane %v3254_v1, %v25418_v35  ;;  %v3517_v39 = vrot.slane %v3325_v45, %v25418_v35  ;;  %v3256_v57 = vpop.f32.mrb[23].mxu0  ;;  %v3327_v12 = vpop.f32.mrb[31].mxu1  ;;  %v22915_v1 = vld [vmem:[%s32819_s11 + $0xad0] ss:$60 sps:$4 sm:$0xff]   ;;  %v22920_v45 = vld [vmem:[%s32819_s11 + $0xb44] ss:$60 sps:$4 sm:$0xff]  }
 0x506   :  { %v3513_v21 = vrot.slane %v3256_v57, %v25418_v35  ;;  %v3521_v27 = vrot.slane %v3327_v12, %v25418_v35  ;;  %v22926_v57 = vld [vmem:[%s32819_s11 + $0xbbc] ss:$60 sps:$4 sm:$0xff]   ;;  %v22929_v12 = vld [vmem:[%s32819_s11 + $0xbc4] ss:$60 sps:$4 sm:$0xff]  }
 0x507   :  { %v3534_v60 = vadd.f32 %v3509_v52, %v3499_v55  ;;  %v26717_v30 = vadd.f32 %v3517_v39, %v3501_v25  ;;  %v22897_v55 = vld [vmem:[%s32819_s11 + $0x968] ss:$60 sps:$4 sm:$0xff]   ;;  %v22902_v25 = vld [vmem:[%s32819_s11 + $0x9dc] ss:$60 sps:$4 sm:$0xff]  }
 0x508   :  { %v3535_v47 = vadd.f32 %v3513_v21, %v3500_v59  ;;  %v3537_v34 = vadd.f32 %v3521_v27, %v3502_v48  ;;  %v3396_v53 = vpop.f32.mrb[24].mxu0  ;;  %v3467_v43 = vpop.f32.mrb[32].mxu1  ;;  %v22905_v59 = vld [vmem:[%s32819_s11 + $0x9e4] ss:$60 sps:$4 sm:$0xff]   ;;  %v22900_v48 = vld [vmem:[%s32819_s11 + $0x9d8] ss:$60 sps:$4 sm:$0xff]  }
 0x509   :  { %v3541_v16 = vmax.f32 %v3534_v60, 0.0  ;;  %v3525_v20 = vrot.slane %v3396_v53, %v25418_v35  ;;  %v3533_v23 = vrot.slane %v3467_v43, %v25418_v35  ;;  %v3398_v29 = vpop.f32.mrb[25].mxu0  ;;  %v21543_v32 = vpop.f32.mrb[33].mxu1  ;;  %v22918_v52 = vld [vmem:[%s32819_s11 + $0xb40] ss:$60 sps:$4 sm:$0xff]  }
 0x50a   :  { %v3542_v40 = vmax.f32 %v3535_v47, 0.0  ;;  %v3529_v46 = vrot.slane %v3398_v29, %v25418_v35  ;;  %v3544_v50 = vmax.f32 %v3537_v34, 0.0  ;;  %v22921_v39 = vld [vmem:[%s32819_s11 + $0xb48] ss:$60 sps:$4 sm:$0xff]   ;;  %v22924_v21 = vld [vmem:[%s32819_s11 + $0xbb8] ss:$60 sps:$4 sm:$0xff]  }
 0x50b   :  { %v26723_v56 = vadd.f32 %v3525_v20, %v3503_v6  ;;  %v26725_v62 = vadd.f32 %v3533_v23, %v3505_v37  ;;  %v26737_v10 = vpack.c.bf16 %v3541_v16, %v3541_v16  ;;  %v22917_v6 = vld [vmem:[%s32819_s11 + $0xad4] ss:$60 sps:$4 sm:$0xff]   ;;  %v22927_v27 = vld [vmem:[%s32819_s11 + $0xbc0] ss:$60 sps:$4 sm:$0xff]   ;;  %v22938_v43 = vld [vmem:[%s32819_s11 + $0xcac] ss:$60 sps:$4 sm:$0xff]  }
 0x50c   :  { %v26727_v14 = vpack.c.bf16 %v3542_v40, %v3542_v40  ;;  %v26729_v7 = vadd.f32 %v3529_v46, %v3504_v63  ;;  %v26747_v41 = vpack.c.bf16 %v3544_v50, %v3544_v50  ;;  %v22912_v63 = vld [vmem:[%s32819_s11 + $0xac8] ss:$60 sps:$4 sm:$0xff]   ;;  %v22932_v60 = vld [vmem:[%s32819_s11 + $0xc34] ss:$60 sps:$4 sm:$0xff]   ;;  %v22935_v47 = vld [vmem:[%s32819_s11 + $0xc3c] ss:$60 sps:$4 sm:$0xff]  }
 0x50d   :  { %v22930_v34 = vld [vmem:[%s32819_s11 + $0xc30] ss:$60 sps:$4 sm:$0xff]   ;;  %v22933_v53 = vld [vmem:[%s32819_s11 + $0xc38] ss:$60 sps:$4 sm:$0xff]   ;;  %v22936_v16 = vld [vmem:[%s32819_s11 + $0xca8] ss:$60 sps:$4 sm:$0xff]  }
 0x50e   :  { %8098 = vmatprep.mubr.bf16.mxu0 %v26727_v14  ;;  %8262 = vmatprep.mubr.bf16.mxu1 %v26727_v14  ;;  %v22941_v37 = vld [vmem:[%s32819_s11 + $0xcb4] ss:$60 sps:$4 sm:$0xff]   ;;  %v22944_v23 = vld [vmem:[%s32819_s11 + $0xd24] ss:$60 sps:$4 sm:$0xff]   ;;  %v22947_v29 = vld [vmem:[%s32819_s11 + $0xd2c] ss:$60 sps:$4 sm:$0xff]  }
 0x50f   :  { %8099 = vmatmul.mubr.bf16.vlgmr.msra.gmra.mrb[28].mxu0 %v26737_v10  ;;  %8263 = vmatmul.mubr.bf16.vlgmr.msra.gmra.mrb[36].mxu1 %v26737_v10  ;;  %v22939_v20 = vld [vmem:[%s32819_s11 + $0xcb0] ss:$60 sps:$4 sm:$0xff]   ;;  %v22942_v32 = vld [vmem:[%s32819_s11 + $0xd20] ss:$60 sps:$4 sm:$0xff]   ;;  %v22945_v40 = vld [vmem:[%s32819_s11 + $0xd28] ss:$60 sps:$4 sm:$0xff]  }
 0x510   :  { %8108 = vmatpush1.bf16.msra.mxu0 %v22870_v44  ;;  %8272 = vmatpush1.bf16.msra.mxu1 %v22873_v9  ;;  %v22950_v46 = vld [vmem:[%s32819_s11 + $0xd9c] ss:$60 sps:$4 sm:$0xff]   ;;  %v22953_v50 = vld [vmem:[%s32819_s11 + $0xda4] ss:$60 sps:$4 sm:$0xff]  }
 0x511   :  { %8139 = vmatprep.mubr.bf16.mxu0 %v26747_v41  ;;  %8303 = vmatprep.mubr.bf16.mxu1 %v26747_v41  ;;  %v22948_v44 = vld [vmem:[%s32819_s11 + $0xd98] ss:$60 sps:$4 sm:$0xff]   ;;  %v22951_v9 = vld [vmem:[%s32819_s11 + $0xda0] ss:$60 sps:$4 sm:$0xff]  }
 0x512   :  { %8109 = vmatprep.subr.bf16.mxu0 %v22878_v36  ;;  %8273 = vmatprep.subr.bf16.mxu1 %v22881_v26  ;;  %v22956_v36 = vld [vmem:[%s32819_s11 + $0xe14] ss:$60 sps:$4 sm:$0xff]   ;;  %v22959_v26 = vld [vmem:[%s32819_s11 + $0xe1c] ss:$60 sps:$4 sm:$0xff]  }
 0x514   :  { %8110 = vmatpush1.bf16.msra.mxu0 %v22876_v33  ;;  %8274 = vmatpush1.bf16.msra.mxu1 %v22879_v4  ;;  %v22954_v33 = vld [vmem:[%s32819_s11 + $0xe10] ss:$60 sps:$4 sm:$0xff]   ;;  %v22957_v4 = vld [vmem:[%s32819_s11 + $0xe18] ss:$60 sps:$4 sm:$0xff]  }
 0x515   :  { %8111 = vmatprep.subr.bf16.mxu0 %v22884_v11  ;;  %8275 = vmatprep.subr.bf16.mxu1 %v22887_v61  ;;  %v22962_v11 = vld [vmem:[%s32819_s11 + $0xe8c] ss:$60 sps:$4 sm:$0xff]   ;;  %v22965_v61 = vld [vmem:[%s32819_s11 + $0xe94] ss:$60 sps:$4 sm:$0xff]  }
 0x518   :  { %8112 = vmatpush1.bf16.msra.mxu0 %v22882_v31  ;;  %8276 = vmatpush1.bf16.msra.mxu1 %v22885_v22  ;;  %v22960_v31 = vld [vmem:[%s32819_s11 + $0xe88] ss:$60 sps:$4 sm:$0xff]   ;;  %v22963_v22 = vld [vmem:[%s32819_s11 + $0xe90] ss:$60 sps:$4 sm:$0xff]  }
 0x519   :  { %8113 = vmatprep.subr.bf16.mxu0 %v22890_v58  ;;  %8277 = vmatprep.subr.bf16.mxu1 %v22893_v19  ;;  %v3543_v58 = vmax.f32 %v26717_v30, 0.0  ;;  %v22968_v19 = vld [vmem:[%s32819_s11 + $0xf04] ss:$60 sps:$4 sm:$0xff]  }
 0x51a   :  { %v22969_v30 = vld [vmem:[%s32819_s11 + $0xf08] ss:$60 sps:$4 sm:$0xff]  }
 0x51c   :  { %8114 = vmatpush1.bf16.msra.mxu0 %v22888_v8  ;;  %8278 = vmatpush1.bf16.msra.mxu1 %v22891_v51  ;;  %v22971_v8 = vld [vmem:[%s32819_s11 + $0xf0c] ss:$60 sps:$4 sm:$0xff]   ;;  %v3546_v51 = vmax.f32 %v26729_v7, 0.0  ;;  %v22974_v7 = vld [vmem:[%s32819_s11 + $0xf7c] ss:$60 sps:$4 sm:$0xff]  }
 0x51d   :  { %8115 = vmatprep.subr.bf16.mxu0 %v22896_v15  ;;  %8279 = vmatprep.subr.bf16.mxu1 %v22899_v28  ;;  %v22966_v15 = vld [vmem:[%s32819_s11 + $0xf00] ss:$60 sps:$4 sm:$0xff]   ;;  %v26938_v28 = vpack.c.bf16 %v3543_v58, %v3543_v58 }
 0x51e   :  { %v23038_v58 = vld [vmem:[%s32819_s11 + $0x14a0] ss:$60 sps:$4 sm:$0xff]  }
 0x520   :  { %8116 = vmatpush1.bf16.msra.mxu0 %v22894_v42  ;;  %8280 = vmatpush1.bf16.msra.mxu1 %v22897_v55  ;;  %v26943_v42 = vpack.c.bf16 %v3546_v51, %v3546_v51  ;;  %v22977_v55 = vld [vmem:[%s32819_s11 + $0xf84] ss:$60 sps:$4 sm:$0xff]  }
 0x521   :  { %8117 = vmatprep.subr.bf16.mxu0 %v22902_v25  ;;  %8281 = vmatprep.subr.bf16.mxu1 %v22905_v59  ;;  %v22972_v25 = vld [vmem:[%s32819_s11 + $0xf78] ss:$60 sps:$4 sm:$0xff]   ;;  %v22975_v59 = vld [vmem:[%s32819_s11 + $0xf80] ss:$60 sps:$4 sm:$0xff]  }
 0x522   :  { %v23049_v51 = vld [vmem:[%s32819_s11 + $0x1524] ss:$60 sps:$4 sm:$0xff]  }
 0x524   :  { %8118 = vmatpush1.bf16.msra.mxu0 %v22900_v48  ;;  %8282 = vmatpush1.bf16.msra.mxu1 %v22903_v2  ;;  %v22980_v48 = vld [vmem:[%s32819_s11 + $0xff4] ss:$60 sps:$4 sm:$0xff]   ;;  %v22983_v2 = vld [vmem:[%s32819_s11 + $0xffc] ss:$60 sps:$4 sm:$0xff]  }
 0x525   :  { %8119 = vmatprep.subr.bf16.mxu0 %v22908_v0  ;;  %8283 = vmatprep.subr.bf16.mxu1 %v22911_v13  ;;  %v22978_v0 = vld [vmem:[%s32819_s11 + $0xff0] ss:$60 sps:$4 sm:$0xff]   ;;  %v22981_v13 = vld [vmem:[%s32819_s11 + $0xff8] ss:$60 sps:$4 sm:$0xff]  }
 0x528   :  { %8120 = vmatpush1.bf16.msra.mxu0 %v22906_v17  ;;  %8284 = vmatpush1.bf16.msra.mxu1 %v22909_v3  ;;  %v22986_v17 = vld [vmem:[%s32819_s11 + $0x106c] ss:$60 sps:$4 sm:$0xff]   ;;  %v22989_v3 = vld [vmem:[%s32819_s11 + $0x1074] ss:$60 sps:$4 sm:$0xff]  }
 0x529   :  { %8121 = vmatprep.subr.bf16.mxu0 %v22914_v49  ;;  %8285 = vmatprep.subr.bf16.mxu1 %v22917_v6  ;;  %v22984_v49 = vld [vmem:[%s32819_s11 + $0x1068] ss:$60 sps:$4 sm:$0xff]   ;;  %v22987_v6 = vld [vmem:[%s32819_s11 + $0x1070] ss:$60 sps:$4 sm:$0xff]  }
 0x52c   :  { %8122 = vmatpush1.bf16.msra.mxu0 %v22912_v63  ;;  %8286 = vmatpush1.bf16.msra.mxu1 %v22915_v1  ;;  %v22992_v63 = vld [vmem:[%s32819_s11 + $0x10e4] ss:$60 sps:$4 sm:$0xff]   ;;  %v22995_v1 = vld [vmem:[%s32819_s11 + $0x10ec] ss:$60 sps:$4 sm:$0xff]  }
 0x52d   :  { %8123 = vmatprep.subr.bf16.mxu0 %v22920_v45  ;;  %8287 = vmatprep.subr.bf16.mxu1 %v22923_v18  ;;  %v22990_v45 = vld [vmem:[%s32819_s11 + $0x10e0] ss:$60 sps:$4 sm:$0xff]   ;;  %v22993_v18 = vld [vmem:[%s32819_s11 + $0x10e8] ss:$60 sps:$4 sm:$0xff]  }
 0x530   :  { %8124 = vmatpush1.bf16.msra.mxu0 %v22918_v52  ;;  %8288 = vmatpush1.bf16.msra.mxu1 %v22921_v39  ;;  %v22998_v52 = vld [vmem:[%s32819_s11 + $0x115c] ss:$60 sps:$4 sm:$0xff]   ;;  %v23001_v39 = vld [vmem:[%s32819_s11 + $0x1164] ss:$60 sps:$4 sm:$0xff]  }
 0x531   :  { %8125 = vmatprep.subr.bf16.mxu0 %v22926_v57  ;;  %8289 = vmatprep.subr.bf16.mxu1 %v22929_v12  ;;  %v22996_v57 = vld [vmem:[%s32819_s11 + $0x1158] ss:$60 sps:$4 sm:$0xff]   ;;  %v22999_v12 = vld [vmem:[%s32819_s11 + $0x1160] ss:$60 sps:$4 sm:$0xff]  }
 0x534   :  { %8126 = vmatpush1.bf16.msra.mxu0 %v22924_v21  ;;  %8290 = vmatpush1.bf16.msra.mxu1 %v22927_v27  ;;  %v23004_v21 = vld [vmem:[%s32819_s11 + $0x11d4] ss:$60 sps:$4 sm:$0xff]   ;;  %v23007_v27 = vld [vmem:[%s32819_s11 + $0x11dc] ss:$60 sps:$4 sm:$0xff]  }
 0x535   :  { %8127 = vmatprep.subr.bf16.mxu0 %v22932_v60  ;;  %8291 = vmatprep.subr.bf16.mxu1 %v22935_v47  ;;  %v23002_v60 = vld [vmem:[%s32819_s11 + $0x11d0] ss:$60 sps:$4 sm:$0xff]   ;;  %v23005_v47 = vld [vmem:[%s32819_s11 + $0x11d8] ss:$60 sps:$4 sm:$0xff]  }
 0x538   :  { %8128 = vmatpush1.bf16.msra.mxu0 %v22930_v34  ;;  %8292 = vmatpush1.bf16.msra.mxu1 %v22933_v53  ;;  %v23010_v34 = vld [vmem:[%s32819_s11 + $0x124c] ss:$60 sps:$4 sm:$0xff]   ;;  %v23013_v53 = vld [vmem:[%s32819_s11 + $0x1254] ss:$60 sps:$4 sm:$0xff]  }
 0x539   :  { %8129 = vmatprep.subr.bf16.mxu0 %v22938_v43  ;;  %8293 = vmatprep.subr.bf16.mxu1 %v22941_v37  ;;  %v23008_v43 = vld [vmem:[%s32819_s11 + $0x1248] ss:$60 sps:$4 sm:$0xff]   ;;  %v23011_v37 = vld [vmem:[%s32819_s11 + $0x1250] ss:$60 sps:$4 sm:$0xff]  }
 0x53c   :  { %8130 = vmatpush1.bf16.msra.mxu0 %v22936_v16  ;;  %8294 = vmatpush1.bf16.msra.mxu1 %v22939_v20  ;;  %v23016_v16 = vld [vmem:[%s32819_s11 + $0x12c4] ss:$60 sps:$4 sm:$0xff]   ;;  %v23019_v20 = vld [vmem:[%s32819_s11 + $0x12cc] ss:$60 sps:$4 sm:$0xff]  }
 0x53d   :  { %8131 = vmatprep.subr.bf16.mxu0 %v22944_v23  ;;  %8295 = vmatprep.subr.bf16.mxu1 %v22947_v29  ;;  %v23014_v23 = vld [vmem:[%s32819_s11 + $0x12c0] ss:$60 sps:$4 sm:$0xff]   ;;  %v23017_v29 = vld [vmem:[%s32819_s11 + $0x12c8] ss:$60 sps:$4 sm:$0xff]  }
 0x540   :  { %8132 = vmatpush1.bf16.msra.mxu0 %v22942_v32  ;;  %8296 = vmatpush1.bf16.msra.mxu1 %v22945_v40  ;;  %v23022_v32 = vld [vmem:[%s32819_s11 + $0x133c] ss:$60 sps:$4 sm:$0xff]   ;;  %v23025_v40 = vld [vmem:[%s32819_s11 + $0x1344] ss:$60 sps:$4 sm:$0xff]  }
 0x541   :  { %8133 = vmatprep.subr.bf16.mxu0 %v22950_v46  ;;  %8297 = vmatprep.subr.bf16.mxu1 %v22953_v50  ;;  %v23020_v46 = vld [vmem:[%s32819_s11 + $0x1338] ss:$60 sps:$4 sm:$0xff]   ;;  %v23023_v50 = vld [vmem:[%s32819_s11 + $0x1340] ss:$60 sps:$4 sm:$0xff]  }
 0x544   :  { %8134 = vmatpush1.bf16.msra.mxu0 %v22948_v44  ;;  %8298 = vmatpush1.bf16.msra.mxu1 %v22951_v9  ;;  %v23028_v44 = vld [vmem:[%s32819_s11 + $0x13b4] ss:$60 sps:$4 sm:$0xff]   ;;  %v23031_v9 = vld [vmem:[%s32819_s11 + $0x13bc] ss:$60 sps:$4 sm:$0xff]  }
 0x545   :  { %8135 = vmatprep.subr.bf16.mxu0 %v22956_v36  ;;  %8299 = vmatprep.subr.bf16.mxu1 %v22959_v26  ;;  %v23026_v36 = vld [vmem:[%s32819_s11 + $0x13b0] ss:$60 sps:$4 sm:$0xff]   ;;  %v23029_v26 = vld [vmem:[%s32819_s11 + $0x13b8] ss:$60 sps:$4 sm:$0xff]  }
 0x548   :  { %8136 = vmatpush1.bf16.msra.mxu0 %v22954_v33  ;;  %8300 = vmatpush1.bf16.msra.mxu1 %v22957_v4  ;;  %v23034_v33 = vld [vmem:[%s32819_s11 + $0x142c] ss:$60 sps:$4 sm:$0xff]   ;;  %v23037_v4 = vld [vmem:[%s32819_s11 + $0x1434] ss:$60 sps:$4 sm:$0xff]  }
 0x549   :  { %8137 = vmatprep.subr.bf16.mxu0 %v22962_v11  ;;  %8301 = vmatprep.subr.bf16.mxu1 %v22965_v61  ;;  %v23032_v11 = vld [vmem:[%s32819_s11 + $0x1428] ss:$60 sps:$4 sm:$0xff]   ;;  %v23035_v61 = vld [vmem:[%s32819_s11 + $0x1430] ss:$60 sps:$4 sm:$0xff]  }
 0x54c   :  { %8138 = vmatpush1.bf16.msra.mxu0 %v22960_v31  ;;  %8302 = vmatpush1.bf16.msra.mxu1 %v22963_v22  ;;  %v23040_v31 = vld [vmem:[%s32819_s11 + $0x14a4] ss:$60 sps:$4 sm:$0xff]   ;;  %v23043_v22 = vld [vmem:[%s32819_s11 + $0x14ac] ss:$60 sps:$4 sm:$0xff]  }
 0x54d   :  { %8148 = vmatprep.subr.bf16.mxu0 %v22968_v19  ;;  %8312 = vmatprep.subr.bf16.mxu1 %v22971_v8  ;;  %v23041_v19 = vld [vmem:[%s32819_s11 + $0x14a8] ss:$60 sps:$4 sm:$0xff]   ;;  %v23046_v8 = vld [vmem:[%s32819_s11 + $0x151c] ss:$60 sps:$4 sm:$0xff]  }
 0x54f   :  { %8140 = vmatmul.mubr.bf16.vlgmr.msra.gmra.mrb[28].mxu0 %v26938_v28  ;;  %8304 = vmatmul.mubr.bf16.vlgmr.msra.gmra.mrb[36].mxu1 %v26938_v28 }
 0x550   :  { %8149 = vmatpush1.bf16.msra.mxu0 %v22966_v15  ;;  %8180 = vmatprep.mubr.bf16.mxu0 %v26943_v42  ;;  %v23044_v15 = vld [vmem:[%s32819_s11 + $0x1518] ss:$60 sps:$4 sm:$0xff]  }
 0x551   :  { %8313 = vmatpush1.bf16.msra.mxu1 %v22969_v30  ;;  %8344 = vmatprep.mubr.bf16.mxu1 %v26943_v42  ;;  %v23047_v30 = vld [vmem:[%s32819_s11 + $0x1520] ss:$60 sps:$4 sm:$0xff]  }
 0x552   :  { %8150 = vmatprep.subr.bf16.mxu0 %v22974_v7  ;;  %8314 = vmatprep.subr.bf16.mxu1 %v22977_v55  ;;  %v23052_v7 = vld [vmem:[%s32819_s11 + $0x1594] ss:$60 sps:$4 sm:$0xff]   ;;  %v23055_v55 = vld [vmem:[%s32819_s11 + $0x159c] ss:$60 sps:$4 sm:$0xff]  }
 0x554   :  { %8151 = vmatpush1.bf16.msra.mxu0 %v22972_v25  ;;  %v23050_v25 = vld [vmem:[%s32819_s11 + $0x1590] ss:$60 sps:$4 sm:$0xff]  }
 0x555   :  { %8315 = vmatpush1.bf16.msra.mxu1 %v22975_v59  ;;  %8152 = vmatprep.subr.bf16.mxu0 %v22980_v48  ;;  %v23053_v59 = vld [vmem:[%s32819_s11 + $0x1598] ss:$60 sps:$4 sm:$0xff]   ;;  %v23058_v48 = vld [vmem:[%s32819_s11 + $0x160c] ss:$60 sps:$4 sm:$0xff]  }
 0x556   :  { %8316 = vmatprep.subr.bf16.mxu1 %v22983_v2  ;;  %v23061_v2 = vld [vmem:[%s32819_s11 + $0x1614] ss:$60 sps:$4 sm:$0xff]  }
 0x558   :  { %8153 = vmatpush1.bf16.msra.mxu0 %v22978_v0  ;;  %v23056_v0 = vld [vmem:[%s32819_s11 + $0x1608] ss:$60 sps:$4 sm:$0xff]  }
 0x559   :  { %8317 = vmatpush1.bf16.msra.mxu1 %v22981_v13  ;;  %8154 = vmatprep.subr.bf16.mxu0 %v22986_v17  ;;  %v3545_v13 = vmax.f32 %v26723_v56, 0.0  ;;  %v23059_v17 = vld [vmem:[%s32819_s11 + $0x1610] ss:$60 sps:$4 sm:$0xff]   ;;  %v23062_v56 = vld [vmem:[%s32819_s11 + $0x1680] ss:$60 sps:$4 sm:$0xff]  }
 0x55a   :  { %8318 = vmatprep.subr.bf16.mxu1 %v22989_v3  ;;  %v23064_v3 = vld [vmem:[%s32819_s11 + $0x1684] ss:$60 sps:$4 sm:$0xff]  }
 0x55c   :  { %8155 = vmatpush1.bf16.msra.mxu0 %v22984_v49  ;;  %v23067_v49 = vld [vmem:[%s32819_s11 + $0x1c] ss:$60 sps:$4 sm:$0xff]  }
 0x55d   :  { %8319 = vmatpush1.bf16.msra.mxu1 %v22987_v6  ;;  %8156 = vmatprep.subr.bf16.mxu0 %v22992_v63  ;;  %v27139_v6 = vpack.c.bf16 %v3545_v13, %v3545_v13  ;;  %v23065_v63 = vld [vmem:[%s32819_s11 + $0x18] ss:$60 sps:$4 sm:$0xff]   ;;  %v23131_v13 = vld [vmem:[%s32819_s11 + $0x3d0] ss:$60 sps:$4 sm:$0xff]  }
 0x55e   :  { %8320 = vmatprep.subr.bf16.mxu1 %v22995_v1  ;;  %v23070_v1 = vld [vmem:[%s32819_s11 + $0x94] ss:$60 sps:$4 sm:$0xff]  }
 0x560   :  { %8157 = vmatpush1.bf16.msra.mxu0 %v22990_v45  ;;  %v23076_v45 = vld [vmem:[%s32819_s11 + $0x168c] ss:$60 sps:$4 sm:$0xff]  }
 0x561   :  { %8321 = vmatpush1.bf16.msra.mxu1 %v22993_v18  ;;  %8158 = vmatprep.subr.bf16.mxu0 %v22998_v52  ;;  %v23068_v18 = vld [vmem:[%s32819_s11 + $0x90] ss:$60 sps:$4 sm:$0xff]  }
 0x562   :  { %8322 = vmatprep.subr.bf16.mxu1 %v23001_v39  ;;  %v23073_v52 = vld [vmem:[%s32819_s11 + $0x10c] ss:$60 sps:$4 sm:$0xff]   ;;  %v32936_v39 = vmov 0  }
 0x564   :  { %8159 = vmatpush1.bf16.msra.mxu0 %v22996_v57  ;;  %v3547_v57 = vmax.f32 %v26725_v62, 0.0  ;;  %v23077_v62 = vld [vmem:[%s32819_s11 + $0x180] ss:$60 sps:$4 sm:$0xff]  }
 0x565   :  { %8323 = vmatpush1.bf16.msra.mxu1 %v22999_v12  ;;  %8160 = vmatprep.subr.bf16.mxu0 %v23004_v21  ;;  %v23071_v12 = vld [vmem:[%s32819_s11 + $0x108] ss:$60 sps:$4 sm:$0xff]  }
 0x566   :  { %8324 = vmatprep.subr.bf16.mxu1 %v23007_v27  ;;  %v23079_v21 = vld [vmem:[%s32819_s11 + $0x184] ss:$60 sps:$4 sm:$0xff]  }
 0x567   :  { %v23074_v27 = vld [vmem:[%s32819_s11 + $0x1688] ss:$60 sps:$4 sm:$0xff]  }
 0x568   :  { %8161 = vmatpush1.bf16.msra.mxu0 %v23002_v60  ;;  %v27170_v60 = vpack.c.bf16 %v3547_v57, %v3547_v57  ;;  %v23151_v57 = vld [vmem:[%s32819_s11 + $0x53c] ss:$60 sps:$4 sm:$0xff]  }
 0x569   :  { %8325 = vmatpush1.bf16.msra.mxu1 %v23005_v47  ;;  %8162 = vmatprep.subr.bf16.mxu0 %v23010_v34  ;;  %v23085_v47 = vld [vmem:[%s32819_s11 + $0x14] ss:$60 sps:$4 sm:$0xff]   ;;  %v23082_v34 = vld [vmem:[%s32819_s11 + $0x1fc] ss:$60 sps:$4 sm:$0xff]  }
 0x56a   :  { %8326 = vmatprep.subr.bf16.mxu1 %v23013_v53  ;;  %v23080_v53 = vld [vmem:[%s32819_s11 + $0x1f8] ss:$60 sps:$4 sm:$0xff]  }
 0x56c   :  { %8163 = vmatpush1.bf16.msra.mxu0 %v23008_v43  ;;  %v23088_v43 = vld [vmem:[%s32819_s11 + $0x274] ss:$60 sps:$4 sm:$0xff]  }
 0x56d   :  { %8327 = vmatpush1.bf16.msra.mxu1 %v23011_v37  ;;  %8164 = vmatprep.subr.bf16.mxu0 %v23016_v16  ;;  %v23083_v37 = vld [vmem:[%s32819_s11 + $0x10] ss:$60 sps:$4 sm:$0xff]  }
 0x56e   :  { %8328 = vmatprep.subr.bf16.mxu1 %v23019_v20  ;;  %v23086_v16 = vld [vmem:[%s32819_s11 + $0x270] ss:$60 sps:$4 sm:$0xff]  }
 0x56f   :  { %v23091_v20 = vld [vmem:[%s32819_s11 + $0x8c] ss:$60 sps:$4 sm:$0xff]  }
 0x570   :  { %8165 = vmatpush1.bf16.msra.mxu0 %v23014_v23  ;;  %v23094_v23 = vld [vmem:[%s32819_s11 + $0x2ec] ss:$60 sps:$4 sm:$0xff]  }
 0x571   :  { %8329 = vmatpush1.bf16.msra.mxu1 %v23017_v29  ;;  %8166 = vmatprep.subr.bf16.mxu0 %v23022_v32  ;;  %v23089_v29 = vld [vmem:[%s32819_s11 + $0x88] ss:$60 sps:$4 sm:$0xff]  }
 0x572   :  { %8330 = vmatprep.subr.bf16.mxu1 %v23025_v40  ;;  %v23092_v32 = vld [vmem:[%s32819_s11 + $0x2e8] ss:$60 sps:$4 sm:$0xff]  }
 0x573   :  { %v23097_v40 = vld [vmem:[%s32819_s11 + $0x104] ss:$60 sps:$4 sm:$0xff]  }
 0x574   :  { %8167 = vmatpush1.bf16.msra.mxu0 %v23020_v46  ;;  %v23100_v46 = vld [vmem:[%s32819_s11 + $0x364] ss:$60 sps:$4 sm:$0xff]  }
 0x575   :  { %8331 = vmatpush1.bf16.msra.mxu1 %v23023_v50  ;;  %8168 = vmatprep.subr.bf16.mxu0 %v23028_v44  ;;  %v23095_v50 = vld [vmem:[%s32819_s11 + $0x100] ss:$60 sps:$4 sm:$0xff]  }
 0x576   :  { %8332 = vmatprep.subr.bf16.mxu1 %v23031_v9  ;;  %v23098_v44 = vld [vmem:[%s32819_s11 + $0x360] ss:$60 sps:$4 sm:$0xff]  }
 0x577   :  { %v23103_v9 = vld [vmem:[%s32819_s11 + $0x17c] ss:$60 sps:$4 sm:$0xff]  }
 0x578   :  { %8169 = vmatpush1.bf16.msra.mxu0 %v23026_v36  ;;  %v23106_v36 = vld [vmem:[%s32819_s11 + $0x3dc] ss:$60 sps:$4 sm:$0xff]  }
 0x579   :  { %8333 = vmatpush1.bf16.msra.mxu1 %v23029_v26  ;;  %8170 = vmatprep.subr.bf16.mxu0 %v23034_v33  ;;  %v23101_v26 = vld [vmem:[%s32819_s11 + $0x178] ss:$60 sps:$4 sm:$0xff]  }
 0x57a   :  { %8334 = vmatprep.subr.bf16.mxu1 %v23037_v4  ;;  %v23104_v33 = vld [vmem:[%s32819_s11 + $0x3d8] ss:$60 sps:$4 sm:$0xff]  }
 0x57b   :  { %v23109_v4 = vld [vmem:[%s32819_s11 + $0x1f4] ss:$60 sps:$4 sm:$0xff]  }
 0x57c   :  { %8171 = vmatpush1.bf16.msra.mxu0 %v23032_v11  ;;  %v23112_v11 = vld [vmem:[%s32819_s11 + $0x454] ss:$60 sps:$4 sm:$0xff]  }
 0x57d   :  { %8335 = vmatpush1.bf16.msra.mxu1 %v23035_v61  ;;  %8172 = vmatprep.subr.bf16.mxu0 %v23040_v31  ;;  %v23107_v61 = vld [vmem:[%s32819_s11 + $0x1f0] ss:$60 sps:$4 sm:$0xff]  }
 0x57e   :  { %8336 = vmatprep.subr.bf16.mxu1 %v23043_v22  ;;  %v23110_v31 = vld [vmem:[%s32819_s11 + $0x450] ss:$60 sps:$4 sm:$0xff]  }
 0x57f   :  { %v23115_v22 = vld [vmem:[%s32819_s11 + $0x26c] ss:$60 sps:$4 sm:$0xff]  }
 0x580   :  { %8173 = vmatpush1.bf16.msra.mxu0 %v23038_v58  ;;  %v23118_v58 = vld [vmem:[%s32819_s11 + $0x4cc] ss:$60 sps:$4 sm:$0xff]  }
 0x581   :  { %8337 = vmatpush1.bf16.msra.mxu1 %v23041_v19  ;;  %8174 = vmatprep.subr.bf16.mxu0 %v23046_v8  ;;  %v23113_v19 = vld [vmem:[%s32819_s11 + $0x268] ss:$60 sps:$4 sm:$0xff]  }
 0x582   :  { %8338 = vmatprep.subr.bf16.mxu1 %v23049_v51  ;;  %v23116_v8 = vld [vmem:[%s32819_s11 + $0x4c8] ss:$60 sps:$4 sm:$0xff]  }
 0x583   :  { %v23121_v51 = vld [vmem:[%s32819_s11 + $0x2e4] ss:$60 sps:$4 sm:$0xff]  }
 0x584   :  { %8175 = vmatpush1.bf16.msra.mxu0 %v23044_v15  ;;  %v23124_v15 = vld [vmem:[%s32819_s11 + $0x544] ss:$60 sps:$4 sm:$0xff]  }
 0x585   :  { %8339 = vmatpush1.bf16.msra.mxu1 %v23047_v30  ;;  %8176 = vmatprep.subr.bf16.mxu0 %v23052_v7  ;;  %v23119_v30 = vld [vmem:[%s32819_s11 + $0x2e0] ss:$60 sps:$4 sm:$0xff]  }
 0x586   :  { %8340 = vmatprep.subr.bf16.mxu1 %v23055_v55  ;;  %v23122_v7 = vld [vmem:[%s32819_s11 + $0x540] ss:$60 sps:$4 sm:$0xff]  }
 0x587   :  { %v23127_v55 = vld [vmem:[%s32819_s11 + $0x35c] ss:$60 sps:$4 sm:$0xff]  }
 0x588   :  { %8177 = vmatpush1.bf16.msra.mxu0 %v23050_v25  ;;  %v23130_v25 = vld [vmem:[%s32819_s11 + $0x5bc] ss:$60 sps:$4 sm:$0xff]  }
 0x589   :  { %8341 = vmatpush1.bf16.msra.mxu1 %v23053_v59  ;;  %8178 = vmatprep.subr.bf16.mxu0 %v23058_v48  ;;  %v23125_v59 = vld [vmem:[%s32819_s11 + $0x358] ss:$60 sps:$4 sm:$0xff]  }
 0x58a   :  { %8342 = vmatprep.subr.bf16.mxu1 %v23061_v2  ;;  %v23128_v48 = vld [vmem:[%s32819_s11 + $0x5b8] ss:$60 sps:$4 sm:$0xff]  }
 0x58b   :  { %v23133_v2 = vld [vmem:[%s32819_s11 + $0x3d4] ss:$60 sps:$4 sm:$0xff]  }
 0x58c   :  { %8179 = vmatpush1.bf16.msra.mxu0 %v23056_v0  ;;  %v23136_v0 = vld [vmem:[%s32819_s11 + $0x634] ss:$60 sps:$4 sm:$0xff]  }
 0x58d   :  { %8343 = vmatpush1.bf16.msra.mxu1 %v23059_v17  ;;  %8189 = vmatprep.subr.bf16.mxu0 %v23064_v3  ;;  %v23134_v17 = vld [vmem:[%s32819_s11 + $0x630] ss:$60 sps:$4 sm:$0xff]  }
 0x58e   :  { %8558 = vmatprep.subr.bf16.mxu1 %v23067_v49  ;;  %v23139_v3 = vld [vmem:[%s32819_s11 + $0x44c] ss:$60 sps:$4 sm:$0xff]  }
 0x58f   :  { %8181 = vmatmul.mubr.bf16.vlgmr.msra.gmra.mrb[28].mxu0 %v27139_v6  ;;  %v23142_v49 = vld [vmem:[%s32819_s11 + $0x6ac] ss:$60 sps:$4 sm:$0xff]  }
 0x590   :  { %8345 = vmatmul.mubr.bf16.vlgmr.msra.gmra.mrb[36].mxu1 %v27139_v6  ;;  %8190 = vmatpush1.bf16.msra.mxu0 %v23062_v56  ;;  %v23137_v56 = vld [vmem:[%s32819_s11 + $0x448] ss:$60 sps:$4 sm:$0xff]  }
 0x591   :  { %8559 = vmatpush1.bf16.msra.mxu1 %v23065_v63  ;;  %8590 = vmatprep.mubr.bf16.mxu1 %v26727_v14  ;;  %v23140_v63 = vld [vmem:[%s32819_s11 + $0x6a8] ss:$60 sps:$4 sm:$0xff]  }
 0x592   :  { %8560 = vmatprep.subr.bf16.mxu1 %v23070_v1  ;;  %8221 = vmatprep.mubr.bf16.mxu0 %v32936_v39  ;;  %v23145_v1 = vld [vmem:[%s32819_s11 + $0x4c4] ss:$60 sps:$4 sm:$0xff]  }
 0x593   :  { %8353 = vmatprep.subr.bf16.mxu0 %v23076_v45  ;;  %v23148_v45 = vld [vmem:[%s32819_s11 + $0x724] ss:$60 sps:$4 sm:$0xff]  }
 0x595   :  { %8561 = vmatpush1.bf16.msra.mxu1 %v23068_v18  ;;  %v23143_v18 = vld [vmem:[%s32819_s11 + $0x4c0] ss:$60 sps:$4 sm:$0xff]  }
 0x596   :  { %8562 = vmatprep.subr.bf16.mxu1 %v23073_v52  ;;  %v23146_v52 = vld [vmem:[%s32819_s11 + $0x720] ss:$60 sps:$4 sm:$0xff]  }
 0x599   :  { %8563 = vmatpush1.bf16.msra.mxu1 %v23071_v12  ;;  %v23154_v12 = vld [vmem:[%s32819_s11 + $0x79c] ss:$60 sps:$4 sm:$0xff]  }
 0x59a   :  { %8564 = vmatprep.subr.bf16.mxu1 %v23079_v21  ;;  %v23149_v21 = vld [vmem:[%s32819_s11 + $0x538] ss:$60 sps:$4 sm:$0xff]  }
 0x59b   :  { %19697 = vmatmul.mubr.msk.bf16.vlgmr.msra.gmra.mrb[28].mxu0 %vm2307_vm4, %v27170_v60 }
 0x59c   :  { %8354 = vmatpush1.bf16.msra.mxu0 %v23074_v27  ;;  %8385 = vmatprep.mubr.bf16.mxu0 %v32936_v39  ;;  %v23152_v27 = vld [vmem:[%s32819_s11 + $0x798] ss:$60 sps:$4 sm:$0xff]  }
 0x59d   :  { %8565 = vmatpush1.bf16.msra.mxu1 %v23077_v62  ;;  %8394 = vmatprep.subr.bf16.mxu0 %v23085_v47  ;;  %v23157_v62 = vld [vmem:[%s32819_s11 + $0x5b4] ss:$60 sps:$4 sm:$0xff]  }
 0x59e   :  { %8566 = vmatprep.subr.bf16.mxu1 %v23082_v34  ;;  %v23160_v47 = vld [vmem:[%s32819_s11 + $0x814] ss:$60 sps:$4 sm:$0xff]  }
 0x59f   :  { %v23155_v34 = vld [vmem:[%s32819_s11 + $0x5b0] ss:$60 sps:$4 sm:$0xff]  }
 0x5a1   :  { %8567 = vmatpush1.bf16.msra.mxu1 %v23080_v53  ;;  %v23158_v53 = vld [vmem:[%s32819_s11 + $0x810] ss:$60 sps:$4 sm:$0xff]  }
 0x5a2   :  { %8568 = vmatprep.subr.bf16.mxu1 %v23088_v43  ;;  %v23163_v43 = vld [vmem:[%s32819_s11 + $0x62c] ss:$60 sps:$4 sm:$0xff]  }
 0x5a3   :  { %19698 = vmatmul.mubr.msk.bf16.vlgmr.msra.gmra.mrb[32].mxu0 %vm2307_vm4, %v27170_v60 }
 0x5a4   :  { %8395 = vmatpush1.bf16.msra.mxu0 %v23083_v37  ;;  %8426 = vmatprep.mubr.bf16.mxu0 %v26727_v14  ;;  %v23166_v37 = vld [vmem:[%s32819_s11 + $0x88c] ss:$60 sps:$4 sm:$0xff]  }
 0x5a5   :  { %8569 = vmatpush1.bf16.msra.mxu1 %v23086_v16  ;;  %8396 = vmatprep.subr.bf16.mxu0 %v23091_v20  ;;  %v23161_v16 = vld [vmem:[%s32819_s11 + $0x628] ss:$60 sps:$4 sm:$0xff]  }
 0x5a6   :  { %8570 = vmatprep.subr.bf16.mxu1 %v23094_v23  ;;  %v23164_v20 = vld [vmem:[%s32819_s11 + $0x888] ss:$60 sps:$4 sm:$0xff]  }
 0x5a7   :  { %v23169_v23 = vld [vmem:[%s32819_s11 + $0x6a4] ss:$60 sps:$4 sm:$0xff]  }
 0x5a8   :  { %8397 = vmatpush1.bf16.msra.mxu0 %v23089_v29  ;;  %v23172_v29 = vld [vmem:[%s32819_s11 + $0x904] ss:$60 sps:$4 sm:$0xff]  }
 0x5a9   :  { %8571 = vmatpush1.bf16.msra.mxu1 %v23092_v32  ;;  %8398 = vmatprep.subr.bf16.mxu0 %v23097_v40  ;;  %v23167_v32 = vld [vmem:[%s32819_s11 + $0x6a0] ss:$60 sps:$4 sm:$0xff]  }
 0x5aa   :  { %8572 = vmatprep.subr.bf16.mxu1 %v23100_v46  ;;  %v23170_v40 = vld [vmem:[%s32819_s11 + $0x900] ss:$60 sps:$4 sm:$0xff]  }
 0x5ab   :  { %v23175_v46 = vld [vmem:[%s32819_s11 + $0x71c] ss:$60 sps:$4 sm:$0xff]  }
 0x5ac   :  { %8399 = vmatpush1.bf16.msra.mxu0 %v23095_v50  ;;  %v23178_v50 = vld [vmem:[%s32819_s11 + $0x97c] ss:$60 sps:$4 sm:$0xff]  }
 0x5ad   :  { %8573 = vmatpush1.bf16.msra.mxu1 %v23098_v44  ;;  %8400 = vmatprep.subr.bf16.mxu0 %v23103_v9  ;;  %v23173_v44 = vld [vmem:[%s32819_s11 + $0x718] ss:$60 sps:$4 sm:$0xff]  }
 0x5ae   :  { %8574 = vmatprep.subr.bf16.mxu1 %v23106_v36  ;;  %v23176_v9 = vld [vmem:[%s32819_s11 + $0x978] ss:$60 sps:$4 sm:$0xff]  }
 0x5af   :  { %v23181_v36 = vld [vmem:[%s32819_s11 + $0x794] ss:$60 sps:$4 sm:$0xff]  }
 0x5b0   :  { %8401 = vmatpush1.bf16.msra.mxu0 %v23101_v26  ;;  %v23184_v26 = vld [vmem:[%s32819_s11 + $0x9f4] ss:$60 sps:$4 sm:$0xff]  }
 0x5b1   :  { %8575 = vmatpush1.bf16.msra.mxu1 %v23104_v33  ;;  %8402 = vmatprep.subr.bf16.mxu0 %v23109_v4  ;;  %v23179_v33 = vld [vmem:[%s32819_s11 + $0x790] ss:$60 sps:$4 sm:$0xff]  }
 0x5b2   :  { %8576 = vmatprep.subr.bf16.mxu1 %v23112_v11  ;;  %v23182_v4 = vld [vmem:[%s32819_s11 + $0x9f0] ss:$60 sps:$4 sm:$0xff]  }
 0x5b3   :  { %v23187_v11 = vld [vmem:[%s32819_s11 + $0x80c] ss:$60 sps:$4 sm:$0xff]  }
 0x5b4   :  { %8403 = vmatpush1.bf16.msra.mxu0 %v23107_v61  ;;  %v23190_v61 = vld [vmem:[%s32819_s11 + $0xa6c] ss:$60 sps:$4 sm:$0xff]  }
 0x5b5   :  { %8577 = vmatpush1.bf16.msra.mxu1 %v23110_v31  ;;  %8404 = vmatprep.subr.bf16.mxu0 %v23115_v22  ;;  %v23185_v31 = vld [vmem:[%s32819_s11 + $0x808] ss:$60 sps:$4 sm:$0xff]  }
 0x5b6   :  { %8578 = vmatprep.subr.bf16.mxu1 %v23118_v58  ;;  %v23188_v22 = vld [vmem:[%s32819_s11 + $0xa68] ss:$60 sps:$4 sm:$0xff]  }
 0x5b7   :  { %v23193_v58 = vld [vmem:[%s32819_s11 + $0x884] ss:$60 sps:$4 sm:$0xff]  }
 0x5b8   :  { %8405 = vmatpush1.bf16.msra.mxu0 %v23113_v19  ;;  %v23196_v19 = vld [vmem:[%s32819_s11 + $0xae4] ss:$60 sps:$4 sm:$0xff]  }
 0x5b9   :  { %8579 = vmatpush1.bf16.msra.mxu1 %v23116_v8  ;;  %8406 = vmatprep.subr.bf16.mxu0 %v23121_v51  ;;  %v23191_v8 = vld [vmem:[%s32819_s11 + $0x880] ss:$60 sps:$4 sm:$0xff]  }
 0x5ba   :  { %8580 = vmatprep.subr.bf16.mxu1 %v23124_v15  ;;  %v23194_v51 = vld [vmem:[%s32819_s11 + $0xae0] ss:$60 sps:$4 sm:$0xff]  }
 0x5bb   :  { %v23199_v15 = vld [vmem:[%s32819_s11 + $0x8fc] ss:$60 sps:$4 sm:$0xff]  }
 0x5bc   :  { %8407 = vmatpush1.bf16.msra.mxu0 %v23119_v30  ;;  %v23202_v30 = vld [vmem:[%s32819_s11 + $0xb5c] ss:$60 sps:$4 sm:$0xff]  }
 0x5bd   :  { %8581 = vmatpush1.bf16.msra.mxu1 %v23122_v7  ;;  %8408 = vmatprep.subr.bf16.mxu0 %v23127_v55  ;;  %v23197_v7 = vld [vmem:[%s32819_s11 + $0x8f8] ss:$60 sps:$4 sm:$0xff]  }
 0x5be   :  { %8582 = vmatprep.subr.bf16.mxu1 %v23130_v25  ;;  %v23200_v55 = vld [vmem:[%s32819_s11 + $0xb58] ss:$60 sps:$4 sm:$0xff]  }
 0x5bf   :  { %v23205_v25 = vld [vmem:[%s32819_s11 + $0x974] ss:$60 sps:$4 sm:$0xff]  }
 0x5c0   :  { %8409 = vmatpush1.bf16.msra.mxu0 %v23125_v59  ;;  %v23208_v59 = vld [vmem:[%s32819_s11 + $0xbd4] ss:$60 sps:$4 sm:$0xff]  }
 0x5c1   :  { %8583 = vmatpush1.bf16.msra.mxu1 %v23128_v48  ;;  %8410 = vmatprep.subr.bf16.mxu0 %v23133_v2  ;;  %v23203_v48 = vld [vmem:[%s32819_s11 + $0x970] ss:$60 sps:$4 sm:$0xff]  }
 0x5c2   :  { %8584 = vmatprep.subr.bf16.mxu1 %v23136_v0  ;;  %v23206_v2 = vld [vmem:[%s32819_s11 + $0xbd0] ss:$60 sps:$4 sm:$0xff]  }
 0x5c3   :  { %v23211_v0 = vld [vmem:[%s32819_s11 + $0x9ec] ss:$60 sps:$4 sm:$0xff]  }
 0x5c4   :  { %8411 = vmatpush1.bf16.msra.mxu0 %v23131_v13  ;;  %v23214_v13 = vld [vmem:[%s32819_s11 + $0xc4c] ss:$60 sps:$4 sm:$0xff]  }
 0x5c5   :  { %8585 = vmatpush1.bf16.msra.mxu1 %v23134_v17  ;;  %8412 = vmatprep.subr.bf16.mxu0 %v23139_v3  ;;  %v23209_v17 = vld [vmem:[%s32819_s11 + $0x9e8] ss:$60 sps:$4 sm:$0xff]  }
 0x5c6   :  { %8586 = vmatprep.subr.bf16.mxu1 %v23142_v49  ;;  %v23212_v3 = vld [vmem:[%s32819_s11 + $0xc48] ss:$60 sps:$4 sm:$0xff]  }
 0x5c7   :  { %v23217_v49 = vld [vmem:[%s32819_s11 + $0xa64] ss:$60 sps:$4 sm:$0xff]  }
 0x5c8   :  { %8413 = vmatpush1.bf16.msra.mxu0 %v23137_v56  ;;  %v23220_v56 = vld [vmem:[%s32819_s11 + $0xcc4] ss:$60 sps:$4 sm:$0xff]  }
 0x5c9   :  { %8587 = vmatpush1.bf16.msra.mxu1 %v23140_v63  ;;  %8414 = vmatprep.subr.bf16.mxu0 %v23145_v1  ;;  %v23215_v63 = vld [vmem:[%s32819_s11 + $0xa60] ss:$60 sps:$4 sm:$0xff]  }
 0x5ca   :  { %8588 = vmatprep.subr.bf16.mxu1 %v23148_v45  ;;  %v23218_v1 = vld [vmem:[%s32819_s11 + $0xcc0] ss:$60 sps:$4 sm:$0xff]  }
 0x5cb   :  { %v23223_v45 = vld [vmem:[%s32819_s11 + $0xadc] ss:$60 sps:$4 sm:$0xff]  }
 0x5cc   :  { %8415 = vmatpush1.bf16.msra.mxu0 %v23143_v18  ;;  %v23226_v18 = vld [vmem:[%s32819_s11 + $0xd3c] ss:$60 sps:$4 sm:$0xff]  }
 0x5cd   :  { %8589 = vmatpush1.bf16.msra.mxu1 %v23146_v52  ;;  %8416 = vmatprep.subr.bf16.mxu0 %v23151_v57  ;;  %v23221_v52 = vld [vmem:[%s32819_s11 + $0xad8] ss:$60 sps:$4 sm:$0xff]  }
 0x5ce   :  { %8599 = vmatprep.subr.bf16.mxu1 %v23154_v12  ;;  %v23224_v57 = vld [vmem:[%s32819_s11 + $0xd38] ss:$60 sps:$4 sm:$0xff]  }
 0x5cf   :  { %v23229_v12 = vld [vmem:[%s32819_s11 + $0xb54] ss:$60 sps:$4 sm:$0xff]  }
 0x5d0   :  { %8417 = vmatpush1.bf16.msra.mxu0 %v23149_v21  ;;  %8591 = vmatmul.mubr.bf16.vlgmr.msra.gmra.mrb[40].mxu1 %v26737_v10  ;;  %v23232_v21 = vld [vmem:[%s32819_s11 + $0xdb4] ss:$60 sps:$4 sm:$0xff]  }
 0x5d1   :  { %8600 = vmatpush1.bf16.msra.mxu1 %v23152_v27  ;;  %8631 = vmatprep.mubr.bf16.mxu1 %v26747_v41  ;;  %v23227_v27 = vld [vmem:[%s32819_s11 + $0xb50] ss:$60 sps:$4 sm:$0xff]  }
 0x5d2   :  { %8418 = vmatprep.subr.bf16.mxu0 %v23157_v62  ;;  %8601 = vmatprep.subr.bf16.mxu1 %v23160_v47  ;;  %v23230_v62 = vld [vmem:[%s32819_s11 + $0xdb0] ss:$60 sps:$4 sm:$0xff]  }
 0x5d3   :  { %v23235_v47 = vld [vmem:[%s32819_s11 + $0xbcc] ss:$60 sps:$4 sm:$0xff]  }
 0x5d4   :  { %8419 = vmatpush1.bf16.msra.mxu0 %v23155_v34  ;;  %v23238_v34 = vld [vmem:[%s32819_s11 + $0xe2c] ss:$60 sps:$4 sm:$0xff]  }
 0x5d5   :  { %8602 = vmatpush1.bf16.msra.mxu1 %v23158_v53  ;;  %8420 = vmatprep.subr.bf16.mxu0 %v23163_v43  ;;  %v23233_v53 = vld [vmem:[%s32819_s11 + $0xbc8] ss:$60 sps:$4 sm:$0xff]  }
 0x5d6   :  { %8603 = vmatprep.subr.bf16.mxu1 %v23166_v37  ;;  %v23236_v43 = vld [vmem:[%s32819_s11 + $0xe28] ss:$60 sps:$4 sm:$0xff]  }
 0x5d7   :  { %v23241_v37 = vld [vmem:[%s32819_s11 + $0xc44] ss:$60 sps:$4 sm:$0xff]  }
 0x5d8   :  { %8421 = vmatpush1.bf16.msra.mxu0 %v23161_v16  ;;  %v23244_v16 = vld [vmem:[%s32819_s11 + $0xea4] ss:$60 sps:$4 sm:$0xff]  }
 0x5d9   :  { %8604 = vmatpush1.bf16.msra.mxu1 %v23164_v20  ;;  %8422 = vmatprep.subr.bf16.mxu0 %v23169_v23  ;;  %v23239_v20 = vld [vmem:[%s32819_s11 + $0xc40] ss:$60 sps:$4 sm:$0xff]  }
 0x5da   :  { %8605 = vmatprep.subr.bf16.mxu1 %v23172_v29  ;;  %v23242_v23 = vld [vmem:[%s32819_s11 + $0xea0] ss:$60 sps:$4 sm:$0xff]  }
 0x5db   :  { %v23247_v29 = vld [vmem:[%s32819_s11 + $0xcbc] ss:$60 sps:$4 sm:$0xff]  }
 0x5dc   :  { %8423 = vmatpush1.bf16.msra.mxu0 %v23167_v32  ;;  %v23250_v32 = vld [vmem:[%s32819_s11 + $0xf1c] ss:$60 sps:$4 sm:$0xff]  }
 0x5dd   :  { %8606 = vmatpush1.bf16.msra.mxu1 %v23170_v40  ;;  %8424 = vmatprep.subr.bf16.mxu0 %v23175_v46  ;;  %v23245_v40 = vld [vmem:[%s32819_s11 + $0xcb8] ss:$60 sps:$4 sm:$0xff]  }
 0x5de   :  { %8607 = vmatprep.subr.bf16.mxu1 %v23178_v50  ;;  %v23248_v46 = vld [vmem:[%s32819_s11 + $0xf18] ss:$60 sps:$4 sm:$0xff]  }
 0x5df   :  { %v23253_v50 = vld [vmem:[%s32819_s11 + $0xd34] ss:$60 sps:$4 sm:$0xff]  }
 0x5e0   :  { %8425 = vmatpush1.bf16.msra.mxu0 %v23173_v44  ;;  %v23256_v44 = vld [vmem:[%s32819_s11 + $0xf94] ss:$60 sps:$4 sm:$0xff]  }
 0x5e1   :  { %8608 = vmatpush1.bf16.msra.mxu1 %v23176_v9  ;;  %8435 = vmatprep.subr.bf16.mxu0 %v23181_v36  ;;  %v23251_v9 = vld [vmem:[%s32819_s11 + $0xd30] ss:$60 sps:$4 sm:$0xff]  }
 0x5e2   :  { %8609 = vmatprep.subr.bf16.mxu1 %v23184_v26  ;;  %v23254_v36 = vld [vmem:[%s32819_s11 + $0xf90] ss:$60 sps:$4 sm:$0xff]  }
 0x5e3   :  { %8427 = vmatmul.mubr.bf16.vlgmr.msra.gmra.mrb[36].mxu0 %v26737_v10  ;;  %v23259_v26 = vld [vmem:[%s32819_s11 + $0xdac] ss:$60 sps:$4 sm:$0xff]  }
 0x5e4   :  { %8436 = vmatpush1.bf16.msra.mxu0 %v23179_v33  ;;  %8467 = vmatprep.mubr.bf16.mxu0 %v26747_v41  ;;  %v23262_v33 = vld [vmem:[%s32819_s11 + $0x100c] ss:$60 sps:$4 sm:$0xff]  }
 0x5e5   :  { %8610 = vmatpush1.bf16.msra.mxu1 %v23182_v4  ;;  %8437 = vmatprep.subr.bf16.mxu0 %v23187_v11  ;;  %v23257_v4 = vld [vmem:[%s32819_s11 + $0xda8] ss:$60 sps:$4 sm:$0xff]  }
 0x5e6   :  { %8611 = vmatprep.subr.bf16.mxu1 %v23190_v61  ;;  %v23260_v11 = vld [vmem:[%s32819_s11 + $0x1008] ss:$60 sps:$4 sm:$0xff]  }
 0x5e7   :  { %v23265_v61 = vld [vmem:[%s32819_s11 + $0xe24] ss:$60 sps:$4 sm:$0xff]  }
 0x5e8   :  { %8438 = vmatpush1.bf16.msra.mxu0 %v23185_v31  ;;  %v23268_v31 = vld [vmem:[%s32819_s11 + $0x1084] ss:$60 sps:$4 sm:$0xff]  }
 0x5e9   :  { %8612 = vmatpush1.bf16.msra.mxu1 %v23188_v22  ;;  %8439 = vmatprep.subr.bf16.mxu0 %v23193_v58  ;;  %v23263_v22 = vld [vmem:[%s32819_s11 + $0xe20] ss:$60 sps:$4 sm:$0xff]  }
 0x5ea   :  { %8613 = vmatprep.subr.bf16.mxu1 %v23196_v19  ;;  %v23266_v58 = vld [vmem:[%s32819_s11 + $0x1080] ss:$60 sps:$4 sm:$0xff]  }
 0x5eb   :  { %v23271_v19 = vld [vmem:[%s32819_s11 + $0xe9c] ss:$60 sps:$4 sm:$0xff]  }
 0x5ec   :  { %8440 = vmatpush1.bf16.msra.mxu0 %v23191_v8  ;;  %v23274_v8 = vld [vmem:[%s32819_s11 + $0x10fc] ss:$60 sps:$4 sm:$0xff]  }
 0x5ed   :  { %8614 = vmatpush1.bf16.msra.mxu1 %v23194_v51  ;;  %8441 = vmatprep.subr.bf16.mxu0 %v23199_v15  ;;  %v23269_v51 = vld [vmem:[%s32819_s11 + $0xe98] ss:$60 sps:$4 sm:$0xff]  }
 0x5ee   :  { %8615 = vmatprep.subr.bf16.mxu1 %v23202_v30  ;;  %v23272_v15 = vld [vmem:[%s32819_s11 + $0x10f8] ss:$60 sps:$4 sm:$0xff]  }
 0x5ef   :  { %v23277_v30 = vld [vmem:[%s32819_s11 + $0xf14] ss:$60 sps:$4 sm:$0xff]  }
 0x5f0   :  { %8442 = vmatpush1.bf16.msra.mxu0 %v23197_v7  ;;  %v23280_v7 = vld [vmem:[%s32819_s11 + $0x1174] ss:$60 sps:$4 sm:$0xff]  }
 0x5f1   :  { %8616 = vmatpush1.bf16.msra.mxu1 %v23200_v55  ;;  %8443 = vmatprep.subr.bf16.mxu0 %v23205_v25  ;;  %v23275_v55 = vld [vmem:[%s32819_s11 + $0xf10] ss:$60 sps:$4 sm:$0xff]  }
 0x5f2   :  { %8617 = vmatprep.subr.bf16.mxu1 %v23208_v59  ;;  %v23278_v25 = vld [vmem:[%s32819_s11 + $0x1170] ss:$60 sps:$4 sm:$0xff]  }
 0x5f3   :  { %v23283_v59 = vld [vmem:[%s32819_s11 + $0xf8c] ss:$60 sps:$4 sm:$0xff]  }
 0x5f4   :  { %8444 = vmatpush1.bf16.msra.mxu0 %v23203_v48  ;;  %v23286_v48 = vld [vmem:[%s32819_s11 + $0x11ec] ss:$60 sps:$4 sm:$0xff]  }
 0x5f5   :  { %8618 = vmatpush1.bf16.msra.mxu1 %v23206_v2  ;;  %8445 = vmatprep.subr.bf16.mxu0 %v23211_v0  ;;  %v23281_v2 = vld [vmem:[%s32819_s11 + $0xf88] ss:$60 sps:$4 sm:$0xff]  }
 0x5f6   :  { %8619 = vmatprep.subr.bf16.mxu1 %v23214_v13  ;;  %v23284_v0 = vld [vmem:[%s32819_s11 + $0x11e8] ss:$60 sps:$4 sm:$0xff]  }
 0x5f7   :  { %v23289_v13 = vld [vmem:[%s32819_s11 + $0x1004] ss:$60 sps:$4 sm:$0xff]  }
 0x5f8   :  { %8446 = vmatpush1.bf16.msra.mxu0 %v23209_v17  ;;  %v23292_v17 = vld [vmem:[%s32819_s11 + $0x1264] ss:$60 sps:$4 sm:$0xff]  }
 0x5f9   :  { %8620 = vmatpush1.bf16.msra.mxu1 %v23212_v3  ;;  %8447 = vmatprep.subr.bf16.mxu0 %v23217_v49  ;;  %v23287_v3 = vld [vmem:[%s32819_s11 + $0x1000] ss:$60 sps:$4 sm:$0xff]  }
 0x5fa   :  { %8621 = vmatprep.subr.bf16.mxu1 %v23220_v56  ;;  %v23290_v49 = vld [vmem:[%s32819_s11 + $0x1260] ss:$60 sps:$4 sm:$0xff]  }
 0x5fb   :  { %v23295_v56 = vld [vmem:[%s32819_s11 + $0x107c] ss:$60 sps:$4 sm:$0xff]  }
 0x5fc   :  { %8448 = vmatpush1.bf16.msra.mxu0 %v23215_v63  ;;  %v23298_v63 = vld [vmem:[%s32819_s11 + $0x12dc] ss:$60 sps:$4 sm:$0xff]  }
 0x5fd   :  { %8622 = vmatpush1.bf16.msra.mxu1 %v23218_v1  ;;  %8449 = vmatprep.subr.bf16.mxu0 %v23223_v45  ;;  %v23293_v1 = vld [vmem:[%s32819_s11 + $0x1078] ss:$60 sps:$4 sm:$0xff]  }
 0x5fe   :  { %8623 = vmatprep.subr.bf16.mxu1 %v23226_v18  ;;  %v23296_v45 = vld [vmem:[%s32819_s11 + $0x12d8] ss:$60 sps:$4 sm:$0xff]  }
 0x5ff   :  { %v23301_v18 = vld [vmem:[%s32819_s11 + $0x10f4] ss:$60 sps:$4 sm:$0xff]  }
 0x600   :  { %8450 = vmatpush1.bf16.msra.mxu0 %v23221_v52  ;;  %v23304_v52 = vld [vmem:[%s32819_s11 + $0x1354] ss:$60 sps:$4 sm:$0xff]  }
 0x601   :  { %8624 = vmatpush1.bf16.msra.mxu1 %v23224_v57  ;;  %8451 = vmatprep.subr.bf16.mxu0 %v23229_v12  ;;  %v23299_v57 = vld [vmem:[%s32819_s11 + $0x10f0] ss:$60 sps:$4 sm:$0xff]  }
 0x602   :  { %8625 = vmatprep.subr.bf16.mxu1 %v23232_v21  ;;  %v23302_v12 = vld [vmem:[%s32819_s11 + $0x1350] ss:$60 sps:$4 sm:$0xff]  }
 0x603   :  { %v23307_v21 = vld [vmem:[%s32819_s11 + $0x116c] ss:$60 sps:$4 sm:$0xff]  }
 0x604   :  { %8452 = vmatpush1.bf16.msra.mxu0 %v23227_v27  ;;  %v23310_v27 = vld [vmem:[%s32819_s11 + $0x13cc] ss:$60 sps:$4 sm:$0xff]  }
 0x605   :  { %8626 = vmatpush1.bf16.msra.mxu1 %v23230_v62  ;;  %8453 = vmatprep.subr.bf16.mxu0 %v23235_v47  ;;  %v23305_v62 = vld [vmem:[%s32819_s11 + $0x1168] ss:$60 sps:$4 sm:$0xff]  }
 0x606   :  { %8627 = vmatprep.subr.bf16.mxu1 %v23238_v34  ;;  %v23308_v47 = vld [vmem:[%s32819_s11 + $0x13c8] ss:$60 sps:$4 sm:$0xff]  }
 0x607   :  { %v23313_v34 = vld [vmem:[%s32819_s11 + $0x11e4] ss:$60 sps:$4 sm:$0xff]  }
 0x608   :  { %8454 = vmatpush1.bf16.msra.mxu0 %v23233_v53  ;;  %v23316_v53 = vld [vmem:[%s32819_s11 + $0x1444] ss:$60 sps:$4 sm:$0xff]  }
 0x609   :  { %8628 = vmatpush1.bf16.msra.mxu1 %v23236_v43  ;;  %8455 = vmatprep.subr.bf16.mxu0 %v23241_v37  ;;  %v23311_v43 = vld [vmem:[%s32819_s11 + $0x11e0] ss:$60 sps:$4 sm:$0xff]  }
 0x60a   :  { %8629 = vmatprep.subr.bf16.mxu1 %v23244_v16  ;;  %v23314_v37 = vld [vmem:[%s32819_s11 + $0x1440] ss:$60 sps:$4 sm:$0xff]  }
 0x60b   :  { %v23319_v16 = vld [vmem:[%s32819_s11 + $0x125c] ss:$60 sps:$4 sm:$0xff]  }
 0x60c   :  { %8456 = vmatpush1.bf16.msra.mxu0 %v23239_v20  ;;  %v23322_v20 = vld [vmem:[%s32819_s11 + $0x14bc] ss:$60 sps:$4 sm:$0xff]  }
 0x60d   :  { %8630 = vmatpush1.bf16.msra.mxu1 %v23242_v23  ;;  %8457 = vmatprep.subr.bf16.mxu0 %v23247_v29  ;;  %v23317_v23 = vld [vmem:[%s32819_s11 + $0x1258] ss:$60 sps:$4 sm:$0xff]  }
 0x60e   :  { %8640 = vmatprep.subr.bf16.mxu1 %v23250_v32  ;;  %v23320_v29 = vld [vmem:[%s32819_s11 + $0x14b8] ss:$60 sps:$4 sm:$0xff]  }
 0x60f   :  { %v23325_v32 = vld [vmem:[%s32819_s11 + $0x12d4] ss:$60 sps:$4 sm:$0xff]  }
 0x610   :  { %8458 = vmatpush1.bf16.msra.mxu0 %v23245_v40  ;;  %8632 = vmatmul.mubr.bf16.vlgmr.msra.gmra.mrb[40].mxu1 %v26938_v28  ;;  %v23328_v40 = vld [vmem:[%s32819_s11 + $0x1534] ss:$60 sps:$4 sm:$0xff]  }
 0x611   :  { %8641 = vmatpush1.bf16.msra.mxu1 %v23248_v46  ;;  %8672 = vmatprep.mubr.bf16.mxu1 %v26943_v42  ;;  %v23323_v46 = vld [vmem:[%s32819_s11 + $0x12d0] ss:$60 sps:$4 sm:$0xff]  }
 0x612   :  { %8459 = vmatprep.subr.bf16.mxu0 %v23253_v50  ;;  %8642 = vmatprep.subr.bf16.mxu1 %v23256_v44  ;;  %v23326_v50 = vld [vmem:[%s32819_s11 + $0x1530] ss:$60 sps:$4 sm:$0xff]  }
 0x613   :  { %v23331_v44 = vld [vmem:[%s32819_s11 + $0x134c] ss:$60 sps:$4 sm:$0xff]  }
 0x614   :  { %8460 = vmatpush1.bf16.msra.mxu0 %v23251_v9  ;;  %v23334_v9 = vld [vmem:[%s32819_s11 + $0x15ac] ss:$60 sps:$4 sm:$0xff]  }
 0x615   :  { %8643 = vmatpush1.bf16.msra.mxu1 %v23254_v36  ;;  %8461 = vmatprep.subr.bf16.mxu0 %v23259_v26  ;;  %v23329_v36 = vld [vmem:[%s32819_s11 + $0x1348] ss:$60 sps:$4 sm:$0xff]  }
 0x616   :  { %8644 = vmatprep.subr.bf16.mxu1 %v23262_v33  ;;  %v23332_v26 = vld [vmem:[%s32819_s11 + $0x15a8] ss:$60 sps:$4 sm:$0xff]  }
 0x617   :  { %v23337_v33 = vld [vmem:[%s32819_s11 + $0x13c4] ss:$60 sps:$4 sm:$0xff]  }
 0x618   :  { %8462 = vmatpush1.bf16.msra.mxu0 %v23257_v4  ;;  %v23340_v4 = vld [vmem:[%s32819_s11 + $0x1624] ss:$60 sps:$4 sm:$0xff]  }
 0x619   :  { %8645 = vmatpush1.bf16.msra.mxu1 %v23260_v11  ;;  %8463 = vmatprep.subr.bf16.mxu0 %v23265_v61  ;;  %v23335_v11 = vld [vmem:[%s32819_s11 + $0x13c0] ss:$60 sps:$4 sm:$0xff]  }
 0x61a   :  { %8646 = vmatprep.subr.bf16.mxu1 %v23268_v31  ;;  %v23338_v61 = vld [vmem:[%s32819_s11 + $0x1620] ss:$60 sps:$4 sm:$0xff]  }
 0x61b   :  { %v23343_v31 = vld [vmem:[%s32819_s11 + $0x143c] ss:$60 sps:$4 sm:$0xff]  }
 0x61c   :  { %8464 = vmatpush1.bf16.msra.mxu0 %v23263_v22  ;;  %v23352_v22 = vld [vmem:[%s32819_s11 + $0x169c] ss:$60 sps:$4 sm:$0xff]  }
 0x61d   :  { %8647 = vmatpush1.bf16.msra.mxu1 %v23266_v58  ;;  %8465 = vmatprep.subr.bf16.mxu0 %v23271_v19  ;;  %v23341_v58 = vld [vmem:[%s32819_s11 + $0x1438] ss:$60 sps:$4 sm:$0xff]  }
 0x61e   :  { %8648 = vmatprep.subr.bf16.mxu1 %v23274_v8  ;;  %v23346_v19 = vld [vmem:[%s32819_s11 + $0x14b4] ss:$60 sps:$4 sm:$0xff]  }
 0x61f   :  { %v23350_v8 = vld [vmem:[%s32819_s11 + $0x1698] ss:$60 sps:$4 sm:$0xff]  }
 0x620   :  { %8466 = vmatpush1.bf16.msra.mxu0 %v23269_v51  ;;  %v23358_v51 = vld [vmem:[%s32819_s11 + $0x2c] ss:$60 sps:$4 sm:$0xff]  }
 0x621   :  { %8649 = vmatpush1.bf16.msra.mxu1 %v23272_v15  ;;  %8476 = vmatprep.subr.bf16.mxu0 %v23277_v30  ;;  %v23344_v15 = vld [vmem:[%s32819_s11 + $0x14b0] ss:$60 sps:$4 sm:$0xff]  }
 0x622   :  { %8650 = vmatprep.subr.bf16.mxu1 %v23280_v7  ;;  %v23349_v30 = vld [vmem:[%s32819_s11 + $0x152c] ss:$60 sps:$4 sm:$0xff]  }
 0x623   :  { %8468 = vmatmul.mubr.bf16.vlgmr.msra.gmra.mrb[36].mxu0 %v26938_v28  ;;  %v23347_v7 = vld [vmem:[%s32819_s11 + $0x1528] ss:$60 sps:$4 sm:$0xff]  }
 0x624   :  { %8477 = vmatpush1.bf16.msra.mxu0 %v23275_v55  ;;  %8508 = vmatprep.mubr.bf16.mxu0 %v26943_v42  ;;  %v23355_v55 = vld [vmem:[%s32819_s11 + $0x15a4] ss:$60 sps:$4 sm:$0xff]  }
 0x625   :  { %8651 = vmatpush1.bf16.msra.mxu1 %v23278_v25  ;;  %8478 = vmatprep.subr.bf16.mxu0 %v23283_v59  ;;  %v23353_v25 = vld [vmem:[%s32819_s11 + $0x15a0] ss:$60 sps:$4 sm:$0xff]   ;;  %v23356_v59 = vld [vmem:[%s32819_s11 + $0x28] ss:$60 sps:$4 sm:$0xff]  }
 0x626   :  { %8652 = vmatprep.subr.bf16.mxu1 %v23286_v48  ;;  %v23361_v48 = vld [vmem:[%s32819_s11 + $0x161c] ss:$60 sps:$4 sm:$0xff]  }
 0x628   :  { %8479 = vmatpush1.bf16.msra.mxu0 %v23281_v2  ;;  %v23364_v2 = vld [vmem:[%s32819_s11 + $0xa4] ss:$60 sps:$4 sm:$0xff]  }
 0x629   :  { %8653 = vmatpush1.bf16.msra.mxu1 %v23284_v0  ;;  %8480 = vmatprep.subr.bf16.mxu0 %v23289_v13  ;;  %v23359_v0 = vld [vmem:[%s32819_s11 + $0x1618] ss:$60 sps:$4 sm:$0xff]   ;;  %v23362_v13 = vld [vmem:[%s32819_s11 + $0xa0] ss:$60 sps:$4 sm:$0xff]  }
 0x62a   :  { %8654 = vmatprep.subr.bf16.mxu1 %v23292_v17  ;;  %v23367_v17 = vld [vmem:[%s32819_s11 + $0x1694] ss:$60 sps:$4 sm:$0xff]  }
 0x62c   :  { %8481 = vmatpush1.bf16.msra.mxu0 %v23287_v3  ;;  %v23370_v3 = vld [vmem:[%s32819_s11 + $0x11c] ss:$60 sps:$4 sm:$0xff]  }
 0x62d   :  { %8655 = vmatpush1.bf16.msra.mxu1 %v23290_v49  ;;  %8482 = vmatprep.subr.bf16.mxu0 %v23295_v56  ;;  %v23365_v49 = vld [vmem:[%s32819_s11 + $0x1690] ss:$60 sps:$4 sm:$0xff]   ;;  %v23368_v56 = vld [vmem:[%s32819_s11 + $0x118] ss:$60 sps:$4 sm:$0xff]  }
 0x62e   :  { %8656 = vmatprep.subr.bf16.mxu1 %v23298_v63  ;;  %v23379_v63 = vld [vmem:[%s32819_s11 + $0x24] ss:$60 sps:$4 sm:$0xff]  }
 0x630   :  { %8483 = vmatpush1.bf16.msra.mxu0 %v23293_v1  ;;  %v23373_v1 = vld [vmem:[%s32819_s11 + $0x194] ss:$60 sps:$4 sm:$0xff]  }
 0x631   :  { %8657 = vmatpush1.bf16.msra.mxu1 %v23296_v45  ;;  %8484 = vmatprep.subr.bf16.mxu0 %v23301_v18 }
 0x632   :  { %8658 = vmatprep.subr.bf16.mxu1 %v23304_v52 }
 0x634   :  { %8485 = vmatpush1.bf16.msra.mxu0 %v23299_v57  ;;  %v23371_v57 = vld [vmem:[%s32819_s11 + $0x190] ss:$60 sps:$4 sm:$0xff]  }
 0x635   :  { %8659 = vmatpush1.bf16.msra.mxu1 %v23302_v12  ;;  %8486 = vmatprep.subr.bf16.mxu0 %v23307_v21  ;;  %v23376_v21 = vld [vmem:[%s32819_s11 + $0x20c] ss:$60 sps:$4 sm:$0xff]  }
 0x636   :  { %8660 = vmatprep.subr.bf16.mxu1 %v23310_v27  ;;  %v23374_v27 = vld [vmem:[%s32819_s11 + $0x208] ss:$60 sps:$4 sm:$0xff]  }
 0x638   :  { %8487 = vmatpush1.bf16.msra.mxu0 %v23305_v62  ;;  %v23382_v62 = vld [vmem:[%s32819_s11 + $0x284] ss:$60 sps:$4 sm:$0xff]  }
 0x639   :  { %8661 = vmatpush1.bf16.msra.mxu1 %v23308_v47  ;;  %8488 = vmatprep.subr.bf16.mxu0 %v23313_v34  ;;  %v23377_v47 = vld [vmem:[%s32819_s11 + $0x20] ss:$60 sps:$4 sm:$0xff]  }
 0x63a   :  { %8662 = vmatprep.subr.bf16.mxu1 %v23316_v53  ;;  %v23380_v34 = vld [vmem:[%s32819_s11 + $0x280] ss:$60 sps:$4 sm:$0xff]  }
 0x63b   :  { %v23385_v53 = vld [vmem:[%s32819_s11 + $0x9c] ss:$60 sps:$4 sm:$0xff]  }
 0x63c   :  { %8489 = vmatpush1.bf16.msra.mxu0 %v23311_v43 }
 0x63d   :  { %8663 = vmatpush1.bf16.msra.mxu1 %v23314_v37  ;;  %8490 = vmatprep.subr.bf16.mxu0 %v23319_v16  ;;  %v23388_v37 = vld [vmem:[%s32819_s11 + $0x2fc] ss:$60 sps:$4 sm:$0xff]  }
 0x63e   :  { %8664 = vmatprep.subr.bf16.mxu1 %v23322_v20 }
 0x640   :  { %8491 = vmatpush1.bf16.msra.mxu0 %v23317_v23  ;;  %v23383_v23 = vld [vmem:[%s32819_s11 + $0x98] ss:$60 sps:$4 sm:$0xff]  }
 0x641   :  { %8665 = vmatpush1.bf16.msra.mxu1 %v23320_v29  ;;  %8492 = vmatprep.subr.bf16.mxu0 %v23325_v32  ;;  %v23386_v32 = vld [vmem:[%s32819_s11 + $0x2f8] ss:$60 sps:$4 sm:$0xff]  }
 0x642   :  { %8666 = vmatprep.subr.bf16.mxu1 %v23328_v40  ;;  %v23391_v40 = vld [vmem:[%s32819_s11 + $0x114] ss:$60 sps:$4 sm:$0xff]  }
 0x644   :  { %8493 = vmatpush1.bf16.msra.mxu0 %v23323_v46  ;;  %v23394_v46 = vld [vmem:[%s32819_s11 + $0x374] ss:$60 sps:$4 sm:$0xff]  }
 0x645   :  { %8667 = vmatpush1.bf16.msra.mxu1 %v23326_v50  ;;  %8494 = vmatprep.subr.bf16.mxu0 %v23331_v44  ;;  %v23389_v50 = vld [vmem:[%s32819_s11 + $0x110] ss:$60 sps:$4 sm:$0xff]  }
 0x646   :  { %8668 = vmatprep.subr.bf16.mxu1 %v23334_v9  ;;  %v23392_v44 = vld [vmem:[%s32819_s11 + $0x370] ss:$60 sps:$4 sm:$0xff]  }
 0x647   :  { %v23397_v9 = vld [vmem:[%s32819_s11 + $0x18c] ss:$60 sps:$4 sm:$0xff]  }
 0x648   :  { %8495 = vmatpush1.bf16.msra.mxu0 %v23329_v36 }
 0x649   :  { %8669 = vmatpush1.bf16.msra.mxu1 %v23332_v26  ;;  %8496 = vmatprep.subr.bf16.mxu0 %v23337_v33  ;;  %v23400_v26 = vld [vmem:[%s32819_s11 + $0x3ec] ss:$60 sps:$4 sm:$0xff]  }
 0x64a   :  { %8670 = vmatprep.subr.bf16.mxu1 %v23340_v4 }
 0x64c   :  { %8497 = vmatpush1.bf16.msra.mxu0 %v23335_v11 }
 0x64d   :  { %8671 = vmatpush1.bf16.msra.mxu1 %v23338_v61  ;;  %8498 = vmatprep.subr.bf16.mxu0 %v23343_v31  ;;  %v23395_v31 = vld [vmem:[%s32819_s11 + $0x188] ss:$60 sps:$4 sm:$0xff]  }
 0x64e   :  { %8681 = vmatprep.subr.bf16.mxu1 %v23352_v22 }
 0x650   :  { %8499 = vmatpush1.bf16.msra.mxu0 %v23341_v58  ;;  %8673 = vmatmul.mubr.bf16.vlgmr.msra.gmra.mrb[40].mxu1 %v27139_v6  ;;  %v23398_v58 = vld [vmem:[%s32819_s11 + $0x3e8] ss:$60 sps:$4 sm:$0xff]  }
 0x651   :  { %8500 = vmatprep.subr.bf16.mxu0 %v23346_v19  ;;  %8682 = vmatpush1.bf16.msra.mxu1 %v23350_v8  ;;  %v23403_v19 = vld [vmem:[%s32819_s11 + $0x204] ss:$60 sps:$4 sm:$0xff]  }
 0x652   :  { %8713 = vmatprep.mubr.bf16.mxu1 %v32936_v39  ;;  %8886 = vmatprep.subr.bf16.mxu1 %v23358_v51  ;;  %v23406_v8 = vld [vmem:[%s32819_s11 + $0x464] ss:$60 sps:$4 sm:$0xff]  }
 0x653   :  { %v23401_v51 = vld [vmem:[%s32819_s11 + $0x200] ss:$60 sps:$4 sm:$0xff]  }
 0x654   :  { %8501 = vmatpush1.bf16.msra.mxu0 %v23344_v15  ;;  %v23404_v15 = vld [vmem:[%s32819_s11 + $0x460] ss:$60 sps:$4 sm:$0xff]  }
 0x655   :  { %8502 = vmatprep.subr.bf16.mxu0 %v23349_v30  ;;  %v23409_v30 = vld [vmem:[%s32819_s11 + $0x27c] ss:$60 sps:$4 sm:$0xff]  }
 0x658   :  { %8503 = vmatpush1.bf16.msra.mxu0 %v23347_v7  ;;  %v23412_v7 = vld [vmem:[%s32819_s11 + $0x4dc] ss:$60 sps:$4 sm:$0xff]  }
 0x659   :  { %8504 = vmatprep.subr.bf16.mxu0 %v23355_v55  ;;  %v23407_v55 = vld [vmem:[%s32819_s11 + $0x278] ss:$60 sps:$4 sm:$0xff]  }
 0x65c   :  { %8505 = vmatpush1.bf16.msra.mxu0 %v23353_v25  ;;  %19700 = vmatmul.mubr.msk.bf16.vlgmr.msra.gmra.mrb[40].mxu1 %vm2307_vm4, %v27170_v60  ;;  %v23410_v25 = vld [vmem:[%s32819_s11 + $0x4d8] ss:$60 sps:$4 sm:$0xff]  }
 0x65d   :  { %8887 = vmatpush1.bf16.msra.mxu1 %v23356_v59  ;;  %8918 = vmatprep.mubr.bf16.mxu1 %v26727_v14  ;;  %v23415_v59 = vld [vmem:[%s32819_s11 + $0x2f4] ss:$60 sps:$4 sm:$0xff]  }
 0x65e   :  { %8506 = vmatprep.subr.bf16.mxu0 %v23361_v48  ;;  %8888 = vmatprep.subr.bf16.mxu1 %v23364_v2  ;;  %v23418_v48 = vld [vmem:[%s32819_s11 + $0x554] ss:$60 sps:$4 sm:$0xff]  }
 0x65f   :  { %v23413_v2 = vld [vmem:[%s32819_s11 + $0x2f0] ss:$60 sps:$4 sm:$0xff]  }
 0x660   :  { %8507 = vmatpush1.bf16.msra.mxu0 %v23359_v0  ;;  %v23416_v0 = vld [vmem:[%s32819_s11 + $0x550] ss:$60 sps:$4 sm:$0xff]  }
 0x661   :  { %8889 = vmatpush1.bf16.msra.mxu1 %v23362_v13  ;;  %8517 = vmatprep.subr.bf16.mxu0 %v23367_v17  ;;  %v23421_v13 = vld [vmem:[%s32819_s11 + $0x36c] ss:$60 sps:$4 sm:$0xff]  }
 0x662   :  { %8890 = vmatprep.subr.bf16.mxu1 %v23370_v3  ;;  %v23424_v17 = vld [vmem:[%s32819_s11 + $0x5cc] ss:$60 sps:$4 sm:$0xff]  }
 0x663   :  { %v8346_v45 = vpop.f32.mrb[36].mxu1  ;;  %8509 = vmatmul.mubr.bf16.vlgmr.msra.gmra.mrb[36].mxu0 %v27139_v6  ;;  %v23419_v3 = vld [vmem:[%s32819_s11 + $0x368] ss:$60 sps:$4 sm:$0xff]  }
 0x664   :  { %v8348_v18 = vpop.f32.mrb[37].mxu1  ;;  %8518 = vmatpush1.bf16.msra.mxu0 %v23365_v49  ;;  %8549 = vmatprep.mubr.bf16.mxu0 %v32936_v39  ;;  %v23422_v49 = vld [vmem:[%s32819_s11 + $0x5c8] ss:$60 sps:$4 sm:$0xff]  }
 0x665   :  { %8891 = vmatpush1.bf16.msra.mxu1 %v23368_v56  ;;  %v8350_v52 = vpop.f32.mrb[38].mxu1  ;;  %8722 = vmatprep.subr.bf16.mxu0 %v23379_v63  ;;  %v23427_v56 = vld [vmem:[%s32819_s11 + $0x3e4] ss:$60 sps:$4 sm:$0xff]  }
 0x666   :  { %v8351_v12 = vpop.f32.mrb[39].mxu1  ;;  %8892 = vmatprep.subr.bf16.mxu1 %v23373_v1  ;;  %v23430_v63 = vld [vmem:[%s32819_s11 + $0x644] ss:$60 sps:$4 sm:$0xff]   ;;  %v23436_v52 = vld [vmem:[%s32819_s11 + $0x6bc] ss:$60 sps:$4 sm:$0xff]  }
 0x667   :  { %v23425_v1 = vld [vmem:[%s32819_s11 + $0x3e0] ss:$60 sps:$4 sm:$0xff]   ;;  %v23434_v12 = vld [vmem:[%s32819_s11 + $0x6b8] ss:$60 sps:$4 sm:$0xff]  }
 0x669   :  { %8893 = vmatpush1.bf16.msra.mxu1 %v23371_v57  ;;  %v23431_v57 = vld [vmem:[%s32819_s11 + $0x458] ss:$60 sps:$4 sm:$0xff]  }
 0x66a   :  { %8894 = vmatprep.subr.bf16.mxu1 %v23376_v21  ;;  %v23439_v21 = vld [vmem:[%s32819_s11 + $0x4d4] ss:$60 sps:$4 sm:$0xff]  }
 0x66d   :  { %8895 = vmatpush1.bf16.msra.mxu1 %v23374_v27  ;;  %v23442_v27 = vld [vmem:[%s32819_s11 + $0x734] ss:$60 sps:$4 sm:$0xff]  }
 0x66e   :  { %v27805_v43 = vpop.f32.mrb[28].mxu0  ;;  %8896 = vmatprep.subr.bf16.mxu1 %v23382_v62  ;;  %v23437_v62 = vld [vmem:[%s32819_s11 + $0x4d0] ss:$60 sps:$4 sm:$0xff]  }
 0x66f   :  { %32937 = vst [vmem:[#allocation10_spill] sm:$0xff] %v27805_v43  ;;  %19699 = vmatmul.mubr.msk.bf16.vlgmr.msra.gmra.mrb[36].mxu0 %vm2307_vm4, %v27170_v60  ;;  %v27812_v16 = vpop.f32.mrb[29].mxu0 }
 0x670   :  { %32938 = vst [vmem:[#allocation11_spill] sm:$0xff] %v27812_v16  ;;  %8723 = vmatpush1.bf16.msra.mxu0 %v23377_v47  ;;  %8754 = vmatprep.mubr.bf16.mxu0 %v26727_v14  ;;  %v8227_v20 = vpop.f32.mrb[30].mxu0  ;;  %v23440_v47 = vld [vmem:[%s32819_s11 + $0x730] ss:$60 sps:$4 sm:$0xff]  }
 0x671   :  { %8897 = vmatpush1.bf16.msra.mxu1 %v23380_v34  ;;  %v8228_v29 = vpop.f32.mrb[31].mxu0  ;;  %8724 = vmatprep.subr.bf16.mxu0 %v23385_v53  ;;  %v23445_v34 = vld [vmem:[%s32819_s11 + $0x54c] ss:$60 sps:$4 sm:$0xff]  }
 0x672   :  { %8898 = vmatprep.subr.bf16.mxu1 %v23388_v37  ;;  %v23448_v53 = vld [vmem:[%s32819_s11 + $0x7ac] ss:$60 sps:$4 sm:$0xff]   ;;  %v23454_v29 = vld [vmem:[%s32819_s11 + $0x824] ss:$60 sps:$4 sm:$0xff]  }
 0x673   :  { %v23443_v37 = vld [vmem:[%s32819_s11 + $0x548] ss:$60 sps:$4 sm:$0xff]  }
 0x674   :  { %8725 = vmatpush1.bf16.msra.mxu0 %v23383_v23  ;;  %v23446_v20 = vld [vmem:[%s32819_s11 + $0x7a8] ss:$60 sps:$4 sm:$0xff]  }
 0x675   :  { %8899 = vmatpush1.bf16.msra.mxu1 %v23386_v32  ;;  %8726 = vmatprep.subr.bf16.mxu0 %v23391_v40  ;;  %v23451_v23 = vld [vmem:[%s32819_s11 + $0x5c4] ss:$60 sps:$4 sm:$0xff]  }
 0x676   :  { %v8387_v36 = vpop.f32.mrb[32].mxu0  ;;  %8900 = vmatprep.subr.bf16.mxu1 %v23394_v46  ;;  %v23449_v32 = vld [vmem:[%s32819_s11 + $0x5c0] ss:$60 sps:$4 sm:$0xff]  }
 0x677   :  { %v27839_v33 = vadd.f32 %v8387_v36, %v8346_v45  ;;  %v8389_v4 = vpop.f32.mrb[33].mxu0  ;;  %v23428_v45 = vld [vmem:[%s32819_s11 + $0x640] ss:$60 sps:$4 sm:$0xff]   ;;  %v23463_v36 = vld [vmem:[%s32819_s11 + $0x6b4] ss:$60 sps:$4 sm:$0xff]  }
 0x678   :  { %8727 = vmatpush1.bf16.msra.mxu0 %v23389_v50  ;;  %v27841_v11 = vadd.f32 %v8389_v4, %v8348_v18  ;;  %v8391_v61 = vpop.f32.mrb[34].mxu0  ;;  %v23433_v18 = vld [vmem:[%s32819_s11 + $0x45c] ss:$60 sps:$4 sm:$0xff]   ;;  %v23461_v4 = vld [vmem:[%s32819_s11 + $0x6b0] ss:$60 sps:$4 sm:$0xff]  }
 0x679   :  { %8901 = vmatpush1.bf16.msra.mxu1 %v23392_v44  ;;  %v8392_v22 = vpop.f32.mrb[35].mxu0  ;;  %8728 = vmatprep.subr.bf16.mxu0 %v23397_v9  ;;  %v23452_v40 = vld [vmem:[%s32819_s11 + $0x820] ss:$60 sps:$4 sm:$0xff]   ;;  %v23455_v44 = vld [vmem:[%s32819_s11 + $0x638] ss:$60 sps:$4 sm:$0xff]  }
 0x67a   :  { %32939 = vst [vmem:[#allocation12_spill] sm:$0xff] %v27841_v11  ;;  %8902 = vmatprep.subr.bf16.mxu1 %v23400_v26  ;;  %v23457_v46 = vld [vmem:[%s32819_s11 + $0x63c] ss:$60 sps:$4 sm:$0xff]   ;;  %v23466_v26 = vld [vmem:[%s32819_s11 + $0x914] ss:$60 sps:$4 sm:$0xff]  }
 0x67b   :  { %v23460_v50 = vld [vmem:[%s32819_s11 + $0x89c] ss:$60 sps:$4 sm:$0xff]   ;;  %v23464_v61 = vld [vmem:[%s32819_s11 + $0x910] ss:$60 sps:$4 sm:$0xff]  }
 0x67c   :  { %8729 = vmatpush1.bf16.msra.mxu0 %v23395_v31  ;;  %v23458_v9 = vld [vmem:[%s32819_s11 + $0x898] ss:$60 sps:$4 sm:$0xff]   ;;  %v23469_v31 = vld [vmem:[%s32819_s11 + $0x72c] ss:$60 sps:$4 sm:$0xff]  }
 0x67d   :  { %8903 = vmatpush1.bf16.msra.mxu1 %v23398_v58  ;;  %8730 = vmatprep.subr.bf16.mxu0 %v23403_v19  ;;  %v23472_v22 = vld [vmem:[%s32819_s11 + $0x98c] ss:$60 sps:$4 sm:$0xff]  }
 0x67e   :  { %8904 = vmatprep.subr.bf16.mxu1 %v23406_v8  ;;  %v23467_v58 = vld [vmem:[%s32819_s11 + $0x728] ss:$60 sps:$4 sm:$0xff]  }
 0x67f   :  { %v23470_v19 = vld [vmem:[%s32819_s11 + $0x988] ss:$60 sps:$4 sm:$0xff]  }
 0x680   :  { %8731 = vmatpush1.bf16.msra.mxu0 %v23401_v51  ;;  %v23475_v8 = vld [vmem:[%s32819_s11 + $0x7a4] ss:$60 sps:$4 sm:$0xff]  }
 0x681   :  { %8905 = vmatpush1.bf16.msra.mxu1 %v23404_v15  ;;  %8732 = vmatprep.subr.bf16.mxu0 %v23409_v30  ;;  %v23478_v51 = vld [vmem:[%s32819_s11 + $0xa04] ss:$60 sps:$4 sm:$0xff]  }
 0x682   :  { %8906 = vmatprep.subr.bf16.mxu1 %v23412_v7  ;;  %v23473_v15 = vld [vmem:[%s32819_s11 + $0x7a0] ss:$60 sps:$4 sm:$0xff]  }
 0x683   :  { %v23476_v30 = vld [vmem:[%s32819_s11 + $0xa00] ss:$60 sps:$4 sm:$0xff]  }
 0x684   :  { %8733 = vmatpush1.bf16.msra.mxu0 %v23407_v55  ;;  %v23481_v7 = vld [vmem:[%s32819_s11 + $0x81c] ss:$60 sps:$4 sm:$0xff]  }
 0x685   :  { %8907 = vmatpush1.bf16.msra.mxu1 %v23410_v25  ;;  %8734 = vmatprep.subr.bf16.mxu0 %v23415_v59  ;;  %v23484_v55 = vld [vmem:[%s32819_s11 + $0xa7c] ss:$60 sps:$4 sm:$0xff]  }
 0x686   :  { %8908 = vmatprep.subr.bf16.mxu1 %v23418_v48  ;;  %v23479_v25 = vld [vmem:[%s32819_s11 + $0x818] ss:$60 sps:$4 sm:$0xff]  }
 0x687   :  { %v23482_v59 = vld [vmem:[%s32819_s11 + $0xa78] ss:$60 sps:$4 sm:$0xff]  }
 0x688   :  { %8735 = vmatpush1.bf16.msra.mxu0 %v23413_v2  ;;  %v23487_v48 = vld [vmem:[%s32819_s11 + $0x894] ss:$60 sps:$4 sm:$0xff]  }
 0x689   :  { %8909 = vmatpush1.bf16.msra.mxu1 %v23416_v0  ;;  %8736 = vmatprep.subr.bf16.mxu0 %v23421_v13  ;;  %v23490_v2 = vld [vmem:[%s32819_s11 + $0xaf4] ss:$60 sps:$4 sm:$0xff]  }
 0x68a   :  { %8910 = vmatprep.subr.bf16.mxu1 %v23424_v17  ;;  %v23485_v0 = vld [vmem:[%s32819_s11 + $0x890] ss:$60 sps:$4 sm:$0xff]  }
 0x68b   :  { %v23488_v13 = vld [vmem:[%s32819_s11 + $0xaf0] ss:$60 sps:$4 sm:$0xff]  }
 0x68c   :  { %8737 = vmatpush1.bf16.msra.mxu0 %v23419_v3  ;;  %v23493_v17 = vld [vmem:[%s32819_s11 + $0x90c] ss:$60 sps:$4 sm:$0xff]  }
 0x68d   :  { %8911 = vmatpush1.bf16.msra.mxu1 %v23422_v49  ;;  %8738 = vmatprep.subr.bf16.mxu0 %v23427_v56  ;;  %v23496_v3 = vld [vmem:[%s32819_s11 + $0xb6c] ss:$60 sps:$4 sm:$0xff]  }
 0x68e   :  { %8912 = vmatprep.subr.bf16.mxu1 %v23430_v63  ;;  %v23491_v49 = vld [vmem:[%s32819_s11 + $0x908] ss:$60 sps:$4 sm:$0xff]  }
 0x68f   :  { %v23494_v56 = vld [vmem:[%s32819_s11 + $0xb68] ss:$60 sps:$4 sm:$0xff]  }
 0x690   :  { %8739 = vmatpush1.bf16.msra.mxu0 %v23425_v1  ;;  %v23499_v63 = vld [vmem:[%s32819_s11 + $0x984] ss:$60 sps:$4 sm:$0xff]  }
 0x691   :  { %8913 = vmatpush1.bf16.msra.mxu1 %v23428_v45  ;;  %8740 = vmatprep.subr.bf16.mxu0 %v23433_v18  ;;  %v23502_v1 = vld [vmem:[%s32819_s11 + $0xbe4] ss:$60 sps:$4 sm:$0xff]  }
 0x692   :  { %8914 = vmatprep.subr.bf16.mxu1 %v23436_v52  ;;  %v23497_v45 = vld [vmem:[%s32819_s11 + $0x980] ss:$60 sps:$4 sm:$0xff]  }
 0x693   :  { %v23500_v18 = vld [vmem:[%s32819_s11 + $0xbe0] ss:$60 sps:$4 sm:$0xff]  }
 0x694   :  { %8741 = vmatpush1.bf16.msra.mxu0 %v23431_v57  ;;  %v23505_v52 = vld [vmem:[%s32819_s11 + $0x9fc] ss:$60 sps:$4 sm:$0xff]  }
 0x695   :  { %8915 = vmatpush1.bf16.msra.mxu1 %v23434_v12  ;;  %8742 = vmatprep.subr.bf16.mxu0 %v23439_v21  ;;  %v23508_v57 = vld [vmem:[%s32819_s11 + $0xc5c] ss:$60 sps:$4 sm:$0xff]  }
 0x696   :  { %8916 = vmatprep.subr.bf16.mxu1 %v23442_v27  ;;  %v23503_v12 = vld [vmem:[%s32819_s11 + $0x9f8] ss:$60 sps:$4 sm:$0xff]  }
 0x697   :  { %v23506_v21 = vld [vmem:[%s32819_s11 + $0xc58] ss:$60 sps:$4 sm:$0xff]  }
 0x698   :  { %8743 = vmatpush1.bf16.msra.mxu0 %v23437_v62  ;;  %v23511_v27 = vld [vmem:[%s32819_s11 + $0xa74] ss:$60 sps:$4 sm:$0xff]  }
 0x699   :  { %8917 = vmatpush1.bf16.msra.mxu1 %v23440_v47  ;;  %8744 = vmatprep.subr.bf16.mxu0 %v23445_v34  ;;  %v23514_v62 = vld [vmem:[%s32819_s11 + $0xcd4] ss:$60 sps:$4 sm:$0xff]  }
 0x69a   :  { %8927 = vmatprep.subr.bf16.mxu1 %v23448_v53  ;;  %v23509_v47 = vld [vmem:[%s32819_s11 + $0xa70] ss:$60 sps:$4 sm:$0xff]  }
 0x69b   :  { %v23512_v34 = vld [vmem:[%s32819_s11 + $0xcd0] ss:$60 sps:$4 sm:$0xff]  }
 0x69c   :  { %8745 = vmatpush1.bf16.msra.mxu0 %v23443_v37  ;;  %8919 = vmatmul.mubr.bf16.vlgmr.msra.gmra.mrb[44].mxu1 %v26737_v10  ;;  %v23517_v53 = vld [vmem:[%s32819_s11 + $0xaec] ss:$60 sps:$4 sm:$0xff]  }
 0x69d   :  { %8928 = vmatpush1.bf16.msra.mxu1 %v23446_v20  ;;  %8959 = vmatprep.mubr.bf16.mxu1 %v26747_v41  ;;  %v23520_v37 = vld [vmem:[%s32819_s11 + $0xd4c] ss:$60 sps:$4 sm:$0xff]  }
 0x69e   :  { %8746 = vmatprep.subr.bf16.mxu0 %v23451_v23  ;;  %8929 = vmatprep.subr.bf16.mxu1 %v23454_v29  ;;  %v23515_v20 = vld [vmem:[%s32819_s11 + $0xae8] ss:$60 sps:$4 sm:$0xff]  }
 0x69f   :  { %v23518_v23 = vld [vmem:[%s32819_s11 + $0xd48] ss:$60 sps:$4 sm:$0xff]  }
 0x6a0   :  { %8747 = vmatpush1.bf16.msra.mxu0 %v23449_v32  ;;  %v23523_v29 = vld [vmem:[%s32819_s11 + $0xb64] ss:$60 sps:$4 sm:$0xff]  }
 0x6a1   :  { %8930 = vmatpush1.bf16.msra.mxu1 %v23452_v40  ;;  %8748 = vmatprep.subr.bf16.mxu0 %v23457_v46  ;;  %v23526_v32 = vld [vmem:[%s32819_s11 + $0xdc4] ss:$60 sps:$4 sm:$0xff]  }
 0x6a2   :  { %8931 = vmatprep.subr.bf16.mxu1 %v23460_v50  ;;  %v23521_v40 = vld [vmem:[%s32819_s11 + $0xb60] ss:$60 sps:$4 sm:$0xff]  }
 0x6a3   :  { %v23524_v46 = vld [vmem:[%s32819_s11 + $0xdc0] ss:$60 sps:$4 sm:$0xff]  }
 0x6a4   :  { %8749 = vmatpush1.bf16.msra.mxu0 %v23455_v44  ;;  %v23529_v50 = vld [vmem:[%s32819_s11 + $0xbdc] ss:$60 sps:$4 sm:$0xff]  }
 0x6a5   :  { %8932 = vmatpush1.bf16.msra.mxu1 %v23458_v9  ;;  %8750 = vmatprep.subr.bf16.mxu0 %v23463_v36  ;;  %v23532_v44 = vld [vmem:[%s32819_s11 + $0xe3c] ss:$60 sps:$4 sm:$0xff]  }
 0x6a6   :  { %8933 = vmatprep.subr.bf16.mxu1 %v23466_v26  ;;  %v23527_v9 = vld [vmem:[%s32819_s11 + $0xbd8] ss:$60 sps:$4 sm:$0xff]  }
 0x6a7   :  { %v23530_v36 = vld [vmem:[%s32819_s11 + $0xe38] ss:$60 sps:$4 sm:$0xff]  }
 0x6a8   :  { %8751 = vmatpush1.bf16.msra.mxu0 %v23461_v4  ;;  %v23535_v26 = vld [vmem:[%s32819_s11 + $0xc54] ss:$60 sps:$4 sm:$0xff]  }
 0x6a9   :  { %8934 = vmatpush1.bf16.msra.mxu1 %v23464_v61  ;;  %8752 = vmatprep.subr.bf16.mxu0 %v23469_v31  ;;  %v23538_v4 = vld [vmem:[%s32819_s11 + $0xeb4] ss:$60 sps:$4 sm:$0xff]  }
 0x6aa   :  { %8935 = vmatprep.subr.bf16.mxu1 %v23472_v22  ;;  %v23533_v61 = vld [vmem:[%s32819_s11 + $0xc50] ss:$60 sps:$4 sm:$0xff]  }
 0x6ab   :  { %v23536_v31 = vld [vmem:[%s32819_s11 + $0xeb0] ss:$60 sps:$4 sm:$0xff]  }
 0x6ac   :  { %8753 = vmatpush1.bf16.msra.mxu0 %v23467_v58  ;;  %v23541_v22 = vld [vmem:[%s32819_s11 + $0xccc] ss:$60 sps:$4 sm:$0xff]  }
 0x6ad   :  { %8936 = vmatpush1.bf16.msra.mxu1 %v23470_v19  ;;  %8763 = vmatprep.subr.bf16.mxu0 %v23475_v8  ;;  %v23544_v58 = vld [vmem:[%s32819_s11 + $0xf2c] ss:$60 sps:$4 sm:$0xff]  }
 0x6ae   :  { %8937 = vmatprep.subr.bf16.mxu1 %v23478_v51  ;;  %v23539_v19 = vld [vmem:[%s32819_s11 + $0xcc8] ss:$60 sps:$4 sm:$0xff]  }
 0x6af   :  { %8755 = vmatmul.mubr.bf16.vlgmr.msra.gmra.mrb[40].mxu0 %v26737_v10  ;;  %v23542_v8 = vld [vmem:[%s32819_s11 + $0xf28] ss:$60 sps:$4 sm:$0xff]  }
 0x6b0   :  { %8764 = vmatpush1.bf16.msra.mxu0 %v23473_v15  ;;  %8795 = vmatprep.mubr.bf16.mxu0 %v26747_v41  ;;  %v23547_v51 = vld [vmem:[%s32819_s11 + $0xd44] ss:$60 sps:$4 sm:$0xff]  }
 0x6b1   :  { %8938 = vmatpush1.bf16.msra.mxu1 %v23476_v30  ;;  %8765 = vmatprep.subr.bf16.mxu0 %v23481_v7  ;;  %v23550_v15 = vld [vmem:[%s32819_s11 + $0xfa4] ss:$60 sps:$4 sm:$0xff]  }
 0x6b2   :  { %8939 = vmatprep.subr.bf16.mxu1 %v23484_v55  ;;  %v23545_v30 = vld [vmem:[%s32819_s11 + $0xd40] ss:$60 sps:$4 sm:$0xff]  }
 0x6b3   :  { %v23548_v7 = vld [vmem:[%s32819_s11 + $0xfa0] ss:$60 sps:$4 sm:$0xff]  }
 0x6b4   :  { %8766 = vmatpush1.bf16.msra.mxu0 %v23479_v25  ;;  %v23553_v55 = vld [vmem:[%s32819_s11 + $0xdbc] ss:$60 sps:$4 sm:$0xff]  }
 0x6b5   :  { %8940 = vmatpush1.bf16.msra.mxu1 %v23482_v59  ;;  %8767 = vmatprep.subr.bf16.mxu0 %v23487_v48  ;;  %v23556_v25 = vld [vmem:[%s32819_s11 + $0x101c] ss:$60 sps:$4 sm:$0xff]  }
 0x6b6   :  { %8941 = vmatprep.subr.bf16.mxu1 %v23490_v2  ;;  %v23551_v59 = vld [vmem:[%s32819_s11 + $0xdb8] ss:$60 sps:$4 sm:$0xff]  }
 0x6b7   :  { %v23554_v48 = vld [vmem:[%s32819_s11 + $0x1018] ss:$60 sps:$4 sm:$0xff]  }
 0x6b8   :  { %8768 = vmatpush1.bf16.msra.mxu0 %v23485_v0  ;;  %v23559_v2 = vld [vmem:[%s32819_s11 + $0xe34] ss:$60 sps:$4 sm:$0xff]  }
 0x6b9   :  { %8942 = vmatpush1.bf16.msra.mxu1 %v23488_v13  ;;  %8769 = vmatprep.subr.bf16.mxu0 %v23493_v17  ;;  %v23562_v0 = vld [vmem:[%s32819_s11 + $0x1094] ss:$60 sps:$4 sm:$0xff]  }
 0x6ba   :  { %8943 = vmatprep.subr.bf16.mxu1 %v23496_v3  ;;  %v23557_v13 = vld [vmem:[%s32819_s11 + $0xe30] ss:$60 sps:$4 sm:$0xff]  }
 0x6bb   :  { %v23560_v17 = vld [vmem:[%s32819_s11 + $0x1090] ss:$60 sps:$4 sm:$0xff]  }
 0x6bc   :  { %8770 = vmatpush1.bf16.msra.mxu0 %v23491_v49  ;;  %v23565_v3 = vld [vmem:[%s32819_s11 + $0xeac] ss:$60 sps:$4 sm:$0xff]  }
 0x6bd   :  { %8944 = vmatpush1.bf16.msra.mxu1 %v23494_v56  ;;  %8771 = vmatprep.subr.bf16.mxu0 %v23499_v63  ;;  %v23568_v49 = vld [vmem:[%s32819_s11 + $0x110c] ss:$60 sps:$4 sm:$0xff]  }
 0x6be   :  { %8945 = vmatprep.subr.bf16.mxu1 %v23502_v1  ;;  %v23563_v56 = vld [vmem:[%s32819_s11 + $0xea8] ss:$60 sps:$4 sm:$0xff]  }
 0x6bf   :  { %v23566_v63 = vld [vmem:[%s32819_s11 + $0x1108] ss:$60 sps:$4 sm:$0xff]  }
 0x6c0   :  { %8772 = vmatpush1.bf16.msra.mxu0 %v23497_v45  ;;  %v23571_v1 = vld [vmem:[%s32819_s11 + $0xf24] ss:$60 sps:$4 sm:$0xff]  }
 0x6c1   :  { %8946 = vmatpush1.bf16.msra.mxu1 %v23500_v18  ;;  %8773 = vmatprep.subr.bf16.mxu0 %v23505_v52  ;;  %v23574_v45 = vld [vmem:[%s32819_s11 + $0x1184] ss:$60 sps:$4 sm:$0xff]  }
 0x6c2   :  { %8947 = vmatprep.subr.bf16.mxu1 %v23508_v57  ;;  %v23569_v18 = vld [vmem:[%s32819_s11 + $0xf20] ss:$60 sps:$4 sm:$0xff]  }
 0x6c3   :  { %v23572_v52 = vld [vmem:[%s32819_s11 + $0x1180] ss:$60 sps:$4 sm:$0xff]  }
 0x6c4   :  { %8774 = vmatpush1.bf16.msra.mxu0 %v23503_v12  ;;  %v23577_v57 = vld [vmem:[%s32819_s11 + $0xf9c] ss:$60 sps:$4 sm:$0xff]  }
 0x6c5   :  { %8948 = vmatpush1.bf16.msra.mxu1 %v23506_v21  ;;  %8775 = vmatprep.subr.bf16.mxu0 %v23511_v27  ;;  %v23580_v12 = vld [vmem:[%s32819_s11 + $0x11fc] ss:$60 sps:$4 sm:$0xff]  }
 0x6c6   :  { %8949 = vmatprep.subr.bf16.mxu1 %v23514_v62  ;;  %v23575_v21 = vld [vmem:[%s32819_s11 + $0xf98] ss:$60 sps:$4 sm:$0xff]  }
 0x6c7   :  { %v23578_v27 = vld [vmem:[%s32819_s11 + $0x11f8] ss:$60 sps:$4 sm:$0xff]  }
 0x6c8   :  { %8776 = vmatpush1.bf16.msra.mxu0 %v23509_v47  ;;  %v23583_v62 = vld [vmem:[%s32819_s11 + $0x1014] ss:$60 sps:$4 sm:$0xff]  }
 0x6c9   :  { %8950 = vmatpush1.bf16.msra.mxu1 %v23512_v34  ;;  %8777 = vmatprep.subr.bf16.mxu0 %v23517_v53  ;;  %v23586_v47 = vld [vmem:[%s32819_s11 + $0x1274] ss:$60 sps:$4 sm:$0xff]  }
 0x6ca   :  { %8951 = vmatprep.subr.bf16.mxu1 %v23520_v37  ;;  %v23581_v34 = vld [vmem:[%s32819_s11 + $0x1010] ss:$60 sps:$4 sm:$0xff]  }
 0x6cb   :  { %v23584_v53 = vld [vmem:[%s32819_s11 + $0x1270] ss:$60 sps:$4 sm:$0xff]  }
 0x6cc   :  { %8778 = vmatpush1.bf16.msra.mxu0 %v23515_v20  ;;  %v23589_v37 = vld [vmem:[%s32819_s11 + $0x108c] ss:$60 sps:$4 sm:$0xff]  }
 0x6cd   :  { %8952 = vmatpush1.bf16.msra.mxu1 %v23518_v23  ;;  %8779 = vmatprep.subr.bf16.mxu0 %v23523_v29  ;;  %v23592_v20 = vld [vmem:[%s32819_s11 + $0x12ec] ss:$60 sps:$4 sm:$0xff]  }
 0x6ce   :  { %8953 = vmatprep.subr.bf16.mxu1 %v23526_v32  ;;  %v23587_v23 = vld [vmem:[%s32819_s11 + $0x1088] ss:$60 sps:$4 sm:$0xff]  }
 0x6cf   :  { %v23590_v29 = vld [vmem:[%s32819_s11 + $0x12e8] ss:$60 sps:$4 sm:$0xff]  }
 0x6d0   :  { %8780 = vmatpush1.bf16.msra.mxu0 %v23521_v40  ;;  %v23595_v32 = vld [vmem:[%s32819_s11 + $0x1104] ss:$60 sps:$4 sm:$0xff]  }
 0x6d1   :  { %8954 = vmatpush1.bf16.msra.mxu1 %v23524_v46  ;;  %8781 = vmatprep.subr.bf16.mxu0 %v23529_v50  ;;  %v23598_v40 = vld [vmem:[%s32819_s11 + $0x1364] ss:$60 sps:$4 sm:$0xff]  }
 0x6d2   :  { %8955 = vmatprep.subr.bf16.mxu1 %v23532_v44  ;;  %v23593_v46 = vld [vmem:[%s32819_s11 + $0x1100] ss:$60 sps:$4 sm:$0xff]  }
 0x6d3   :  { %v23596_v50 = vld [vmem:[%s32819_s11 + $0x1360] ss:$60 sps:$4 sm:$0xff]  }
 0x6d4   :  { %8782 = vmatpush1.bf16.msra.mxu0 %v23527_v9  ;;  %v23601_v44 = vld [vmem:[%s32819_s11 + $0x117c] ss:$60 sps:$4 sm:$0xff]  }
 0x6d5   :  { %8956 = vmatpush1.bf16.msra.mxu1 %v23530_v36  ;;  %8783 = vmatprep.subr.bf16.mxu0 %v23535_v26  ;;  %v23604_v9 = vld [vmem:[%s32819_s11 + $0x13dc] ss:$60 sps:$4 sm:$0xff]  }
 0x6d6   :  { %8957 = vmatprep.subr.bf16.mxu1 %v23538_v4  ;;  %v23599_v36 = vld [vmem:[%s32819_s11 + $0x1178] ss:$60 sps:$4 sm:$0xff]  }
 0x6d7   :  { %v23602_v26 = vld [vmem:[%s32819_s11 + $0x13d8] ss:$60 sps:$4 sm:$0xff]  }
 0x6d8   :  { %8784 = vmatpush1.bf16.msra.mxu0 %v23533_v61  ;;  %v23607_v4 = vld [vmem:[%s32819_s11 + $0x11f4] ss:$60 sps:$4 sm:$0xff]  }
 0x6d9   :  { %8958 = vmatpush1.bf16.msra.mxu1 %v23536_v31  ;;  %8785 = vmatprep.subr.bf16.mxu0 %v23541_v22  ;;  %v23610_v61 = vld [vmem:[%s32819_s11 + $0x1454] ss:$60 sps:$4 sm:$0xff]  }
 0x6da   :  { %8968 = vmatprep.subr.bf16.mxu1 %v23544_v58  ;;  %v23605_v31 = vld [vmem:[%s32819_s11 + $0x11f0] ss:$60 sps:$4 sm:$0xff]  }
 0x6db   :  { %v23608_v22 = vld [vmem:[%s32819_s11 + $0x1450] ss:$60 sps:$4 sm:$0xff]  }
 0x6dc   :  { %8786 = vmatpush1.bf16.msra.mxu0 %v23539_v19  ;;  %8960 = vmatmul.mubr.bf16.vlgmr.msra.gmra.mrb[44].mxu1 %v26938_v28  ;;  %v23613_v58 = vld [vmem:[%s32819_s11 + $0x126c] ss:$60 sps:$4 sm:$0xff]  }
 0x6dd   :  { %8969 = vmatpush1.bf16.msra.mxu1 %v23542_v8  ;;  %9000 = vmatprep.mubr.bf16.mxu1 %v26943_v42  ;;  %v23616_v19 = vld [vmem:[%s32819_s11 + $0x14cc] ss:$60 sps:$4 sm:$0xff]  }
 0x6de   :  { %8787 = vmatprep.subr.bf16.mxu0 %v23547_v51  ;;  %8970 = vmatprep.subr.bf16.mxu1 %v23550_v15  ;;  %v23611_v8 = vld [vmem:[%s32819_s11 + $0x1268] ss:$60 sps:$4 sm:$0xff]  }
 0x6df   :  { %v23614_v51 = vld [vmem:[%s32819_s11 + $0x14c8] ss:$60 sps:$4 sm:$0xff]  }
 0x6e0   :  { %8788 = vmatpush1.bf16.msra.mxu0 %v23545_v30  ;;  %v23619_v15 = vld [vmem:[%s32819_s11 + $0x12e4] ss:$60 sps:$4 sm:$0xff]  }
 0x6e1   :  { %8971 = vmatpush1.bf16.msra.mxu1 %v23548_v7  ;;  %8789 = vmatprep.subr.bf16.mxu0 %v23553_v55  ;;  %v23622_v30 = vld [vmem:[%s32819_s11 + $0x1544] ss:$60 sps:$4 sm:$0xff]  }
 0x6e2   :  { %8972 = vmatprep.subr.bf16.mxu1 %v23556_v25  ;;  %v23617_v7 = vld [vmem:[%s32819_s11 + $0x12e0] ss:$60 sps:$4 sm:$0xff]  }
 0x6e3   :  { %v23620_v55 = vld [vmem:[%s32819_s11 + $0x1540] ss:$60 sps:$4 sm:$0xff]  }
 0x6e4   :  { %8790 = vmatpush1.bf16.msra.mxu0 %v23551_v59  ;;  %v23625_v25 = vld [vmem:[%s32819_s11 + $0x135c] ss:$60 sps:$4 sm:$0xff]  }
 0x6e5   :  { %8973 = vmatpush1.bf16.msra.mxu1 %v23554_v48  ;;  %8791 = vmatprep.subr.bf16.mxu0 %v23559_v2  ;;  %v23628_v59 = vld [vmem:[%s32819_s11 + $0x15bc] ss:$60 sps:$4 sm:$0xff]  }
 0x6e6   :  { %8974 = vmatprep.subr.bf16.mxu1 %v23562_v0  ;;  %v23623_v48 = vld [vmem:[%s32819_s11 + $0x1358] ss:$60 sps:$4 sm:$0xff]  }
 0x6e7   :  { %v23626_v2 = vld [vmem:[%s32819_s11 + $0x15b8] ss:$60 sps:$4 sm:$0xff]  }
 0x6e8   :  { %8792 = vmatpush1.bf16.msra.mxu0 %v23557_v13  ;;  %v23631_v0 = vld [vmem:[%s32819_s11 + $0x13d4] ss:$60 sps:$4 sm:$0xff]  }
 0x6e9   :  { %8975 = vmatpush1.bf16.msra.mxu1 %v23560_v17  ;;  %8793 = vmatprep.subr.bf16.mxu0 %v23565_v3  ;;  %v23634_v13 = vld [vmem:[%s32819_s11 + $0x1634] ss:$60 sps:$4 sm:$0xff]  }
 0x6ea   :  { %8976 = vmatprep.subr.bf16.mxu1 %v23568_v49  ;;  %v23629_v17 = vld [vmem:[%s32819_s11 + $0x13d0] ss:$60 sps:$4 sm:$0xff]  }
 0x6eb   :  { %v23632_v3 = vld [vmem:[%s32819_s11 + $0x1630] ss:$60 sps:$4 sm:$0xff]  }
 0x6ec   :  { %8794 = vmatpush1.bf16.msra.mxu0 %v23563_v56  ;;  %v23637_v49 = vld [vmem:[%s32819_s11 + $0x144c] ss:$60 sps:$4 sm:$0xff]  }
 0x6ed   :  { %8977 = vmatpush1.bf16.msra.mxu1 %v23566_v63  ;;  %8804 = vmatprep.subr.bf16.mxu0 %v23571_v1  ;;  %v23646_v56 = vld [vmem:[%s32819_s11 + $0x16ac] ss:$60 sps:$4 sm:$0xff]   ;;  %v23640_v1 = vld [vmem:[%s32819_s11 + $0x14c4] ss:$60 sps:$4 sm:$0xff]  }
 0x6ee   :  { %8978 = vmatprep.subr.bf16.mxu1 %v23574_v45  ;;  %v23635_v63 = vld [vmem:[%s32819_s11 + $0x1448] ss:$60 sps:$4 sm:$0xff]  }
 0x6ef   :  { %8796 = vmatmul.mubr.bf16.vlgmr.msra.gmra.mrb[40].mxu0 %v26938_v28  ;;  %v23644_v45 = vld [vmem:[%s32819_s11 + $0x16a8] ss:$60 sps:$4 sm:$0xff]  }
 0x6f0   :  { %8805 = vmatpush1.bf16.msra.mxu0 %v23569_v18  ;;  %8836 = vmatprep.mubr.bf16.mxu0 %v26943_v42  ;;  %v23650_v18 = vld [vmem:[%s32819_s11 + $0x3f8] ss:$60 sps:$4 sm:$0xff]  }
 0x6f1   :  { %8979 = vmatpush1.bf16.msra.mxu1 %v23572_v52  ;;  %8806 = vmatprep.subr.bf16.mxu0 %v23577_v57  ;;  %v23638_v52 = vld [vmem:[%s32819_s11 + $0x14c0] ss:$60 sps:$4 sm:$0xff]  }
 0x6f2   :  { %8980 = vmatprep.subr.bf16.mxu1 %v23580_v12  ;;  %v23643_v57 = vld [vmem:[%s32819_s11 + $0x153c] ss:$60 sps:$4 sm:$0xff]  }
 0x6f3   :  { %v23641_v12 = vld [vmem:[%s32819_s11 + $0x1538] ss:$60 sps:$4 sm:$0xff]  }
 0x6f4   :  { %8807 = vmatpush1.bf16.msra.mxu0 %v23575_v21  ;;  %v23649_v21 = vld [vmem:[%s32819_s11 + $0x15b4] ss:$60 sps:$4 sm:$0xff]  }
 0x6f5   :  { %8981 = vmatpush1.bf16.msra.mxu1 %v23578_v27  ;;  %8808 = vmatprep.subr.bf16.mxu0 %v23583_v62  ;;  %v23647_v27 = vld [vmem:[%s32819_s11 + $0x15b0] ss:$60 sps:$4 sm:$0xff]   ;;  %v23651_v62 = vld [vmem:[%s32819_s11 + $0x38] ss:$60 sps:$4 sm:$0xff]  }
 0x6f6   :  { %8982 = vmatprep.subr.bf16.mxu1 %v23586_v47  ;;  %v23654_v47 = vld [vmem:[%s32819_s11 + $0x162c] ss:$60 sps:$4 sm:$0xff]  }
 0x6f8   :  { %8809 = vmatpush1.bf16.msra.mxu0 %v23581_v34  ;;  %v23655_v34 = vld [vmem:[%s32819_s11 + $0x470] ss:$60 sps:$4 sm:$0xff]  }
 0x6f9   :  { %8983 = vmatpush1.bf16.msra.mxu1 %v23584_v53  ;;  %8810 = vmatprep.subr.bf16.mxu0 %v23589_v37  ;;  %v23652_v53 = vld [vmem:[%s32819_s11 + $0x1628] ss:$60 sps:$4 sm:$0xff]   ;;  %v23656_v37 = vld [vmem:[%s32819_s11 + $0xb0] ss:$60 sps:$4 sm:$0xff]  }
 0x6fa   :  { %8984 = vmatprep.subr.bf16.mxu1 %v23592_v20  ;;  %v23659_v20 = vld [vmem:[%s32819_s11 + $0x16a4] ss:$60 sps:$4 sm:$0xff]  }
 0x6fc   :  { %8811 = vmatpush1.bf16.msra.mxu0 %v23587_v23  ;;  %v23660_v23 = vld [vmem:[%s32819_s11 + $0x4e8] ss:$60 sps:$4 sm:$0xff]  }
 0x6fd   :  { %8985 = vmatpush1.bf16.msra.mxu1 %v23590_v29  ;;  %8812 = vmatprep.subr.bf16.mxu0 %v23595_v32  ;;  %v23657_v29 = vld [vmem:[%s32819_s11 + $0x16a0] ss:$60 sps:$4 sm:$0xff]   ;;  %v23661_v32 = vld [vmem:[%s32819_s11 + $0x128] ss:$60 sps:$4 sm:$0xff]  }
 0x6fe   :  { %8986 = vmatprep.subr.bf16.mxu1 %v23598_v40  ;;  %v23668_v40 = vld [vmem:[%s32819_s11 + $0x34] ss:$60 sps:$4 sm:$0xff]  }
 0x700   :  { %8813 = vmatpush1.bf16.msra.mxu0 %v23593_v46  ;;  %v23662_v46 = vld [vmem:[%s32819_s11 + $0x560] ss:$60 sps:$4 sm:$0xff]  }
 0x701   :  { %8987 = vmatpush1.bf16.msra.mxu1 %v23596_v50  ;;  %8814 = vmatprep.subr.bf16.mxu0 %v23601_v44 }
 0x702   :  { %8988 = vmatprep.subr.bf16.mxu1 %v23604_v9 }
 0x704   :  { %8815 = vmatpush1.bf16.msra.mxu0 %v23599_v36  ;;  %v23663_v36 = vld [vmem:[%s32819_s11 + $0x1a0] ss:$60 sps:$4 sm:$0xff]  }
 0x705   :  { %8989 = vmatpush1.bf16.msra.mxu1 %v23602_v26  ;;  %8816 = vmatprep.subr.bf16.mxu0 %v23607_v4  ;;  %v23664_v4 = vld [vmem:[%s32819_s11 + $0x5d8] ss:$60 sps:$4 sm:$0xff]  }
 0x706   :  { %8990 = vmatprep.subr.bf16.mxu1 %v23610_v61  ;;  %v23665_v61 = vld [vmem:[%s32819_s11 + $0x218] ss:$60 sps:$4 sm:$0xff]  }
 0x708   :  { %8817 = vmatpush1.bf16.msra.mxu0 %v23605_v31  ;;  %v23669_v31 = vld [vmem:[%s32819_s11 + $0x650] ss:$60 sps:$4 sm:$0xff]  }
 0x709   :  { %8991 = vmatpush1.bf16.msra.mxu1 %v23608_v22  ;;  %8818 = vmatprep.subr.bf16.mxu0 %v23613_v58  ;;  %v23666_v22 = vld [vmem:[%s32819_s11 + $0x30] ss:$60 sps:$4 sm:$0xff]  }
 0x70a   :  { %8992 = vmatprep.subr.bf16.mxu1 %v23616_v19  ;;  %v23670_v58 = vld [vmem:[%s32819_s11 + $0x290] ss:$60 sps:$4 sm:$0xff]  }
 0x70b   :  { %v23673_v19 = vld [vmem:[%s32819_s11 + $0xac] ss:$60 sps:$4 sm:$0xff]  }
 0x70c   :  { %8819 = vmatpush1.bf16.msra.mxu0 %v23611_v8  ;;  %v23674_v8 = vld [vmem:[%s32819_s11 + $0x6c8] ss:$60 sps:$4 sm:$0xff]  }
 0x70d   :  { %8993 = vmatpush1.bf16.msra.mxu1 %v23614_v51  ;;  %8820 = vmatprep.subr.bf16.mxu0 %v23619_v15  ;;  %v23671_v51 = vld [vmem:[%s32819_s11 + $0xa8] ss:$60 sps:$4 sm:$0xff]  }
 0x70e   :  { %8994 = vmatprep.subr.bf16.mxu1 %v23622_v30  ;;  %v23675_v15 = vld [vmem:[%s32819_s11 + $0x308] ss:$60 sps:$4 sm:$0xff]  }
 0x70f   :  { %v23678_v30 = vld [vmem:[%s32819_s11 + $0x124] ss:$60 sps:$4 sm:$0xff]  }
 0x710   :  { %8821 = vmatpush1.bf16.msra.mxu0 %v23617_v7  ;;  %v23679_v7 = vld [vmem:[%s32819_s11 + $0x740] ss:$60 sps:$4 sm:$0xff]  }
 0x711   :  { %8995 = vmatpush1.bf16.msra.mxu1 %v23620_v55  ;;  %8822 = vmatprep.subr.bf16.mxu0 %v23625_v25  ;;  %v23680_v55 = vld [vmem:[%s32819_s11 + $0x380] ss:$60 sps:$4 sm:$0xff]  }
 0x712   :  { %8996 = vmatprep.subr.bf16.mxu1 %v23628_v59  ;;  %v23683_v25 = vld [vmem:[%s32819_s11 + $0x19c] ss:$60 sps:$4 sm:$0xff]  }
 0x714   :  { %8823 = vmatpush1.bf16.msra.mxu0 %v23623_v48  ;;  %v23684_v48 = vld [vmem:[%s32819_s11 + $0xb78] ss:$60 sps:$4 sm:$0xff]  }
 0x715   :  { %8997 = vmatpush1.bf16.msra.mxu1 %v23626_v2  ;;  %8824 = vmatprep.subr.bf16.mxu0 %v23631_v0 }
 0x716   :  { %8998 = vmatprep.subr.bf16.mxu1 %v23634_v13  ;;  %v23681_v13 = vld [vmem:[%s32819_s11 + $0x198] ss:$60 sps:$4 sm:$0xff]  }
 0x718   :  { %8825 = vmatpush1.bf16.msra.mxu0 %v23629_v17 }
 0x719   :  { %8999 = vmatpush1.bf16.msra.mxu1 %v23632_v3  ;;  %8826 = vmatprep.subr.bf16.mxu0 %v23637_v49  ;;  %v23685_v3 = vld [vmem:[%s32819_s11 + $0x7b8] ss:$60 sps:$4 sm:$0xff]  }
 0x71a   :  { %9009 = vmatprep.subr.bf16.mxu1 %v23646_v56  ;;  %v23688_v49 = vld [vmem:[%s32819_s11 + $0x214] ss:$60 sps:$4 sm:$0xff]  }
 0x71b   :  { %v23689_v56 = vld [vmem:[%s32819_s11 + $0xbf0] ss:$60 sps:$4 sm:$0xff]  }
 0x71c   :  { %8827 = vmatpush1.bf16.msra.mxu0 %v23635_v63  ;;  %9001 = vmatmul.mubr.bf16.vlgmr.msra.gmra.mrb[44].mxu1 %v27139_v6  ;;  %v23686_v63 = vld [vmem:[%s32819_s11 + $0x210] ss:$60 sps:$4 sm:$0xff]  }
 0x71d   :  { %8828 = vmatprep.subr.bf16.mxu0 %v23640_v1  ;;  %9010 = vmatpush1.bf16.msra.mxu1 %v23644_v45  ;;  %v23690_v1 = vld [vmem:[%s32819_s11 + $0x830] ss:$60 sps:$4 sm:$0xff]  }
 0x71e   :  { %9041 = vmatprep.mubr.bf16.mxu1 %v32936_v39  ;;  %20794 = vmatprep.subr.bf16.mxu1 %v23650_v18  ;;  %v23693_v45 = vld [vmem:[%s32819_s11 + $0x28c] ss:$60 sps:$4 sm:$0xff]  }
 0x71f   :  { %v23694_v18 = vld [vmem:[%s32819_s11 + $0xc68] ss:$60 sps:$4 sm:$0xff]  }
 0x720   :  { %8829 = vmatpush1.bf16.msra.mxu0 %v23638_v52  ;;  %v23691_v52 = vld [vmem:[%s32819_s11 + $0x288] ss:$60 sps:$4 sm:$0xff]  }
 0x721   :  { %8830 = vmatprep.subr.bf16.mxu0 %v23643_v57  ;;  %v23695_v57 = vld [vmem:[%s32819_s11 + $0x8a8] ss:$60 sps:$4 sm:$0xff]  }
 0x724   :  { %8831 = vmatpush1.bf16.msra.mxu0 %v23641_v12  ;;  %v23698_v12 = vld [vmem:[%s32819_s11 + $0x304] ss:$60 sps:$4 sm:$0xff]  }
 0x725   :  { %8832 = vmatprep.subr.bf16.mxu0 %v23649_v21  ;;  %v23699_v21 = vld [vmem:[%s32819_s11 + $0xce0] ss:$60 sps:$4 sm:$0xff]  }
 0x728   :  { %8833 = vmatpush1.bf16.msra.mxu0 %v23647_v27  ;;  %19702 = vmatmul.mubr.msk.bf16.vlgmr.msra.gmra.mrb[44].mxu1 %vm2307_vm4, %v27170_v60  ;;  %v23696_v27 = vld [vmem:[%s32819_s11 + $0x300] ss:$60 sps:$4 sm:$0xff]  }
 0x729   :  { %20795 = vmatpush3.bf16.msra.mxu1 %v23651_v62  ;;  %9246 = vmatprep.mubr.bf16.mxu1 %v26727_v14  ;;  %v23700_v62 = vld [vmem:[%s32819_s11 + $0x920] ss:$60 sps:$4 sm:$0xff]  }
 0x72a   :  { %8834 = vmatprep.subr.bf16.mxu0 %v23654_v47  ;;  %20796 = vmatprep.subr.bf16.mxu1 %v23655_v34  ;;  %v23703_v47 = vld [vmem:[%s32819_s11 + $0x37c] ss:$60 sps:$4 sm:$0xff]  }
 0x72b   :  { %v23704_v34 = vld [vmem:[%s32819_s11 + $0xd58] ss:$60 sps:$4 sm:$0xff]  }
 0x72c   :  { %8835 = vmatpush1.bf16.msra.mxu0 %v23652_v53  ;;  %v23701_v53 = vld [vmem:[%s32819_s11 + $0x378] ss:$60 sps:$4 sm:$0xff]  }
 0x72d   :  { %20797 = vmatpush3.bf16.msra.mxu1 %v23656_v37  ;;  %8845 = vmatprep.subr.bf16.mxu0 %v23659_v20  ;;  %v23705_v37 = vld [vmem:[%s32819_s11 + $0x998] ss:$60 sps:$4 sm:$0xff]  }
 0x72e   :  { %20798 = vmatprep.subr.bf16.mxu1 %v23660_v23  ;;  %v23708_v20 = vld [vmem:[%s32819_s11 + $0x3f4] ss:$60 sps:$4 sm:$0xff]  }
 0x72f   :  { %8837 = vmatmul.mubr.bf16.vlgmr.msra.gmra.mrb[40].mxu0 %v27139_v6  ;;  %v28397_v50 = vpop.f32.mrb[40].mxu1  ;;  %v23709_v23 = vld [vmem:[%s32819_s11 + $0xdd0] ss:$60 sps:$4 sm:$0xff]  }
 0x730   :  { %8846 = vmatpush1.bf16.msra.mxu0 %v23657_v29  ;;  %v28399_v44 = vpop.f32.mrb[41].mxu1  ;;  %8877 = vmatprep.mubr.bf16.mxu0 %v32936_v39  ;;  %v23706_v29 = vld [vmem:[%s32819_s11 + $0x3f0] ss:$60 sps:$4 sm:$0xff]  }
 0x731   :  { %20799 = vmatpush3.bf16.msra.mxu1 %v23661_v32  ;;  %v8719_v9 = vpop.f32.mrb[42].mxu1  ;;  %9050 = vmatprep.subr.bf16.mxu0 %v23668_v40  ;;  %v23710_v32 = vld [vmem:[%s32819_s11 + $0xa10] ss:$60 sps:$4 sm:$0xff]  }
 0x732   :  { %v8720_v26 = vpop.f32.mrb[43].mxu1  ;;  %20800 = vmatprep.subr.bf16.mxu1 %v23662_v46  ;;  %v23713_v40 = vld [vmem:[%s32819_s11 + $0x46c] ss:$60 sps:$4 sm:$0xff]  }
 0x733   :  { %v23714_v46 = vld [vmem:[%s32819_s11 + $0xe48] ss:$60 sps:$4 sm:$0xff]  }
 0x734   :  { %v23711_v9 = vld [vmem:[%s32819_s11 + $0x468] ss:$60 sps:$4 sm:$0xff]  }
 0x735   :  { %20801 = vmatpush3.bf16.msra.mxu1 %v23663_v36  ;;  %v23715_v36 = vld [vmem:[%s32819_s11 + $0xa88] ss:$60 sps:$4 sm:$0xff]  }
 0x736   :  { %20802 = vmatprep.subr.bf16.mxu1 %v23664_v4  ;;  %v23718_v26 = vld [vmem:[%s32819_s11 + $0x4e4] ss:$60 sps:$4 sm:$0xff]  }
 0x737   :  { %v23719_v4 = vld [vmem:[%s32819_s11 + $0xec0] ss:$60 sps:$4 sm:$0xff]  }
 0x739   :  { %20803 = vmatpush3.bf16.msra.mxu1 %v23665_v61  ;;  %v23716_v61 = vld [vmem:[%s32819_s11 + $0x4e0] ss:$60 sps:$4 sm:$0xff]  }
 0x73a   :  { %20804 = vmatprep.subr.bf16.mxu1 %v23669_v31  ;;  %v23720_v31 = vld [vmem:[%s32819_s11 + $0xb00] ss:$60 sps:$4 sm:$0xff]  }
 0x73b   :  { %19701 = vmatmul.mubr.msk.bf16.vlgmr.msra.gmra.mrb[40].mxu0 %vm2307_vm4, %v27170_v60 }
 0x73c   :  { %9051 = vmatpush1.bf16.msra.mxu0 %v23666_v22  ;;  %9082 = vmatprep.mubr.bf16.mxu0 %v26727_v14  ;;  %v23676_v14 = vld [vmem:[%s32819_s11 + $0x120] ss:$60 sps:$4 sm:$0xff]  }
 0x73d   :  { %20805 = vmatpush3.bf16.msra.mxu1 %v23670_v58  ;;  %9052 = vmatprep.subr.bf16.mxu0 %v23673_v19  ;;  %v23723_v22 = vld [vmem:[%s32819_s11 + $0x55c] ss:$60 sps:$4 sm:$0xff]  }
 0x73e   :  { %20806 = vmatprep.subr.bf16.mxu1 %v23674_v8  ;;  %v23724_v58 = vld [vmem:[%s32819_s11 + $0x12f8] ss:$60 sps:$4 sm:$0xff]  }
 0x73f   :  { %v23721_v19 = vld [vmem:[%s32819_s11 + $0x558] ss:$60 sps:$4 sm:$0xff]  }
 0x740   :  { %9053 = vmatpush1.bf16.msra.mxu0 %v23671_v51  ;;  %v23725_v8 = vld [vmem:[%s32819_s11 + $0xf38] ss:$60 sps:$4 sm:$0xff]  }
 0x741   :  { %20807 = vmatpush3.bf16.msra.mxu1 %v23675_v15  ;;  %9054 = vmatprep.subr.bf16.mxu0 %v23678_v30  ;;  %v23728_v51 = vld [vmem:[%s32819_s11 + $0x5d4] ss:$60 sps:$4 sm:$0xff]  }
 0x742   :  { %v28450_v59 = vpop.f32.mrb[36].mxu0  ;;  %20808 = vmatprep.subr.bf16.mxu1 %v23679_v7  ;;  %v23729_v15 = vld [vmem:[%s32819_s11 + $0x1370] ss:$60 sps:$4 sm:$0xff]  }
 0x743   :  { %32940 = vst [vmem:[#allocation13_spill] sm:$0xff] %v28450_v59  ;;  %v28455_v2 = vpop.f32.mrb[37].mxu0  ;;  %v23726_v30 = vld [vmem:[%s32819_s11 + $0x5d0] ss:$60 sps:$4 sm:$0xff]  }
 0x744   :  { %32941 = vst [vmem:[#allocation14_spill] sm:$0xff] %v28455_v2  ;;  %9055 = vmatpush1.bf16.msra.mxu0 %v23676_v14  ;;  %v8555_v0 = vpop.f32.mrb[38].mxu0  ;;  %v23730_v7 = vld [vmem:[%s32819_s11 + $0xfb0] ss:$60 sps:$4 sm:$0xff]  }
 0x745   :  { %20809 = vmatpush3.bf16.msra.mxu1 %v23680_v55  ;;  %v8556_v17 = vpop.f32.mrb[39].mxu0  ;;  %9056 = vmatprep.subr.bf16.mxu0 %v23683_v25  ;;  %v23733_v14 = vld [vmem:[%s32819_s11 + $0x64c] ss:$60 sps:$4 sm:$0xff]   ;;  %v23738_v0 = vld [vmem:[%s32819_s11 + $0x6c4] ss:$60 sps:$4 sm:$0xff]  }
 0x746   :  { %20816 = vmatprep.subr.bf16.mxu1 %v23684_v48  ;;  %v23734_v55 = vld [vmem:[%s32819_s11 + $0x13e8] ss:$60 sps:$4 sm:$0xff]   ;;  %v23736_v17 = vld [vmem:[%s32819_s11 + $0x6c0] ss:$60 sps:$4 sm:$0xff]  }
 0x747   :  { %v23731_v25 = vld [vmem:[%s32819_s11 + $0x648] ss:$60 sps:$4 sm:$0xff]  }
 0x748   :  { %9057 = vmatpush1.bf16.msra.mxu0 %v23681_v13  ;;  %9247 = vmatmul.mubr.bf16.vlgmr.msra.gmra.mrb[48].mxu1 %v26737_v10  ;;  %v23735_v48 = vld [vmem:[%s32819_s11 + $0x1028] ss:$60 sps:$4 sm:$0xff]   ;;  %v23739_v13 = vld [vmem:[%s32819_s11 + $0x1460] ss:$60 sps:$4 sm:$0xff]  }
 0x749   :  { %20817 = vmatpush3.bf16.msra.mxu1 %v23685_v3  ;;  %9286 = vmatprep.mubr.bf16.mxu1 %v26747_v41  ;;  %v23740_v3 = vld [vmem:[%s32819_s11 + $0x10a0] ss:$60 sps:$4 sm:$0xff]  }
 0x74a   :  { %9058 = vmatprep.subr.bf16.mxu0 %v23688_v49  ;;  %20818 = vmatprep.subr.bf16.mxu1 %v23689_v56  ;;  %v23743_v49 = vld [vmem:[%s32819_s11 + $0x73c] ss:$60 sps:$4 sm:$0xff]  }
 0x74b   :  { %v23744_v56 = vld [vmem:[%s32819_s11 + $0x14d8] ss:$60 sps:$4 sm:$0xff]  }
 0x74c   :  { %9059 = vmatpush1.bf16.msra.mxu0 %v23686_v63  ;;  %v23741_v63 = vld [vmem:[%s32819_s11 + $0x738] ss:$60 sps:$4 sm:$0xff]  }
 0x74d   :  { %20819 = vmatpush3.bf16.msra.mxu1 %v23690_v1  ;;  %9060 = vmatprep.subr.bf16.mxu0 %v23693_v45  ;;  %v23745_v1 = vld [vmem:[%s32819_s11 + $0x1118] ss:$60 sps:$4 sm:$0xff]  }
 0x74e   :  { %20820 = vmatprep.subr.bf16.mxu1 %v23694_v18  ;;  %v23748_v45 = vld [vmem:[%s32819_s11 + $0x7b4] ss:$60 sps:$4 sm:$0xff]  }
 0x74f   :  { %v23749_v18 = vld [vmem:[%s32819_s11 + $0x1550] ss:$60 sps:$4 sm:$0xff]  }
 0x750   :  { %9061 = vmatpush1.bf16.msra.mxu0 %v23691_v52  ;;  %v9381_v52 = vsel %vm200_vm1, %v27812_v16, 0.0 }
 0x751   :  { %20821 = vmatpush3.bf16.msra.mxu1 %v23695_v57  ;;  %9062 = vmatprep.subr.bf16.mxu0 %v23698_v12  ;;  %v23746_v57 = vld [vmem:[%s32819_s11 + $0x7b0] ss:$60 sps:$4 sm:$0xff]  }
 0x752   :  { %20822 = vmatprep.subr.bf16.mxu1 %v23699_v21  ;;  %v23750_v12 = vld [vmem:[%s32819_s11 + $0x1190] ss:$60 sps:$4 sm:$0xff]  }
 0x753   :  { %v23753_v21 = vld [vmem:[%s32819_s11 + $0x82c] ss:$60 sps:$4 sm:$0xff]  }
 0x754   :  { %9063 = vmatpush1.bf16.msra.mxu0 %v23696_v27  ;;  %v23754_v27 = vld [vmem:[%s32819_s11 + $0x15c8] ss:$60 sps:$4 sm:$0xff]  }
 0x755   :  { %20823 = vmatpush3.bf16.msra.mxu1 %v23700_v62  ;;  %9064 = vmatprep.subr.bf16.mxu0 %v23703_v47  ;;  %v9382_v62 = vrot.slane %v9381_v52, 4  ;;  %v23751_v47 = vld [vmem:[%s32819_s11 + $0x828] ss:$60 sps:$4 sm:$0xff]  }
 0x756   :  { %20824 = vmatprep.subr.bf16.mxu1 %v23704_v34  ;;  %v23755_v34 = vld [vmem:[%s32819_s11 + $0x1208] ss:$60 sps:$4 sm:$0xff]  }
 0x758   :  { %9065 = vmatpush1.bf16.msra.mxu0 %v23701_v53  ;;  %v23758_v53 = vld [vmem:[%s32819_s11 + $0x8a4] ss:$60 sps:$4 sm:$0xff]  }
 0x759   :  { %20825 = vmatpush3.bf16.msra.mxu1 %v23705_v37  ;;  %9066 = vmatprep.subr.bf16.mxu0 %v23708_v20  ;;  %v23756_v37 = vld [vmem:[%s32819_s11 + $0x8a0] ss:$60 sps:$4 sm:$0xff]  }
 0x75a   :  { %20826 = vmatprep.subr.bf16.mxu1 %v23709_v23  ;;  %v23760_v20 = vld [vmem:[%s32819_s11 + $0x1280] ss:$60 sps:$4 sm:$0xff]  }
 0x75b   :  { %v23763_v23 = vld [vmem:[%s32819_s11 + $0x91c] ss:$60 sps:$4 sm:$0xff]  }
 0x75c   :  { %9067 = vmatpush1.bf16.msra.mxu0 %v23706_v29 }
 0x75d   :  { %20827 = vmatpush3.bf16.msra.mxu1 %v23710_v32  ;;  %9068 = vmatprep.subr.bf16.mxu0 %v23713_v40  ;;  %v9616_v32 = vld [vmem:[%s32821_s13 + $0x80] sm:$0xff]  ;;  %v9617_v40 = vld [vmem:[%s32821_s13 + $0x88] sm:$0xff] }
 0x75e   :  { %20828 = vmatprep.subr.bf16.mxu1 %v23714_v46  ;;  %v23761_v46 = vld [vmem:[%s32819_s11 + $0x918] ss:$60 sps:$4 sm:$0xff]  }
 0x760   :  { %9069 = vmatpush1.bf16.msra.mxu0 %v23711_v9  ;;  %v23766_v9 = vld [vmem:[%s32819_s11 + $0x994] ss:$60 sps:$4 sm:$0xff]  }
 0x761   :  { %20829 = vmatpush3.bf16.msra.mxu1 %v23715_v36  ;;  %9070 = vmatprep.subr.bf16.mxu0 %v23718_v26  ;;  %v23767_v36 = vld [vmem:[%s32819_s11 + $0x16b8] ss:$60 sps:$4 sm:$0xff]   ;;  %v28670_v26 = vpack.c.bf16 %v9617_v40, %v9616_v32  ;;  %v9608_v32 = vld [vmem:[%s32821_s13 + $0x40] sm:$0xff]  ;;  %v9609_v40 = vld [vmem:[%s32821_s13 + $0x48] sm:$0xff] }
 0x762   :  { %20830 = vmatprep.subr.bf16.mxu1 %v23719_v4 }
 0x764   :  { %9071 = vmatpush1.bf16.msra.mxu0 %v23716_v61  ;;  %v23764_v61 = vld [vmem:[%s32819_s11 + $0x990] ss:$60 sps:$4 sm:$0xff]  }
 0x765   :  { %20831 = vmatpush3.bf16.msra.mxu1 %v23720_v31  ;;  %9072 = vmatprep.subr.bf16.mxu0 %v23723_v22  ;;  %v23770_v31 = vld [vmem:[%s32819_s11 + $0xa0c] ss:$60 sps:$4 sm:$0xff]   ;;  %v9600_v22 = vld [vmem:[%s32821_s13] sm:$0xff] }
 0x766   :  { %20838 = vmatprep.subr.bf16.mxu1 %v23724_v58  ;;  %v9601_v58 = vld [vmem:[%s32821_s13 + $0x8] sm:$0xff] }
 0x768   :  { %9073 = vmatpush1.bf16.msra.mxu0 %v23721_v19  ;;  %9287 = vmatmul.mubr.bf16.vlgmr.msra.gmra.mrb[52].mxu1 %v26938_v28 }
 0x769   :  { %20839 = vmatpush3.bf16.msra.mxu1 %v23725_v8  ;;  %9326 = vmatprep.mubr.bf16.mxu1 %v26943_v42  ;;  %v9618_v8 = vld [vmem:[%s32821_s13 + $0x90] sm:$0xff] }
 0x76a   :  { %9074 = vmatprep.subr.bf16.mxu0 %v23728_v51  ;;  %20840 = vmatprep.subr.bf16.mxu1 %v23729_v15  ;;  %v9619_v51 = vld [vmem:[%s32821_s13 + $0x98] sm:$0xff]  ;;  %v23768_v15 = vld [vmem:[%s32819_s11 + $0xa08] ss:$60 sps:$4 sm:$0xff]  }
 0x76c   :  { %9075 = vmatpush1.bf16.msra.mxu0 %v23726_v30  ;;  %v28697_v30 = vpack.c.bf16 %v9601_v58, %v9600_v22 }
 0x76d   :  { %20841 = vmatpush3.bf16.msra.mxu1 %v23730_v7  ;;  %9076 = vmatprep.subr.bf16.mxu0 %v23733_v14  ;;  %v23773_v7 = vld [vmem:[%s32819_s11 + $0xa84] ss:$60 sps:$4 sm:$0xff]   ;;  %v28702_v14 = vpack.c.bf16 %v9619_v51, %v9618_v8  ;;  %v9611_v8 = vld [vmem:[%s32821_s13 + $0x58] sm:$0xff] }
 0x76e   :  { %20842 = vmatprep.subr.bf16.mxu1 %v23734_v55  ;;  %32942 = vst [vmem:[#allocation15_spill] sm:$0xff] %v28697_v30  ;;  %v9602_v55 = vld [vmem:[%s32821_s13 + $0x10] sm:$0xff] }
 0x76f   :  { %32943 = vst [vmem:[#allocation16_spill] sm:$0xff] %v28702_v14 }
 0x770   :  { %9077 = vmatpush1.bf16.msra.mxu0 %v23731_v25  ;;  %v9603_v25 = vld [vmem:[%s32821_s13 + $0x18] sm:$0xff] }
 0x771   :  { %20843 = vmatpush3.bf16.msra.mxu1 %v23735_v48  ;;  %9078 = vmatprep.subr.bf16.mxu0 %v23738_v0  ;;  %v9620_v0 = vld [vmem:[%s32821_s13 + $0xa0] sm:$0xff] }
 0x772   :  { %20844 = vmatprep.subr.bf16.mxu1 %v23739_v13  ;;  %v9621_v13 = vld [vmem:[%s32821_s13 + $0xa8] sm:$0xff] }
 0x774   :  { %9079 = vmatpush1.bf16.msra.mxu0 %v23736_v17  ;;  %v23771_v17 = vld [vmem:[%s32819_s11 + $0xa80] ss:$60 sps:$4 sm:$0xff]  }
 0x775   :  { %20845 = vmatpush3.bf16.msra.mxu1 %v23740_v3  ;;  %9080 = vmatprep.subr.bf16.mxu0 %v23743_v49  ;;  %v28722_v3 = vpack.c.bf16 %v9603_v25, %v9602_v55  ;;  %v23776_v49 = vld [vmem:[%s32819_s11 + $0xafc] ss:$60 sps:$4 sm:$0xff]  }
 0x776   :  { %20846 = vmatprep.subr.bf16.mxu1 %v23744_v56  ;;  %v28728_v56 = vpack.c.bf16 %v9621_v13, %v9620_v0  ;;  %v23783_v55 = vld [vmem:[%s32819_s11 + $0xc60] ss:$60 sps:$4 sm:$0xff]  }
 0x777   :  { %32944 = vst [vmem:[#allocation17_spill] sm:$0xff] %v28722_v3 }
 0x778   :  { %9081 = vmatpush1.bf16.msra.mxu0 %v23741_v63  ;;  %32945 = vst [vmem:[#allocation18_spill] sm:$0xff] %v28728_v56  ;;  %v9604_v63 = vld [vmem:[%s32821_s13 + $0x20] sm:$0xff] }
 0x779   :  { %20847 = vmatpush3.bf16.msra.mxu1 %v23745_v1  ;;  %9091 = vmatprep.subr.bf16.mxu0 %v23748_v45  ;;  %v9605_v1 = vld [vmem:[%s32821_s13 + $0x28] sm:$0xff]  ;;  %v9622_v45 = vld [vmem:[%s32821_s13 + $0xb0] sm:$0xff] }
 0x77a   :  { %20848 = vmatprep.subr.bf16.mxu1 %v23749_v18  ;;  %v9623_v18 = vld [vmem:[%s32821_s13 + $0xb8] sm:$0xff] }
 0x77b   :  { %9083 = vmatmul.mubr.bf16.vlgmr.msra.gmra.mrb[44].mxu0 %v26737_v10  ;;  %v23759_v10 = vld [vmem:[%s32819_s11 + $0x1640] ss:$60 sps:$4 sm:$0xff]  }
 0x77c   :  { %9092 = vmatpush1.bf16.msra.mxu0 %v23746_v57  ;;  %9123 = vmatprep.mubr.bf16.mxu0 %v26747_v41  ;;  %v9383_v41 = vadd.f32 %v9382_v62, %v9381_v52  ;;  %v23774_v52 = vld [vmem:[%s32819_s11 + $0xaf8] ss:$60 sps:$4 sm:$0xff]   ;;  %v28746_v57 = vpack.c.bf16 %v9605_v1, %v9604_v63 }
 0x77d   :  { %20849 = vmatpush3.bf16.msra.mxu1 %v23750_v12  ;;  %9093 = vmatprep.subr.bf16.mxu0 %v23753_v21  ;;  %v23779_v12 = vld [vmem:[%s32819_s11 + $0xb74] ss:$60 sps:$4 sm:$0xff]   ;;  %v28752_v21 = vpack.c.bf16 %v9623_v18, %v9622_v45  ;;  %v9607_v62 = vld [vmem:[%s32821_s13 + $0x38] sm:$0xff] }
 0x77e   :  { %20850 = vmatprep.subr.bf16.mxu1 %v23754_v27  ;;  %v9384_v29 = vrot.slane %v9383_v41, 2  ;;  %32946 = vst [vmem:[#allocation19_spill] sm:$0xff] %v28746_v57  ;;  %v9606_v27 = vld [vmem:[%s32821_s13 + $0x30] sm:$0xff]  ;;  %v9631_v1 = vld [vmem:[%s32821_s13 + $0xf8] sm:$0xff] }
 0x77f   :  { %32947 = vst [vmem:[#allocation20_spill] sm:$0xff] %v28752_v21  ;;  %v9630_v63 = vld [vmem:[%s32821_s13 + $0xf0] sm:$0xff] }
 0x780   :  { %9094 = vmatpush1.bf16.msra.mxu0 %v23751_v47  ;;  %v9385_v4 = vadd.f32 %v9384_v29, %v9383_v41  ;;  %v9374_v47 = vsel %vm200_vm1, %v27805_v43, 0.0  ;;  %v23777_v41 = vld [vmem:[%s32819_s11 + $0xb70] ss:$60 sps:$4 sm:$0xff]   ;;  %v23786_v18 = vld [vmem:[%s32819_s11 + $0xcd8] ss:$60 sps:$4 sm:$0xff]   ;;  %v9788_v43 = vld [vmem:[%s32821_s13 + $0x5e0] sm:$0xff] }
 0x781   :  { %20851 = vmatpush3.bf16.msra.mxu1 %v23755_v34  ;;  %9095 = vmatprep.subr.bf16.mxu0 %v23758_v53  ;;  %v9624_v34 = vld [vmem:[%s32821_s13 + $0xc0] sm:$0xff]  ;;  %v9625_v53 = vld [vmem:[%s32821_s13 + $0xc8] sm:$0xff] }
 0x782   :  { %20852 = vmatprep.subr.bf16.mxu1 %v23759_v10  ;;  %v9386_v19 = vrot.slane %v9385_v4, 1  ;;  %v9395_v10 = vsel %vm200_vm1, %v27841_v11, 0.0  ;;  %v28780_v29 = vpack.c.bf16 %v9625_v53, %v9624_v34  ;;  %v9615_v34 = vld [vmem:[%s32821_s13 + $0x78] sm:$0xff]  ;;  %v9648_v53 = vld [vmem:[%s32821_s13 + $0x180] sm:$0xff] }
 0x784   :  { %9096 = vmatpush1.bf16.msra.mxu0 %v23756_v37  ;;  %v9387_v48 = vadd.f32 %v9386_v19, %v9385_v4  ;;  %v28774_v37 = vpack.c.bf16 %v9607_v62, %v9606_v27  ;;  %32949 = vst [vmem:[#allocation22_spill] sm:$0xff] %v28780_v29  ;;  %v23780_v4 = vld [vmem:[%s32819_s11 + $0xbe8] ss:$60 sps:$4 sm:$0xff]   ;;  %v9610_v19 = vld [vmem:[%s32821_s13 + $0x50] sm:$0xff]  ;;  %v28852_v62 = vpack.c.bf16 %v9631_v1, %v9630_v63  ;;  %v23795_v63 = vld [vmem:[%s32819_s11 + $0xe40] ss:$60 sps:$4 sm:$0xff]  }
 0x785   :  { %20853 = vmatpush3.bf16.msra.mxu1 %v23760_v20  ;;  %9097 = vmatprep.subr.bf16.mxu0 %v23763_v23  ;;  %v23782_v20 = vld [vmem:[%s32819_s11 + $0xbec] ss:$60 sps:$4 sm:$0xff]   ;;  %v9375_v23 = vrot.slane %v9374_v47, 4  ;;  %v28822_v25 = vpack.c.bf16 %v9611_v8, %v9610_v19 }
 0x786   :  { %21544 = vmatprep.subr.bf16.mxu1 %v32835_v24  ;;  %32948 = vst [vmem:[#allocation21_spill] sm:$0xff] %v28774_v37  ;;  %32955 = vst [vmem:[#allocation28_spill] sm:$0xff] %v28852_v62  ;;  %v23792_v19 = vld [vmem:[%s32819_s11 + $0xdc8] ss:$60 sps:$4 sm:$0xff]  }
 0x787   :  { %v9376_v22 = vadd.f32 %v9375_v23, %v9374_v47  ;;  %32952 = vst [vmem:[#allocation25_spill] sm:$0xff] %v28822_v25  ;;  %v9614_v47 = vld [vmem:[%s32821_s13 + $0x70] sm:$0xff] }
 0x788   :  { %9098 = vmatpush1.bf16.msra.mxu0 %v23761_v46  ;;  %9327 = vmatmul.mubr.bf16.vlgmr.msra.gmra.mrb[56].mxu1 %v27139_v6  ;;  %v9396_v46 = vrot.slane %v9395_v10, 4  ;;  %v28870_v23 = vpack.c.bf16 %v9615_v34, %v9614_v47  ;;  %v9654_v47 = vld [vmem:[%s32821_s13 + $0x1b0] sm:$0xff]  ;;  %v9655_v34 = vld [vmem:[%s32821_s13 + $0x1b8] sm:$0xff] }
 0x789   :  { %9099 = vmatprep.subr.bf16.mxu0 %v23766_v9  ;;  %21545 = vmatpush3.bf16.msra.mxu1 %v23767_v36  ;;  %v9626_v9 = vld [vmem:[%s32821_s13 + $0xd0] sm:$0xff]  ;;  %v9627_v36 = vld [vmem:[%s32821_s13 + $0xd8] sm:$0xff]  ;;  %v9377_v0 = vrot.slane %v9376_v22, 2 }
 0x78a   :  { %21546 = vmatprep.mubr.msk.bf16.mxu1 %vm25045_vm2, %v32835_v24  ;;  %21805 = vmatprep.subr.bf16.mxu1 %v28670_v26  ;;  %v28804_v58 = vpack.c.bf16 %v9627_v36, %v9626_v9  ;;  %v9397_v51 = vadd.f32 %v9396_v46, %v9395_v10  ;;  %v9649_v10 = vld [vmem:[%s32821_s13 + $0x188] sm:$0xff]  ;;  %32956 = vst [vmem:[#allocation29_spill] sm:$0xff] %v28870_v23  ;;  %v9632_v9 = vld [vmem:[%s32821_s13 + $0x100] sm:$0xff]  ;;  %v9667_v24 = vld [vmem:[%s32821_s13 + $0x218] sm:$0xff] }
 0x78b   :  { %v9378_v27 = vadd.f32 %v9377_v0, %v9376_v22  ;;  %v28876_v46 = vpack.c.bf16 %v9649_v10, %v9648_v53  ;;  %v9633_v36 = vld [vmem:[%s32821_s13 + $0x108] sm:$0xff]  ;;  %v9651_v22 = vld [vmem:[%s32821_s13 + $0x198] sm:$0xff] }
 0x78c   :  { %9100 = vmatpush1.bf16.msra.mxu0 %v23764_v61  ;;  %v28798_v61 = vpack.c.bf16 %v9609_v40, %v9608_v32  ;;  %32951 = vst [vmem:[#allocation24_spill] sm:$0xff] %v28804_v58  ;;  %v9398_v45 = vrot.slane %v9397_v51, 2  ;;  %v23794_v32 = vld [vmem:[%s32819_s11 + $0xdcc] ss:$60 sps:$4 sm:$0xff]   ;;  %v28894_v8 = vpack.c.bf16 %v9633_v36, %v9632_v9  ;;  %v23798_v53 = vld [vmem:[%s32819_s11 + $0xeb8] ss:$60 sps:$4 sm:$0xff]  }
 0x78d   :  { %9101 = vmatprep.subr.bf16.mxu0 %v23770_v31  ;;  %v23785_v31 = vld [vmem:[%s32819_s11 + $0xc64] ss:$60 sps:$4 sm:$0xff]   ;;  %v9379_v40 = vrot.slane %v9378_v27, 1  ;;  %v9388_v9 = vsel %vm200_vm1, %v27839_v33, 0.0 }
 0x78e   :  { %32950 = vst [vmem:[#allocation23_spill] sm:$0xff] %v28798_v61  ;;  %v9656_v36 = vld [vmem:[%s32821_s13 + $0x1c0] sm:$0xff] }
 0x790   :  { %9102 = vmatpush1.bf16.msra.mxu0 %v23768_v15  ;;  %21547 = vmatmul.mubr.msk.bf16.vlgmr.msra.gmra.mrb[60].mxu1 %vm2307_vm4, %v27170_v60  ;;  %v9628_v15 = vld [vmem:[%s32821_s13 + $0xe0] sm:$0xff] }
 0x791   :  { %21807 = vmatpush3.bf16.msra.mxu1 %v28697_v30  ;;  %9893 = vmatprep.mubr.f32.mxu1 %v9387_v48  ;;  %v23788_v48 = vld [vmem:[%s32819_s11 + $0xcdc] ss:$60 sps:$4 sm:$0xff]  }
 0x792   :  { %9103 = vmatprep.subr.bf16.mxu0 %v23773_v7  ;;  %21809 = vmatprep.subr.bf16.mxu1 %v28702_v14  ;;  %v9629_v7 = vld [vmem:[%s32821_s13 + $0xe8] sm:$0xff]  ;;  %v9790_v14 = vld [vmem:[%s32821_s13 + $0x5f0] sm:$0xff] }
 0x793   :  { %v28828_v13 = vpack.c.bf16 %v9629_v7, %v9628_v15  ;;  %v23797_v15 = vld [vmem:[%s32819_s11 + $0xe44] ss:$60 sps:$4 sm:$0xff]  }
 0x794   :  { %9104 = vmatpush1.bf16.msra.mxu0 %v23771_v17  ;;  %v9612_v17 = vld [vmem:[%s32821_s13 + $0x60] sm:$0xff] }
 0x795   :  { %21811 = vmatpush3.bf16.msra.mxu1 %v28722_v3  ;;  %9105 = vmatprep.subr.bf16.mxu0 %v23776_v49  ;;  %32953 = vst [vmem:[#allocation26_spill] sm:$0xff] %v28828_v13  ;;  %v9613_v49 = vld [vmem:[%s32821_s13 + $0x68] sm:$0xff]  ;;  %v9770_v3 = vld [vmem:[%s32821_s13 + $0x550] sm:$0xff] }
 0x796   :  { %21813 = vmatprep.subr.bf16.mxu1 %v28728_v56  ;;  %v9710_v56 = vld [vmem:[%s32821_s13 + $0x370] sm:$0xff] }
 0x798   :  { %9106 = vmatpush1.bf16.msra.mxu0 %v23774_v52  ;;  %v28846_v52 = vpack.c.bf16 %v9613_v49, %v9612_v17  ;;  %v9652_v17 = vld [vmem:[%s32821_s13 + $0x1a0] sm:$0xff]  ;;  %v9653_v49 = vld [vmem:[%s32821_s13 + $0x1a8] sm:$0xff] }
 0x799   :  { %21815 = vmatpush3.bf16.msra.mxu1 %v28746_v57  ;;  %9107 = vmatprep.subr.bf16.mxu0 %v23779_v12  ;;  %v23791_v12 = vld [vmem:[%s32819_s11 + $0xd54] ss:$60 sps:$4 sm:$0xff]  }
 0x79a   :  { %21817 = vmatprep.subr.bf16.mxu1 %v28752_v21  ;;  %32954 = vst [vmem:[#allocation27_spill] sm:$0xff] %v28846_v52 }
 0x79c   :  { %9108 = vmatpush1.bf16.msra.mxu0 %v23777_v41  ;;  %v9399_v41 = vadd.f32 %v9398_v45, %v9397_v51  ;;  %v9380_v51 = vadd.f32 %v9379_v40, %v9378_v27  ;;  %v23800_v45 = vld [vmem:[%s32819_s11 + $0xebc] ss:$60 sps:$4 sm:$0xff]   ;;  %v9637_v27 = vld [vmem:[%s32821_s13 + $0x128] sm:$0xff] }
 0x79d   :  { %21819 = vmatpush3.bf16.msra.mxu1 %v28774_v37  ;;  %9109 = vmatprep.subr.bf16.mxu0 %v23782_v20  ;;  %v23789_v20 = vld [vmem:[%s32819_s11 + $0xd50] ss:$60 sps:$4 sm:$0xff]   ;;  %v9639_v40 = vld [vmem:[%s32821_s13 + $0x138] sm:$0xff] }
 0x79e   :  { %21821 = vmatprep.subr.bf16.mxu1 %v28780_v29 }
 0x7a0   :  { %9110 = vmatpush1.bf16.msra.mxu0 %v23780_v4  ;;  %v9400_v4 = vrot.slane %v9399_v41, 1 }
 0x7a1   :  { %21823 = vmatpush3.bf16.msra.mxu1 %v28798_v61  ;;  %9111 = vmatprep.subr.bf16.mxu0 %v23785_v31  ;;  %v9650_v31 = vld [vmem:[%s32821_s13 + $0x190] sm:$0xff] }
 0x7a2   :  { %21825 = vmatprep.subr.bf16.mxu1 %v28804_v58  ;;  %v28900_v7 = vpack.c.bf16 %v9651_v22, %v9650_v31  ;;  %v9401_v0 = vadd.f32 %v9400_v4, %v9399_v41  ;;  %v23803_v41 = vld [vmem:[%s32819_s11 + $0xf34] ss:$60 sps:$4 sm:$0xff]   ;;  %v9657_v4 = vld [vmem:[%s32821_s13 + $0x1c8] sm:$0xff]  ;;  %v9409_v31 = vsel %vm200_vm1, %v28455_v2, 0.0  ;;  %v9771_v2 = vld [vmem:[%s32821_s13 + $0x558] sm:$0xff] }
 0x7a3   :  { %v23801_v22 = vld [vmem:[%s32819_s11 + $0xf30] ss:$60 sps:$4 sm:$0xff]  }
 0x7a4   :  { %9112 = vmatpush1.bf16.msra.mxu0 %v23783_v55  ;;  %v9634_v55 = vld [vmem:[%s32821_s13 + $0x110] sm:$0xff] }
 0x7a5   :  { %21827 = vmatpush3.bf16.msra.mxu1 %v28822_v25  ;;  %9113 = vmatprep.subr.bf16.mxu0 %v23788_v48  ;;  %v9635_v48 = vld [vmem:[%s32821_s13 + $0x118] sm:$0xff] }
 0x7a6   :  { %21829 = vmatprep.subr.bf16.mxu1 %v28828_v13  ;;  %v28918_v1 = vpack.c.bf16 %v9635_v48, %v9634_v55  ;;  %v28976_v55 = vpack.c.bf16 %v9657_v4, %v9656_v36  ;;  %v9640_v48 = vld [vmem:[%s32821_s13 + $0x140] sm:$0xff]  ;;  %v23812_v36 = vld [vmem:[%s32819_s11 + $0x109c] ss:$60 sps:$4 sm:$0xff]  }
 0x7a8   :  { %9114 = vmatpush1.bf16.msra.mxu0 %v23786_v18  ;;  %v28924_v18 = vpack.c.bf16 %v9653_v49, %v9652_v17  ;;  %v9410_v17 = vrot.slane %v9409_v31, 4  ;;  %v9658_v49 = vld [vmem:[%s32821_s13 + $0x1d0] sm:$0xff] }
 0x7a9   :  { %21831 = vmatpush3.bf16.msra.mxu1 %v28846_v52  ;;  %9115 = vmatprep.subr.bf16.mxu0 %v23791_v12  ;;  %v9636_v12 = vld [vmem:[%s32821_s13 + $0x120] sm:$0xff] }
 0x7aa   :  { %21833 = vmatprep.subr.bf16.mxu1 %v28852_v62  ;;  %v28942_v10 = vpack.c.bf16 %v9637_v27, %v9636_v12  ;;  %v9705_v62 = vld [vmem:[%s32821_s13 + $0x348] sm:$0xff] }
 0x7ac   :  { %9116 = vmatpush1.bf16.msra.mxu0 %v23789_v20  ;;  %v28948_v20 = vpack.c.bf16 %v9655_v34, %v9654_v47  ;;  %v9643_v34 = vld [vmem:[%s32821_s13 + $0x158] sm:$0xff] }
 0x7ad   :  { %21835 = vmatpush3.bf16.msra.mxu1 %v28870_v23  ;;  %9117 = vmatprep.subr.bf16.mxu0 %v23794_v32  ;;  %v9638_v32 = vld [vmem:[%s32821_s13 + $0x130] sm:$0xff] }
 0x7ae   :  { %21837 = vmatprep.subr.bf16.mxu1 %v28876_v46 }
 0x7b0   :  { %9894 = vmatmul.mubr.f32.vlgmr.msra.gmra.mrb[34].mxu1 %v9380_v51  ;;  %9118 = vmatpush1.bf16.msra.mxu0 %v23792_v19  ;;  %v28970_v19 = vpack.c.bf16 %v9639_v40, %v9638_v32  ;;  %v23806_v51 = vld [vmem:[%s32819_s11 + $0xfac] ss:$60 sps:$4 sm:$0xff]   ;;  %v23807_v40 = vld [vmem:[%s32819_s11 + $0x1020] ss:$60 sps:$4 sm:$0xff]  }
 0x7b1   :  { %21839 = vmatpush3.bf16.msra.mxu1 %v28894_v8  ;;  %9963 = vmatprep.mubr.f32.mxu1 %v9401_v0  ;;  %v9641_v0 = vld [vmem:[%s32821_s13 + $0x148] sm:$0xff] }
 0x7b2   :  { %9119 = vmatprep.subr.bf16.mxu0 %v23797_v15  ;;  %21841 = vmatprep.subr.bf16.mxu1 %v28900_v7  ;;  %v9389_v15 = vrot.slane %v9388_v9, 4  ;;  %v28996_v12 = vpack.c.bf16 %v9641_v0, %v9640_v48  ;;  %v9661_v32 = vld [vmem:[%s32821_s13 + $0x1e8] sm:$0xff]  ;;  %v9662_v48 = vld [vmem:[%s32821_s13 + $0x1f0] sm:$0xff]  ;;  %v9663_v0 = vld [vmem:[%s32821_s13 + $0x1f8] sm:$0xff] }
 0x7b4   :  { %9120 = vmatpush1.bf16.msra.mxu0 %v23795_v63  ;;  %v9659_v63 = vld [vmem:[%s32821_s13 + $0x1d8] sm:$0xff]  ;;  %v9390_v27 = vadd.f32 %v9389_v15, %v9388_v9 }
 0x7b5   :  { %21843 = vmatpush3.bf16.msra.mxu1 %v28918_v1  ;;  %9121 = vmatprep.subr.bf16.mxu0 %v23800_v45  ;;  %v23804_v45 = vld [vmem:[%s32819_s11 + $0xfa8] ss:$60 sps:$4 sm:$0xff]   ;;  %v29002_v47 = vpack.c.bf16 %v9659_v63, %v9658_v49  ;;  %v23815_v63 = vld [vmem:[%s32819_s11 + $0x1114] ss:$60 sps:$4 sm:$0xff]  }
 0x7b6   :  { %21845 = vmatprep.subr.bf16.mxu1 %v28924_v18  ;;  %v9391_v4 = vrot.slane %v9390_v27, 2 }
 0x7b8   :  { %9122 = vmatpush1.bf16.msra.mxu0 %v23798_v53  ;;  %v9411_v53 = vadd.f32 %v9410_v17, %v9409_v31  ;;  %v23810_v17 = vld [vmem:[%s32819_s11 + $0x1098] ss:$60 sps:$4 sm:$0xff]  }
 0x7b9   :  { %21847 = vmatpush3.bf16.msra.mxu1 %v28942_v10  ;;  %9132 = vmatprep.subr.bf16.mxu0 %v23803_v41  ;;  %v9660_v41 = vld [vmem:[%s32821_s13 + $0x1e0] sm:$0xff] }
 0x7ba   :  { %21849 = vmatprep.subr.bf16.mxu1 %v28948_v20  ;;  %v29026_v31 = vpack.c.bf16 %v9661_v32, %v9660_v41  ;;  %v9412_v15 = vrot.slane %v9411_v53, 2  ;;  %v9680_v41 = vld [vmem:[%s32821_s13 + $0x280] sm:$0xff] }
 0x7bb   :  { %9124 = vmatmul.mubr.bf16.vlgmr.msra.gmra.mrb[44].mxu0 %v26938_v28  ;;  %v23809_v28 = vld [vmem:[%s32819_s11 + $0x1024] ss:$60 sps:$4 sm:$0xff]  }
 0x7bc   :  { %9133 = vmatpush1.bf16.msra.mxu0 %v23801_v22  ;;  %9164 = vmatprep.mubr.bf16.mxu0 %v26943_v42  ;;  %v9642_v42 = vld [vmem:[%s32821_s13 + $0x150] sm:$0xff]  ;;  %v9644_v22 = vld [vmem:[%s32821_s13 + $0x160] sm:$0xff]  ;;  %v9413_v32 = vadd.f32 %v9412_v15, %v9411_v53  ;;  %v9665_v15 = vld [vmem:[%s32821_s13 + $0x208] sm:$0xff] }
 0x7bd   :  { %21851 = vmatpush3.bf16.msra.mxu1 %v28970_v19  ;;  %9134 = vmatprep.subr.bf16.mxu0 %v23806_v51  ;;  %v29020_v9 = vpack.c.bf16 %v9643_v34, %v9642_v42  ;;  %v9645_v51 = vld [vmem:[%s32821_s13 + $0x168] sm:$0xff]  ;;  %v9646_v42 = vld [vmem:[%s32821_s13 + $0x170] sm:$0xff]  ;;  %v9647_v34 = vld [vmem:[%s32821_s13 + $0x178] sm:$0xff] }
 0x7be   :  { %21853 = vmatprep.subr.bf16.mxu1 %v28976_v55  ;;  %v29044_v49 = vpack.c.bf16 %v9645_v51, %v9644_v22  ;;  %v9664_v53 = vld [vmem:[%s32821_s13 + $0x200] sm:$0xff] }
 0x7c0   :  { %9135 = vmatpush1.bf16.msra.mxu0 %v23804_v45  ;;  %v9392_v45 = vadd.f32 %v9391_v4, %v9390_v27  ;;  %v9681_v27 = vld [vmem:[%s32821_s13 + $0x288] sm:$0xff] }
 0x7c1   :  { %21855 = vmatpush3.bf16.msra.mxu1 %v28996_v12  ;;  %9136 = vmatprep.subr.bf16.mxu0 %v23809_v28  ;;  %v29050_v28 = vpack.c.bf16 %v9663_v0, %v9662_v48  ;;  %v23818_v4 = vld [vmem:[%s32819_s11 + $0x118c] ss:$60 sps:$4 sm:$0xff]   ;;  %v29074_v51 = vpack.c.bf16 %v9681_v27, %v9680_v41  ;;  %v9414_v48 = vrot.slane %v9413_v32, 1  ;;  %v9682_v0 = vld [vmem:[%s32821_s13 + $0x290] sm:$0xff]  ;;  %v23821_v41 = vld [vmem:[%s32819_s11 + $0x1204] ss:$60 sps:$4 sm:$0xff]  }
 0x7c2   :  { %21857 = vmatprep.subr.bf16.mxu1 %v29002_v47  ;;  %v9393_v22 = vrot.slane %v9392_v45, 1 }
 0x7c3   :  { %32957 = vst [vmem:[#allocation30_spill] sm:$0xff] %v29074_v51 }
 0x7c4   :  { %9137 = vmatpush1.bf16.msra.mxu0 %v23807_v40  ;;  %v23813_v40 = vld [vmem:[%s32819_s11 + $0x1110] ss:$60 sps:$4 sm:$0xff]  }
 0x7c5   :  { %21859 = vmatpush3.bf16.msra.mxu1 %v29020_v9  ;;  %9138 = vmatprep.subr.bf16.mxu0 %v23812_v36  ;;  %v29068_v36 = vpack.c.bf16 %v9647_v34, %v9646_v42  ;;  %v29092_v42 = vpack.c.bf16 %v9665_v15, %v9664_v53  ;;  %v9394_v34 = vadd.f32 %v9393_v22, %v9392_v45  ;;  %v9684_v45 = vld [vmem:[%s32821_s13 + $0x2a0] sm:$0xff]  ;;  %v9685_v22 = vld [vmem:[%s32821_s13 + $0x2a8] sm:$0xff] }
 0x7c6   :  { %21861 = vmatprep.subr.bf16.mxu1 %v29026_v31  ;;  %v23819_v53 = vld [vmem:[%s32819_s11 + $0x1200] ss:$60 sps:$4 sm:$0xff]  }
 0x7c7   :  { %32958 = vst [vmem:[#allocation31_spill] sm:$0xff] %v29092_v42 }
 0x7c8   :  { %9139 = vmatpush1.bf16.msra.mxu0 %v23810_v17  ;;  %v9683_v17 = vld [vmem:[%s32821_s13 + $0x298] sm:$0xff] }
 0x7c9   :  { %21863 = vmatpush3.bf16.msra.mxu1 %v29044_v49  ;;  %9140 = vmatprep.subr.bf16.mxu0 %v23815_v63  ;;  %v23816_v63 = vld [vmem:[%s32819_s11 + $0x1188] ss:$60 sps:$4 sm:$0xff]   ;;  %v29098_v27 = vpack.c.bf16 %v9683_v17, %v9682_v0 }
 0x7ca   :  { %21865 = vmatprep.subr.bf16.mxu1 %v29050_v28  ;;  %v9668_v0 = vld [vmem:[%s32821_s13 + $0x220] sm:$0xff]  ;;  %v9669_v17 = vld [vmem:[%s32821_s13 + $0x228] sm:$0xff] }
 0x7cb   :  { %32959 = vst [vmem:[#allocation32_spill] sm:$0xff] %v29098_v27 }
 0x7cc   :  { %9141 = vmatpush1.bf16.msra.mxu0 %v23813_v40  ;;  %v9666_v40 = vld [vmem:[%s32821_s13 + $0x210] sm:$0xff] }
 0x7cd   :  { %21867 = vmatpush3.bf16.msra.mxu1 %v29068_v36  ;;  %9142 = vmatprep.subr.bf16.mxu0 %v23818_v4  ;;  %v9415_v4 = vadd.f32 %v9414_v48, %v9413_v32  ;;  %v29116_v15 = vpack.c.bf16 %v9667_v24, %v9666_v40  ;;  %v23824_v32 = vld [vmem:[%s32819_s11 + $0x127c] ss:$60 sps:$4 sm:$0xff]   ;;  %v29122_v48 = vpack.c.bf16 %v9685_v22, %v9684_v45  ;;  %v9686_v24 = vld [vmem:[%s32821_s13 + $0x2b0] sm:$0xff] }
 0x7ce   :  { %21869 = vmatprep.subr.bf16.mxu1 %v29074_v51  ;;  %v23827_v40 = vld [vmem:[%s32819_s11 + $0x12f4] ss:$60 sps:$4 sm:$0xff]   ;;  %v9671_v22 = vld [vmem:[%s32821_s13 + $0x238] sm:$0xff] }
 0x7cf   :  { %32960 = vst [vmem:[#allocation33_spill] sm:$0xff] %v29116_v15  ;;  %32961 = vst [vmem:[#allocation34_spill] sm:$0xff] %v29122_v48  ;;  %v9670_v45 = vld [vmem:[%s32821_s13 + $0x230] sm:$0xff] }
 0x7d0   :  { %9964 = vmatmul.mubr.f32.vlgmr.msra.gmra.mrb[64].mxu1 %v9394_v34  ;;  %9143 = vmatpush1.bf16.msra.mxu0 %v23816_v63  ;;  %v9687_v63 = vld [vmem:[%s32821_s13 + $0x2b8] sm:$0xff] }
 0x7d1   :  { %21871 = vmatpush3.bf16.msra.mxu1 %v29092_v42  ;;  %10033 = vmatprep.mubr.f32.mxu1 %v9415_v4  ;;  %v23822_v34 = vld [vmem:[%s32819_s11 + $0x1278] ss:$60 sps:$4 sm:$0xff]   ;;  %v29146_v4 = vpack.c.bf16 %v9687_v63, %v9686_v24  ;;  %v29166_v24 = vpack.c.bf16 %v9671_v22, %v9670_v45  ;;  %v23830_v63 = vld [vmem:[%s32819_s11 + $0x136c] ss:$60 sps:$4 sm:$0xff]  }
 0x7d2   :  { %9144 = vmatprep.subr.bf16.mxu0 %v23821_v41  ;;  %21873 = vmatprep.subr.bf16.mxu1 %v29098_v27  ;;  %v29140_v41 = vpack.c.bf16 %v9669_v17, %v9668_v0  ;;  %v9689_v0 = vld [vmem:[%s32821_s13 + $0x2c8] sm:$0xff]  ;;  %v9691_v45 = vld [vmem:[%s32821_s13 + $0x2d8] sm:$0xff] }
 0x7d3   :  { %32963 = vst [vmem:[#allocation36_spill] sm:$0xff] %v29146_v4  ;;  %v23825_v17 = vld [vmem:[%s32819_s11 + $0x12f0] ss:$60 sps:$4 sm:$0xff]   ;;  %32964 = vst [vmem:[#allocation37_spill] sm:$0xff] %v29166_v24  ;;  %v23828_v22 = vld [vmem:[%s32819_s11 + $0x1368] ss:$60 sps:$4 sm:$0xff]  }
 0x7d4   :  { %9145 = vmatpush1.bf16.msra.mxu0 %v23819_v53  ;;  %32962 = vst [vmem:[#allocation35_spill] sm:$0xff] %v29140_v41  ;;  %v9402_v53 = vsel %vm200_vm1, %v28450_v59, 0.0  ;;  %v9743_v27 = vld [vmem:[%s32821_s13 + $0x478] sm:$0xff] }
 0x7d5   :  { %21875 = vmatpush3.bf16.msra.mxu1 %v29116_v15  ;;  %9146 = vmatprep.subr.bf16.mxu0 %v23824_v32  ;;  %v9688_v32 = vld [vmem:[%s32821_s13 + $0x2c0] sm:$0xff]  ;;  %v9403_v5 = vrot.slane %v9402_v53, 4 }
 0x7d6   :  { %21877 = vmatprep.subr.bf16.mxu1 %v29122_v48  ;;  %v29172_v38 = vpack.c.bf16 %v9689_v0, %v9688_v32  ;;  %v23833_v0 = vld [vmem:[%s32819_s11 + $0x13e4] ss:$60 sps:$4 sm:$0xff]   ;;  %v9737_v48 = vld [vmem:[%s32821_s13 + $0x448] sm:$0xff] }
 0x7d7   :  { %v9404_v35 = vadd.f32 %v9403_v5, %v9402_v53  ;;  %v9693_v5 = vld [vmem:[%s32821_s13 + $0x2e8] sm:$0xff]  ;;  %v23831_v53 = vld [vmem:[%s32819_s11 + $0x13e0] ss:$60 sps:$4 sm:$0xff]  }
 0x7d8   :  { %9147 = vmatpush1.bf16.msra.mxu0 %v23822_v34  ;;  %32965 = vst [vmem:[#allocation38_spill] sm:$0xff] %v29172_v38  ;;  %v9672_v34 = vld [vmem:[%s32821_s13 + $0x240] sm:$0xff] }
 0x7d9   :  { %21879 = vmatpush3.bf16.msra.mxu1 %v29140_v41  ;;  %9148 = vmatprep.subr.bf16.mxu0 %v23827_v40  ;;  %v9690_v40 = vld [vmem:[%s32821_s13 + $0x2d0] sm:$0xff]  ;;  %v29190_v32 = vpack.c.bf16 %v9673_v54, %v9672_v34  ;;  %v9692_v54 = vld [vmem:[%s32821_s13 + $0x2e0] sm:$0xff]  ;;  %v23836_v34 = vld [vmem:[%s32819_s11 + $0x145c] ss:$60 sps:$4 sm:$0xff]  }
 0x7da   :  { %21881 = vmatprep.subr.bf16.mxu1 %v29146_v4  ;;  %v29196_v4 = vpack.c.bf16 %v9691_v45, %v9690_v40  ;;  %v9405_v40 = vrot.slane %v9404_v35, 2  ;;  %v29220_v45 = vpack.c.bf16 %v9693_v5, %v9692_v54  ;;  %v23839_v5 = vld [vmem:[%s32819_s11 + $0x14d4] ss:$60 sps:$4 sm:$0xff]   ;;  %v9716_v15 = vld [vmem:[%s32821_s13 + $0x3a0] sm:$0xff] }
 0x7db   :  { %32966 = vst [vmem:[#allocation39_spill] sm:$0xff] %v29190_v32  ;;  %v9734_v41 = vld [vmem:[%s32821_s13 + $0x430] sm:$0xff] }
 0x7dc   :  { %9149 = vmatpush1.bf16.msra.mxu0 %v23825_v17  ;;  %32967 = vst [vmem:[#allocation40_spill] sm:$0xff] %v29196_v4  ;;  %v9674_v17 = vld [vmem:[%s32821_s13 + $0x250] sm:$0xff]  ;;  %32969 = vst [vmem:[#allocation42_spill] sm:$0xff] %v29220_v45 }
 0x7dd   :  { %21883 = vmatpush3.bf16.msra.mxu1 %v29166_v24  ;;  %9150 = vmatprep.subr.bf16.mxu0 %v23830_v63  ;;  %v9675_v24 = vld [vmem:[%s32821_s13 + $0x258] sm:$0xff] }
 0x7de   :  { %21885 = vmatprep.subr.bf16.mxu1 %v29172_v38  ;;  %v29214_v63 = vpack.c.bf16 %v9675_v24, %v9674_v17  ;;  %v9694_v24 = vld [vmem:[%s32821_s13 + $0x2f0] sm:$0xff] }
 0x7df   :  { %v23834_v17 = vld [vmem:[%s32819_s11 + $0x1458] ss:$60 sps:$4 sm:$0xff]  }
 0x7e0   :  { %9151 = vmatpush1.bf16.msra.mxu0 %v23828_v22  ;;  %32968 = vst [vmem:[#allocation41_spill] sm:$0xff] %v29214_v63  ;;  %v9676_v22 = vld [vmem:[%s32821_s13 + $0x260] sm:$0xff] }
 0x7e1   :  { %21887 = vmatpush3.bf16.msra.mxu1 %v29190_v32  ;;  %9152 = vmatprep.subr.bf16.mxu0 %v23833_v0  ;;  %v9677_v32 = vld [vmem:[%s32821_s13 + $0x268] sm:$0xff]  ;;  %v9695_v0 = vld [vmem:[%s32821_s13 + $0x2f8] sm:$0xff] }
 0x7e2   :  { %21889 = vmatprep.subr.bf16.mxu1 %v29196_v4  ;;  %v29238_v54 = vpack.c.bf16 %v9677_v32, %v9676_v22  ;;  %v9406_v4 = vadd.f32 %v9405_v40, %v9404_v35  ;;  %v29244_v38 = vpack.c.bf16 %v9695_v0, %v9694_v24  ;;  %v9744_v32 = vld [vmem:[%s32821_s13 + $0x480] sm:$0xff]  ;;  %v9745_v35 = vld [vmem:[%s32821_s13 + $0x488] sm:$0xff] }
 0x7e3   :  { %v23842_v22 = vld [vmem:[%s32819_s11 + $0x154c] ss:$60 sps:$4 sm:$0xff]   ;;  %v29268_v0 = vpack.c.bf16 %v9745_v35, %v9744_v32  ;;  %v23845_v32 = vld [vmem:[%s32819_s11 + $0x15c4] ss:$60 sps:$4 sm:$0xff]  }
 0x7e4   :  { %9153 = vmatpush1.bf16.msra.mxu0 %v23831_v53  ;;  %32970 = vst [vmem:[#allocation43_spill] sm:$0xff] %v29238_v54  ;;  %32971 = vst [vmem:[#allocation44_spill] sm:$0xff] %v29244_v38  ;;  %v9678_v53 = vld [vmem:[%s32821_s13 + $0x270] sm:$0xff]  ;;  %v9407_v24 = vrot.slane %v9406_v4, 1 }
 0x7e5   :  { %21891 = vmatpush3.bf16.msra.mxu1 %v29214_v63  ;;  %9154 = vmatprep.subr.bf16.mxu0 %v23836_v34  ;;  %v9679_v63 = vld [vmem:[%s32821_s13 + $0x278] sm:$0xff]  ;;  %v23837_v34 = vld [vmem:[%s32819_s11 + $0x14d0] ss:$60 sps:$4 sm:$0xff]   ;;  %32973 = vst [vmem:[#allocation46_spill] sm:$0xff] %v29268_v0 }
 0x7e6   :  { %21893 = vmatprep.subr.bf16.mxu1 %v29220_v45  ;;  %v29262_v40 = vpack.c.bf16 %v9679_v63, %v9678_v53  ;;  %v9746_v63 = vld [vmem:[%s32821_s13 + $0x490] sm:$0xff]  ;;  %v23840_v53 = vld [vmem:[%s32819_s11 + $0x1548] ss:$60 sps:$4 sm:$0xff]  }
 0x7e8   :  { %9155 = vmatpush1.bf16.msra.mxu0 %v23834_v17  ;;  %32972 = vst [vmem:[#allocation45_spill] sm:$0xff] %v29262_v40  ;;  %v9728_v17 = vld [vmem:[%s32821_s13 + $0x400] sm:$0xff] }
 0x7e9   :  { %21895 = vmatpush3.bf16.msra.mxu1 %v29238_v54  ;;  %9156 = vmatprep.subr.bf16.mxu0 %v23839_v5  ;;  %v9729_v54 = vld [vmem:[%s32821_s13 + $0x408] sm:$0xff]  ;;  %v9747_v5 = vld [vmem:[%s32821_s13 + $0x498] sm:$0xff] }
 0x7ea   :  { %21897 = vmatprep.subr.bf16.mxu1 %v29244_v38  ;;  %v29289_v35 = vpack.c.bf16 %v9729_v54, %v9728_v17  ;;  %v9408_v38 = vadd.f32 %v9407_v24, %v9406_v4  ;;  %v29292_v45 = vpack.c.bf16 %v9747_v5, %v9746_v63  ;;  %v9748_v54 = vld [vmem:[%s32821_s13 + $0x4a0] sm:$0xff]  ;;  %v9749_v4 = vld [vmem:[%s32821_s13 + $0x4a8] sm:$0xff]  ;;  %v23848_v17 = vld [vmem:[%s32819_s11 + $0x163c] ss:$60 sps:$4 sm:$0xff]  }
 0x7eb   :  { %v23843_v24 = vld [vmem:[%s32819_s11 + $0x15c0] ss:$60 sps:$4 sm:$0xff]  }
 0x7ec   :  { %9157 = vmatpush1.bf16.msra.mxu0 %v23837_v34  ;;  %32974 = vst [vmem:[#allocation47_spill] sm:$0xff] %v29289_v35  ;;  %32975 = vst [vmem:[#allocation48_spill] sm:$0xff] %v29292_v45  ;;  %v9730_v34 = vld [vmem:[%s32821_s13 + $0x410] sm:$0xff] }
 0x7ed   :  { %21899 = vmatpush3.bf16.msra.mxu1 %v29262_v40  ;;  %9158 = vmatprep.subr.bf16.mxu0 %v23842_v22  ;;  %v9731_v40 = vld [vmem:[%s32821_s13 + $0x418] sm:$0xff]  ;;  %v9423_v22 = vsel %vm200_vm1, %v28399_v44, 0.0 }
 0x7ee   :  { %21933 = vmatprep.subr.bf16.mxu1 %v29268_v0  ;;  %v29315_v63 = vpack.c.bf16 %v9731_v40, %v9730_v34  ;;  %v9424_v5 = vrot.slane %v9423_v22, 4  ;;  %v29318_v0 = vpack.c.bf16 %v9749_v4, %v9748_v54  ;;  %v9751_v40 = vld [vmem:[%s32821_s13 + $0x4b8] sm:$0xff]  ;;  %v23851_v54 = vld [vmem:[%s32819_s11 + $0x16b4] ss:$60 sps:$4 sm:$0xff]   ;;  %v9712_v4 = vld [vmem:[%s32821_s13 + $0x380] sm:$0xff] }
 0x7ef   :  { %v23846_v34 = vld [vmem:[%s32819_s11 + $0x1638] ss:$60 sps:$4 sm:$0xff]  }
 0x7f0   :  { %10034 = vmatmul.mubr.f32.vlgmr.msra.gmra.mrb[66].mxu1 %v9408_v38  ;;  %9159 = vmatpush1.bf16.msra.mxu0 %v23840_v53  ;;  %32976 = vst [vmem:[#allocation49_spill] sm:$0xff] %v29315_v63  ;;  %32977 = vst [vmem:[#allocation50_spill] sm:$0xff] %v29318_v0  ;;  %v9732_v38 = vld [vmem:[%s32821_s13 + $0x420] sm:$0xff]  ;;  %v9733_v53 = vld [vmem:[%s32821_s13 + $0x428] sm:$0xff] }
 0x7f1   :  { %9160 = vmatprep.subr.bf16.mxu0 %v23845_v32  ;;  %21935 = vmatpush3.bf16.msra.mxu1 %v29289_v35  ;;  %v9750_v32 = vld [vmem:[%s32821_s13 + $0x4b0] sm:$0xff]  ;;  %v9425_v35 = vadd.f32 %v9424_v5, %v9423_v22  ;;  %v9752_v22 = vld [vmem:[%s32821_s13 + $0x4c0] sm:$0xff]  ;;  %v9753_v5 = vld [vmem:[%s32821_s13 + $0x4c8] sm:$0xff] }
 0x7f2   :  { %21937 = vmatprep.subr.bf16.mxu1 %v29292_v45  ;;  %v29342_v45 = vpack.c.bf16 %v9733_v53, %v9732_v38  ;;  %v23849_v38 = vld [vmem:[%s32819_s11 + $0x16b0] ss:$60 sps:$4 sm:$0xff]  }
 0x7f4   :  { %9161 = vmatpush1.bf16.msra.mxu0 %v23843_v24  ;;  %32978 = vst [vmem:[#allocation51_spill] sm:$0xff] %v29342_v45  ;;  %v9713_v24 = vld [vmem:[%s32821_s13 + $0x388] sm:$0xff] }
 0x7f5   :  { %9162 = vmatprep.subr.bf16.mxu0 %v23848_v17  ;;  %21939 = vmatpush3.bf16.msra.mxu1 %v29315_v63  ;;  %v29348_v17 = vpack.c.bf16 %v9751_v40, %v9750_v32  ;;  %v9735_v63 = vld [vmem:[%s32821_s13 + $0x438] sm:$0xff]  ;;  %v29365_v53 = vpack.c.bf16 %v9713_v24, %v9712_v4  ;;  %v9426_v40 = vrot.slane %v9425_v35, 2 }
 0x7f6   :  { %21941 = vmatprep.subr.bf16.mxu1 %v29318_v0  ;;  %v29368_v32 = vpack.c.bf16 %v9735_v63, %v9734_v41  ;;  %v29371_v0 = vpack.c.bf16 %v9753_v5, %v9752_v22  ;;  %v9754_v41 = vld [vmem:[%s32821_s13 + $0x4d0] sm:$0xff]  ;;  %v9755_v63 = vld [vmem:[%s32821_s13 + $0x4d8] sm:$0xff] }
 0x7f7   :  { %32979 = vst [vmem:[#allocation52_spill] sm:$0xff] %v29348_v17  ;;  %v9427_v5 = vadd.f32 %v9426_v40, %v9425_v35  ;;  %v9696_v35 = vld [vmem:[%s32821_s13 + $0x300] sm:$0xff]  ;;  %v9697_v40 = vld [vmem:[%s32821_s13 + $0x308] sm:$0xff] }
 0x7f8   :  { %9163 = vmatpush1.bf16.msra.mxu0 %v23846_v34  ;;  %32980 = vst [vmem:[#allocation53_spill] sm:$0xff] %v29368_v32  ;;  %32981 = vst [vmem:[#allocation54_spill] sm:$0xff] %v29371_v0  ;;  %v9736_v34 = vld [vmem:[%s32821_s13 + $0x440] sm:$0xff] }
 0x7f9   :  { %9173 = vmatprep.subr.bf16.mxu0 %v23851_v54  ;;  %21943 = vmatpush3.bf16.msra.mxu1 %v29342_v45  ;;  %v9741_v45 = vld [vmem:[%s32821_s13 + $0x468] sm:$0xff] }
 0x7fa   :  { %21945 = vmatprep.subr.bf16.mxu1 %v29348_v17  ;;  %v29396_v17 = vpack.c.bf16 %v9755_v63, %v9754_v41  ;;  %v9428_v63 = vrot.slane %v9427_v5, 1 }
 0x7fb   :  { %9165 = vmatmul.mubr.bf16.vlgmr.msra.gmra.mrb[44].mxu0 %v27139_v6  ;;  %v29380_v54 = vpop.f32.mrb[44].mxu1  ;;  %v29393_v6 = vpack.c.bf16 %v9737_v48, %v9736_v34  ;;  %v9757_v48 = vld [vmem:[%s32821_s13 + $0x4e8] sm:$0xff]  ;;  %v9714_v34 = vld [vmem:[%s32821_s13 + $0x390] sm:$0xff] }
 0x7fc   :  { %9174 = vmatpush1.bf16.msra.mxu0 %v23849_v38  ;;  %v29388_v4 = vpop.f32.mrb[45].mxu1  ;;  %9205 = vmatprep.mubr.bf16.mxu0 %v32936_v39  ;;  %32983 = vst [vmem:[#allocation56_spill] sm:$0xff] %v29396_v17  ;;  %v9738_v38 = vld [vmem:[%s32821_s13 + $0x450] sm:$0xff]  ;;  %v9756_v39 = vld [vmem:[%s32821_s13 + $0x4e0] sm:$0xff] }
 0x7fd   :  { %v9047_v24 = vpop.f32.mrb[46].mxu1  ;;  %21901 = vmatprep.subr.bf16.mxu0 %v29365_v53  ;;  %21947 = vmatpush3.bf16.msra.mxu1 %v29368_v32  ;;  %32982 = vst [vmem:[#allocation55_spill] sm:$0xff] %v29393_v6  ;;  %v9740_v32 = vld [vmem:[%s32821_s13 + $0x460] sm:$0xff] }
 0x7fe   :  { %v9048_v22 = vpop.f32.mrb[47].mxu1  ;;  %21949 = vmatprep.subr.bf16.mxu1 %v29371_v0  ;;  %v9739_v24 = vld [vmem:[%s32821_s13 + $0x458] sm:$0xff]  ;;  %v29426_v0 = vpack.c.bf16 %v9757_v48, %v9756_v39  ;;  %v9698_v48 = vld [vmem:[%s32821_s13 + $0x310] sm:$0xff]  ;;  %v29454_v59 = vpack.c.bf16 %v9741_v45, %v9740_v32 }
 0x7ff   :  { %v29420_v41 = vpack.c.bf16 %v9739_v24, %v9738_v38  ;;  %v9715_v22 = vld [vmem:[%s32821_s13 + $0x398] sm:$0xff]  ;;  %v9758_v38 = vld [vmem:[%s32821_s13 + $0x4f0] sm:$0xff] }
 0x800   :  { %32985 = vst [vmem:[#allocation58_spill] sm:$0xff] %v29426_v0  ;;  %v9759_v24 = vld [vmem:[%s32821_s13 + $0x4f8] sm:$0xff]  ;;  %v29442_v39 = vpack.c.bf16 %v9715_v22, %v9714_v34  ;;  %32986 = vst [vmem:[#allocation59_spill] sm:$0xff] %v29454_v59  ;;  %v9742_v22 = vld [vmem:[%s32821_s13 + $0x470] sm:$0xff] }
 0x801   :  { %21951 = vmatpush3.bf16.msra.mxu1 %v29393_v6  ;;  %32984 = vst [vmem:[#allocation57_spill] sm:$0xff] %v29420_v41  ;;  %v29440_v6 = vpack.c.bf16 %v9697_v40, %v9696_v35  ;;  %v9429_v35 = vadd.f32 %v9428_v63, %v9427_v5  ;;  %v9717_v40 = vld [vmem:[%s32821_s13 + $0x3a8] sm:$0xff]  ;;  %v29460_v34 = vpack.c.bf16 %v9759_v24, %v9758_v38  ;;  %v9700_v5 = vld [vmem:[%s32821_s13 + $0x320] sm:$0xff] }
 0x802   :  { %21953 = vmatprep.subr.bf16.mxu1 %v29396_v17  ;;  %v9699_v17 = vld [vmem:[%s32821_s13 + $0x318] sm:$0xff]  ;;  %v29474_v32 = vpack.c.bf16 %v9717_v40, %v9716_v15  ;;  %v9701_v63 = vld [vmem:[%s32821_s13 + $0x328] sm:$0xff] }
 0x803   :  { %32987 = vst [vmem:[#allocation60_spill] sm:$0xff] %v29460_v34  ;;  %v29471_v45 = vpack.c.bf16 %v9699_v17, %v9698_v48  ;;  %v9718_v17 = vld [vmem:[%s32821_s13 + $0x3b0] sm:$0xff]  ;;  %v9719_v15 = vld [vmem:[%s32821_s13 + $0x3b8] sm:$0xff]  ;;  %v29493_v38 = vpack.c.bf16 %v9701_v63, %v9700_v5  ;;  %v9721_v5 = vld [vmem:[%s32821_s13 + $0x3c8] sm:$0xff]  ;;  %v9451_v63 = vsel %vm200_vm1, %v29388_v4, 0.0 }
 0x804   :  { %v29496_v24 = vpack.c.bf16 %v9719_v15, %v9718_v17  ;;  %v9703_v48 = vld [vmem:[%s32821_s13 + $0x338] sm:$0xff]  ;;  %v9452_v52 = vrot.slane %v9451_v63, 4 }
 0x805   :  { %21955 = vmatpush3.bf16.msra.mxu1 %v29420_v41 }
 0x806   :  { %21957 = vmatprep.subr.bf16.mxu1 %v29426_v0 }
 0x807   :  { %19703 = vmatmul.mubr.msk.bf16.vlgmr.msra.gmra.mrb[44].mxu0 %vm2307_vm4, %v27170_v60  ;;  %v29483_v60 = vpack.c.bf16 %v9743_v27, %v9742_v22  ;;  %v9702_v27 = vld [vmem:[%s32821_s13 + $0x330] sm:$0xff]  ;;  %v9720_v22 = vld [vmem:[%s32821_s13 + $0x3c0] sm:$0xff] }
 0x808   :  { %21903 = vmatpush3.bf16.msra.mxu0 %v29440_v6  ;;  %10103 = vmatprep.mubr.f32.mxu0 %v9429_v35  ;;  %v9416_v35 = vsel %vm200_vm1, %v28397_v50, 0.0  ;;  %v29524_v0 = vpack.c.bf16 %v9703_v48, %v9702_v27  ;;  %v29527_v23 = vpack.c.bf16 %v9721_v5, %v9720_v22 }
 0x809   :  { %21905 = vmatprep.subr.bf16.mxu0 %v29442_v39  ;;  %21959 = vmatpush3.bf16.msra.mxu1 %v29454_v59  ;;  %32988 = vst [vmem:[#allocation61_spill] sm:$0xff] %v29483_v60  ;;  %v9417_v41 = vrot.slane %v9416_v35, 4 }
 0x80a   :  { %21961 = vmatprep.subr.bf16.mxu1 %v29460_v34 }
 0x80b   :  { %v9418_v5 = vadd.f32 %v9417_v41, %v9416_v35  ;;  %v9725_v41 = vld [vmem:[%s32821_s13 + $0x3e8] sm:$0xff] }
 0x80c   :  { %21907 = vmatpush3.bf16.msra.mxu0 %v29471_v45 }
 0x80d   :  { %21909 = vmatprep.subr.bf16.mxu0 %v29474_v32  ;;  %21963 = vmatpush3.bf16.msra.mxu1 %v29483_v60 }
 0x80e   :  { %v29507_v40 = vpop.f32.mrb[40].mxu0 }
 0x80f   :  { %32989 = vst [vmem:[#allocation62_spill] sm:$0xff] %v29507_v40  ;;  %v9430_v17 = vsel %vm200_vm1, %v29507_v40, 0.0  ;;  %v29519_v15 = vpop.f32.mrb[41].mxu0  ;;  %v9704_v40 = vld [vmem:[%s32821_s13 + $0x340] sm:$0xff] }
 0x810   :  { %32990 = vst [vmem:[#allocation63_spill] sm:$0xff] %v29519_v15  ;;  %v9431_v60 = vrot.slane %v9430_v17, 4  ;;  %21911 = vmatpush3.bf16.msra.mxu0 %v29493_v38  ;;  %v9437_v34 = vsel %vm200_vm1, %v29519_v15, 0.0  ;;  %v8883_v59 = vpop.f32.mrb[42].mxu0  ;;  %v29542_v22 = vpack.c.bf16 %v9705_v62, %v9704_v40  ;;  %v9724_v62 = vld [vmem:[%s32821_s13 + $0x3e0] sm:$0xff] }
 0x811   :  { %v9438_v42 = vrot.slane %v9437_v34, 4  ;;  %v8884_v51 = vpop.f32.mrb[43].mxu0  ;;  %21913 = vmatprep.subr.bf16.mxu0 %v29496_v24  ;;  %v9722_v59 = vld [vmem:[%s32821_s13 + $0x3d0] sm:$0xff]  ;;  %v29563_v58 = vpack.c.bf16 %v9725_v41, %v9724_v62 }
 0x812   :  { %v9432_v15 = vadd.f32 %v9431_v60, %v9430_v17  ;;  %v9723_v51 = vld [vmem:[%s32821_s13 + $0x3d8] sm:$0xff]  ;;  %v9706_v60 = vld [vmem:[%s32821_s13 + $0x350] sm:$0xff] }
 0x813   :  { %v9439_v27 = vadd.f32 %v9438_v42, %v9437_v34  ;;  %v29545_v25 = vpack.c.bf16 %v9723_v51, %v9722_v59  ;;  %v9707_v17 = vld [vmem:[%s32821_s13 + $0x358] sm:$0xff]  ;;  %v9453_v42 = vadd.f32 %v9452_v52, %v9451_v63  ;;  %v9419_v51 = vrot.slane %v9418_v5, 2  ;;  %v9708_v63 = vld [vmem:[%s32821_s13 + $0x360] sm:$0xff] }
 0x814   :  { %v9433_v48 = vrot.slane %v9432_v15, 2  ;;  %21915 = vmatpush3.bf16.msra.mxu0 %v29524_v0  ;;  %v29560_v59 = vpack.c.bf16 %v9707_v17, %v9706_v60 }
 0x815   :  { %v9440_v13 = vrot.slane %v9439_v27, 2  ;;  %21917 = vmatprep.subr.bf16.mxu0 %v29527_v23  ;;  %v9420_v29 = vadd.f32 %v9419_v51, %v9418_v5  ;;  %v9776_v5 = vld [vmem:[%s32821_s13 + $0x580] sm:$0xff] }
 0x816   :  { %v9434_v34 = vadd.f32 %v9433_v48, %v9432_v15  ;;  %v9709_v15 = vld [vmem:[%s32821_s13 + $0x368] sm:$0xff]  ;;  %v9727_v48 = vld [vmem:[%s32821_s13 + $0x3f8] sm:$0xff] }
 0x817   :  { %v9441_v35 = vadd.f32 %v9440_v13, %v9439_v27  ;;  %v9454_v13 = vrot.slane %v9453_v42, 2  ;;  %v9726_v27 = vld [vmem:[%s32821_s13 + $0x3f0] sm:$0xff]  ;;  %v29578_v41 = vpack.c.bf16 %v9709_v15, %v9708_v63  ;;  %v9421_v51 = vrot.slane %v9420_v29, 1  ;;  %v9761_v15 = vld [vmem:[%s32821_s13 + $0x508] sm:$0xff] }
 0x818   :  { %v9435_v40 = vrot.slane %v9434_v34, 1  ;;  %21919 = vmatpush3.bf16.msra.mxu0 %v29542_v22  ;;  %v29583_v57 = vpack.c.bf16 %v9727_v48, %v9726_v27 }
 0x819   :  { %21921 = vmatprep.subr.bf16.mxu0 %v29545_v25  ;;  %v9442_v52 = vrot.slane %v9441_v35, 1  ;;  %v9422_v48 = vadd.f32 %v9421_v51, %v9420_v29  ;;  %v9781_v29 = vld [vmem:[%s32821_s13 + $0x5a8] sm:$0xff] }
 0x81a   :  { %v9436_v61 = vadd.f32 %v9435_v40, %v9434_v34  ;;  %v9455_v34 = vadd.f32 %v9454_v13, %v9453_v42  ;;  %v9778_v42 = vld [vmem:[%s32821_s13 + $0x590] sm:$0xff]  ;;  %v9765_v51 = vld [vmem:[%s32821_s13 + $0x528] sm:$0xff] }
 0x81b   :  { %v20810_v60 = vpop.f32.mrb[48].mxu1  ;;  %v9443_v17 = vadd.f32 %v9442_v52, %v9441_v35  ;;  %v9711_v35 = vld [vmem:[%s32821_s13 + $0x378] sm:$0xff] }
 0x81c   :  { %21923 = vmatpush3.bf16.msra.mxu0 %v29560_v59  ;;  %v20811_v62 = vpop.f32.mrb[49].mxu1  ;;  %v29598_v40 = vpack.c.bf16 %v9711_v35, %v9710_v56  ;;  %v9456_v27 = vrot.slane %v9455_v34, 1  ;;  %v9779_v56 = vld [vmem:[%s32821_s13 + $0x598] sm:$0xff] }
 0x81d   :  { %v29580_v37 = vadd.f32 %v20811_v62, %v20810_v60  ;;  %v20813_v21 = vpop.f32.mrb[50].mxu1  ;;  %21925 = vmatprep.subr.bf16.mxu0 %v29563_v58  ;;  %10173 = vmatprep.mubr.f32.mxu1 %v9443_v17  ;;  %v29619_v60 = vpack.c.bf16 %v9779_v56, %v9778_v42  ;;  %v9762_v17 = vld [vmem:[%s32821_s13 + $0x510] sm:$0xff]  ;;  %v9763_v62 = vld [vmem:[%s32821_s13 + $0x518] sm:$0xff] }
 0x81e   :  { %v20814_v52 = vpop.f32.mrb[51].mxu1  ;;  %10174 = vmatmul.mubr.f32.vlgmr.msra.gmra.mrb[68].mxu1 %v9436_v61  ;;  %v9777_v21 = vld [vmem:[%s32821_s13 + $0x588] sm:$0xff]  ;;  %v9760_v61 = vld [vmem:[%s32821_s13 + $0x500] sm:$0xff]  ;;  %v9457_v35 = vadd.f32 %v9456_v27, %v9455_v34  ;;  %v9766_v56 = vld [vmem:[%s32821_s13 + $0x530] sm:$0xff] }
 0x81f   :  { %v29601_v63 = vpack.c.bf16 %v9777_v21, %v9776_v5  ;;  %v29616_v13 = vpack.c.bf16 %v9761_v15, %v9760_v61  ;;  %v9780_v52 = vld [vmem:[%s32821_s13 + $0x5a0] sm:$0xff]  ;;  %v29634_v5 = vpack.c.bf16 %v9763_v62, %v9762_v17  ;;  %v9782_v61 = vld [vmem:[%s32821_s13 + $0x5b0] sm:$0xff]  ;;  %v9783_v15 = vld [vmem:[%s32821_s13 + $0x5b8] sm:$0xff]  ;;  %v9444_v17 = vsel %vm200_vm1, %v29380_v54, 0.0 }
 0x820   :  { %21927 = vmatpush3.bf16.msra.mxu0 %v29578_v41  ;;  %v29637_v21 = vpack.c.bf16 %v9781_v29, %v9780_v52  ;;  %v9764_v34 = vld [vmem:[%s32821_s13 + $0x520] sm:$0xff]  ;;  %v29655_v42 = vpack.c.bf16 %v9783_v15, %v9782_v61  ;;  %v9445_v29 = vrot.slane %v9444_v17, 4  ;;  %v9769_v61 = vld [vmem:[%s32821_s13 + $0x548] sm:$0xff]  ;;  %v9786_v15 = vld [vmem:[%s32821_s13 + $0x5d0] sm:$0xff] }
 0x821   :  { %21929 = vmatprep.subr.bf16.mxu0 %v29583_v57  ;;  %v29652_v27 = vpack.c.bf16 %v9765_v51, %v9764_v34  ;;  %v9784_v62 = vld [vmem:[%s32821_s13 + $0x5c0] sm:$0xff] }
 0x822   :  { %32991 = vst [vmem:[#allocation64_spill] sm:$0xff] %v29655_v42  ;;  %v9768_v51 = vld [vmem:[%s32821_s13 + $0x540] sm:$0xff] }
 0x824   :  { %21931 = vmatpush3.bf16.msra.mxu0 %v29598_v40 }
 0x825   :  { %21965 = vmatprep.subr.bf16.mxu0 %v29601_v63 }
 0x827   :  { %10104 = vmatmul.mubr.f32.vlgmr.msra.gmra.mrb[26].mxu0 %v9422_v48  ;;  %v9767_v48 = vld [vmem:[%s32821_s13 + $0x538] sm:$0xff] }
 0x828   :  { %21967 = vmatpush3.bf16.msra.mxu0 %v29616_v13  ;;  %10243 = vmatprep.mubr.f32.mxu0 %v9457_v35  ;;  %v9785_v35 = vld [vmem:[%s32821_s13 + $0x5c8] sm:$0xff]  ;;  %v29672_v52 = vpack.c.bf16 %v9767_v48, %v9766_v56  ;;  %v9787_v56 = vld [vmem:[%s32821_s13 + $0x5d8] sm:$0xff]  ;;  %v29690_v48 = vpack.c.bf16 %v9769_v61, %v9768_v51 }
 0x829   :  { %21969 = vmatprep.subr.bf16.mxu0 %v29619_v60  ;;  %v29675_v34 = vpack.c.bf16 %v9785_v35, %v9784_v62  ;;  %v9446_v62 = vadd.f32 %v9445_v29, %v9444_v17  ;;  %v29693_v35 = vpack.c.bf16 %v9787_v56, %v9786_v15  ;;  %v9789_v17 = vld [vmem:[%s32821_s13 + $0x5e8] sm:$0xff]  ;;  %v29708_v29 = vpack.c.bf16 %v9771_v2, %v9770_v3  ;;  %v9772_v15 = vld [vmem:[%s32821_s13 + $0x560] sm:$0xff]  ;;  %v9791_v2 = vld [vmem:[%s32821_s13 + $0x5f8] sm:$0xff] }
 0x82a   :  { %32992 = vst [vmem:[#allocation65_spill] sm:$0xff] %v29672_v52  ;;  %32994 = vst [vmem:[#allocation67_spill] sm:$0xff] %v29690_v48  ;;  %v29711_v61 = vpack.c.bf16 %v9789_v17, %v9788_v43  ;;  %v9773_v56 = vld [vmem:[%s32821_s13 + $0x568] sm:$0xff] }
 0x82b   :  { %32993 = vst [vmem:[#allocation66_spill] sm:$0xff] %v29675_v34  ;;  %32995 = vst [vmem:[#allocation68_spill] sm:$0xff] %v29693_v35  ;;  %v9447_v51 = vrot.slane %v9446_v62, 2  ;;  %v29726_v17 = vpack.c.bf16 %v9773_v56, %v9772_v15  ;;  %v29749_v15 = vld [vmem:[%s32821_s13 + $0x700] sm:$0xff]  ;;  %v9810_v56 = vld [vmem:[%s32821_s13 + $0x690] sm:$0xff] }
 0x82c   :  { %21971 = vmatpush3.bf16.msra.mxu0 %v29634_v5  ;;  %32996 = vst [vmem:[#allocation69_spill] sm:$0xff] %v29708_v29  ;;  %32998 = vst [vmem:[#allocation70_spill] sm:$0xff] %v29749_v15 }
 0x82d   :  { %21973 = vmatprep.subr.bf16.mxu0 %v29637_v21  ;;  %v9448_v30 = vadd.f32 %v9447_v51, %v9446_v62  ;;  %v32997_v51 = vmov 0.0  }
 0x830   :  { %21975 = vmatpush3.bf16.msra.mxu0 %v29652_v27 }
 0x831   :  { %21977 = vmatprep.subr.bf16.mxu0 %v29655_v42 }
 0x834   :  { %21979 = vmatpush3.bf16.msra.mxu0 %v29672_v52  ;;  %v9775_v52 = vld [vmem:[%s32821_s13 + $0x578] sm:$0xff] }
 0x835   :  { %21981 = vmatprep.subr.bf16.mxu0 %v29675_v34  ;;  %v9774_v34 = vld [vmem:[%s32821_s13 + $0x570] sm:$0xff] }
 0x836   :  { %v29741_v62 = vpack.c.bf16 %v9775_v52, %v9774_v34  ;;  %v9793_v52 = vld [vmem:[%s32821_s13 + $0x608] sm:$0xff] }
 0x838   :  { %21983 = vmatpush3.bf16.msra.mxu0 %v29690_v48  ;;  %v29729_v48 = vpack.c.bf16 %v9791_v2, %v9790_v14  ;;  %v9811_v2 = vld [vmem:[%s32821_s13 + $0x698] sm:$0xff] }
 0x839   :  { %21985 = vmatprep.subr.bf16.mxu0 %v29693_v35 }
 0x83b   :  { %v20832_v3 = vpop.f32.mrb[52].mxu1 }
 0x83c   :  { %21987 = vmatpush3.bf16.msra.mxu0 %v29708_v29  ;;  %v20833_v43 = vpop.f32.mrb[53].mxu1 }
 0x83d   :  { %v20834_v16 = vadd.f32 %v20833_v43, %v20832_v3  ;;  %v20835_v35 = vpop.f32.mrb[54].mxu1  ;;  %21989 = vmatprep.subr.bf16.mxu0 %v29711_v61  ;;  %v29779_v3 = vpack.c.bf16 %v9811_v2, %v9810_v56  ;;  %v9795_v43 = vld [vmem:[%s32821_s13 + $0x618] sm:$0xff]  ;;  %v9814_v2 = vld [vmem:[%s32821_s13 + $0x6b0] sm:$0xff] }
 0x83e   :  { %v20836_v42 = vpop.f32.mrb[55].mxu1  ;;  %v9449_v35 = vrot.slane %v9448_v30, 1 }
 0x83f   :  { %v29738_v29 = vadd.f32 %v20834_v16, %v29580_v37  ;;  %v9808_v16 = vld [vmem:[%s32821_s13 + $0x680] sm:$0xff]  ;;  %v9809_v37 = vld [vmem:[%s32821_s13 + $0x688] sm:$0xff]  ;;  %33001 = vst [vmem:[#allocation73_spill] sm:$0xff] %v29779_v3 }
 0x840   :  { %21991 = vmatpush3.bf16.msra.mxu0 %v29726_v17  ;;  %v9450_v14 = vadd.f32 %v9449_v35, %v9448_v30  ;;  %v29760_v30 = vpack.c.bf16 %v9809_v37, %v9808_v16  ;;  %v9792_v42 = vld [vmem:[%s32821_s13 + $0x600] sm:$0xff]  ;;  %v9813_v16 = vld [vmem:[%s32821_s13 + $0x6a8] sm:$0xff] }
 0x841   :  { %21993 = vmatprep.subr.bf16.mxu0 %v29729_v48  ;;  %v29769_v34 = vpack.c.bf16 %v9793_v52, %v9792_v42  ;;  %v9796_v42 = vld [vmem:[%s32821_s13 + $0x620] sm:$0xff]  ;;  %v9797_v52 = vld [vmem:[%s32821_s13 + $0x628] sm:$0xff] }
 0x842   :  { %32999 = vst [vmem:[#allocation71_spill] sm:$0xff] %v29760_v30  ;;  %21997 = vmatprep.subr.bf16.mxu1 %v29760_v30  ;;  %v29805_v56 = vpack.c.bf16 %v9797_v52, %v9796_v42  ;;  %v9483_v52 = vmul.f32 %v27841_v11, %v27841_v11 }
 0x843   :  { %33000 = vst [vmem:[#allocation72_spill] sm:$0xff] %v29769_v34  ;;  %21999 = vmatpush3.bf16.msra.mxu1 %v29769_v34 }
 0x844   :  { %21995 = vmatpush3.bf16.msra.mxu0 %v29741_v62  ;;  %22001 = vmatprep.subr.bf16.mxu1 %v29779_v3  ;;  %33004 = vst [vmem:[#allocation76_spill] sm:$0xff] %v29805_v56 }
 0x845   :  { %21550 = vmatprep.subr.mxu0 %v32997_v51 }
 0x847   :  { %10244 = vmatmul.mubr.f32.vlgmr.msra.gmra.mrb[48].mxu0 %v9450_v14  ;;  %v9812_v14 = vld [vmem:[%s32821_s13 + $0x6a0] sm:$0xff] }
 0x848   :  { %21551 = vmatpush3.msra.mxu0 %v29749_v15  ;;  %21552 = vmatprep.mubr.msk.f32.mxu0 %vm25045_vm2, %v32997_v51  ;;  %v29797_v37 = vpack.c.bf16 %v9813_v16, %v9812_v14  ;;  %v9798_v14 = vld [vmem:[%s32821_s13 + $0x630] sm:$0xff]  ;;  %v9799_v16 = vld [vmem:[%s32821_s13 + $0x638] sm:$0xff] }
 0x849   :  { %22061 = vmatprep.subr.bf16.mxu0 %v28876_v46  ;;  %v9794_v46 = vld [vmem:[%s32821_s13 + $0x610] sm:$0xff]  ;;  %v29823_v42 = vpack.c.bf16 %v9799_v16, %v9798_v14  ;;  %v9800_v14 = vld [vmem:[%s32821_s13 + $0x640] sm:$0xff]  ;;  %v9801_v16 = vld [vmem:[%s32821_s13 + $0x648] sm:$0xff] }
 0x84a   :  { %v29787_v35 = vpack.c.bf16 %v9795_v43, %v9794_v46  ;;  %33003 = vst [vmem:[#allocation75_spill] sm:$0xff] %v29797_v37  ;;  %v9815_v46 = vld [vmem:[%s32821_s13 + $0x6b8] sm:$0xff]  ;;  %v29843_v11 = vpack.c.bf16 %v9801_v16, %v9800_v14  ;;  %v9802_v14 = vld [vmem:[%s32821_s13 + $0x650] sm:$0xff] }
 0x84b   :  { %v29815_v43 = vpack.c.bf16 %v9815_v46, %v9814_v2  ;;  %33006 = vst [vmem:[#allocation78_spill] sm:$0xff] %v29823_v42  ;;  %v9816_v2 = vld [vmem:[%s32821_s13 + $0x6c0] sm:$0xff]  ;;  %v9817_v46 = vld [vmem:[%s32821_s13 + $0x6c8] sm:$0xff] }
 0x84c   :  { %33002 = vst [vmem:[#allocation74_spill] sm:$0xff] %v29787_v35  ;;  %22003 = vmatpush3.bf16.msra.mxu1 %v29787_v35  ;;  %33008 = vst [vmem:[#allocation80_spill] sm:$0xff] %v29843_v11 }
 0x84d   :  { %22005 = vmatprep.subr.bf16.mxu1 %v29797_v37  ;;  %33005 = vst [vmem:[#allocation77_spill] sm:$0xff] %v29815_v43 }
 0x850   :  { %22007 = vmatpush3.bf16.msra.mxu1 %v29805_v56  ;;  %v29835_v56 = vpack.c.bf16 %v9817_v46, %v9816_v2  ;;  %v9818_v2 = vld [vmem:[%s32821_s13 + $0x6d0] sm:$0xff]  ;;  %v9819_v46 = vld [vmem:[%s32821_s13 + $0x6d8] sm:$0xff] }
 0x851   :  { %22009 = vmatprep.subr.bf16.mxu1 %v29815_v43  ;;  %v29854_v35 = vpack.c.bf16 %v9819_v46, %v9818_v2  ;;  %v9820_v2 = vld [vmem:[%s32821_s13 + $0x6e0] sm:$0xff]  ;;  %v9821_v46 = vld [vmem:[%s32821_s13 + $0x6e8] sm:$0xff] }
 0x852   :  { %33007 = vst [vmem:[#allocation79_spill] sm:$0xff] %v29835_v56 }
 0x853   :  { %33009 = vst [vmem:[#allocation81_spill] sm:$0xff] %v29854_v35 }
 0x854   :  { %22011 = vmatpush3.bf16.msra.mxu1 %v29823_v42  ;;  %v9516_v42 = vsel %vm200_vm1, %v9483_v52, 0.0  ;;  %v9803_v52 = vld [vmem:[%s32821_s13 + $0x658] sm:$0xff] }
 0x855   :  { %22013 = vmatprep.subr.bf16.mxu1 %v29835_v56  ;;  %v29862_v56 = vpack.c.bf16 %v9803_v52, %v9802_v14  ;;  %v9517_v3 = vrot.slane %v9516_v42, 4  ;;  %v9822_v52 = vld [vmem:[%s32821_s13 + $0x6f0] sm:$0xff] }
 0x857   :  { %33010 = vst [vmem:[#allocation82_spill] sm:$0xff] %v29862_v56 }
 0x858   :  { %22015 = vmatpush3.bf16.msra.mxu1 %v29843_v11 }
 0x859   :  { %22017 = vmatprep.subr.bf16.mxu1 %v29854_v35 }
 0x85b   :  { %v20854_v43 = vpop.f32.mrb[56].mxu1 }
 0x85c   :  { %v20855_v37 = vpop.f32.mrb[57].mxu1  ;;  %22019 = vmatpush3.bf16.msra.mxu1 %v29862_v56 }
 0x85d   :  { %v20856_v16 = vadd.f32 %v20855_v37, %v20854_v43  ;;  %v20857_v11 = vpop.f32.mrb[58].mxu1  ;;  %v29873_v37 = vpack.c.bf16 %v9821_v46, %v9820_v2  ;;  %v9518_v43 = vadd.f32 %v9517_v3, %v9516_v42  ;;  %v9806_v3 = vld [vmem:[%s32821_s13 + $0x670] sm:$0xff]  ;;  %v9807_v42 = vld [vmem:[%s32821_s13 + $0x678] sm:$0xff] }
 0x85e   :  { %v20858_v34 = vpop.f32.mrb[59].mxu1  ;;  %v9804_v11 = vld [vmem:[%s32821_s13 + $0x660] sm:$0xff] }
 0x85f   :  { %v9329_v30 = vadd.f32 %v20856_v16, %v29738_v29  ;;  %33011 = vst [vmem:[#allocation83_spill] sm:$0xff] %v29873_v37  ;;  %v9805_v29 = vld [vmem:[%s32821_s13 + $0x668] sm:$0xff]  ;;  %22021 = vmatprep.subr.bf16.mxu1 %v29873_v37  ;;  %v9823_v16 = vld [vmem:[%s32821_s13 + $0x6f8] sm:$0xff] }
 0x860   :  { %v29881_v34 = vpack.c.bf16 %v9805_v29, %v9804_v11  ;;  %v29893_v11 = vpack.c.bf16 %v9823_v16, %v9822_v52 }
 0x862   :  { %33012 = vst [vmem:[#allocation84_spill] sm:$0xff] %v29881_v34  ;;  %22023 = vmatpush3.bf16.msra.mxu1 %v29881_v34  ;;  %v29901_v34 = vpack.c.bf16 %v9807_v42, %v9806_v3 }
 0x863   :  { %v9368_v14 = vpop.f32.mrb[60].mxu1  ;;  %22025 = vmatprep.subr.bf16.mxu1 %v29893_v11 }
 0x864   :  { %v29891_v2 = vadd.f32 %v9368_v14, %v9329_v30  ;;  %v21548_v46 = vpop.f32.mrb[61].mxu1  ;;  %v9519_v30 = vrot.slane %v9518_v43, 2 }
 0x865   :  { %v9371_v29 = vpop.f32.mrb[62].mxu1 }
 0x866   :  { %v9473_v37 = vsel %vm9472_vm5, %v29891_v2, 0.0  ;;  %v21549_v56 = vpop.f32.mrb[63].mxu1  ;;  %22027 = vmatpush3.bf16.msra.mxu1 %v29901_v34  ;;  %v9520_v16 = vadd.f32 %v9519_v30, %v9518_v43 }
 0x867   :  { %v9474_v14 = vrot.slane %v9473_v37, 4  ;;  %22029 = vmatprep.subr.bf16.mxu1 %v28670_v26  ;;  %v9482_v56 = vmul.f32 %v27839_v33, %v27839_v33  ;;  %v9487_v26 = vmul.f32 %v28399_v44, %v28399_v44 }
 0x868   :  { %v9521_v15 = vrot.slane %v9520_v16, 1 }
 0x869   :  { %v9475_v52 = vadd.f32 %v9474_v14, %v9473_v37 }
 0x86a   :  { %v9522_v42 = vadd.f32 %v9521_v15, %v9520_v16  ;;  %v9544_v15 = vsel %vm200_vm1, %v9487_v26, 0.0  ;;  %v33016_v26 = vld [vmem:[#allocation67_spill] sm:$0xff] }
 0x86b   :  { %v9476_v46 = vrot.slane %v9475_v52, 2 }
 0x86d   :  { %v9477_v35 = vadd.f32 %v9476_v46, %v9475_v52 }
 0x86f   :  { %v9478_v29 = vrot.slane %v9477_v35, 1 }
 0x871   :  { %v9479_v3 = vadd.f32 %v9478_v29, %v9477_v35  ;;  %v9509_v35 = vsel %vm200_vm1, %v9482_v56, 0.0  ;;  %v33015_v56 = vld [vmem:[#allocation66_spill] sm:$0xff] }
 0x873   :  { %21553 = vmatmul.mubr.msk.f32.vlgmr.msra.gmra.mrb[50].mxu0 %vm9825_vm6, %v9479_v3 }
 0x874   :  { %22063 = vmatpush3.bf16.msra.mxu0 %v28894_v8  ;;  %10526 = vmatprep.mubr.f32.mxu0 %v9522_v42  ;;  %v9510_v8 = vrot.slane %v9509_v35, 4 }
 0x875   :  { %22065 = vmatprep.subr.bf16.mxu0 %v28900_v7  ;;  %v9545_v7 = vrot.slane %v9544_v15, 4 }
 0x876   :  { %v9511_v37 = vadd.f32 %v9510_v8, %v9509_v35 }
 0x877   :  { %v9546_v43 = vadd.f32 %v9545_v7, %v9544_v15  ;;  %v33017_v7 = vld [vmem:[#allocation68_spill] sm:$0xff] }
 0x878   :  { %22067 = vmatpush3.bf16.msra.mxu0 %v28918_v1 }
 0x879   :  { %22069 = vmatprep.subr.bf16.mxu0 %v28924_v18  ;;  %v9512_v18 = vrot.slane %v9511_v37, 2  ;;  %v9547_v52 = vrot.slane %v9546_v43, 2 }
 0x87c   :  { %22071 = vmatpush3.bf16.msra.mxu0 %v28942_v10  ;;  %v9513_v10 = vadd.f32 %v9512_v18, %v9511_v37  ;;  %v33018_v37 = vld [vmem:[#allocation69_spill] sm:$0xff] }
 0x87d   :  { %22073 = vmatprep.subr.bf16.mxu0 %v28948_v20  ;;  %v9548_v20 = vadd.f32 %v9547_v52, %v9546_v43 }
 0x880   :  { %22075 = vmatpush3.bf16.msra.mxu0 %v28970_v19  ;;  %v9514_v19 = vrot.slane %v9513_v10, 1 }
 0x881   :  { %22077 = vmatprep.subr.bf16.mxu0 %v28976_v55  ;;  %v9549_v55 = vrot.slane %v9548_v20, 1 }
 0x883   :  { %v20894_v30 = vpop.f32.mrb[34].mxu1  ;;  %v9550_v16 = vadd.f32 %v9549_v55, %v9548_v20  ;;  %v33020_v55 = vld [vmem:[#allocation70_spill] sm:$0xff] }
 0x884   :  { %v20895_v1 = vpop.f32.mrb[35].mxu1  ;;  %22079 = vmatpush3.bf16.msra.mxu0 %v28996_v12  ;;  %v9515_v12 = vadd.f32 %v9514_v19, %v9513_v10 }
 0x885   :  { %v20896_v14 = vadd.f32 %v20895_v1, %v20894_v30  ;;  %22081 = vmatprep.subr.bf16.mxu0 %v29002_v47  ;;  %v9486_v47 = vmul.f32 %v28397_v50, %v28397_v50 }
 0x888   :  { %22083 = vmatpush3.bf16.msra.mxu0 %v29020_v9  ;;  %v9491_v9 = vmul.f32 %v29388_v4, %v29388_v4 }
 0x889   :  { %22085 = vmatprep.subr.bf16.mxu0 %v29026_v31  ;;  %v9537_v31 = vsel %vm200_vm1, %v9486_v47, 0.0 }
 0x88c   :  { %22087 = vmatpush3.bf16.msra.mxu0 %v29044_v49  ;;  %v9572_v49 = vsel %vm200_vm1, %v9491_v9, 0.0 }
 0x88d   :  { %22089 = vmatprep.subr.bf16.mxu0 %v29050_v28  ;;  %v9538_v28 = vrot.slane %v9537_v31, 4 }
 0x890   :  { %22091 = vmatpush3.bf16.msra.mxu0 %v29068_v36  ;;  %v9573_v36 = vrot.slane %v9572_v49, 4 }
 0x891   :  { %22125 = vmatprep.subr.bf16.mxu0 %v29365_v53  ;;  %v9539_v53 = vadd.f32 %v9538_v28, %v9537_v31 }
 0x893   :  { %10527 = vmatmul.mubr.f32.vlgmr.msra.gmra.mrb[52].mxu0 %v9515_v12 }
 0x894   :  { %22127 = vmatpush3.bf16.msra.mxu0 %v29440_v6  ;;  %10666 = vmatprep.mubr.f32.mxu0 %v9550_v16  ;;  %v9574_v6 = vadd.f32 %v9573_v36, %v9572_v49 }
 0x895   :  { %22129 = vmatprep.subr.bf16.mxu0 %v29442_v39 }
 0x896   :  { %v9575_v29 = vrot.slane %v9574_v6, 2 }
 0x898   :  { %22131 = vmatpush3.bf16.msra.mxu0 %v29471_v45 }
 0x899   :  { %22133 = vmatprep.subr.bf16.mxu0 %v29474_v32  ;;  %v9540_v32 = vrot.slane %v9539_v53, 2 }
 0x89c   :  { %22135 = vmatpush3.bf16.msra.mxu0 %v29493_v38 }
 0x89d   :  { %22137 = vmatprep.subr.bf16.mxu0 %v29496_v24  ;;  %v9541_v24 = vadd.f32 %v9540_v32, %v9539_v53 }
 0x8a0   :  { %22139 = vmatpush3.bf16.msra.mxu0 %v29524_v0  ;;  %v9576_v0 = vadd.f32 %v9575_v29, %v9574_v6 }
 0x8a1   :  { %22141 = vmatprep.subr.bf16.mxu0 %v29527_v23  ;;  %v9542_v23 = vrot.slane %v9541_v24, 1 }
 0x8a2   :  { %v9577_v3 = vrot.slane %v9576_v0, 1 }
 0x8a3   :  { %v20929_v39 = vpop.f32.mrb[64].mxu1 }
 0x8a4   :  { %v20930_v45 = vpop.f32.mrb[65].mxu1  ;;  %22143 = vmatpush3.bf16.msra.mxu0 %v29542_v22  ;;  %v9543_v22 = vadd.f32 %v9542_v23, %v9541_v24 }
 0x8a5   :  { %v20931_v46 = vadd.f32 %v20930_v45, %v20929_v39  ;;  %22145 = vmatprep.subr.bf16.mxu0 %v29545_v25  ;;  %v9578_v25 = vadd.f32 %v9577_v3, %v9576_v0 }
 0x8a7   :  { %v9966_v38 = vadd.f32 %v20931_v46, %v20896_v14  ;;  %v33019_v14 = vld [vmem:[#allocation11_spill] sm:$0xff] }
 0x8a8   :  { %22147 = vmatpush3.bf16.msra.mxu0 %v29560_v59  ;;  %v9494_v59 = vmul.f32 %v29891_v2, %v29891_v2  ;;  %v9481_v52 = vmul.f32 %v33019_v14, %v33019_v14 }
 0x8a9   :  { %22149 = vmatprep.subr.bf16.mxu0 %v29563_v58  ;;  %v9490_v58 = vmul.f32 %v29380_v54, %v29380_v54 }
 0x8aa   :  { %v9502_v19 = vsel %vm200_vm1, %v9481_v52, 0.0  ;;  %v33031_v52 = vld [vmem:[#allocation23_spill] sm:$0xff] }
 0x8ac   :  { %22151 = vmatpush3.bf16.msra.mxu0 %v29578_v41 }
 0x8ad   :  { %22153 = vmatprep.subr.bf16.mxu0 %v29583_v57  ;;  %v9565_v57 = vsel %vm200_vm1, %v9490_v58, 0.0  ;;  %v33022_v58 = vld [vmem:[#allocation16_spill] sm:$0xff] }
 0x8ae   :  { %v9566_v41 = vrot.slane %v9565_v57, 4 }
 0x8b0   :  { %22155 = vmatpush3.bf16.msra.mxu0 %v29598_v40  ;;  %v33013_v40 = vld [vmem:[#allocation64_spill] sm:$0xff] }
 0x8b1   :  { %22189 = vmatprep.subr.bf16.mxu0 %v29601_v63  ;;  %v9593_v63 = vsel %vm9472_vm5, %v9494_v59, 0.0 }
 0x8b2   :  { %v9594_v42 = vrot.slane %v9593_v63, 4 }
 0x8b3   :  { %10667 = vmatmul.mubr.f32.vlgmr.msra.gmra.mrb[54].mxu0 %v9543_v22 }
 0x8b4   :  { %22191 = vmatpush3.bf16.msra.mxu0 %v29616_v13  ;;  %10806 = vmatprep.mubr.f32.mxu0 %v9578_v25  ;;  %v33014_v13 = vld [vmem:[#allocation65_spill] sm:$0xff]  ;;  %v9595_v15 = vadd.f32 %v9594_v42, %v9593_v63  ;;  %v33021_v25 = vld [vmem:[#allocation15_spill] sm:$0xff] }
 0x8b5   :  { %22193 = vmatprep.subr.bf16.mxu0 %v29619_v60  ;;  %v9567_v60 = vadd.f32 %v9566_v41, %v9565_v57  ;;  %v33023_v57 = vld [vmem:[#allocation10_spill] sm:$0xff]  ;;  %v33025_v63 = vld [vmem:[#allocation17_spill] sm:$0xff] }
 0x8b6   :  { %v9596_v30 = vrot.slane %v9595_v15, 2  ;;  %v9480_v59 = vmul.f32 %v33023_v57, %v33023_v57  ;;  %v33024_v41 = vld [vmem:[#allocation14_spill] sm:$0xff] }
 0x8b7   :  { %v9568_v35 = vrot.slane %v9567_v60, 2 }
 0x8b8   :  { %22195 = vmatpush3.bf16.msra.mxu0 %v29634_v5  ;;  %v9597_v1 = vadd.f32 %v9596_v30, %v9595_v15  ;;  %v33028_v15 = vld [vmem:[#allocation20_spill] sm:$0xff] }
 0x8b9   :  { %22197 = vmatprep.subr.bf16.mxu0 %v29637_v21  ;;  %v9569_v43 = vadd.f32 %v9568_v35, %v9567_v60  ;;  %v9495_v60 = vsel %vm200_vm1, %v9480_v59, 0.0  ;;  %v33046_v59 = vld [vmem:[#allocation36_spill] sm:$0xff] }
 0x8ba   :  { %v9598_v10 = vrot.slane %v9597_v1, 1  ;;  %v9496_v35 = vrot.slane %v9495_v60, 4 }
 0x8bb   :  { %v9570_v18 = vrot.slane %v9569_v43, 1 }
 0x8bc   :  { %22199 = vmatpush3.bf16.msra.mxu0 %v29652_v27 }
 0x8bd   :  { %22201 = vmatprep.subr.bf16.mxu0 %v33013_v40  ;;  %v9571_v20 = vadd.f32 %v9570_v18, %v9569_v43  ;;  %v9485_v40 = vmul.f32 %v33024_v41, %v33024_v41  ;;  %v33030_v43 = vld [vmem:[#allocation22_spill] sm:$0xff] }
 0x8c0   :  { %22203 = vmatpush3.bf16.msra.mxu0 %v33014_v13  ;;  %v33026_v13 = vld [vmem:[#allocation18_spill] sm:$0xff] }
 0x8c1   :  { %22205 = vmatprep.subr.bf16.mxu0 %v33015_v56  ;;  %v9530_v56 = vsel %vm200_vm1, %v9485_v40, 0.0 }
 0x8c3   :  { %v20964_v5 = vpop.f32.mrb[66].mxu1 }
 0x8c4   :  { %v20965_v21 = vpop.f32.mrb[67].mxu1  ;;  %22207 = vmatpush3.bf16.msra.mxu0 %v33016_v26 }
 0x8c5   :  { %v20966_v8 = vadd.f32 %v20965_v21, %v20964_v5  ;;  %22209 = vmatprep.subr.bf16.mxu0 %v33017_v7  ;;  %v33027_v21 = vld [vmem:[#allocation19_spill] sm:$0xff]  ;;  %v33029_v7 = vld [vmem:[#allocation21_spill] sm:$0xff] }
 0x8c7   :  { %v29969_v27 = vadd.f32 %v20966_v8, %v9966_v38  ;;  %v9531_v8 = vrot.slane %v9530_v56, 4 }
 0x8c8   :  { %22211 = vmatpush3.bf16.msra.mxu0 %v33018_v37  ;;  %v9497_v37 = vadd.f32 %v9496_v35, %v9495_v60  ;;  %v33048_v60 = vld [vmem:[#allocation38_spill] sm:$0xff] }
 0x8c9   :  { %22213 = vmatprep.subr.bf16.mxu0 %v29711_v61  ;;  %v9503_v61 = vrot.slane %v9502_v19, 4  ;;  %v9532_v30 = vadd.f32 %v9531_v8, %v9530_v56 }
 0x8cc   :  { %22215 = vmatpush3.bf16.msra.mxu0 %v29726_v17  ;;  %v9504_v17 = vadd.f32 %v9503_v61, %v9502_v19  ;;  %v33032_v19 = vld [vmem:[#allocation24_spill] sm:$0xff] }
 0x8cd   :  { %22217 = vmatprep.subr.bf16.mxu0 %v29729_v48  ;;  %v9599_v48 = vadd.f32 %v9598_v10, %v9597_v1  ;;  %v9498_v10 = vrot.slane %v9497_v37, 2 }
 0x8ce   :  { %v9505_v36 = vrot.slane %v9504_v17, 2 }
 0x8d0   :  { %22219 = vmatpush3.bf16.msra.mxu0 %v29741_v62  ;;  %v9506_v32 = vadd.f32 %v9505_v36, %v9504_v17  ;;  %v9499_v17 = vadd.f32 %v9498_v10, %v9497_v37  ;;  %v33051_v37 = vld [vmem:[#allocation41_spill] sm:$0xff] }
 0x8d1   :  { %21555 = vmatprep.subr.mxu0 %v32997_v51 }
 0x8d2   :  { %v9507_v0 = vrot.slane %v9506_v32, 1 }
 0x8d3   :  { %10807 = vmatmul.mubr.f32.vlgmr.msra.gmra.mrb[56].mxu0 %v9571_v20 }
 0x8d4   :  { %21556 = vmatpush3.msra.mxu0 %v33020_v55  ;;  %21557 = vmatprep.mubr.msk.f32.mxu0 %vm25045_vm2, %v32997_v51  ;;  %v9508_v22 = vadd.f32 %v9507_v0, %v9506_v32  ;;  %v9533_v55 = vrot.slane %v9532_v30, 2  ;;  %v33040_v32 = vld [vmem:[#allocation32_spill] sm:$0xff]  ;;  %v33043_v0 = vld [vmem:[#allocation33_spill] sm:$0xff] }
 0x8d7   :  { %21558 = vmatmul.mubr.msk.f32.vlgmr.msra.gmra.mrb[58].mxu0 %vm9825_vm6, %v9599_v48  ;;  %v33033_v48 = vld [vmem:[#allocation25_spill] sm:$0xff] }
 0x8d8   :  { %11045 = vmatprep.mubr.f32.mxu0 %v32997_v51 }
 0x8da   :  { %v29985_v62 = vpop.f32.mrb[44].mxu0 }
 0x8db   :  { %v9458_v12 = vsel %vm200_vm1, %v29985_v62, 0.0  ;;  %v29989_v16 = vpop.f32.mrb[45].mxu0 }
 0x8dc   :  { %v9459_v47 = vrot.slane %v9458_v12, 4  ;;  %v9465_v9 = vsel %vm200_vm1, %v29989_v16, 0.0  ;;  %v9211_v31 = vpop.f32.mrb[46].mxu0 }
 0x8dd   :  { %v9466_v49 = vrot.slane %v9465_v9, 4  ;;  %v9212_v28 = vpop.f32.mrb[47].mxu0  ;;  %v33035_v31 = vld [vmem:[#allocation27_spill] sm:$0xff] }
 0x8de   :  { %v9460_v53 = vadd.f32 %v9459_v47, %v9458_v12  ;;  %v33034_v12 = vld [vmem:[#allocation26_spill] sm:$0xff]  ;;  %v9500_v28 = vrot.slane %v9499_v17, 1 }
 0x8df   :  { %v9467_v6 = vadd.f32 %v9466_v49, %v9465_v9  ;;  %v9534_v9 = vadd.f32 %v9533_v55, %v9532_v30  ;;  %v33036_v49 = vld [vmem:[#allocation28_spill] sm:$0xff]  ;;  %v33052_v30 = vld [vmem:[#allocation42_spill] sm:$0xff] }
 0x8e0   :  { %v9461_v39 = vrot.slane %v9460_v53, 2 }
 0x8e1   :  { %v9468_v45 = vrot.slane %v9467_v6, 2  ;;  %v9535_v36 = vrot.slane %v9534_v9, 1 }
 0x8e2   :  { %v9462_v46 = vadd.f32 %v9461_v39, %v9460_v53  ;;  %v33037_v53 = vld [vmem:[#allocation29_spill] sm:$0xff]  ;;  %v33038_v39 = vld [vmem:[#allocation30_spill] sm:$0xff] }
 0x8e3   :  { %v9469_v29 = vadd.f32 %v9468_v45, %v9467_v6  ;;  %v9501_v6 = vadd.f32 %v9500_v28, %v9499_v17  ;;  %v9536_v45 = vadd.f32 %v9535_v36, %v9534_v9  ;;  %v33057_v17 = vld [vmem:[#allocation47_spill] sm:$0xff]  ;;  %v33061_v28 = vld [vmem:[#allocation50_spill] sm:$0xff] }
 0x8e4   :  { %v9463_v38 = vrot.slane %v9462_v46, 1 }
 0x8e5   :  { %v9470_v24 = vrot.slane %v9469_v29, 1 }
 0x8e6   :  { %v9464_v3 = vadd.f32 %v9463_v38, %v9462_v46  ;;  %v33041_v46 = vld [vmem:[#allocation13_spill] sm:$0xff]  ;;  %v33042_v38 = vld [vmem:[#allocation63_spill] sm:$0xff] }
 0x8e7   :  { %v9471_v23 = vadd.f32 %v9470_v24, %v9469_v29  ;;  %v9484_v29 = vmul.f32 %v33041_v46, %v33041_v46  ;;  %v9489_v24 = vmul.f32 %v33042_v38, %v33042_v38 }
 0x8e9   :  { %10313 = vmatprep.mubr.f32.mxu1 %v9471_v23  ;;  %v33044_v23 = vld [vmem:[#allocation34_spill] sm:$0xff] }
 0x8ea   :  { %10314 = vmatmul.mubr.f32.vlgmr.msra.gmra.mrb[70].mxu1 %v9464_v3  ;;  %v9523_v3 = vsel %vm200_vm1, %v9484_v29, 0.0 }
 0x8eb   :  { %22031 = vmatpush3.bf16.msra.mxu1 %v33021_v25  ;;  %10456 = vmatprep.mubr.f32.mxu1 %v9508_v22  ;;  %v9558_v22 = vsel %vm200_vm1, %v9489_v24, 0.0  ;;  %v33045_v25 = vld [vmem:[#allocation35_spill] sm:$0xff]  ;;  %v33065_v24 = vld [vmem:[#allocation54_spill] sm:$0xff] }
 0x8ec   :  { %22033 = vmatprep.subr.bf16.mxu1 %v33022_v58  ;;  %v9524_v58 = vrot.slane %v9523_v3, 4  ;;  %v9559_v40 = vrot.slane %v9558_v22, 4 }
 0x8ef   :  { %22035 = vmatpush3.bf16.msra.mxu1 %v33025_v63  ;;  %v33047_v63 = vld [vmem:[#allocation37_spill] sm:$0xff] }
 0x8f0   :  { %22037 = vmatprep.subr.bf16.mxu1 %v33026_v13  ;;  %v9525_v13 = vadd.f32 %v9524_v58, %v9523_v3  ;;  %v33068_v58 = vld [vmem:[#allocation57_spill] sm:$0xff] }
 0x8f1   :  { %v21034_v42 = vpop.f32.mrb[68].mxu1 }
 0x8f2   :  { %v21035_v5 = vpop.f32.mrb[69].mxu1 }
 0x8f3   :  { %22039 = vmatpush3.bf16.msra.mxu1 %v33027_v21  ;;  %v21036_v26 = vadd.f32 %v21035_v5, %v21034_v42  ;;  %v9560_v42 = vadd.f32 %v9559_v40, %v9558_v22  ;;  %v33049_v21 = vld [vmem:[#allocation39_spill] sm:$0xff]  ;;  %v33067_v22 = vld [vmem:[#allocation56_spill] sm:$0xff]  ;;  %v33069_v40 = vld [vmem:[#allocation58_spill] sm:$0xff] }
 0x8f4   :  { %22041 = vmatprep.subr.bf16.mxu1 %v33028_v15  ;;  %v33050_v15 = vld [vmem:[#allocation40_spill] sm:$0xff] }
 0x8f5   :  { %v9561_v8 = vrot.slane %v9560_v42, 2 }
 0x8f7   :  { %22043 = vmatpush3.bf16.msra.mxu1 %v33029_v7 }
 0x8f8   :  { %22045 = vmatprep.subr.bf16.mxu1 %v33030_v43 }
 0x8fa   :  { %v20999_v1 = vpop.f32.mrb[26].mxu0 }
 0x8fb   :  { %v21000_v18 = vpop.f32.mrb[27].mxu0  ;;  %22047 = vmatpush3.bf16.msra.mxu1 %v33031_v52  ;;  %v33054_v52 = vld [vmem:[#allocation44_spill] sm:$0xff] }
 0x8fc   :  { %v21001_v20 = vadd.f32 %v21000_v18, %v20999_v1  ;;  %22049 = vmatprep.subr.bf16.mxu1 %v33032_v19  ;;  %v9562_v1 = vadd.f32 %v9561_v8, %v9560_v42  ;;  %v33053_v18 = vld [vmem:[#allocation43_spill] sm:$0xff]  ;;  %v33055_v19 = vld [vmem:[#allocation45_spill] sm:$0xff] }
 0x8fe   :  { %v10106_v61 = vadd.f32 %v21001_v20, %v29969_v27  ;;  %v33039_v27 = vld [vmem:[#allocation31_spill] sm:$0xff]  ;;  %v9563_v20 = vrot.slane %v9562_v1, 1 }
 0x8ff   :  { %22051 = vmatpush3.bf16.msra.mxu1 %v33033_v48 }
 0x900   :  { %22053 = vmatprep.subr.bf16.mxu1 %v33034_v12  ;;  %v10176_v47 = vadd.f32 %v21036_v26, %v10106_v61  ;;  %v9526_v26 = vrot.slane %v9525_v13, 2  ;;  %v33056_v61 = vld [vmem:[#allocation46_spill] sm:$0xff]  ;;  %v9564_v48 = vadd.f32 %v9563_v20, %v9562_v1  ;;  %v33058_v12 = vld [vmem:[#allocation48_spill] sm:$0xff] }
 0x901   :  { %v33076_v1 = vld [vmem:[#allocation74_spill] sm:$0xff] }
 0x902   :  { %v9527_v43 = vadd.f32 %v9526_v26, %v9525_v13  ;;  %v33070_v13 = vld [vmem:[#allocation59_spill] sm:$0xff] }
 0x903   :  { %22055 = vmatpush3.bf16.msra.mxu1 %v33035_v31  ;;  %v9493_v31 = vmul.f32 %v29989_v16, %v29989_v16 }
 0x904   :  { %22057 = vmatprep.subr.bf16.mxu1 %v33036_v49  ;;  %v9528_v10 = vrot.slane %v9527_v43, 1  ;;  %v33060_v49 = vld [vmem:[#allocation49_spill] sm:$0xff] }
 0x906   :  { %v9529_v55 = vadd.f32 %v9528_v10, %v9527_v43  ;;  %v33075_v43 = vld [vmem:[#allocation73_spill] sm:$0xff]  ;;  %v33078_v10 = vld [vmem:[#allocation76_spill] sm:$0xff] }
 0x907   :  { %22059 = vmatpush3.bf16.msra.mxu1 %v33037_v53  ;;  %v9586_v53 = vsel %vm200_vm1, %v9493_v31, 0.0  ;;  %v33084_v31 = vld [vmem:[#allocation82_spill] sm:$0xff] }
 0x908   :  { %22093 = vmatprep.subr.bf16.mxu1 %v33038_v39 }
 0x90a   :  { %10457 = vmatmul.mubr.f32.vlgmr.msra.gmra.mrb[72].mxu1 %v9501_v6  ;;  %v33062_v6 = vld [vmem:[#allocation51_spill] sm:$0xff] }
 0x90b   :  { %22095 = vmatpush3.bf16.msra.mxu1 %v33039_v27  ;;  %10596 = vmatprep.mubr.f32.mxu1 %v9536_v45  ;;  %v33063_v45 = vld [vmem:[#allocation52_spill] sm:$0xff]  ;;  %v9587_v27 = vrot.slane %v9586_v53, 4 }
 0x90c   :  { %22097 = vmatprep.subr.bf16.mxu1 %v33040_v32  ;;  %v33064_v32 = vld [vmem:[#allocation53_spill] sm:$0xff] }
 0x90f   :  { %22099 = vmatpush3.bf16.msra.mxu1 %v33043_v0  ;;  %v9588_v0 = vadd.f32 %v9587_v27, %v9586_v53 }
 0x910   :  { %22101 = vmatprep.subr.bf16.mxu1 %v33044_v23  ;;  %v33066_v23 = vld [vmem:[#allocation55_spill] sm:$0xff] }
 0x913   :  { %22103 = vmatpush3.bf16.msra.mxu1 %v33045_v25  ;;  %v9589_v25 = vrot.slane %v9588_v0, 2 }
 0x914   :  { %22105 = vmatprep.subr.bf16.mxu1 %v33046_v59 }
 0x917   :  { %22107 = vmatpush3.bf16.msra.mxu1 %v33047_v63  ;;  %v9590_v63 = vadd.f32 %v9589_v25, %v9588_v0 }
 0x918   :  { %22109 = vmatprep.subr.bf16.mxu1 %v33048_v60  ;;  %v33071_v60 = vld [vmem:[#allocation60_spill] sm:$0xff] }
 0x91a   :  { %v21069_v56 = vpop.f32.mrb[48].mxu0 }
 0x91b   :  { %v21070_v5 = vpop.f32.mrb[49].mxu0  ;;  %22111 = vmatpush3.bf16.msra.mxu1 %v33049_v21  ;;  %v33072_v21 = vld [vmem:[#allocation61_spill] sm:$0xff] }
 0x91c   :  { %v21071_v35 = vadd.f32 %v21070_v5, %v21069_v56  ;;  %22113 = vmatprep.subr.bf16.mxu1 %v33050_v15  ;;  %v9591_v56 = vrot.slane %v9590_v63, 1  ;;  %v33073_v15 = vld [vmem:[#allocation71_spill] sm:$0xff] }
 0x91e   :  { %v30032_v7 = vadd.f32 %v21071_v35, %v10176_v47  ;;  %v33059_v47 = vld [vmem:[#allocation62_spill] sm:$0xff]  ;;  %v9592_v8 = vadd.f32 %v9591_v56, %v9590_v63  ;;  %v30087_v63 = vld [vmem:[%s32822_s14 + $0x8] sm:$0xff] }
 0x91f   :  { %22115 = vmatpush3.bf16.msra.mxu1 %v33051_v37  ;;  %v9488_v9 = vmul.f32 %v33059_v47, %v33059_v47  ;;  %v33074_v37 = vld [vmem:[#allocation72_spill] sm:$0xff]  ;;  %10981 = vmatprep.subr.mxu0 %v30087_v63 }
 0x920   :  { %22117 = vmatprep.subr.bf16.mxu1 %v33052_v30  ;;  %v9492_v30 = vmul.f32 %v29985_v62, %v29985_v62 }
 0x921   :  { %v9551_v36 = vsel %vm200_vm1, %v9488_v9, 0.0  ;;  %v33083_v9 = vld [vmem:[#allocation81_spill] sm:$0xff] }
 0x922   :  { %v9552_v39 = vrot.slane %v9551_v36, 4 }
 0x923   :  { %22119 = vmatpush3.bf16.msra.mxu1 %v33053_v18  ;;  %v33077_v18 = vld [vmem:[#allocation75_spill] sm:$0xff] }
 0x924   :  { %22121 = vmatprep.subr.bf16.mxu1 %v33054_v52  ;;  %v9553_v29 = vadd.f32 %v9552_v39, %v9551_v36  ;;  %v9579_v52 = vsel %vm200_vm1, %v9492_v30, 0.0  ;;  %v33086_v36 = vld [vmem:[#allocation84_spill] sm:$0xff] }
 0x925   :  { %v9580_v20 = vrot.slane %v9579_v52, 4 }
 0x926   :  { %v9554_v3 = vrot.slane %v9553_v29, 2 }
 0x927   :  { %22123 = vmatpush3.bf16.msra.mxu1 %v33055_v19  ;;  %v33079_v19 = vld [vmem:[#allocation77_spill] sm:$0xff] }
 0x928   :  { %22157 = vmatprep.subr.bf16.mxu1 %v33056_v61  ;;  %v9555_v59 = vadd.f32 %v9554_v3, %v9553_v29  ;;  %v9581_v61 = vadd.f32 %v9580_v20, %v9579_v52 }
 0x92a   :  { %10597 = vmatmul.mubr.f32.vlgmr.msra.gmra.mrb[74].mxu1 %v9529_v55  ;;  %v9556_v42 = vrot.slane %v9555_v59, 1  ;;  %v33080_v55 = vld [vmem:[#allocation78_spill] sm:$0xff] }
 0x92b   :  { %22159 = vmatpush3.bf16.msra.mxu1 %v33057_v17  ;;  %10736 = vmatprep.mubr.f32.mxu1 %v9564_v48  ;;  %v33081_v48 = vld [vmem:[#allocation79_spill] sm:$0xff]  ;;  %v33082_v17 = vld [vmem:[#allocation80_spill] sm:$0xff] }
 0x92c   :  { %22161 = vmatprep.subr.bf16.mxu1 %v33058_v12  ;;  %v9557_v35 = vadd.f32 %v9556_v42, %v9555_v59  ;;  %v9582_v12 = vrot.slane %v9581_v61, 2 }
 0x92f   :  { %22163 = vmatpush3.bf16.msra.mxu1 %v33060_v49  ;;  %v9583_v49 = vadd.f32 %v9582_v12, %v9581_v61 }
 0x930   :  { %22165 = vmatprep.subr.bf16.mxu1 %v33061_v28  ;;  %v33085_v28 = vld [vmem:[#allocation83_spill] sm:$0xff] }
 0x931   :  { %v9584_v53 = vrot.slane %v9583_v49, 1 }
 0x933   :  { %22167 = vmatpush3.bf16.msra.mxu1 %v33062_v6  ;;  %v9585_v27 = vadd.f32 %v9584_v53, %v9583_v49  ;;  %v10956_v49 = vld [vmem:[%s32823_s15] sm:$0x1]  ;;  %v10965_v53 = vld [vmem:[%s32822_s14 + $0x10] sm:$0xff] }
 0x934   :  { %22169 = vmatprep.subr.bf16.mxu1 %v33063_v45 }
 0x937   :  { %22171 = vmatpush3.bf16.msra.mxu1 %v33064_v32 }
 0x938   :  { %22173 = vmatprep.subr.bf16.mxu1 %v33065_v24 }
 0x93b   :  { %22175 = vmatpush3.bf16.msra.mxu1 %v33066_v23 }
 0x93c   :  { %22177 = vmatprep.subr.bf16.mxu1 %v33067_v22 }
 0x93f   :  { %22179 = vmatpush3.bf16.msra.mxu1 %v33068_v58 }
 0x940   :  { %22181 = vmatprep.subr.bf16.mxu1 %v33069_v40 }
 0x943   :  { %22183 = vmatpush3.bf16.msra.mxu1 %v33070_v13  ;;  %v30093_v13 = vld [vmem:[%s32822_s14] sm:$0xff] }
 0x944   :  { %22185 = vmatprep.subr.bf16.mxu1 %v33071_v60  ;;  %v30098_v60 = vld [vmem:[%s32822_s14 + $0x70] sm:$0xff]  ;;  %10982 = vmatpush1.msra.mxu0 %v30093_v13 }
 0x946   :  { %v10385_v5 = vpop.f32.mrb[50].mxu0 }
 0x947   :  { %22187 = vmatpush3.bf16.msra.mxu1 %v33072_v21  ;;  %v21554_v26 = vpop.f32.mrb[51].mxu0 }
 0x948   :  { %22221 = vmatprep.subr.bf16.mxu1 %v33073_v15 }
 0x94a   :  { %10737 = vmatmul.mubr.f32.vlgmr.msra.gmra.mrb[76].mxu1 %v9557_v35 }
 0x94b   :  { %22223 = vmatpush3.bf16.msra.mxu1 %v33074_v37  ;;  %10876 = vmatprep.mubr.f32.mxu1 %v9592_v8 }
 0x94c   :  { %22225 = vmatprep.subr.bf16.mxu1 %v33075_v43 }
 0x94f   :  { %22227 = vmatpush3.bf16.msra.mxu1 %v33076_v1 }
 0x950   :  { %22229 = vmatprep.subr.bf16.mxu1 %v33077_v18 }
 0x953   :  { %22231 = vmatpush3.bf16.msra.mxu1 %v33078_v10 }
 0x954   :  { %22233 = vmatprep.subr.bf16.mxu1 %v33079_v19 }
 0x957   :  { %22235 = vmatpush3.bf16.msra.mxu1 %v33080_v55 }
 0x958   :  { %22237 = vmatprep.subr.bf16.mxu1 %v33081_v48 }
 0x95b   :  { %22239 = vmatpush3.bf16.msra.mxu1 %v33082_v17 }
 0x95c   :  { %22241 = vmatprep.subr.bf16.mxu1 %v33083_v9 }
 0x95f   :  { %22243 = vmatpush3.bf16.msra.mxu1 %v33084_v31 }
 0x960   :  { %22245 = vmatprep.subr.bf16.mxu1 %v33085_v28 }
 0x963   :  { %22247 = vmatpush3.bf16.msra.mxu1 %v33086_v36 }
 0x964   :  { %22249 = vmatprep.subr.bf16.mxu1 %v29893_v11 }
 0x966   :  { %v21176_v6 = vpop.f32.mrb[52].mxu0 }
 0x967   :  { %v21177_v39 = vpop.f32.mrb[53].mxu0  ;;  %22251 = vmatpush3.bf16.msra.mxu1 %v29901_v34 }
 0x968   :  { %v21178_v45 = vadd.f32 %v21177_v39, %v21176_v6  ;;  %21560 = vmatprep.subr.mxu1 %v32997_v51  ;;  %v10960_v6 = vld [vmem:[%s32824_s16] sm:$0x1]  ;;  %v30123_v39 = vld [vmem:[%s32822_s14 + $0x28] sm:$0xff] }
 0x96a   :  { %10877 = vmatmul.mubr.f32.vlgmr.msra.gmra.mrb[78].mxu1 %v9585_v27  ;;  %v10970_v27 = vld [vmem:[%s32822_s14 + $0x38] sm:$0xff] }
 0x96b   :  { %21562 = vmatprep.mubr.msk.f32.mxu1 %vm25045_vm2, %v32997_v51  ;;  %21561 = vmatpush3.msra.mxu1 %v30098_v60 }
 0x986   :  { %v21246_v32 = vpop.f32.mrb[54].mxu0 }
 0x987   :  { %v21247_v29 = vpop.f32.mrb[55].mxu0 }
 0x988   :  { %v21248_v24 = vadd.f32 %v21247_v29, %v21246_v32  ;;  %v30136_v29 = vld [vmem:[%s32822_s14 + $0x20] sm:$0xff] }
 0x9a6   :  { %v21316_v0 = vpop.f32.mrb[56].mxu0 }
 0x9a7   :  { %v21317_v23 = vpop.f32.mrb[57].mxu0 }
 0x9a8   :  { %v21318_v3 = vadd.f32 %v21317_v23, %v21316_v0  ;;  %v10974_v0 = vld [vmem:[%s32822_s14 + $0x58] sm:$0xff]  ;;  %v10973_v23 = vld [vmem:[%s32822_s14 + $0x50] sm:$0xff] }
 0x9aa   :  { %v10948_v11 = vpop.f32.mrb[58].mxu0 }
 0x9ab   :  { %v21559_v22 = vpop.f32.mrb[59].mxu0 }
 0x9ac   :  { %v23857_v22 = vld [vmem:[%s32825_s17 + $0xc] ss:$28 sps:$4 sm:$0xff]  }
 0x9bd   :  { %v21104_v25 = vpop.f32.mrb[70].mxu1 }
 0x9be   :  { %v21105_v58 = vpop.f32.mrb[71].mxu1 }
 0x9bf   :  { %v21106_v59 = vadd.f32 %v21105_v58, %v21104_v25  ;;  %v23855_v25 = vld [vmem:[%s32825_s17 + $0x8] ss:$28 sps:$4 sm:$0xff]  }
 0x9c0   :  { %v10976_v58 = vld [vmem:[%s32822_s14 + $0x68] sm:$0xff] }
 0x9c1   :  { %v10316_v34 = vadd.f32 %v21106_v59, %v30032_v7  ;;  %v10966_v7 = vld [vmem:[%s32822_s14 + $0x18] sm:$0xff]  ;;  %v23863_v59 = vld [vmem:[%s32825_s17 + $0x44] ss:$28 sps:$4 sm:$0xff]  }
 0x9c2   :  { %11052 = vmatprep.subr.mxu0 %v10966_v7  ;;  %11622 = vmatprep.subr.mxu1 %v10966_v7  ;;  %v23867_v7 = vld [vmem:[%s32825_s17 + $0x78] ss:$28 sps:$4 sm:$0xff]  }
 0x9c3   :  { %v10386_v40 = vadd.f32 %v10385_v5, %v10316_v34  ;;  %v10975_v34 = vld [vmem:[%s32822_s14 + $0x60] sm:$0xff] }
 0x9c5   :  { %v10952_v55 = vmul.f32 0.0022222223, %v10386_v40  ;;  %v23861_v40 = vld [vmem:[%s32825_s17 + $0x40] ss:$28 sps:$4 sm:$0xff]  }
 0x9c7   :  { %v10954_v17 = vmul.f32 %v10952_v55, %v10952_v55 }
 0x9dd   :  { %v21141_v42 = vpop.f32.mrb[72].mxu1 }
 0x9de   :  { %v21142_v56 = vpop.f32.mrb[73].mxu1 }
 0x9df   :  { %v21143_v5 = vadd.f32 %v21142_v56, %v21141_v42  ;;  %v23875_v42 = vld [vmem:[%s32825_s17 + $0xb4] ss:$28 sps:$4 sm:$0xff]   ;;  %v23881_v56 = vld [vmem:[%s32825_s17 + $0xec] ss:$28 sps:$4 sm:$0xff]  }
 0x9e1   :  { %v10529_v21 = vadd.f32 %v21178_v45, %v21143_v5  ;;  %v23887_v5 = vld [vmem:[%s32825_s17 + $0x124] ss:$28 sps:$4 sm:$0xff]  }
 0x9fd   :  { %v21211_v26 = vpop.f32.mrb[74].mxu1 }
 0x9fe   :  { %v21212_v35 = vpop.f32.mrb[75].mxu1 }
 0x9ff   :  { %v21213_v15 = vadd.f32 %v21212_v35, %v21211_v26  ;;  %v23885_v26 = vld [vmem:[%s32825_s17 + $0x120] ss:$28 sps:$4 sm:$0xff]  }
 0xa00   :  { %v23893_v35 = vld [vmem:[%s32825_s17 + $0x15c] ss:$28 sps:$4 sm:$0xff]  }
 0xa01   :  { %v10599_v8 = vadd.f32 %v21213_v15, %v10529_v21  ;;  %v23854_v21 = vld [vmem:[%s32825_s17 + $0x4] ss:$28 sps:$4 sm:$0xff]  }
 0xa02   :  { %v23852_v15 = vld [vmem:[%s32825_s17] ss:$28 sps:$4 sm:$0xff]  }
 0xa03   :  { %v10669_v37 = vadd.f32 %v21248_v24, %v10599_v8  ;;  %v10969_v24 = vld [vmem:[%s32822_s14 + $0x30] sm:$0xff]  ;;  %v23860_v8 = vld [vmem:[%s32825_s17 + $0x3c] ss:$28 sps:$4 sm:$0xff]  }
 0xa1d   :  { %v21281_v43 = vpop.f32.mrb[76].mxu1 }
 0xa1e   :  { %v21282_v30 = vpop.f32.mrb[77].mxu1 }
 0xa1f   :  { %v21283_v1 = vadd.f32 %v21282_v30, %v21281_v43  ;;  %v23858_v43 = vld [vmem:[%s32825_s17 + $0x38] ss:$28 sps:$4 sm:$0xff]  }
 0xa20   :  { %v23866_v30 = vld [vmem:[%s32825_s17 + $0x74] ss:$28 sps:$4 sm:$0xff]  }
 0xa21   :  { %v10739_v18 = vadd.f32 %v21283_v1, %v10669_v37  ;;  %v23891_v37 = vld [vmem:[%s32825_s17 + $0x158] ss:$28 sps:$4 sm:$0xff]   ;;  %v23864_v1 = vld [vmem:[%s32825_s17 + $0x70] ss:$28 sps:$4 sm:$0xff]  }
 0xa23   :  { %v10809_v52 = vadd.f32 %v21318_v3, %v10739_v18  ;;  %v10972_v3 = vld [vmem:[%s32822_s14 + $0x48] sm:$0xff] }
 0xa24   :  { %v23872_v18 = vld [vmem:[%s32825_s17 + $0xac] ss:$28 sps:$4 sm:$0xff]  }
 0xa3d   :  { %v21351_v10 = vpop.f32.mrb[78].mxu1 }
 0xa3e   :  { %v21352_v20 = vpop.f32.mrb[79].mxu1 }
 0xa3f   :  { %v21353_v19 = vadd.f32 %v21352_v20, %v21351_v10  ;;  %v23878_v10 = vld [vmem:[%s32825_s17 + $0xe4] ss:$28 sps:$4 sm:$0xff]  }
 0xa40   :  { %v23876_v20 = vld [vmem:[%s32825_s17 + $0xe0] ss:$28 sps:$4 sm:$0xff]  }
 0xa41   :  { %v10879_v61 = vadd.f32 %v21353_v19, %v10809_v52  ;;  %v23870_v52 = vld [vmem:[%s32825_s17 + $0xa8] ss:$28 sps:$4 sm:$0xff]   ;;  %v23884_v19 = vld [vmem:[%s32825_s17 + $0x11c] ss:$28 sps:$4 sm:$0xff]  }
 0xa43   :  { %v10949_v48 = vadd.f32 %v10948_v11, %v10879_v61  ;;  %v10971_v11 = vld [vmem:[%s32822_s14 + $0x40] sm:$0xff]  ;;  %v23890_v61 = vld [vmem:[%s32825_s17 + $0x154] ss:$28 sps:$4 sm:$0xff]  }
 0xa45   :  { %v10953_v12 = vmul.f32 0.0022222223, %v10949_v48  ;;  %v23888_v48 = vld [vmem:[%s32825_s17 + $0x150] ss:$28 sps:$4 sm:$0xff]  }
 0xa47   :  { %v10955_v9 = vsub.f32 %v10953_v12, %v10954_v17  ;;  %v23896_v17 = vld [vmem:[%s32825_s17 + $0x18c] ss:$28 sps:$4 sm:$0xff]   ;;  %v23899_v12 = vld [vmem:[%s32825_s17 + $0x194] ss:$28 sps:$4 sm:$0xff]  }
 0xa49   :  { %v10957_v31 = vadd.f32 1e-05, %v10955_v9  ;;  %v23894_v9 = vld [vmem:[%s32825_s17 + $0x188] ss:$28 sps:$4 sm:$0xff]  }
 0xa4b   :  { %24989 = vrsqrt.f32 %v10957_v31  ;;  %v23897_v31 = vld [vmem:[%s32825_s17 + $0x190] ss:$28 sps:$4 sm:$0xff]  }
 0xa55   :  { %v24990_v28 = vpop.eup %24989 }
 0xa56   :  { %v30108_v36 = vmul.f32 %v24990_v28, %v10956_v49  ;;  %v23902_v49 = vld [vmem:[%s32825_s17 + $0x1c4] ss:$28 sps:$4 sm:$0xff]   ;;  %v23905_v28 = vld [vmem:[%s32825_s17 + $0x1cc] ss:$28 sps:$4 sm:$0xff]  }
 0xa58   :  { %19707 = vmatmul.mubr.msk.f32.vlgmr.msra.gmra.mrb[60].mxu0 %vm9825_vm6, %v30108_v36  ;;  %21563 = vmatmul.mubr.msk.f32.vlgmr.msra.gmra.mrb[80].mxu1 %vm9825_vm6, %v30108_v36  ;;  %v10961_v45 = vmul.f32 %v30108_v36, %v10952_v55  ;;  %v23882_v55 = vld [vmem:[%s32825_s17 + $0x118] ss:$28 sps:$4 sm:$0xff]  }
 0xa59   :  { %11053 = vmatpush1.msra.mxu0 %v10965_v53  ;;  %11116 = vmatprep.mubr.f32.mxu0 %v32997_v51 }
 0xa5a   :  { %11623 = vmatpush1.msra.mxu1 %v10965_v53  ;;  %11686 = vmatprep.mubr.f32.mxu1 %v32997_v51  ;;  %v30131_v32 = vsub.f32 %v10960_v6, %v10961_v45  ;;  %v23903_v53 = vld [vmem:[%s32825_s17 + $0x1c8] ss:$28 sps:$4 sm:$0xff]   ;;  %v23908_v6 = vld [vmem:[%s32825_s17 + $0x1fc] ss:$28 sps:$4 sm:$0xff]  }
 0xa5b   :  { %11123 = vmatprep.subr.mxu0 %v30123_v39  ;;  %11764 = vmatprep.subr.mxu1 %v10970_v27  ;;  %v23906_v45 = vld [vmem:[%s32825_s17 + $0x1f8] ss:$28 sps:$4 sm:$0xff]  }
 0xa5c   :  { %19708 = vmatmul.mubr.msk.f32.vlgmr.msra.gmra.mrb[62].mxu0 %vm9825_vm6, %v30108_v36  ;;  %19716 = vmatmul.mubr.msk.f32.vlgmr.msra.gmra.mrb[82].mxu1 %vm9825_vm6, %v30131_v32 }
 0xa5d   :  { %11124 = vmatpush1.msra.mxu0 %v30136_v29  ;;  %11187 = vmatprep.mubr.f32.mxu0 %v32997_v51 }
 0xa5e   :  { %11765 = vmatpush1.msra.mxu1 %v10969_v24  ;;  %11828 = vmatprep.mubr.f32.mxu1 %v32997_v51 }
 0xa5f   :  { %11194 = vmatprep.subr.mxu0 %v10970_v27  ;;  %11906 = vmatprep.subr.mxu1 %v10974_v0  ;;  %v23909_v27 = vld [vmem:[%s32825_s17 + $0x200] ss:$28 sps:$4 sm:$0xff]  }
 0xa60   :  { %19709 = vmatmul.mubr.msk.f32.vlgmr.msra.gmra.mrb[64].mxu0 %vm9825_vm6, %v30108_v36  ;;  %19718 = vmatmul.mubr.msk.f32.vlgmr.msra.gmra.mrb[84].mxu1 %vm9825_vm6, %v30131_v32 }
 0xa61   :  { %11195 = vmatpush1.msra.mxu0 %v10969_v24  ;;  %11258 = vmatprep.mubr.f32.mxu0 %v32997_v51  ;;  %v23912_v24 = vld [vmem:[%s32825_s17 + $0x230] ss:$28 sps:$4 sm:$0xff]  }
 0xa62   :  { %11907 = vmatpush1.msra.mxu1 %v10973_v23  ;;  %11970 = vmatprep.mubr.f32.mxu1 %v32997_v51 }
 0xa63   :  { %11265 = vmatprep.subr.mxu0 %v10972_v3  ;;  %21565 = vmatprep.subr.mxu1 %v32997_v51 }
 0xa64   :  { %19710 = vmatmul.mubr.msk.f32.vlgmr.msra.gmra.mrb[66].mxu0 %vm9825_vm6, %v30108_v36  ;;  %19720 = vmatmul.mubr.msk.f32.vlgmr.msra.gmra.mrb[86].mxu1 %vm9825_vm6, %v30131_v32 }
 0xa65   :  { %11266 = vmatpush1.msra.mxu0 %v10971_v11  ;;  %11329 = vmatprep.mubr.f32.mxu0 %v32997_v51 }
 0xa66   :  { %21566 = vmatpush3.msra.mxu1 %v30098_v60  ;;  %21567 = vmatprep.mubr.msk.f32.mxu1 %vm25045_vm2, %v32997_v51  ;;  %v23869_v60 = vld [vmem:[%s32825_s17 + $0x7c] ss:$28 sps:$4 sm:$0xff]  }
 0xa67   :  { %11336 = vmatprep.subr.mxu0 %v10974_v0  ;;  %17638 = vmatprep.subr.bf16.mxu1 %v23857_v22  ;;  %v23915_v0 = vld [vmem:[%s32825_s17 + $0x238] ss:$28 sps:$4 sm:$0xff]   ;;  %v23921_v22 = vld [vmem:[%s32825_s17 + $0x270] ss:$28 sps:$4 sm:$0xff]  }
 0xa68   :  { %19711 = vmatmul.mubr.msk.f32.vlgmr.msra.gmra.mrb[68].mxu0 %vm9825_vm6, %v30108_v36  ;;  %21568 = vmatmul.mubr.msk.f32.vlgmr.msra.gmra.mrb[88].mxu1 %vm9825_vm6, %v30131_v32 }
 0xa69   :  { %11337 = vmatpush1.msra.mxu0 %v10973_v23  ;;  %11400 = vmatprep.mubr.f32.mxu0 %v32997_v51  ;;  %v23920_v23 = vld [vmem:[%s32825_s17 + $0x26c] ss:$28 sps:$4 sm:$0xff]  }
 0xa6a   :  { %11407 = vmatprep.subr.mxu0 %v10976_v58  ;;  %17639 = vmatpush1.bf16.msra.mxu1 %v23855_v25  ;;  %v23926_v25 = vld [vmem:[%s32825_s17 + $0x2a4] ss:$28 sps:$4 sm:$0xff]  }
 0xa6b   :  { %17640 = vmatprep.subr.bf16.mxu1 %v23863_v59  ;;  %v23924_v59 = vld [vmem:[%s32825_s17 + $0x2a0] ss:$28 sps:$4 sm:$0xff]  }
 0xa6c   :  { %19712 = vmatmul.mubr.msk.f32.vlgmr.msra.gmra.mrb[70].mxu0 %vm9825_vm6, %v30108_v36 }
 0xa6d   :  { %11408 = vmatpush1.msra.mxu0 %v10975_v34  ;;  %11471 = vmatprep.mubr.f32.mxu0 %v32997_v51 }
 0xa6e   :  { %11551 = vmatprep.subr.mxu0 %v30087_v63  ;;  %17641 = vmatpush1.bf16.msra.mxu1 %v23861_v40  ;;  %v23873_v63 = vld [vmem:[%s32825_s17 + $0xb0] ss:$28 sps:$4 sm:$0xff]   ;;  %v23932_v40 = vld [vmem:[%s32825_s17 + $0x2dc] ss:$28 sps:$4 sm:$0xff]  }
 0xa6f   :  { %17642 = vmatprep.subr.bf16.mxu1 %v23869_v60  ;;  %v23935_v60 = vld [vmem:[%s32825_s17 + $0x2e4] ss:$28 sps:$4 sm:$0xff]  }
 0xa70   :  { %19713 = vmatmul.mubr.msk.f32.vlgmr.msra.gmra.mrb[72].mxu0 %vm9825_vm6, %v30108_v36  ;;  %v23900_v36 = vld [vmem:[%s32825_s17 + $0x1c0] ss:$28 sps:$4 sm:$0xff]  }
 0xa71   :  { %11552 = vmatpush1.msra.mxu0 %v30093_v13  ;;  %11615 = vmatprep.mubr.f32.mxu0 %v32997_v51  ;;  %v23879_v13 = vld [vmem:[%s32825_s17 + $0xe8] ss:$28 sps:$4 sm:$0xff]  }
 0xa72   :  { %11693 = vmatprep.subr.mxu0 %v30123_v39  ;;  %17643 = vmatpush1.bf16.msra.mxu1 %v23867_v7  ;;  %v23911_v39 = vld [vmem:[%s32825_s17 + $0x204] ss:$28 sps:$4 sm:$0xff]   ;;  %v23930_v7 = vld [vmem:[%s32825_s17 + $0x2d8] ss:$28 sps:$4 sm:$0xff]  }
 0xa73   :  { %17644 = vmatprep.subr.bf16.mxu1 %v23875_v42  ;;  %v23933_v42 = vld [vmem:[%s32825_s17 + $0x2e0] ss:$28 sps:$4 sm:$0xff]  }
 0xa74   :  { %19715 = vmatmul.mubr.msk.f32.vlgmr.msra.gmra.mrb[74].mxu0 %vm9825_vm6, %v30131_v32 }
 0xa75   :  { %11694 = vmatpush1.msra.mxu0 %v30136_v29  ;;  %11757 = vmatprep.mubr.f32.mxu0 %v32997_v51  ;;  %v23917_v29 = vld [vmem:[%s32825_s17 + $0x23c] ss:$28 sps:$4 sm:$0xff]  }
 0xa76   :  { %11835 = vmatprep.subr.mxu0 %v10972_v3  ;;  %17645 = vmatpush1.bf16.msra.mxu1 %v23873_v63  ;;  %v23923_v3 = vld [vmem:[%s32825_s17 + $0x274] ss:$28 sps:$4 sm:$0xff]  }
 0xa77   :  { %17646 = vmatprep.subr.bf16.mxu1 %v23881_v56  ;;  %v23938_v63 = vld [vmem:[%s32825_s17 + $0x314] ss:$28 sps:$4 sm:$0xff]   ;;  %v23941_v56 = vld [vmem:[%s32825_s17 + $0x31c] ss:$28 sps:$4 sm:$0xff]  }
 0xa78   :  { %19717 = vmatmul.mubr.msk.f32.vlgmr.msra.gmra.mrb[76].mxu0 %vm9825_vm6, %v30131_v32 }
 0xa79   :  { %11836 = vmatpush1.msra.mxu0 %v10971_v11  ;;  %11899 = vmatprep.mubr.f32.mxu0 %v32997_v51  ;;  %v23918_v11 = vld [vmem:[%s32825_s17 + $0x268] ss:$28 sps:$4 sm:$0xff]  }
 0xa7a   :  { %11977 = vmatprep.subr.mxu0 %v10976_v58  ;;  %17647 = vmatpush1.bf16.msra.mxu1 %v23879_v13  ;;  %v23929_v58 = vld [vmem:[%s32825_s17 + $0x2ac] ss:$28 sps:$4 sm:$0xff]  }
 0xa7b   :  { %17648 = vmatprep.subr.bf16.mxu1 %v23887_v5  ;;  %v23936_v13 = vld [vmem:[%s32825_s17 + $0x310] ss:$28 sps:$4 sm:$0xff]   ;;  %v23939_v5 = vld [vmem:[%s32825_s17 + $0x318] ss:$28 sps:$4 sm:$0xff]  }
 0xa7c   :  { %19719 = vmatmul.mubr.msk.f32.vlgmr.msra.gmra.mrb[78].mxu0 %vm9825_vm6, %v30131_v32 }
 0xa7d   :  { %11978 = vmatpush1.msra.mxu0 %v10975_v34  ;;  %12041 = vmatprep.mubr.f32.mxu0 %v32997_v51  ;;  %v23927_v34 = vld [vmem:[%s32825_s17 + $0x2a8] ss:$28 sps:$4 sm:$0xff]  }
 0xa7e   :  { %17310 = vmatprep.subr.bf16.mxu0 %v23854_v21  ;;  %17649 = vmatpush1.bf16.msra.mxu1 %v23885_v26  ;;  %v23944_v21 = vld [vmem:[%s32825_s17 + $0x34c] ss:$28 sps:$4 sm:$0xff]   ;;  %v23947_v26 = vld [vmem:[%s32825_s17 + $0x354] ss:$28 sps:$4 sm:$0xff]  }
 0xa7f   :  { %17650 = vmatprep.subr.bf16.mxu1 %v23893_v35  ;;  %v23942_v35 = vld [vmem:[%s32825_s17 + $0x348] ss:$28 sps:$4 sm:$0xff]  }
 0xa80   :  { %19721 = vmatmul.mubr.msk.f32.vlgmr.msra.gmra.mrb[80].mxu0 %vm9825_vm6, %v30131_v32  ;;  %v23914_v32 = vld [vmem:[%s32825_s17 + $0x234] ss:$28 sps:$4 sm:$0xff]  }
 0xa81   :  { %17311 = vmatpush1.bf16.msra.mxu0 %v23852_v15  ;;  %v23945_v15 = vld [vmem:[%s32825_s17 + $0x350] ss:$28 sps:$4 sm:$0xff]  }
 0xa82   :  { %17312 = vmatprep.subr.bf16.mxu0 %v23860_v8  ;;  %17651 = vmatpush1.bf16.msra.mxu1 %v23891_v37  ;;  %v23950_v8 = vld [vmem:[%s32825_s17 + $0x384] ss:$28 sps:$4 sm:$0xff]   ;;  %v23953_v37 = vld [vmem:[%s32825_s17 + $0x38c] ss:$28 sps:$4 sm:$0xff]  }
 0xa83   :  { %17652 = vmatprep.subr.bf16.mxu1 %v23899_v12 }
 0xa85   :  { %17313 = vmatpush1.bf16.msra.mxu0 %v23858_v43 }
 0xa86   :  { %17314 = vmatprep.subr.bf16.mxu0 %v23866_v30  ;;  %17653 = vmatpush1.bf16.msra.mxu1 %v23897_v31 }
 0xa87   :  { %17654 = vmatprep.subr.bf16.mxu1 %v23905_v28 }
 0xa89   :  { %17315 = vmatpush1.bf16.msra.mxu0 %v23864_v1  ;;  %v33087_v1 = vld [vmem:[#allocation6_spill] sm:$0xff] }
 0xa8a   :  { %17316 = vmatprep.subr.bf16.mxu0 %v23872_v18  ;;  %17655 = vmatpush1.bf16.msra.mxu1 %v23903_v53 }
 0xa8b   :  { %17656 = vmatprep.subr.bf16.mxu1 %v23911_v39 }
 0xa8d   :  { %17317 = vmatpush1.bf16.msra.mxu0 %v23870_v52 }
 0xa8e   :  { %17318 = vmatprep.subr.bf16.mxu0 %v23878_v10  ;;  %17657 = vmatpush1.bf16.msra.mxu1 %v23909_v27 }
 0xa8f   :  { %17658 = vmatprep.subr.bf16.mxu1 %v23917_v29 }
 0xa91   :  { %17319 = vmatpush1.bf16.msra.mxu0 %v23876_v20 }
 0xa92   :  { %17320 = vmatprep.subr.bf16.mxu0 %v23884_v19  ;;  %17659 = vmatpush1.bf16.msra.mxu1 %v23915_v0 }
 0xa93   :  { %17660 = vmatprep.subr.bf16.mxu1 %v23923_v3 }
 0xa95   :  { %17321 = vmatpush1.bf16.msra.mxu0 %v23882_v55 }
 0xa96   :  { %17322 = vmatprep.subr.bf16.mxu0 %v23890_v61  ;;  %17661 = vmatpush1.bf16.msra.mxu1 %v23921_v22 }
 0xa97   :  { %17662 = vmatprep.subr.bf16.mxu1 %v23929_v58 }
 0xa99   :  { %17323 = vmatpush1.bf16.msra.mxu0 %v23888_v48 }
 0xa9a   :  { %17324 = vmatprep.subr.bf16.mxu0 %v23896_v17  ;;  %17663 = vmatpush1.bf16.msra.mxu1 %v23927_v34 }
 0xa9b   :  { %17664 = vmatprep.subr.bf16.mxu1 %v23935_v60 }
 0xa9d   :  { %17325 = vmatpush1.bf16.msra.mxu0 %v23894_v9 }
 0xa9e   :  { %17326 = vmatprep.subr.bf16.mxu0 %v23902_v49  ;;  %17665 = vmatpush1.bf16.msra.mxu1 %v23933_v42 }
 0xa9f   :  { %17666 = vmatprep.subr.bf16.mxu1 %v23941_v56 }
 0xaa1   :  { %17327 = vmatpush1.bf16.msra.mxu0 %v23900_v36  ;;  %v33088_v36 = vld [vmem:[#allocation12_spill] sm:$0xff] }
 0xaa2   :  { %17328 = vmatprep.subr.bf16.mxu0 %v23908_v6  ;;  %17667 = vmatpush1.bf16.msra.mxu1 %v23939_v5 }
 0xaa3   :  { %17668 = vmatprep.subr.bf16.mxu1 %v23947_v26 }
 0xaa5   :  { %17329 = vmatpush1.bf16.msra.mxu0 %v23906_v45 }
 0xaa6   :  { %17330 = vmatprep.subr.bf16.mxu0 %v23914_v32  ;;  %17669 = vmatpush1.bf16.msra.mxu1 %v23945_v15 }
 0xaa7   :  { %17679 = vmatprep.subr.bf16.mxu1 %v23953_v37 }
 0xaa9   :  { %17331 = vmatpush1.bf16.msra.mxu0 %v23912_v24 }
 0xaaa   :  { %17332 = vmatprep.subr.bf16.mxu0 %v23920_v23 }
 0xaad   :  { %17333 = vmatpush1.bf16.msra.mxu0 %v23918_v11 }
 0xaae   :  { %17334 = vmatprep.subr.bf16.mxu0 %v23926_v25 }
 0xab1   :  { %17335 = vmatpush1.bf16.msra.mxu0 %v23924_v59 }
 0xab2   :  { %17336 = vmatprep.subr.bf16.mxu0 %v23932_v40 }
 0xab5   :  { %17337 = vmatpush1.bf16.msra.mxu0 %v23930_v7 }
 0xab6   :  { %17338 = vmatprep.subr.bf16.mxu0 %v23938_v63 }
 0xab9   :  { %17339 = vmatpush1.bf16.msra.mxu0 %v23936_v13 }
 0xaba   :  { %17340 = vmatprep.subr.bf16.mxu0 %v23944_v21 }
 0xabd   :  { %17341 = vmatpush1.bf16.msra.mxu0 %v23942_v35 }
 0xabe   :  { %17351 = vmatprep.subr.bf16.mxu0 %v23950_v8 }
 0xb2b   :  { %v11047_v43 = vpop.f32.mrb[60].mxu0  ;;  %v11544_v30 = vpop.f32.mrb[80].mxu1 }
 0xb2c   :  { %v12121_v18 = vrot.slane %v11047_v43, %v33087_v1  ;;  %v11049_v52 = vpop.f32.mrb[61].mxu0  ;;  %v21564_v10 = vpop.f32.mrb[81].mxu1  ;;  %v12177_v11 = vrot.slane %v11544_v30, %v33087_v1 }
 0xb2d   :  { %v12125_v20 = vrot.slane %v11049_v52, %v33087_v1 }
 0xb2e   :  { %v30409_v19 = vmul.f32 %v12121_v18, %v33023_v57  ;;  %v12192_v42 = vmul.f32 %v12177_v11, %v29891_v2 }
 0xb2f   :  { %v30412_v55 = vmul.f32 %v12125_v20, %v33019_v14  ;;  %v11118_v61 = vpop.f32.mrb[62].mxu0  ;;  %v11688_v48 = vpop.f32.mrb[82].mxu1 }
 0xb30   :  { %v12129_v17 = vrot.slane %v11118_v61, %v33087_v1  ;;  %v11120_v12 = vpop.f32.mrb[63].mxu0  ;;  %v11690_v9 = vpop.f32.mrb[83].mxu1  ;;  %v12204_v28 = vrot.slane %v11688_v48, %v33087_v1 }
 0xb31   :  { %v12133_v31 = vrot.slane %v11120_v12, %v33087_v1  ;;  %v12208_v57 = vrot.slane %v11690_v9, %v33087_v1 }
 0xb32   :  { %v12180_v49 = vmul.f32 %v27839_v33, %v12129_v17 }
 0xb33   :  { %v12181_v53 = vmul.f32 %v33088_v36, %v12133_v31  ;;  %v11189_v6 = vpop.f32.mrb[64].mxu0  ;;  %v11830_v39 = vpop.f32.mrb[84].mxu1 }
 0xb34   :  { %v30420_v14 = vadd.f32 %v12204_v28, %v12180_v49  ;;  %v12137_v45 = vrot.slane %v11189_v6, %v33087_v1  ;;  %v11191_v27 = vpop.f32.mrb[65].mxu0  ;;  %v11832_v32 = vpop.f32.mrb[85].mxu1  ;;  %v12220_v34 = vrot.slane %v11830_v39, %v33087_v1 }
 0xb35   :  { %v30423_v29 = vadd.f32 %v12208_v57, %v12181_v53  ;;  %v12141_v24 = vrot.slane %v11191_v27, %v33087_v1  ;;  %v12224_v60 = vrot.slane %v11832_v32, %v33087_v1 }
 0xb36   :  { %v12182_v33 = vmul.f32 %v12137_v45, %v33041_v46 }
 0xb37   :  { %v12183_v0 = vmul.f32 %v12141_v24, %v33024_v41  ;;  %v11260_v23 = vpop.f32.mrb[66].mxu0  ;;  %v11972_v3 = vpop.f32.mrb[86].mxu1 }
 0xb38   :  { %v12145_v22 = vrot.slane %v11260_v23, %v33087_v1  ;;  %v11262_v25 = vpop.f32.mrb[67].mxu0  ;;  %v11974_v58 = vpop.f32.mrb[87].mxu1  ;;  %v12236_v30 = vrot.slane %v11972_v3, %v33087_v1 }
 0xb39   :  { %v12149_v59 = vrot.slane %v11262_v25, %v33087_v1  ;;  %v12240_v52 = vrot.slane %v11974_v58, %v33087_v1 }
 0xb3a   :  { %v12184_v40 = vmul.f32 %v12145_v22, %v28397_v50  ;;  %v23959_v22 = vld [vmem:[%s32825_s17 + $0x3c4] ss:$28 sps:$4 sm:$0xff]  }
 0xb3b   :  { %v12185_v46 = vmul.f32 %v12149_v59, %v28399_v44  ;;  %v11331_v7 = vpop.f32.mrb[68].mxu0  ;;  %v12114_v41 = vpop.f32.mrb[88].mxu1 }
 0xb3c   :  { %v30436_v63 = vadd.f32 %v12220_v34, %v12184_v40  ;;  %v12153_v56 = vrot.slane %v11331_v7, %v33087_v1  ;;  %v12252_v13 = vrot.slane %v12114_v41, %v33087_v1  ;;  %v11333_v5 = vpop.f32.mrb[69].mxu0  ;;  %v21569_v21 = vpop.f32.mrb[89].mxu1  ;;  %v23954_v40 = vld [vmem:[%s32825_s17 + $0x3b8] ss:$28 sps:$4 sm:$0xff]  }
 0xb3d   :  { %v30440_v26 = vadd.f32 %v12224_v60, %v12185_v46  ;;  %v12157_v50 = vrot.slane %v11333_v5, %v33087_v1  ;;  %v23957_v60 = vld [vmem:[%s32825_s17 + $0x3c0] ss:$28 sps:$4 sm:$0xff]   ;;  %v23962_v41 = vld [vmem:[%s32825_s17 + $0x3f4] ss:$28 sps:$4 sm:$0xff]  }
 0xb3e   :  { %v12186_v35 = vmul.f32 %v12153_v56, %v33059_v47  ;;  %v30444_v15 = vadd.f32 %v12252_v13, %v12192_v42  ;;  %v23965_v42 = vld [vmem:[%s32825_s17 + $0x3fc] ss:$28 sps:$4 sm:$0xff]   ;;  %v23960_v21 = vld [vmem:[%s32825_s17 + $0x3f0] ss:$28 sps:$4 sm:$0xff]  }
 0xb3f   :  { %v12187_v44 = vmul.f32 %v12157_v50, %v33042_v38  ;;  %v11402_v8 = vpop.f32.mrb[70].mxu0  ;;  %v23963_v50 = vld [vmem:[%s32825_s17 + $0x3f8] ss:$28 sps:$4 sm:$0xff]  }
 0xb40   :  { %v12161_v2 = vrot.slane %v11402_v8, %v33087_v1  ;;  %v11404_v37 = vpop.f32.mrb[71].mxu0  ;;  %v23966_v8 = vld [vmem:[%s32825_s17 + $0x428] ss:$28 sps:$4 sm:$0xff]  }
 0xb41   :  { %v12165_v43 = vrot.slane %v11404_v37, %v33087_v1  ;;  %v23974_v37 = vld [vmem:[%s32825_s17 + $0x464] ss:$28 sps:$4 sm:$0xff]  }
 0xb42   :  { %v12188_v18 = vmul.f32 %v12161_v2, %v29380_v54  ;;  %v23969_v2 = vld [vmem:[%s32825_s17 + $0x430] ss:$28 sps:$4 sm:$0xff]  }
 0xb43   :  { %v12189_v10 = vmul.f32 %v12165_v43, %v29388_v4  ;;  %v11473_v20 = vpop.f32.mrb[72].mxu0  ;;  %v23977_v43 = vld [vmem:[%s32825_s17 + $0x46c] ss:$28 sps:$4 sm:$0xff]  }
 0xb44   :  { %v30453_v47 = vadd.f32 %v12236_v30, %v12188_v18  ;;  %v12169_v61 = vrot.slane %v11473_v20, %v33087_v1  ;;  %v11475_v38 = vpop.f32.mrb[73].mxu0  ;;  %v23972_v30 = vld [vmem:[%s32825_s17 + $0x460] ss:$28 sps:$4 sm:$0xff]   ;;  %v23975_v18 = vld [vmem:[%s32825_s17 + $0x468] ss:$28 sps:$4 sm:$0xff]  }
 0xb45   :  { %v30456_v48 = vadd.f32 %v12240_v52, %v12189_v10  ;;  %v12173_v17 = vrot.slane %v11475_v38, %v33087_v1  ;;  %v23980_v52 = vld [vmem:[%s32825_s17 + $0x49c] ss:$28 sps:$4 sm:$0xff]   ;;  %v23983_v10 = vld [vmem:[%s32825_s17 + $0x4a4] ss:$28 sps:$4 sm:$0xff]   ;;  %v23986_v38 = vld [vmem:[%s32825_s17 + $0x4d4] ss:$28 sps:$4 sm:$0xff]  }
 0xb46   :  { %v12190_v12 = vmul.f32 %v12169_v61, %v29985_v62  ;;  %v23978_v20 = vld [vmem:[%s32825_s17 + $0x498] ss:$28 sps:$4 sm:$0xff]   ;;  %v23981_v61 = vld [vmem:[%s32825_s17 + $0x4a0] ss:$28 sps:$4 sm:$0xff]  }
 0xb47   :  { %v12191_v9 = vmul.f32 %v12173_v17, %v29989_v16  ;;  %v11617_v31 = vpop.f32.mrb[74].mxu0  ;;  %v12271_v16 = vmax.f32 %v30423_v29, 0.0  ;;  %v23989_v17 = vld [vmem:[%s32825_s17 + $0x4dc] ss:$28 sps:$4 sm:$0xff]  }
 0xb48   :  { %v12196_v54 = vrot.slane %v11617_v31, %v33087_v1  ;;  %v11619_v49 = vpop.f32.mrb[75].mxu0  ;;  %v23992_v31 = vld [vmem:[%s32825_s17 + $0x50c] ss:$28 sps:$4 sm:$0xff]  }
 0xb49   :  { %v12200_v4 = vrot.slane %v11619_v49, %v33087_v1  ;;  %v30492_v25 = vpack.c.bf16 %v12271_v16, %v12271_v16  ;;  %v23990_v49 = vld [vmem:[%s32825_s17 + $0x508] ss:$28 sps:$4 sm:$0xff]   ;;  %v24010_v16 = vld [vmem:[%s32825_s17 + $0x5b4] ss:$28 sps:$4 sm:$0xff]  }
 0xb4a   :  { %v12253_v28 = vadd.f32 %v12196_v54, %v30409_v19  ;;  %v23948_v19 = vld [vmem:[%s32825_s17 + $0x380] ss:$28 sps:$4 sm:$0xff]   ;;  %v23995_v54 = vld [vmem:[%s32825_s17 + $0x514] ss:$28 sps:$4 sm:$0xff]  }
 0xb4b   :  { %v12254_v36 = vadd.f32 %v12200_v4, %v30412_v55  ;;  %v11759_v53 = vpop.f32.mrb[76].mxu0  ;;  %v23951_v55 = vld [vmem:[%s32825_s17 + $0x388] ss:$28 sps:$4 sm:$0xff]   ;;  %v23993_v4 = vld [vmem:[%s32825_s17 + $0x510] ss:$28 sps:$4 sm:$0xff]  }
 0xb4c   :  { %v12268_v57 = vmax.f32 %v12253_v28, 0.0  ;;  %v12212_v6 = vrot.slane %v11759_v53, %v33087_v1  ;;  %v11761_v39 = vpop.f32.mrb[77].mxu0  ;;  %v23998_v28 = vld [vmem:[%s32825_s17 + $0x544] ss:$28 sps:$4 sm:$0xff]  }
 0xb4d   :  { %v12269_v45 = vmax.f32 %v12254_v36, 0.0  ;;  %v12216_v62 = vrot.slane %v11761_v39, %v33087_v1  ;;  %v24001_v36 = vld [vmem:[%s32825_s17 + $0x54c] ss:$28 sps:$4 sm:$0xff]   ;;  %v23996_v53 = vld [vmem:[%s32825_s17 + $0x540] ss:$28 sps:$4 sm:$0xff]  }
 0xb4e   :  { %v30468_v27 = vadd.f32 %v12212_v6, %v12182_v33  ;;  %v30480_v3 = vpack.c.bf16 %v12268_v57, %v12268_v57  ;;  %v23999_v57 = vld [vmem:[%s32825_s17 + $0x548] ss:$28 sps:$4 sm:$0xff]   ;;  %v24004_v6 = vld [vmem:[%s32825_s17 + $0x57c] ss:$28 sps:$4 sm:$0xff]  }
 0xb4f   :  { %v30470_v32 = vpack.c.bf16 %v12269_v45, %v12269_v45  ;;  %v30472_v24 = vadd.f32 %v12216_v62, %v12183_v0  ;;  %v11901_v23 = vpop.f32.mrb[78].mxu0  ;;  %v23956_v0 = vld [vmem:[%s32825_s17 + $0x3bc] ss:$28 sps:$4 sm:$0xff]   ;;  %v24007_v39 = vld [vmem:[%s32825_s17 + $0x584] ss:$28 sps:$4 sm:$0xff]  }
 0xb50   :  { %v12228_v11 = vrot.slane %v11901_v23, %v33087_v1  ;;  %v11903_v29 = vpop.f32.mrb[79].mxu0  ;;  %v24002_v45 = vld [vmem:[%s32825_s17 + $0x578] ss:$28 sps:$4 sm:$0xff]   ;;  %v24005_v62 = vld [vmem:[%s32825_s17 + $0x580] ss:$28 sps:$4 sm:$0xff]  }
 0xb51   :  { %v12232_v33 = vrot.slane %v11903_v29, %v33087_v1  ;;  %17342 = vmatprep.mubr.bf16.mxu0 %v30470_v32  ;;  %17670 = vmatprep.mubr.bf16.mxu1 %v30470_v32  ;;  %v24013_v23 = vld [vmem:[%s32825_s17 + $0x5bc] ss:$28 sps:$4 sm:$0xff]   ;;  %v24019_v29 = vld [vmem:[%s32825_s17 + $0x5f4] ss:$28 sps:$4 sm:$0xff]  }
 0xb52   :  { %v30494_v58 = vadd.f32 %v12228_v11, %v12186_v35  ;;  %17343 = vmatmul.mubr.bf16.vlgmr.msra.gmra.mrb[84].mxu0 %v30480_v3  ;;  %17671 = vmatmul.mubr.bf16.vlgmr.msra.gmra.mrb[92].mxu1 %v30480_v3  ;;  %v23968_v35 = vld [vmem:[%s32825_s17 + $0x42c] ss:$28 sps:$4 sm:$0xff]  }
 0xb53   :  { %v30498_v59 = vadd.f32 %v12232_v33, %v12187_v44  ;;  %17352 = vmatpush1.bf16.msra.mxu0 %v23948_v19  ;;  %17680 = vmatpush1.bf16.msra.mxu1 %v23951_v55  ;;  %v12043_v34 = vpop.f32.mrb[80].mxu0  ;;  %v23971_v44 = vld [vmem:[%s32825_s17 + $0x434] ss:$28 sps:$4 sm:$0xff]   ;;  %v24016_v11 = vld [vmem:[%s32825_s17 + $0x5ec] ss:$28 sps:$4 sm:$0xff]  }
 0xb54   :  { %v12244_v46 = vrot.slane %v12043_v34, %v33087_v1  ;;  %17383 = vmatprep.mubr.bf16.mxu0 %v30492_v25  ;;  %17711 = vmatprep.mubr.bf16.mxu1 %v30492_v25  ;;  %v12045_v7 = vpop.f32.mrb[81].mxu0  ;;  %v24008_v19 = vld [vmem:[%s32825_s17 + $0x5b0] ss:$28 sps:$4 sm:$0xff]   ;;  %v24011_v55 = vld [vmem:[%s32825_s17 + $0x5b8] ss:$28 sps:$4 sm:$0xff]  }
 0xb55   :  { %v12248_v56 = vrot.slane %v12045_v7, %v33087_v1  ;;  %17353 = vmatprep.subr.bf16.mxu0 %v23956_v0  ;;  %17681 = vmatprep.subr.bf16.mxu1 %v23959_v22  ;;  %v24014_v33 = vld [vmem:[%s32825_s17 + $0x5e8] ss:$28 sps:$4 sm:$0xff]   ;;  %v24017_v0 = vld [vmem:[%s32825_s17 + $0x5f0] ss:$28 sps:$4 sm:$0xff]  }
 0xb56   :  { %v30516_v13 = vadd.f32 %v12244_v46, %v12190_v12  ;;  %v23984_v12 = vld [vmem:[%s32825_s17 + $0x4d0] ss:$28 sps:$4 sm:$0xff]   ;;  %v24022_v22 = vld [vmem:[%s32825_s17 + $0x624] ss:$28 sps:$4 sm:$0xff]   ;;  %v24028_v46 = vld [vmem:[%s32825_s17 + $0x65c] ss:$28 sps:$4 sm:$0xff]  }
 0xb57   :  { %v30518_v5 = vadd.f32 %v12248_v56, %v12191_v9  ;;  %17354 = vmatpush1.bf16.msra.mxu0 %v23954_v40  ;;  %17682 = vmatpush1.bf16.msra.mxu1 %v23957_v60  ;;  %v23987_v9 = vld [vmem:[%s32825_s17 + $0x4d8] ss:$28 sps:$4 sm:$0xff]   ;;  %v24025_v34 = vld [vmem:[%s32825_s17 + $0x62c] ss:$28 sps:$4 sm:$0xff]   ;;  %v24020_v40 = vld [vmem:[%s32825_s17 + $0x620] ss:$28 sps:$4 sm:$0xff]  }
 0xb58   :  { %17355 = vmatprep.subr.bf16.mxu0 %v23962_v41  ;;  %17683 = vmatprep.subr.bf16.mxu1 %v23965_v42  ;;  %v24023_v60 = vld [vmem:[%s32825_s17 + $0x628] ss:$28 sps:$4 sm:$0xff]   ;;  %v24026_v41 = vld [vmem:[%s32825_s17 + $0x658] ss:$28 sps:$4 sm:$0xff]   ;;  %v24029_v42 = vld [vmem:[%s32825_s17 + $0x660] ss:$28 sps:$4 sm:$0xff]  }
 0xb59   :  { %v24031_v7 = vld [vmem:[%s32825_s17 + $0x664] ss:$28 sps:$4 sm:$0xff]   ;;  %v24034_v56 = vld [vmem:[%s32825_s17 + $0x694] ss:$28 sps:$4 sm:$0xff]  }
 0xb5b   :  { %17356 = vmatpush1.bf16.msra.mxu0 %v23960_v21  ;;  %17684 = vmatpush1.bf16.msra.mxu1 %v23963_v50  ;;  %v24037_v21 = vld [vmem:[%s32825_s17 + $0x69c] ss:$28 sps:$4 sm:$0xff]   ;;  %v24032_v50 = vld [vmem:[%s32825_s17 + $0x690] ss:$28 sps:$4 sm:$0xff]  }
 0xb5c   :  { %17357 = vmatprep.subr.bf16.mxu0 %v23968_v35  ;;  %17685 = vmatprep.subr.bf16.mxu1 %v23971_v44  ;;  %v24035_v35 = vld [vmem:[%s32825_s17 + $0x698] ss:$28 sps:$4 sm:$0xff]   ;;  %v24040_v44 = vld [vmem:[%s32825_s17 + $0x6cc] ss:$28 sps:$4 sm:$0xff]  }
 0xb5f   :  { %17358 = vmatpush1.bf16.msra.mxu0 %v23966_v8  ;;  %17686 = vmatpush1.bf16.msra.mxu1 %v23969_v2  ;;  %v24043_v8 = vld [vmem:[%s32825_s17 + $0x6d4] ss:$28 sps:$4 sm:$0xff]   ;;  %v24038_v2 = vld [vmem:[%s32825_s17 + $0x6c8] ss:$28 sps:$4 sm:$0xff]  }
 0xb60   :  { %17359 = vmatprep.subr.bf16.mxu0 %v23974_v37  ;;  %17687 = vmatprep.subr.bf16.mxu1 %v23977_v43  ;;  %v24041_v37 = vld [vmem:[%s32825_s17 + $0x6d0] ss:$28 sps:$4 sm:$0xff]   ;;  %v12270_v43 = vmax.f32 %v30420_v14, 0.0  ;;  %v24047_v14 = vld [vmem:[%s32825_s17 + $0x708] ss:$28 sps:$4 sm:$0xff]  }
 0xb63   :  { %17360 = vmatpush1.bf16.msra.mxu0 %v23972_v30  ;;  %17688 = vmatpush1.bf16.msra.mxu1 %v23975_v18  ;;  %v24046_v30 = vld [vmem:[%s32825_s17 + $0x704] ss:$28 sps:$4 sm:$0xff]   ;;  %v24049_v18 = vld [vmem:[%s32825_s17 + $0x70c] ss:$28 sps:$4 sm:$0xff]  }
 0xb64   :  { %17361 = vmatprep.subr.bf16.mxu0 %v23980_v52  ;;  %17689 = vmatprep.subr.bf16.mxu1 %v23983_v10  ;;  %v12273_v52 = vmax.f32 %v30472_v24, 0.0  ;;  %v24044_v10 = vld [vmem:[%s32825_s17 + $0x700] ss:$28 sps:$4 sm:$0xff]  }
 0xb65   :  { %v24052_v24 = vld [vmem:[%s32825_s17 + $0x73c] ss:$28 sps:$4 sm:$0xff]  }
 0xb67   :  { %17362 = vmatpush1.bf16.msra.mxu0 %v23978_v20  ;;  %17690 = vmatpush1.bf16.msra.mxu1 %v23981_v61  ;;  %v30693_v20 = vpack.c.bf16 %v12270_v43, %v12270_v43  ;;  %v30698_v61 = vpack.c.bf16 %v12273_v52, %v12273_v52  ;;  %v24115_v43 = vld [vmem:[%s32825_s17 + $0x974] ss:$28 sps:$4 sm:$0xff]   ;;  %v24118_v52 = vld [vmem:[%s32825_s17 + $0x9a4] ss:$28 sps:$4 sm:$0xff]  }
 0xb68   :  { %17363 = vmatprep.subr.bf16.mxu0 %v23986_v38  ;;  %17691 = vmatprep.subr.bf16.mxu1 %v23989_v17  ;;  %v24055_v38 = vld [vmem:[%s32825_s17 + $0x744] ss:$28 sps:$4 sm:$0xff]   ;;  %v24050_v17 = vld [vmem:[%s32825_s17 + $0x738] ss:$28 sps:$4 sm:$0xff]  }
 0xb6b   :  { %17364 = vmatpush1.bf16.msra.mxu0 %v23984_v12  ;;  %17692 = vmatpush1.bf16.msra.mxu1 %v23987_v9  ;;  %v24053_v12 = vld [vmem:[%s32825_s17 + $0x740] ss:$28 sps:$4 sm:$0xff]   ;;  %v24058_v9 = vld [vmem:[%s32825_s17 + $0x774] ss:$28 sps:$4 sm:$0xff]  }
 0xb6c   :  { %17365 = vmatprep.subr.bf16.mxu0 %v23992_v31  ;;  %17693 = vmatprep.subr.bf16.mxu1 %v23995_v54  ;;  %v24061_v31 = vld [vmem:[%s32825_s17 + $0x77c] ss:$28 sps:$4 sm:$0xff]   ;;  %v24056_v54 = vld [vmem:[%s32825_s17 + $0x770] ss:$28 sps:$4 sm:$0xff]  }
 0xb6f   :  { %17366 = vmatpush1.bf16.msra.mxu0 %v23990_v49  ;;  %17694 = vmatpush1.bf16.msra.mxu1 %v23993_v4  ;;  %v24059_v49 = vld [vmem:[%s32825_s17 + $0x778] ss:$28 sps:$4 sm:$0xff]   ;;  %v24064_v4 = vld [vmem:[%s32825_s17 + $0x7ac] ss:$28 sps:$4 sm:$0xff]  }
 0xb70   :  { %17367 = vmatprep.subr.bf16.mxu0 %v23998_v28  ;;  %17695 = vmatprep.subr.bf16.mxu1 %v24001_v36  ;;  %v24067_v28 = vld [vmem:[%s32825_s17 + $0x7b4] ss:$28 sps:$4 sm:$0xff]   ;;  %v24062_v36 = vld [vmem:[%s32825_s17 + $0x7a8] ss:$28 sps:$4 sm:$0xff]  }
 0xb73   :  { %17368 = vmatpush1.bf16.msra.mxu0 %v23996_v53  ;;  %17696 = vmatpush1.bf16.msra.mxu1 %v23999_v57  ;;  %v24065_v53 = vld [vmem:[%s32825_s17 + $0x7b0] ss:$28 sps:$4 sm:$0xff]   ;;  %v24070_v57 = vld [vmem:[%s32825_s17 + $0x7e4] ss:$28 sps:$4 sm:$0xff]  }
 0xb74   :  { %17369 = vmatprep.subr.bf16.mxu0 %v24004_v6  ;;  %17697 = vmatprep.subr.bf16.mxu1 %v24007_v39  ;;  %v24073_v6 = vld [vmem:[%s32825_s17 + $0x7ec] ss:$28 sps:$4 sm:$0xff]   ;;  %v24068_v39 = vld [vmem:[%s32825_s17 + $0x7e0] ss:$28 sps:$4 sm:$0xff]  }
 0xb77   :  { %17370 = vmatpush1.bf16.msra.mxu0 %v24002_v45  ;;  %17698 = vmatpush1.bf16.msra.mxu1 %v24005_v62  ;;  %v24071_v45 = vld [vmem:[%s32825_s17 + $0x7e8] ss:$28 sps:$4 sm:$0xff]   ;;  %v24076_v62 = vld [vmem:[%s32825_s17 + $0x81c] ss:$28 sps:$4 sm:$0xff]  }
 0xb78   :  { %17371 = vmatprep.subr.bf16.mxu0 %v24010_v16  ;;  %17699 = vmatprep.subr.bf16.mxu1 %v24013_v23  ;;  %v24079_v16 = vld [vmem:[%s32825_s17 + $0x824] ss:$28 sps:$4 sm:$0xff]   ;;  %v24074_v23 = vld [vmem:[%s32825_s17 + $0x818] ss:$28 sps:$4 sm:$0xff]  }
 0xb7b   :  { %17372 = vmatpush1.bf16.msra.mxu0 %v24008_v19  ;;  %17700 = vmatpush1.bf16.msra.mxu1 %v24011_v55  ;;  %v24077_v19 = vld [vmem:[%s32825_s17 + $0x820] ss:$28 sps:$4 sm:$0xff]   ;;  %v24082_v55 = vld [vmem:[%s32825_s17 + $0x854] ss:$28 sps:$4 sm:$0xff]  }
 0xb7c   :  { %17373 = vmatprep.subr.bf16.mxu0 %v24016_v11  ;;  %17701 = vmatprep.subr.bf16.mxu1 %v24019_v29  ;;  %v24085_v11 = vld [vmem:[%s32825_s17 + $0x85c] ss:$28 sps:$4 sm:$0xff]   ;;  %v24080_v29 = vld [vmem:[%s32825_s17 + $0x850] ss:$28 sps:$4 sm:$0xff]  }
 0xb7f   :  { %17374 = vmatpush1.bf16.msra.mxu0 %v24014_v33  ;;  %17702 = vmatpush1.bf16.msra.mxu1 %v24017_v0  ;;  %v24083_v33 = vld [vmem:[%s32825_s17 + $0x858] ss:$28 sps:$4 sm:$0xff]   ;;  %v24088_v0 = vld [vmem:[%s32825_s17 + $0x88c] ss:$28 sps:$4 sm:$0xff]  }
 0xb80   :  { %17375 = vmatprep.subr.bf16.mxu0 %v24022_v22  ;;  %17703 = vmatprep.subr.bf16.mxu1 %v24025_v34  ;;  %v24091_v22 = vld [vmem:[%s32825_s17 + $0x894] ss:$28 sps:$4 sm:$0xff]   ;;  %v24086_v34 = vld [vmem:[%s32825_s17 + $0x888] ss:$28 sps:$4 sm:$0xff]  }
 0xb83   :  { %17376 = vmatpush1.bf16.msra.mxu0 %v24020_v40  ;;  %17704 = vmatpush1.bf16.msra.mxu1 %v24023_v60  ;;  %v24089_v40 = vld [vmem:[%s32825_s17 + $0x890] ss:$28 sps:$4 sm:$0xff]   ;;  %v24094_v60 = vld [vmem:[%s32825_s17 + $0x8c4] ss:$28 sps:$4 sm:$0xff]  }
 0xb84   :  { %17377 = vmatprep.subr.bf16.mxu0 %v24028_v46  ;;  %17705 = vmatprep.subr.bf16.mxu1 %v24031_v7  ;;  %v24097_v46 = vld [vmem:[%s32825_s17 + $0x8cc] ss:$28 sps:$4 sm:$0xff]   ;;  %v24092_v7 = vld [vmem:[%s32825_s17 + $0x8c0] ss:$28 sps:$4 sm:$0xff]  }
 0xb87   :  { %17378 = vmatpush1.bf16.msra.mxu0 %v24026_v41  ;;  %17706 = vmatpush1.bf16.msra.mxu1 %v24029_v42  ;;  %v24095_v41 = vld [vmem:[%s32825_s17 + $0x8c8] ss:$28 sps:$4 sm:$0xff]   ;;  %v24100_v42 = vld [vmem:[%s32825_s17 + $0x8fc] ss:$28 sps:$4 sm:$0xff]  }
 0xb88   :  { %17379 = vmatprep.subr.bf16.mxu0 %v24034_v56  ;;  %17707 = vmatprep.subr.bf16.mxu1 %v24037_v21  ;;  %v24103_v56 = vld [vmem:[%s32825_s17 + $0x904] ss:$28 sps:$4 sm:$0xff]   ;;  %v24098_v21 = vld [vmem:[%s32825_s17 + $0x8f8] ss:$28 sps:$4 sm:$0xff]  }
 0xb8b   :  { %17380 = vmatpush1.bf16.msra.mxu0 %v24032_v50  ;;  %17708 = vmatpush1.bf16.msra.mxu1 %v24035_v35  ;;  %v24101_v50 = vld [vmem:[%s32825_s17 + $0x900] ss:$28 sps:$4 sm:$0xff]   ;;  %v24106_v35 = vld [vmem:[%s32825_s17 + $0x934] ss:$28 sps:$4 sm:$0xff]  }
 0xb8c   :  { %17381 = vmatprep.subr.bf16.mxu0 %v24040_v44  ;;  %17709 = vmatprep.subr.bf16.mxu1 %v24043_v8  ;;  %v24109_v44 = vld [vmem:[%s32825_s17 + $0x93c] ss:$28 sps:$4 sm:$0xff]   ;;  %v24104_v8 = vld [vmem:[%s32825_s17 + $0x930] ss:$28 sps:$4 sm:$0xff]  }
 0xb8f   :  { %17382 = vmatpush1.bf16.msra.mxu0 %v24038_v2  ;;  %17710 = vmatpush1.bf16.msra.mxu1 %v24041_v37  ;;  %v24107_v2 = vld [vmem:[%s32825_s17 + $0x938] ss:$28 sps:$4 sm:$0xff]   ;;  %v24112_v37 = vld [vmem:[%s32825_s17 + $0x96c] ss:$28 sps:$4 sm:$0xff]  }
 0xb90   :  { %17392 = vmatprep.subr.bf16.mxu0 %v24046_v30  ;;  %17720 = vmatprep.subr.bf16.mxu1 %v24049_v18  ;;  %v24110_v30 = vld [vmem:[%s32825_s17 + $0x968] ss:$28 sps:$4 sm:$0xff]   ;;  %v24113_v18 = vld [vmem:[%s32825_s17 + $0x970] ss:$28 sps:$4 sm:$0xff]  }
 0xb92   :  { %17384 = vmatmul.mubr.bf16.vlgmr.msra.gmra.mrb[84].mxu0 %v30693_v20  ;;  %17712 = vmatmul.mubr.bf16.vlgmr.msra.gmra.mrb[92].mxu1 %v30693_v20 }
 0xb93   :  { %17393 = vmatpush1.bf16.msra.mxu0 %v24044_v10  ;;  %17424 = vmatprep.mubr.bf16.mxu0 %v30698_v61  ;;  %v24121_v10 = vld [vmem:[%s32825_s17 + $0x9ac] ss:$28 sps:$4 sm:$0xff]  }
 0xb94   :  { %17721 = vmatpush1.bf16.msra.mxu1 %v24047_v14  ;;  %17752 = vmatprep.mubr.bf16.mxu1 %v30698_v61  ;;  %v24116_v14 = vld [vmem:[%s32825_s17 + $0x9a0] ss:$28 sps:$4 sm:$0xff]  }
 0xb95   :  { %17394 = vmatprep.subr.bf16.mxu0 %v24052_v24  ;;  %17722 = vmatprep.subr.bf16.mxu1 %v24055_v38  ;;  %v24119_v24 = vld [vmem:[%s32825_s17 + $0x9a8] ss:$28 sps:$4 sm:$0xff]   ;;  %v24124_v38 = vld [vmem:[%s32825_s17 + $0x9dc] ss:$28 sps:$4 sm:$0xff]  }
 0xb97   :  { %17395 = vmatpush1.bf16.msra.mxu0 %v24050_v17  ;;  %v24127_v17 = vld [vmem:[%s32825_s17 + $0x9e4] ss:$28 sps:$4 sm:$0xff]  }
 0xb98   :  { %17723 = vmatpush1.bf16.msra.mxu1 %v24053_v12  ;;  %17396 = vmatprep.subr.bf16.mxu0 %v24058_v9  ;;  %v24122_v12 = vld [vmem:[%s32825_s17 + $0x9d8] ss:$28 sps:$4 sm:$0xff]   ;;  %v24125_v9 = vld [vmem:[%s32825_s17 + $0x9e0] ss:$28 sps:$4 sm:$0xff]  }
 0xb99   :  { %17724 = vmatprep.subr.bf16.mxu1 %v24061_v31  ;;  %v24130_v31 = vld [vmem:[%s32825_s17 + $0xa14] ss:$28 sps:$4 sm:$0xff]  }
 0xb9b   :  { %17397 = vmatpush1.bf16.msra.mxu0 %v24056_v54  ;;  %v24133_v54 = vld [vmem:[%s32825_s17 + $0xa1c] ss:$28 sps:$4 sm:$0xff]  }
 0xb9c   :  { %17725 = vmatpush1.bf16.msra.mxu1 %v24059_v49  ;;  %17398 = vmatprep.subr.bf16.mxu0 %v24064_v4  ;;  %v24128_v49 = vld [vmem:[%s32825_s17 + $0xa10] ss:$28 sps:$4 sm:$0xff]   ;;  %v24131_v4 = vld [vmem:[%s32825_s17 + $0xa18] ss:$28 sps:$4 sm:$0xff]  }
 0xb9d   :  { %17726 = vmatprep.subr.bf16.mxu1 %v24067_v28  ;;  %v24136_v28 = vld [vmem:[%s32825_s17 + $0xa4c] ss:$28 sps:$4 sm:$0xff]  }
 0xb9f   :  { %17399 = vmatpush1.bf16.msra.mxu0 %v24062_v36  ;;  %v24139_v36 = vld [vmem:[%s32825_s17 + $0xa54] ss:$28 sps:$4 sm:$0xff]  }
 0xba0   :  { %17727 = vmatpush1.bf16.msra.mxu1 %v24065_v53  ;;  %17400 = vmatprep.subr.bf16.mxu0 %v24070_v57  ;;  %v24134_v53 = vld [vmem:[%s32825_s17 + $0xa48] ss:$28 sps:$4 sm:$0xff]   ;;  %v12272_v57 = vmax.f32 %v30468_v27, 0.0  ;;  %v24140_v27 = vld [vmem:[%s32825_s17 + $0xa80] ss:$28 sps:$4 sm:$0xff]  }
 0xba1   :  { %17728 = vmatprep.subr.bf16.mxu1 %v24073_v6  ;;  %v24137_v6 = vld [vmem:[%s32825_s17 + $0xa50] ss:$28 sps:$4 sm:$0xff]  }
 0xba3   :  { %17401 = vmatpush1.bf16.msra.mxu0 %v24068_v39  ;;  %v24142_v39 = vld [vmem:[%s32825_s17 + $0xa84] ss:$28 sps:$4 sm:$0xff]  }
 0xba4   :  { %17729 = vmatpush1.bf16.msra.mxu1 %v24071_v45  ;;  %17402 = vmatprep.subr.bf16.mxu0 %v24076_v62  ;;  %v24145_v45 = vld [vmem:[%s32825_s17 + $0xa8c] ss:$28 sps:$4 sm:$0xff]   ;;  %v12275_v62 = vmax.f32 %v30440_v26, 0.0  ;;  %v24151_v26 = vld [vmem:[%s32825_s17 + $0xac4] ss:$28 sps:$4 sm:$0xff]  }
 0xba5   :  { %17730 = vmatprep.subr.bf16.mxu1 %v24079_v16  ;;  %v30895_v16 = vpack.c.bf16 %v12272_v57, %v12272_v57  ;;  %v24208_v57 = vld [vmem:[%s32825_s17 + $0xcec] ss:$28 sps:$4 sm:$0xff]  }
 0xba7   :  { %17403 = vmatpush1.bf16.msra.mxu0 %v24074_v23  ;;  %v24143_v23 = vld [vmem:[%s32825_s17 + $0xa88] ss:$28 sps:$4 sm:$0xff]  }
 0xba8   :  { %17731 = vmatpush1.bf16.msra.mxu1 %v24077_v19  ;;  %17404 = vmatprep.subr.bf16.mxu0 %v24082_v55  ;;  %v24148_v19 = vld [vmem:[%s32825_s17 + $0xabc] ss:$28 sps:$4 sm:$0xff]   ;;  %v30903_v55 = vpack.c.bf16 %v12275_v62, %v12275_v62  ;;  %v24214_v62 = vld [vmem:[%s32825_s17 + $0xd24] ss:$28 sps:$4 sm:$0xff]  }
 0xba9   :  { %17732 = vmatprep.subr.bf16.mxu1 %v24085_v11  ;;  %v24146_v11 = vld [vmem:[%s32825_s17 + $0xab8] ss:$28 sps:$4 sm:$0xff]  }
 0xbab   :  { %17405 = vmatpush1.bf16.msra.mxu0 %v24080_v29  ;;  %v24149_v29 = vld [vmem:[%s32825_s17 + $0xac0] ss:$28 sps:$4 sm:$0xff]  }
 0xbac   :  { %17733 = vmatpush1.bf16.msra.mxu1 %v24083_v33  ;;  %17406 = vmatprep.subr.bf16.mxu0 %v24088_v0  ;;  %v24154_v33 = vld [vmem:[%s32825_s17 + $0xaf4] ss:$28 sps:$4 sm:$0xff]   ;;  %v24157_v0 = vld [vmem:[%s32825_s17 + $0xafc] ss:$28 sps:$4 sm:$0xff]  }
 0xbad   :  { %17734 = vmatprep.subr.bf16.mxu1 %v24091_v22  ;;  %v24152_v22 = vld [vmem:[%s32825_s17 + $0xaf0] ss:$28 sps:$4 sm:$0xff]  }
 0xbaf   :  { %17407 = vmatpush1.bf16.msra.mxu0 %v24086_v34  ;;  %v24155_v34 = vld [vmem:[%s32825_s17 + $0xaf8] ss:$28 sps:$4 sm:$0xff]  }
 0xbb0   :  { %17735 = vmatpush1.bf16.msra.mxu1 %v24089_v40  ;;  %17408 = vmatprep.subr.bf16.mxu0 %v24094_v60  ;;  %v24160_v40 = vld [vmem:[%s32825_s17 + $0xb2c] ss:$28 sps:$4 sm:$0xff]   ;;  %v24163_v60 = vld [vmem:[%s32825_s17 + $0xb34] ss:$28 sps:$4 sm:$0xff]  }
 0xbb1   :  { %17736 = vmatprep.subr.bf16.mxu1 %v24097_v46  ;;  %v24158_v46 = vld [vmem:[%s32825_s17 + $0xb28] ss:$28 sps:$4 sm:$0xff]  }
 0xbb3   :  { %17409 = vmatpush1.bf16.msra.mxu0 %v24092_v7  ;;  %v24161_v7 = vld [vmem:[%s32825_s17 + $0xb30] ss:$28 sps:$4 sm:$0xff]  }
 0xbb4   :  { %17737 = vmatpush1.bf16.msra.mxu1 %v24095_v41  ;;  %17410 = vmatprep.subr.bf16.mxu0 %v24100_v42  ;;  %v24166_v41 = vld [vmem:[%s32825_s17 + $0xb64] ss:$28 sps:$4 sm:$0xff]   ;;  %v24169_v42 = vld [vmem:[%s32825_s17 + $0xb6c] ss:$28 sps:$4 sm:$0xff]  }
 0xbb5   :  { %17738 = vmatprep.subr.bf16.mxu1 %v24103_v56  ;;  %v24164_v56 = vld [vmem:[%s32825_s17 + $0xb60] ss:$28 sps:$4 sm:$0xff]  }
 0xbb7   :  { %17411 = vmatpush1.bf16.msra.mxu0 %v24098_v21  ;;  %v24167_v21 = vld [vmem:[%s32825_s17 + $0xb68] ss:$28 sps:$4 sm:$0xff]  }
 0xbb8   :  { %17739 = vmatpush1.bf16.msra.mxu1 %v24101_v50  ;;  %17412 = vmatprep.subr.bf16.mxu0 %v24106_v35  ;;  %v24172_v50 = vld [vmem:[%s32825_s17 + $0xb9c] ss:$28 sps:$4 sm:$0xff]   ;;  %v24175_v35 = vld [vmem:[%s32825_s17 + $0xba4] ss:$28 sps:$4 sm:$0xff]  }
 0xbb9   :  { %17740 = vmatprep.subr.bf16.mxu1 %v24109_v44  ;;  %v24170_v44 = vld [vmem:[%s32825_s17 + $0xb98] ss:$28 sps:$4 sm:$0xff]  }
 0xbbb   :  { %17413 = vmatpush1.bf16.msra.mxu0 %v24104_v8  ;;  %v24173_v8 = vld [vmem:[%s32825_s17 + $0xba0] ss:$28 sps:$4 sm:$0xff]  }
 0xbbc   :  { %17741 = vmatpush1.bf16.msra.mxu1 %v24107_v2  ;;  %17414 = vmatprep.subr.bf16.mxu0 %v24112_v37  ;;  %v24178_v2 = vld [vmem:[%s32825_s17 + $0xbd4] ss:$28 sps:$4 sm:$0xff]   ;;  %v24181_v37 = vld [vmem:[%s32825_s17 + $0xbdc] ss:$28 sps:$4 sm:$0xff]  }
 0xbbd   :  { %17742 = vmatprep.subr.bf16.mxu1 %v24115_v43  ;;  %v24176_v43 = vld [vmem:[%s32825_s17 + $0xbd0] ss:$28 sps:$4 sm:$0xff]  }
 0xbbf   :  { %17415 = vmatpush1.bf16.msra.mxu0 %v24110_v30  ;;  %v24179_v30 = vld [vmem:[%s32825_s17 + $0xbd8] ss:$28 sps:$4 sm:$0xff]  }
 0xbc0   :  { %17743 = vmatpush1.bf16.msra.mxu1 %v24113_v18  ;;  %17416 = vmatprep.subr.bf16.mxu0 %v24118_v52  ;;  %v24184_v18 = vld [vmem:[%s32825_s17 + $0xc0c] ss:$28 sps:$4 sm:$0xff]   ;;  %v24187_v52 = vld [vmem:[%s32825_s17 + $0xc14] ss:$28 sps:$4 sm:$0xff]  }
 0xbc1   :  { %17744 = vmatprep.subr.bf16.mxu1 %v24121_v10  ;;  %v24182_v10 = vld [vmem:[%s32825_s17 + $0xc08] ss:$28 sps:$4 sm:$0xff]  }
 0xbc3   :  { %17417 = vmatpush1.bf16.msra.mxu0 %v24116_v14  ;;  %v24185_v14 = vld [vmem:[%s32825_s17 + $0xc10] ss:$28 sps:$4 sm:$0xff]  }
 0xbc4   :  { %17745 = vmatpush1.bf16.msra.mxu1 %v24119_v24  ;;  %17418 = vmatprep.subr.bf16.mxu0 %v24124_v38  ;;  %v24190_v24 = vld [vmem:[%s32825_s17 + $0xc44] ss:$28 sps:$4 sm:$0xff]   ;;  %v24193_v38 = vld [vmem:[%s32825_s17 + $0xc4c] ss:$28 sps:$4 sm:$0xff]  }
 0xbc5   :  { %17746 = vmatprep.subr.bf16.mxu1 %v24127_v17  ;;  %v24188_v17 = vld [vmem:[%s32825_s17 + $0xc40] ss:$28 sps:$4 sm:$0xff]  }
 0xbc7   :  { %17419 = vmatpush1.bf16.msra.mxu0 %v24122_v12  ;;  %v24191_v12 = vld [vmem:[%s32825_s17 + $0xc48] ss:$28 sps:$4 sm:$0xff]  }
 0xbc8   :  { %17747 = vmatpush1.bf16.msra.mxu1 %v24125_v9  ;;  %17420 = vmatprep.subr.bf16.mxu0 %v24130_v31  ;;  %v24196_v9 = vld [vmem:[%s32825_s17 + $0xc7c] ss:$28 sps:$4 sm:$0xff]   ;;  %v24199_v31 = vld [vmem:[%s32825_s17 + $0xc84] ss:$28 sps:$4 sm:$0xff]  }
 0xbc9   :  { %17748 = vmatprep.subr.bf16.mxu1 %v24133_v54  ;;  %v24194_v54 = vld [vmem:[%s32825_s17 + $0xc78] ss:$28 sps:$4 sm:$0xff]  }
 0xbcb   :  { %17421 = vmatpush1.bf16.msra.mxu0 %v24128_v49  ;;  %v24197_v49 = vld [vmem:[%s32825_s17 + $0xc80] ss:$28 sps:$4 sm:$0xff]  }
 0xbcc   :  { %17749 = vmatpush1.bf16.msra.mxu1 %v24131_v4  ;;  %17422 = vmatprep.subr.bf16.mxu0 %v24136_v28  ;;  %v24202_v4 = vld [vmem:[%s32825_s17 + $0xcb4] ss:$28 sps:$4 sm:$0xff]   ;;  %v24205_v28 = vld [vmem:[%s32825_s17 + $0xcbc] ss:$28 sps:$4 sm:$0xff]  }
 0xbcd   :  { %17750 = vmatprep.subr.bf16.mxu1 %v24139_v36  ;;  %v24200_v36 = vld [vmem:[%s32825_s17 + $0xcb0] ss:$28 sps:$4 sm:$0xff]  }
 0xbcf   :  { %17423 = vmatpush1.bf16.msra.mxu0 %v24134_v53  ;;  %v24203_v53 = vld [vmem:[%s32825_s17 + $0xcb8] ss:$28 sps:$4 sm:$0xff]  }
 0xbd0   :  { %17751 = vmatpush1.bf16.msra.mxu1 %v24137_v6  ;;  %17433 = vmatprep.subr.bf16.mxu0 %v24142_v39  ;;  %v24211_v6 = vld [vmem:[%s32825_s17 + $0xcf4] ss:$28 sps:$4 sm:$0xff]   ;;  %v24206_v39 = vld [vmem:[%s32825_s17 + $0xce8] ss:$28 sps:$4 sm:$0xff]  }
 0xbd1   :  { %17761 = vmatprep.subr.bf16.mxu1 %v24145_v45  ;;  %v24209_v45 = vld [vmem:[%s32825_s17 + $0xcf0] ss:$28 sps:$4 sm:$0xff]  }
 0xbd2   :  { %17425 = vmatmul.mubr.bf16.vlgmr.msra.gmra.mrb[84].mxu0 %v30895_v16 }
 0xbd3   :  { %17753 = vmatmul.mubr.bf16.vlgmr.msra.gmra.mrb[92].mxu1 %v30895_v16  ;;  %17434 = vmatpush1.bf16.msra.mxu0 %v24140_v27  ;;  %v24217_v27 = vld [vmem:[%s32825_s17 + $0xd2c] ss:$28 sps:$4 sm:$0xff]  }
 0xbd4   :  { %17465 = vmatprep.mubr.bf16.mxu0 %v30903_v55  ;;  %17762 = vmatpush1.bf16.msra.mxu1 %v24143_v23  ;;  %v24212_v23 = vld [vmem:[%s32825_s17 + $0xd20] ss:$28 sps:$4 sm:$0xff]  }
 0xbd5   :  { %17793 = vmatprep.mubr.bf16.mxu1 %v30903_v55  ;;  %17435 = vmatprep.subr.bf16.mxu0 %v24148_v19  ;;  %v24215_v19 = vld [vmem:[%s32825_s17 + $0xd28] ss:$28 sps:$4 sm:$0xff]  }
 0xbd6   :  { %17763 = vmatprep.subr.bf16.mxu1 %v24151_v26  ;;  %v24220_v26 = vld [vmem:[%s32825_s17 + $0xd5c] ss:$28 sps:$4 sm:$0xff]  }
 0xbd7   :  { %17436 = vmatpush1.bf16.msra.mxu0 %v24146_v11  ;;  %v24223_v11 = vld [vmem:[%s32825_s17 + $0xd64] ss:$28 sps:$4 sm:$0xff]  }
 0xbd8   :  { %17764 = vmatpush1.bf16.msra.mxu1 %v24149_v29  ;;  %17437 = vmatprep.subr.bf16.mxu0 %v24154_v33  ;;  %v24218_v29 = vld [vmem:[%s32825_s17 + $0xd58] ss:$28 sps:$4 sm:$0xff]   ;;  %v24221_v33 = vld [vmem:[%s32825_s17 + $0xd60] ss:$28 sps:$4 sm:$0xff]  }
 0xbd9   :  { %17765 = vmatprep.subr.bf16.mxu1 %v24157_v0  ;;  %v24226_v0 = vld [vmem:[%s32825_s17 + $0xd94] ss:$28 sps:$4 sm:$0xff]  }
 0xbdb   :  { %17438 = vmatpush1.bf16.msra.mxu0 %v24152_v22  ;;  %v24229_v22 = vld [vmem:[%s32825_s17 + $0xd9c] ss:$28 sps:$4 sm:$0xff]  }
 0xbdc   :  { %17766 = vmatpush1.bf16.msra.mxu1 %v24155_v34  ;;  %17439 = vmatprep.subr.bf16.mxu0 %v24160_v40  ;;  %v24224_v34 = vld [vmem:[%s32825_s17 + $0xd90] ss:$28 sps:$4 sm:$0xff]   ;;  %v24227_v40 = vld [vmem:[%s32825_s17 + $0xd98] ss:$28 sps:$4 sm:$0xff]  }
 0xbdd   :  { %17767 = vmatprep.subr.bf16.mxu1 %v24163_v60  ;;  %v24232_v60 = vld [vmem:[%s32825_s17 + $0xdcc] ss:$28 sps:$4 sm:$0xff]  }
 0xbdf   :  { %17440 = vmatpush1.bf16.msra.mxu0 %v24158_v46  ;;  %v24235_v46 = vld [vmem:[%s32825_s17 + $0xdd4] ss:$28 sps:$4 sm:$0xff]  }
 0xbe0   :  { %17768 = vmatpush1.bf16.msra.mxu1 %v24161_v7  ;;  %17441 = vmatprep.subr.bf16.mxu0 %v24166_v41  ;;  %v24230_v7 = vld [vmem:[%s32825_s17 + $0xdc8] ss:$28 sps:$4 sm:$0xff]   ;;  %v12274_v41 = vmax.f32 %v30436_v63, 0.0  ;;  %v24236_v63 = vld [vmem:[%s32825_s17 + $0xe00] ss:$28 sps:$4 sm:$0xff]  }
 0xbe1   :  { %17769 = vmatprep.subr.bf16.mxu1 %v24169_v42  ;;  %v24233_v42 = vld [vmem:[%s32825_s17 + $0xdd0] ss:$28 sps:$4 sm:$0xff]  }
 0xbe3   :  { %17442 = vmatpush1.bf16.msra.mxu0 %v24164_v56  ;;  %v24238_v56 = vld [vmem:[%s32825_s17 + $0xe04] ss:$28 sps:$4 sm:$0xff]  }
 0xbe4   :  { %17770 = vmatpush1.bf16.msra.mxu1 %v24167_v21  ;;  %17443 = vmatprep.subr.bf16.mxu0 %v24172_v50  ;;  %v24241_v21 = vld [vmem:[%s32825_s17 + $0xe0c] ss:$28 sps:$4 sm:$0xff]   ;;  %v12277_v50 = vmax.f32 %v30498_v59, 0.0  ;;  %v24247_v59 = vld [vmem:[%s32825_s17 + $0xe44] ss:$28 sps:$4 sm:$0xff]  }
 0xbe5   :  { %17771 = vmatprep.subr.bf16.mxu1 %v24175_v35  ;;  %v31097_v35 = vpack.c.bf16 %v12274_v41, %v12274_v41  ;;  %v24304_v41 = vld [vmem:[%s32825_s17 + $0x106c] ss:$28 sps:$4 sm:$0xff]  }
 0xbe7   :  { %17444 = vmatpush1.bf16.msra.mxu0 %v24170_v44  ;;  %v24239_v44 = vld [vmem:[%s32825_s17 + $0xe08] ss:$28 sps:$4 sm:$0xff]  }
 0xbe8   :  { %17772 = vmatpush1.bf16.msra.mxu1 %v24173_v8  ;;  %17445 = vmatprep.subr.bf16.mxu0 %v24178_v2  ;;  %v24244_v8 = vld [vmem:[%s32825_s17 + $0xe3c] ss:$28 sps:$4 sm:$0xff]   ;;  %v31105_v2 = vpack.c.bf16 %v12277_v50, %v12277_v50  ;;  %v24310_v50 = vld [vmem:[%s32825_s17 + $0x10a4] ss:$28 sps:$4 sm:$0xff]  }
 0xbe9   :  { %17773 = vmatprep.subr.bf16.mxu1 %v24181_v37  ;;  %v24242_v37 = vld [vmem:[%s32825_s17 + $0xe38] ss:$28 sps:$4 sm:$0xff]  }
 0xbeb   :  { %17446 = vmatpush1.bf16.msra.mxu0 %v24176_v43  ;;  %v24245_v43 = vld [vmem:[%s32825_s17 + $0xe40] ss:$28 sps:$4 sm:$0xff]  }
 0xbec   :  { %17774 = vmatpush1.bf16.msra.mxu1 %v24179_v30  ;;  %17447 = vmatprep.subr.bf16.mxu0 %v24184_v18  ;;  %v24250_v30 = vld [vmem:[%s32825_s17 + $0xe74] ss:$28 sps:$4 sm:$0xff]   ;;  %v24253_v18 = vld [vmem:[%s32825_s17 + $0xe7c] ss:$28 sps:$4 sm:$0xff]  }
 0xbed   :  { %17775 = vmatprep.subr.bf16.mxu1 %v24187_v52  ;;  %v24248_v52 = vld [vmem:[%s32825_s17 + $0xe70] ss:$28 sps:$4 sm:$0xff]  }
 0xbef   :  { %17448 = vmatpush1.bf16.msra.mxu0 %v24182_v10  ;;  %v24251_v10 = vld [vmem:[%s32825_s17 + $0xe78] ss:$28 sps:$4 sm:$0xff]  }
 0xbf0   :  { %17776 = vmatpush1.bf16.msra.mxu1 %v24185_v14  ;;  %17449 = vmatprep.subr.bf16.mxu0 %v24190_v24  ;;  %v24256_v14 = vld [vmem:[%s32825_s17 + $0xeac] ss:$28 sps:$4 sm:$0xff]   ;;  %v24259_v24 = vld [vmem:[%s32825_s17 + $0xeb4] ss:$28 sps:$4 sm:$0xff]  }
 0xbf1   :  { %17777 = vmatprep.subr.bf16.mxu1 %v24193_v38  ;;  %v24254_v38 = vld [vmem:[%s32825_s17 + $0xea8] ss:$28 sps:$4 sm:$0xff]  }
 0xbf3   :  { %17450 = vmatpush1.bf16.msra.mxu0 %v24188_v17  ;;  %v24257_v17 = vld [vmem:[%s32825_s17 + $0xeb0] ss:$28 sps:$4 sm:$0xff]  }
 0xbf4   :  { %17778 = vmatpush1.bf16.msra.mxu1 %v24191_v12  ;;  %17451 = vmatprep.subr.bf16.mxu0 %v24196_v9  ;;  %v24262_v12 = vld [vmem:[%s32825_s17 + $0xee4] ss:$28 sps:$4 sm:$0xff]   ;;  %v24265_v9 = vld [vmem:[%s32825_s17 + $0xeec] ss:$28 sps:$4 sm:$0xff]  }
 0xbf5   :  { %17779 = vmatprep.subr.bf16.mxu1 %v24199_v31  ;;  %v24260_v31 = vld [vmem:[%s32825_s17 + $0xee0] ss:$28 sps:$4 sm:$0xff]  }
 0xbf7   :  { %17452 = vmatpush1.bf16.msra.mxu0 %v24194_v54  ;;  %v24263_v54 = vld [vmem:[%s32825_s17 + $0xee8] ss:$28 sps:$4 sm:$0xff]  }
 0xbf8   :  { %17780 = vmatpush1.bf16.msra.mxu1 %v24197_v49  ;;  %17453 = vmatprep.subr.bf16.mxu0 %v24202_v4  ;;  %v24268_v49 = vld [vmem:[%s32825_s17 + $0xf1c] ss:$28 sps:$4 sm:$0xff]   ;;  %v24271_v4 = vld [vmem:[%s32825_s17 + $0xf24] ss:$28 sps:$4 sm:$0xff]  }
 0xbf9   :  { %17781 = vmatprep.subr.bf16.mxu1 %v24205_v28  ;;  %v24266_v28 = vld [vmem:[%s32825_s17 + $0xf18] ss:$28 sps:$4 sm:$0xff]  }
 0xbfb   :  { %17454 = vmatpush1.bf16.msra.mxu0 %v24200_v36  ;;  %v24269_v36 = vld [vmem:[%s32825_s17 + $0xf20] ss:$28 sps:$4 sm:$0xff]  }
 0xbfc   :  { %17782 = vmatpush1.bf16.msra.mxu1 %v24203_v53  ;;  %17455 = vmatprep.subr.bf16.mxu0 %v24208_v57  ;;  %v24274_v53 = vld [vmem:[%s32825_s17 + $0xf54] ss:$28 sps:$4 sm:$0xff]   ;;  %v24277_v57 = vld [vmem:[%s32825_s17 + $0xf5c] ss:$28 sps:$4 sm:$0xff]  }
 0xbfd   :  { %17783 = vmatprep.subr.bf16.mxu1 %v24211_v6  ;;  %v24272_v6 = vld [vmem:[%s32825_s17 + $0xf50] ss:$28 sps:$4 sm:$0xff]  }
 0xbff   :  { %17456 = vmatpush1.bf16.msra.mxu0 %v24206_v39  ;;  %v24275_v39 = vld [vmem:[%s32825_s17 + $0xf58] ss:$28 sps:$4 sm:$0xff]  }
 0xc00   :  { %17784 = vmatpush1.bf16.msra.mxu1 %v24209_v45  ;;  %17457 = vmatprep.subr.bf16.mxu0 %v24214_v62  ;;  %v24280_v45 = vld [vmem:[%s32825_s17 + $0xf8c] ss:$28 sps:$4 sm:$0xff]   ;;  %v24283_v62 = vld [vmem:[%s32825_s17 + $0xf94] ss:$28 sps:$4 sm:$0xff]  }
 0xc01   :  { %17785 = vmatprep.subr.bf16.mxu1 %v24217_v27  ;;  %v24278_v27 = vld [vmem:[%s32825_s17 + $0xf88] ss:$28 sps:$4 sm:$0xff]  }
 0xc03   :  { %17458 = vmatpush1.bf16.msra.mxu0 %v24212_v23  ;;  %v24281_v23 = vld [vmem:[%s32825_s17 + $0xf90] ss:$28 sps:$4 sm:$0xff]  }
 0xc04   :  { %17786 = vmatpush1.bf16.msra.mxu1 %v24215_v19  ;;  %17459 = vmatprep.subr.bf16.mxu0 %v24220_v26  ;;  %v24286_v19 = vld [vmem:[%s32825_s17 + $0xfc4] ss:$28 sps:$4 sm:$0xff]   ;;  %v24289_v26 = vld [vmem:[%s32825_s17 + $0xfcc] ss:$28 sps:$4 sm:$0xff]  }
 0xc05   :  { %17787 = vmatprep.subr.bf16.mxu1 %v24223_v11  ;;  %v24284_v11 = vld [vmem:[%s32825_s17 + $0xfc0] ss:$28 sps:$4 sm:$0xff]  }
 0xc07   :  { %17460 = vmatpush1.bf16.msra.mxu0 %v24218_v29  ;;  %v24287_v29 = vld [vmem:[%s32825_s17 + $0xfc8] ss:$28 sps:$4 sm:$0xff]  }
 0xc08   :  { %17788 = vmatpush1.bf16.msra.mxu1 %v24221_v33  ;;  %17461 = vmatprep.subr.bf16.mxu0 %v24226_v0  ;;  %v24292_v33 = vld [vmem:[%s32825_s17 + $0xffc] ss:$28 sps:$4 sm:$0xff]   ;;  %v24295_v0 = vld [vmem:[%s32825_s17 + $0x1004] ss:$28 sps:$4 sm:$0xff]  }
 0xc09   :  { %17789 = vmatprep.subr.bf16.mxu1 %v24229_v22  ;;  %v24290_v22 = vld [vmem:[%s32825_s17 + $0xff8] ss:$28 sps:$4 sm:$0xff]  }
 0xc0b   :  { %17462 = vmatpush1.bf16.msra.mxu0 %v24224_v34  ;;  %v24293_v34 = vld [vmem:[%s32825_s17 + $0x1000] ss:$28 sps:$4 sm:$0xff]  }
 0xc0c   :  { %17790 = vmatpush1.bf16.msra.mxu1 %v24227_v40  ;;  %17463 = vmatprep.subr.bf16.mxu0 %v24232_v60  ;;  %v24298_v40 = vld [vmem:[%s32825_s17 + $0x1034] ss:$28 sps:$4 sm:$0xff]   ;;  %v24301_v60 = vld [vmem:[%s32825_s17 + $0x103c] ss:$28 sps:$4 sm:$0xff]  }
 0xc0d   :  { %17791 = vmatprep.subr.bf16.mxu1 %v24235_v46  ;;  %v24296_v46 = vld [vmem:[%s32825_s17 + $0x1030] ss:$28 sps:$4 sm:$0xff]  }
 0xc0f   :  { %17464 = vmatpush1.bf16.msra.mxu0 %v24230_v7  ;;  %v24299_v7 = vld [vmem:[%s32825_s17 + $0x1038] ss:$28 sps:$4 sm:$0xff]  }
 0xc10   :  { %17792 = vmatpush1.bf16.msra.mxu1 %v24233_v42  ;;  %17474 = vmatprep.subr.bf16.mxu0 %v24238_v56  ;;  %v24307_v42 = vld [vmem:[%s32825_s17 + $0x1074] ss:$28 sps:$4 sm:$0xff]   ;;  %v24302_v56 = vld [vmem:[%s32825_s17 + $0x1068] ss:$28 sps:$4 sm:$0xff]  }
 0xc11   :  { %17802 = vmatprep.subr.bf16.mxu1 %v24241_v21  ;;  %v24305_v21 = vld [vmem:[%s32825_s17 + $0x1070] ss:$28 sps:$4 sm:$0xff]  }
 0xc12   :  { %17466 = vmatmul.mubr.bf16.vlgmr.msra.gmra.mrb[84].mxu0 %v31097_v35 }
 0xc13   :  { %17794 = vmatmul.mubr.bf16.vlgmr.msra.gmra.mrb[92].mxu1 %v31097_v35  ;;  %17475 = vmatpush1.bf16.msra.mxu0 %v24236_v63  ;;  %v24313_v63 = vld [vmem:[%s32825_s17 + $0x10ac] ss:$28 sps:$4 sm:$0xff]  }
 0xc14   :  { %17506 = vmatprep.mubr.bf16.mxu0 %v31105_v2  ;;  %17803 = vmatpush1.bf16.msra.mxu1 %v24239_v44  ;;  %v24308_v44 = vld [vmem:[%s32825_s17 + $0x10a0] ss:$28 sps:$4 sm:$0xff]  }
 0xc15   :  { %17834 = vmatprep.mubr.bf16.mxu1 %v31105_v2  ;;  %17476 = vmatprep.subr.bf16.mxu0 %v24244_v8  ;;  %v24311_v8 = vld [vmem:[%s32825_s17 + $0x10a8] ss:$28 sps:$4 sm:$0xff]  }
 0xc16   :  { %17804 = vmatprep.subr.bf16.mxu1 %v24247_v59  ;;  %v24316_v59 = vld [vmem:[%s32825_s17 + $0x10dc] ss:$28 sps:$4 sm:$0xff]  }
 0xc17   :  { %17477 = vmatpush1.bf16.msra.mxu0 %v24242_v37  ;;  %v24319_v37 = vld [vmem:[%s32825_s17 + $0x10e4] ss:$28 sps:$4 sm:$0xff]  }
 0xc18   :  { %17805 = vmatpush1.bf16.msra.mxu1 %v24245_v43  ;;  %17478 = vmatprep.subr.bf16.mxu0 %v24250_v30  ;;  %v24314_v43 = vld [vmem:[%s32825_s17 + $0x10d8] ss:$28 sps:$4 sm:$0xff]   ;;  %v24317_v30 = vld [vmem:[%s32825_s17 + $0x10e0] ss:$28 sps:$4 sm:$0xff]  }
 0xc19   :  { %17806 = vmatprep.subr.bf16.mxu1 %v24253_v18  ;;  %v24322_v18 = vld [vmem:[%s32825_s17 + $0x1114] ss:$28 sps:$4 sm:$0xff]  }
 0xc1b   :  { %17479 = vmatpush1.bf16.msra.mxu0 %v24248_v52  ;;  %v24325_v52 = vld [vmem:[%s32825_s17 + $0x111c] ss:$28 sps:$4 sm:$0xff]  }
 0xc1c   :  { %17807 = vmatpush1.bf16.msra.mxu1 %v24251_v10  ;;  %17480 = vmatprep.subr.bf16.mxu0 %v24256_v14  ;;  %v24320_v10 = vld [vmem:[%s32825_s17 + $0x1110] ss:$28 sps:$4 sm:$0xff]   ;;  %v24323_v14 = vld [vmem:[%s32825_s17 + $0x1118] ss:$28 sps:$4 sm:$0xff]  }
 0xc1d   :  { %17808 = vmatprep.subr.bf16.mxu1 %v24259_v24  ;;  %v24328_v24 = vld [vmem:[%s32825_s17 + $0x114c] ss:$28 sps:$4 sm:$0xff]  }
 0xc1f   :  { %17481 = vmatpush1.bf16.msra.mxu0 %v24254_v38  ;;  %v24331_v38 = vld [vmem:[%s32825_s17 + $0x1154] ss:$28 sps:$4 sm:$0xff]  }
 0xc20   :  { %17809 = vmatpush1.bf16.msra.mxu1 %v24257_v17  ;;  %17482 = vmatprep.subr.bf16.mxu0 %v24262_v12  ;;  %v24326_v17 = vld [vmem:[%s32825_s17 + $0x1148] ss:$28 sps:$4 sm:$0xff]   ;;  %v12276_v12 = vmax.f32 %v30494_v58, 0.0  ;;  %v24332_v58 = vld [vmem:[%s32825_s17 + $0x1180] ss:$28 sps:$4 sm:$0xff]  }
 0xc21   :  { %17810 = vmatprep.subr.bf16.mxu1 %v24265_v9  ;;  %v24329_v9 = vld [vmem:[%s32825_s17 + $0x1150] ss:$28 sps:$4 sm:$0xff]  }
 0xc23   :  { %17483 = vmatpush1.bf16.msra.mxu0 %v24260_v31  ;;  %v24334_v31 = vld [vmem:[%s32825_s17 + $0x1184] ss:$28 sps:$4 sm:$0xff]  }
 0xc24   :  { %17811 = vmatpush1.bf16.msra.mxu1 %v24263_v54  ;;  %17484 = vmatprep.subr.bf16.mxu0 %v24268_v49  ;;  %v24337_v54 = vld [vmem:[%s32825_s17 + $0x118c] ss:$28 sps:$4 sm:$0xff]   ;;  %v12279_v49 = vmax.f32 %v30456_v48, 0.0  ;;  %v24343_v48 = vld [vmem:[%s32825_s17 + $0x11c4] ss:$28 sps:$4 sm:$0xff]  }
 0xc25   :  { %17812 = vmatprep.subr.bf16.mxu1 %v24271_v4  ;;  %v31299_v4 = vpack.c.bf16 %v12276_v12, %v12276_v12  ;;  %v24400_v12 = vld [vmem:[%s32825_s17 + $0x13ec] ss:$28 sps:$4 sm:$0xff]  }
 0xc27   :  { %17485 = vmatpush1.bf16.msra.mxu0 %v24266_v28  ;;  %v24335_v28 = vld [vmem:[%s32825_s17 + $0x1188] ss:$28 sps:$4 sm:$0xff]  }
 0xc28   :  { %17813 = vmatpush1.bf16.msra.mxu1 %v24269_v36  ;;  %17486 = vmatprep.subr.bf16.mxu0 %v24274_v53  ;;  %v24340_v36 = vld [vmem:[%s32825_s17 + $0x11bc] ss:$28 sps:$4 sm:$0xff]   ;;  %v31307_v53 = vpack.c.bf16 %v12279_v49, %v12279_v49  ;;  %v24406_v49 = vld [vmem:[%s32825_s17 + $0x1424] ss:$28 sps:$4 sm:$0xff]  }
 0xc29   :  { %17814 = vmatprep.subr.bf16.mxu1 %v24277_v57  ;;  %v24338_v57 = vld [vmem:[%s32825_s17 + $0x11b8] ss:$28 sps:$4 sm:$0xff]  }
 0xc2b   :  { %17487 = vmatpush1.bf16.msra.mxu0 %v24272_v6  ;;  %v24341_v6 = vld [vmem:[%s32825_s17 + $0x11c0] ss:$28 sps:$4 sm:$0xff]  }
 0xc2c   :  { %17815 = vmatpush1.bf16.msra.mxu1 %v24275_v39  ;;  %17488 = vmatprep.subr.bf16.mxu0 %v24280_v45  ;;  %v24346_v39 = vld [vmem:[%s32825_s17 + $0x11f4] ss:$28 sps:$4 sm:$0xff]   ;;  %v24349_v45 = vld [vmem:[%s32825_s17 + $0x11fc] ss:$28 sps:$4 sm:$0xff]  }
 0xc2d   :  { %17816 = vmatprep.subr.bf16.mxu1 %v24283_v62  ;;  %v24344_v62 = vld [vmem:[%s32825_s17 + $0x11f0] ss:$28 sps:$4 sm:$0xff]  }
 0xc2f   :  { %17489 = vmatpush1.bf16.msra.mxu0 %v24278_v27  ;;  %v24347_v27 = vld [vmem:[%s32825_s17 + $0x11f8] ss:$28 sps:$4 sm:$0xff]  }
 0xc30   :  { %17817 = vmatpush1.bf16.msra.mxu1 %v24281_v23  ;;  %17490 = vmatprep.subr.bf16.mxu0 %v24286_v19  ;;  %v24352_v23 = vld [vmem:[%s32825_s17 + $0x122c] ss:$28 sps:$4 sm:$0xff]   ;;  %v24355_v19 = vld [vmem:[%s32825_s17 + $0x1234] ss:$28 sps:$4 sm:$0xff]  }
 0xc31   :  { %17818 = vmatprep.subr.bf16.mxu1 %v24289_v26  ;;  %v24350_v26 = vld [vmem:[%s32825_s17 + $0x1228] ss:$28 sps:$4 sm:$0xff]  }
 0xc33   :  { %17491 = vmatpush1.bf16.msra.mxu0 %v24284_v11  ;;  %v24353_v11 = vld [vmem:[%s32825_s17 + $0x1230] ss:$28 sps:$4 sm:$0xff]  }
 0xc34   :  { %17819 = vmatpush1.bf16.msra.mxu1 %v24287_v29  ;;  %17492 = vmatprep.subr.bf16.mxu0 %v24292_v33  ;;  %v24358_v29 = vld [vmem:[%s32825_s17 + $0x1264] ss:$28 sps:$4 sm:$0xff]   ;;  %v24361_v33 = vld [vmem:[%s32825_s17 + $0x126c] ss:$28 sps:$4 sm:$0xff]  }
 0xc35   :  { %17820 = vmatprep.subr.bf16.mxu1 %v24295_v0  ;;  %v24356_v0 = vld [vmem:[%s32825_s17 + $0x1260] ss:$28 sps:$4 sm:$0xff]  }
 0xc37   :  { %17493 = vmatpush1.bf16.msra.mxu0 %v24290_v22  ;;  %v24359_v22 = vld [vmem:[%s32825_s17 + $0x1268] ss:$28 sps:$4 sm:$0xff]  }
 0xc38   :  { %17821 = vmatpush1.bf16.msra.mxu1 %v24293_v34  ;;  %17494 = vmatprep.subr.bf16.mxu0 %v24298_v40  ;;  %v24364_v34 = vld [vmem:[%s32825_s17 + $0x129c] ss:$28 sps:$4 sm:$0xff]   ;;  %v24367_v40 = vld [vmem:[%s32825_s17 + $0x12a4] ss:$28 sps:$4 sm:$0xff]  }
 0xc39   :  { %17822 = vmatprep.subr.bf16.mxu1 %v24301_v60  ;;  %v24362_v60 = vld [vmem:[%s32825_s17 + $0x1298] ss:$28 sps:$4 sm:$0xff]  }
 0xc3b   :  { %17495 = vmatpush1.bf16.msra.mxu0 %v24296_v46  ;;  %v24365_v46 = vld [vmem:[%s32825_s17 + $0x12a0] ss:$28 sps:$4 sm:$0xff]  }
 0xc3c   :  { %17823 = vmatpush1.bf16.msra.mxu1 %v24299_v7  ;;  %17496 = vmatprep.subr.bf16.mxu0 %v24304_v41  ;;  %v24370_v7 = vld [vmem:[%s32825_s17 + $0x12d4] ss:$28 sps:$4 sm:$0xff]   ;;  %v24373_v41 = vld [vmem:[%s32825_s17 + $0x12dc] ss:$28 sps:$4 sm:$0xff]  }
 0xc3d   :  { %17824 = vmatprep.subr.bf16.mxu1 %v24307_v42  ;;  %v24368_v42 = vld [vmem:[%s32825_s17 + $0x12d0] ss:$28 sps:$4 sm:$0xff]  }
 0xc3f   :  { %17497 = vmatpush1.bf16.msra.mxu0 %v24302_v56  ;;  %v24371_v56 = vld [vmem:[%s32825_s17 + $0x12d8] ss:$28 sps:$4 sm:$0xff]  }
 0xc40   :  { %17825 = vmatpush1.bf16.msra.mxu1 %v24305_v21  ;;  %17498 = vmatprep.subr.bf16.mxu0 %v24310_v50  ;;  %v24376_v21 = vld [vmem:[%s32825_s17 + $0x130c] ss:$28 sps:$4 sm:$0xff]   ;;  %v24379_v50 = vld [vmem:[%s32825_s17 + $0x1314] ss:$28 sps:$4 sm:$0xff]  }
 0xc41   :  { %17826 = vmatprep.subr.bf16.mxu1 %v24313_v63  ;;  %v24374_v63 = vld [vmem:[%s32825_s17 + $0x1308] ss:$28 sps:$4 sm:$0xff]  }
 0xc43   :  { %17499 = vmatpush1.bf16.msra.mxu0 %v24308_v44  ;;  %v24377_v44 = vld [vmem:[%s32825_s17 + $0x1310] ss:$28 sps:$4 sm:$0xff]  }
 0xc44   :  { %17827 = vmatpush1.bf16.msra.mxu1 %v24311_v8  ;;  %17500 = vmatprep.subr.bf16.mxu0 %v24316_v59  ;;  %v24382_v8 = vld [vmem:[%s32825_s17 + $0x1344] ss:$28 sps:$4 sm:$0xff]   ;;  %v24385_v59 = vld [vmem:[%s32825_s17 + $0x134c] ss:$28 sps:$4 sm:$0xff]  }
 0xc45   :  { %17828 = vmatprep.subr.bf16.mxu1 %v24319_v37  ;;  %v24380_v37 = vld [vmem:[%s32825_s17 + $0x1340] ss:$28 sps:$4 sm:$0xff]  }
 0xc47   :  { %17501 = vmatpush1.bf16.msra.mxu0 %v24314_v43  ;;  %v24383_v43 = vld [vmem:[%s32825_s17 + $0x1348] ss:$28 sps:$4 sm:$0xff]  }
 0xc48   :  { %17829 = vmatpush1.bf16.msra.mxu1 %v24317_v30  ;;  %17502 = vmatprep.subr.bf16.mxu0 %v24322_v18  ;;  %v24388_v30 = vld [vmem:[%s32825_s17 + $0x137c] ss:$28 sps:$4 sm:$0xff]   ;;  %v24391_v18 = vld [vmem:[%s32825_s17 + $0x1384] ss:$28 sps:$4 sm:$0xff]  }
 0xc49   :  { %17830 = vmatprep.subr.bf16.mxu1 %v24325_v52  ;;  %v24386_v52 = vld [vmem:[%s32825_s17 + $0x1378] ss:$28 sps:$4 sm:$0xff]  }
 0xc4b   :  { %17503 = vmatpush1.bf16.msra.mxu0 %v24320_v10  ;;  %v24389_v10 = vld [vmem:[%s32825_s17 + $0x1380] ss:$28 sps:$4 sm:$0xff]  }
 0xc4c   :  { %17831 = vmatpush1.bf16.msra.mxu1 %v24323_v14  ;;  %17504 = vmatprep.subr.bf16.mxu0 %v24328_v24  ;;  %v24394_v14 = vld [vmem:[%s32825_s17 + $0x13b4] ss:$28 sps:$4 sm:$0xff]   ;;  %v24397_v24 = vld [vmem:[%s32825_s17 + $0x13bc] ss:$28 sps:$4 sm:$0xff]  }
 0xc4d   :  { %17832 = vmatprep.subr.bf16.mxu1 %v24331_v38  ;;  %v24392_v38 = vld [vmem:[%s32825_s17 + $0x13b0] ss:$28 sps:$4 sm:$0xff]  }
 0xc4f   :  { %17505 = vmatpush1.bf16.msra.mxu0 %v24326_v17  ;;  %v24395_v17 = vld [vmem:[%s32825_s17 + $0x13b8] ss:$28 sps:$4 sm:$0xff]  }
 0xc50   :  { %17833 = vmatpush1.bf16.msra.mxu1 %v24329_v9  ;;  %17515 = vmatprep.subr.bf16.mxu0 %v24334_v31  ;;  %v24403_v9 = vld [vmem:[%s32825_s17 + $0x13f4] ss:$28 sps:$4 sm:$0xff]   ;;  %v24398_v31 = vld [vmem:[%s32825_s17 + $0x13e8] ss:$28 sps:$4 sm:$0xff]  }
 0xc51   :  { %17843 = vmatprep.subr.bf16.mxu1 %v24337_v54  ;;  %v24401_v54 = vld [vmem:[%s32825_s17 + $0x13f0] ss:$28 sps:$4 sm:$0xff]  }
 0xc52   :  { %17507 = vmatmul.mubr.bf16.vlgmr.msra.gmra.mrb[84].mxu0 %v31299_v4 }
 0xc53   :  { %17835 = vmatmul.mubr.bf16.vlgmr.msra.gmra.mrb[92].mxu1 %v31299_v4  ;;  %17516 = vmatpush1.bf16.msra.mxu0 %v24332_v58  ;;  %v24409_v58 = vld [vmem:[%s32825_s17 + $0x142c] ss:$28 sps:$4 sm:$0xff]  }
 0xc54   :  { %17547 = vmatprep.mubr.bf16.mxu0 %v31307_v53  ;;  %17844 = vmatpush1.bf16.msra.mxu1 %v24335_v28  ;;  %v24404_v28 = vld [vmem:[%s32825_s17 + $0x1420] ss:$28 sps:$4 sm:$0xff]  }
 0xc55   :  { %17875 = vmatprep.mubr.bf16.mxu1 %v31307_v53  ;;  %17517 = vmatprep.subr.bf16.mxu0 %v24340_v36  ;;  %v24407_v36 = vld [vmem:[%s32825_s17 + $0x1428] ss:$28 sps:$4 sm:$0xff]  }
 0xc56   :  { %17845 = vmatprep.subr.bf16.mxu1 %v24343_v48  ;;  %v24412_v48 = vld [vmem:[%s32825_s17 + $0x145c] ss:$28 sps:$4 sm:$0xff]  }
 0xc57   :  { %17518 = vmatpush1.bf16.msra.mxu0 %v24338_v57  ;;  %v24415_v57 = vld [vmem:[%s32825_s17 + $0x1464] ss:$28 sps:$4 sm:$0xff]  }
 0xc58   :  { %17846 = vmatpush1.bf16.msra.mxu1 %v24341_v6  ;;  %17519 = vmatprep.subr.bf16.mxu0 %v24346_v39  ;;  %v24410_v6 = vld [vmem:[%s32825_s17 + $0x1458] ss:$28 sps:$4 sm:$0xff]   ;;  %v24413_v39 = vld [vmem:[%s32825_s17 + $0x1460] ss:$28 sps:$4 sm:$0xff]  }
 0xc59   :  { %17847 = vmatprep.subr.bf16.mxu1 %v24349_v45  ;;  %v24418_v45 = vld [vmem:[%s32825_s17 + $0x1494] ss:$28 sps:$4 sm:$0xff]  }
 0xc5b   :  { %17520 = vmatpush1.bf16.msra.mxu0 %v24344_v62  ;;  %v24421_v62 = vld [vmem:[%s32825_s17 + $0x149c] ss:$28 sps:$4 sm:$0xff]  }
 0xc5c   :  { %17848 = vmatpush1.bf16.msra.mxu1 %v24347_v27  ;;  %17521 = vmatprep.subr.bf16.mxu0 %v24352_v23  ;;  %v24416_v27 = vld [vmem:[%s32825_s17 + $0x1490] ss:$28 sps:$4 sm:$0xff]   ;;  %v24419_v23 = vld [vmem:[%s32825_s17 + $0x1498] ss:$28 sps:$4 sm:$0xff]  }
 0xc5d   :  { %17849 = vmatprep.subr.bf16.mxu1 %v24355_v19  ;;  %v24424_v19 = vld [vmem:[%s32825_s17 + $0x14cc] ss:$28 sps:$4 sm:$0xff]  }
 0xc5f   :  { %17522 = vmatpush1.bf16.msra.mxu0 %v24350_v26  ;;  %v24427_v26 = vld [vmem:[%s32825_s17 + $0x14d4] ss:$28 sps:$4 sm:$0xff]  }
 0xc60   :  { %17850 = vmatpush1.bf16.msra.mxu1 %v24353_v11  ;;  %17523 = vmatprep.subr.bf16.mxu0 %v24358_v29  ;;  %v24422_v11 = vld [vmem:[%s32825_s17 + $0x14c8] ss:$28 sps:$4 sm:$0xff]   ;;  %v12278_v29 = vmax.f32 %v30453_v47, 0.0  ;;  %v24428_v47 = vld [vmem:[%s32825_s17 + $0x1500] ss:$28 sps:$4 sm:$0xff]  }
 0xc61   :  { %17851 = vmatprep.subr.bf16.mxu1 %v24361_v33  ;;  %v24425_v33 = vld [vmem:[%s32825_s17 + $0x14d0] ss:$28 sps:$4 sm:$0xff]  }
 0xc63   :  { %17524 = vmatpush1.bf16.msra.mxu0 %v24356_v0  ;;  %v24430_v0 = vld [vmem:[%s32825_s17 + $0x1504] ss:$28 sps:$4 sm:$0xff]  }
 0xc64   :  { %17852 = vmatpush1.bf16.msra.mxu1 %v24359_v22  ;;  %17525 = vmatprep.subr.bf16.mxu0 %v24364_v34  ;;  %v24433_v22 = vld [vmem:[%s32825_s17 + $0x150c] ss:$28 sps:$4 sm:$0xff]   ;;  %v12281_v34 = vmax.f32 %v30518_v5, 0.0  ;;  %v24439_v5 = vld [vmem:[%s32825_s17 + $0x1544] ss:$28 sps:$4 sm:$0xff]  }
 0xc65   :  { %17853 = vmatprep.subr.bf16.mxu1 %v24367_v40  ;;  %v31501_v40 = vpack.c.bf16 %v12278_v29, %v12278_v29  ;;  %v24496_v29 = vld [vmem:[%s32825_s17 + $0x176c] ss:$28 sps:$4 sm:$0xff]  }
 0xc67   :  { %17526 = vmatpush1.bf16.msra.mxu0 %v24362_v60  ;;  %v24431_v60 = vld [vmem:[%s32825_s17 + $0x1508] ss:$28 sps:$4 sm:$0xff]  }
 0xc68   :  { %17854 = vmatpush1.bf16.msra.mxu1 %v24365_v46  ;;  %17527 = vmatprep.subr.bf16.mxu0 %v24370_v7  ;;  %v24436_v46 = vld [vmem:[%s32825_s17 + $0x153c] ss:$28 sps:$4 sm:$0xff]   ;;  %v31509_v7 = vpack.c.bf16 %v12281_v34, %v12281_v34  ;;  %v24502_v34 = vld [vmem:[%s32825_s17 + $0x17a4] ss:$28 sps:$4 sm:$0xff]  }
 0xc69   :  { %17855 = vmatprep.subr.bf16.mxu1 %v24373_v41  ;;  %v24434_v41 = vld [vmem:[%s32825_s17 + $0x1538] ss:$28 sps:$4 sm:$0xff]  }
 0xc6b   :  { %17528 = vmatpush1.bf16.msra.mxu0 %v24368_v42  ;;  %v24437_v42 = vld [vmem:[%s32825_s17 + $0x1540] ss:$28 sps:$4 sm:$0xff]  }
 0xc6c   :  { %17856 = vmatpush1.bf16.msra.mxu1 %v24371_v56  ;;  %17529 = vmatprep.subr.bf16.mxu0 %v24376_v21  ;;  %v24442_v56 = vld [vmem:[%s32825_s17 + $0x1574] ss:$28 sps:$4 sm:$0xff]   ;;  %v24445_v21 = vld [vmem:[%s32825_s17 + $0x157c] ss:$28 sps:$4 sm:$0xff]  }
 0xc6d   :  { %17857 = vmatprep.subr.bf16.mxu1 %v24379_v50  ;;  %v24440_v50 = vld [vmem:[%s32825_s17 + $0x1570] ss:$28 sps:$4 sm:$0xff]  }
 0xc6f   :  { %17530 = vmatpush1.bf16.msra.mxu0 %v24374_v63  ;;  %v24443_v63 = vld [vmem:[%s32825_s17 + $0x1578] ss:$28 sps:$4 sm:$0xff]  }
 0xc70   :  { %17858 = vmatpush1.bf16.msra.mxu1 %v24377_v44  ;;  %17531 = vmatprep.subr.bf16.mxu0 %v24382_v8  ;;  %v24448_v44 = vld [vmem:[%s32825_s17 + $0x15ac] ss:$28 sps:$4 sm:$0xff]   ;;  %v24451_v8 = vld [vmem:[%s32825_s17 + $0x15b4] ss:$28 sps:$4 sm:$0xff]  }
 0xc71   :  { %17859 = vmatprep.subr.bf16.mxu1 %v24385_v59  ;;  %v24446_v59 = vld [vmem:[%s32825_s17 + $0x15a8] ss:$28 sps:$4 sm:$0xff]  }
 0xc73   :  { %17532 = vmatpush1.bf16.msra.mxu0 %v24380_v37  ;;  %v24449_v37 = vld [vmem:[%s32825_s17 + $0x15b0] ss:$28 sps:$4 sm:$0xff]  }
 0xc74   :  { %17860 = vmatpush1.bf16.msra.mxu1 %v24383_v43  ;;  %17533 = vmatprep.subr.bf16.mxu0 %v24388_v30  ;;  %v24454_v43 = vld [vmem:[%s32825_s17 + $0x15e4] ss:$28 sps:$4 sm:$0xff]   ;;  %v24457_v30 = vld [vmem:[%s32825_s17 + $0x15ec] ss:$28 sps:$4 sm:$0xff]  }
 0xc75   :  { %17861 = vmatprep.subr.bf16.mxu1 %v24391_v18  ;;  %v24452_v18 = vld [vmem:[%s32825_s17 + $0x15e0] ss:$28 sps:$4 sm:$0xff]  }
 0xc77   :  { %17534 = vmatpush1.bf16.msra.mxu0 %v24386_v52  ;;  %v24455_v52 = vld [vmem:[%s32825_s17 + $0x15e8] ss:$28 sps:$4 sm:$0xff]  }
 0xc78   :  { %17862 = vmatpush1.bf16.msra.mxu1 %v24389_v10  ;;  %17535 = vmatprep.subr.bf16.mxu0 %v24394_v14  ;;  %v24460_v10 = vld [vmem:[%s32825_s17 + $0x161c] ss:$28 sps:$4 sm:$0xff]   ;;  %v24463_v14 = vld [vmem:[%s32825_s17 + $0x1624] ss:$28 sps:$4 sm:$0xff]  }
 0xc79   :  { %17863 = vmatprep.subr.bf16.mxu1 %v24397_v24  ;;  %v24458_v24 = vld [vmem:[%s32825_s17 + $0x1618] ss:$28 sps:$4 sm:$0xff]  }
 0xc7b   :  { %17536 = vmatpush1.bf16.msra.mxu0 %v24392_v38  ;;  %v24461_v38 = vld [vmem:[%s32825_s17 + $0x1620] ss:$28 sps:$4 sm:$0xff]  }
 0xc7c   :  { %17864 = vmatpush1.bf16.msra.mxu1 %v24395_v17  ;;  %17537 = vmatprep.subr.bf16.mxu0 %v24400_v12  ;;  %v24466_v17 = vld [vmem:[%s32825_s17 + $0x1654] ss:$28 sps:$4 sm:$0xff]   ;;  %v24469_v12 = vld [vmem:[%s32825_s17 + $0x165c] ss:$28 sps:$4 sm:$0xff]  }
 0xc7d   :  { %17865 = vmatprep.subr.bf16.mxu1 %v24403_v9  ;;  %v24464_v9 = vld [vmem:[%s32825_s17 + $0x1650] ss:$28 sps:$4 sm:$0xff]  }
 0xc7f   :  { %17538 = vmatpush1.bf16.msra.mxu0 %v24398_v31  ;;  %v24467_v31 = vld [vmem:[%s32825_s17 + $0x1658] ss:$28 sps:$4 sm:$0xff]  }
 0xc80   :  { %17866 = vmatpush1.bf16.msra.mxu1 %v24401_v54  ;;  %17539 = vmatprep.subr.bf16.mxu0 %v24406_v49  ;;  %v24472_v54 = vld [vmem:[%s32825_s17 + $0x168c] ss:$28 sps:$4 sm:$0xff]   ;;  %v24475_v49 = vld [vmem:[%s32825_s17 + $0x1694] ss:$28 sps:$4 sm:$0xff]  }
 0xc81   :  { %17867 = vmatprep.subr.bf16.mxu1 %v24409_v58  ;;  %v24470_v58 = vld [vmem:[%s32825_s17 + $0x1688] ss:$28 sps:$4 sm:$0xff]  }
 0xc83   :  { %17540 = vmatpush1.bf16.msra.mxu0 %v24404_v28  ;;  %v24473_v28 = vld [vmem:[%s32825_s17 + $0x1690] ss:$28 sps:$4 sm:$0xff]  }
 0xc84   :  { %17868 = vmatpush1.bf16.msra.mxu1 %v24407_v36  ;;  %17541 = vmatprep.subr.bf16.mxu0 %v24412_v48  ;;  %v24478_v36 = vld [vmem:[%s32825_s17 + $0x16c4] ss:$28 sps:$4 sm:$0xff]   ;;  %v24481_v48 = vld [vmem:[%s32825_s17 + $0x16cc] ss:$28 sps:$4 sm:$0xff]  }
 0xc85   :  { %17869 = vmatprep.subr.bf16.mxu1 %v24415_v57  ;;  %v24476_v57 = vld [vmem:[%s32825_s17 + $0x16c0] ss:$28 sps:$4 sm:$0xff]  }
 0xc87   :  { %17542 = vmatpush1.bf16.msra.mxu0 %v24410_v6  ;;  %v24479_v6 = vld [vmem:[%s32825_s17 + $0x16c8] ss:$28 sps:$4 sm:$0xff]  }
 0xc88   :  { %17870 = vmatpush1.bf16.msra.mxu1 %v24413_v39  ;;  %17543 = vmatprep.subr.bf16.mxu0 %v24418_v45  ;;  %v24484_v39 = vld [vmem:[%s32825_s17 + $0x16fc] ss:$28 sps:$4 sm:$0xff]   ;;  %v24487_v45 = vld [vmem:[%s32825_s17 + $0x1704] ss:$28 sps:$4 sm:$0xff]  }
 0xc89   :  { %17871 = vmatprep.subr.bf16.mxu1 %v24421_v62  ;;  %v24482_v62 = vld [vmem:[%s32825_s17 + $0x16f8] ss:$28 sps:$4 sm:$0xff]  }
 0xc8b   :  { %17544 = vmatpush1.bf16.msra.mxu0 %v24416_v27  ;;  %v24485_v27 = vld [vmem:[%s32825_s17 + $0x1700] ss:$28 sps:$4 sm:$0xff]  }
 0xc8c   :  { %17872 = vmatpush1.bf16.msra.mxu1 %v24419_v23  ;;  %17545 = vmatprep.subr.bf16.mxu0 %v24424_v19  ;;  %v24490_v23 = vld [vmem:[%s32825_s17 + $0x1734] ss:$28 sps:$4 sm:$0xff]   ;;  %v24493_v19 = vld [vmem:[%s32825_s17 + $0x173c] ss:$28 sps:$4 sm:$0xff]  }
 0xc8d   :  { %17873 = vmatprep.subr.bf16.mxu1 %v24427_v26  ;;  %v24488_v26 = vld [vmem:[%s32825_s17 + $0x1730] ss:$28 sps:$4 sm:$0xff]  }
 0xc8f   :  { %17546 = vmatpush1.bf16.msra.mxu0 %v24422_v11  ;;  %v24491_v11 = vld [vmem:[%s32825_s17 + $0x1738] ss:$28 sps:$4 sm:$0xff]  }
 0xc90   :  { %17874 = vmatpush1.bf16.msra.mxu1 %v24425_v33  ;;  %17556 = vmatprep.subr.bf16.mxu0 %v24430_v0  ;;  %v24499_v33 = vld [vmem:[%s32825_s17 + $0x1774] ss:$28 sps:$4 sm:$0xff]   ;;  %v24494_v0 = vld [vmem:[%s32825_s17 + $0x1768] ss:$28 sps:$4 sm:$0xff]  }
 0xc91   :  { %17884 = vmatprep.subr.bf16.mxu1 %v24433_v22  ;;  %v24497_v22 = vld [vmem:[%s32825_s17 + $0x1770] ss:$28 sps:$4 sm:$0xff]  }
 0xc92   :  { %17548 = vmatmul.mubr.bf16.vlgmr.msra.gmra.mrb[84].mxu0 %v31501_v40 }
 0xc93   :  { %17876 = vmatmul.mubr.bf16.vlgmr.msra.gmra.mrb[92].mxu1 %v31501_v40  ;;  %17557 = vmatpush1.bf16.msra.mxu0 %v24428_v47  ;;  %v24505_v47 = vld [vmem:[%s32825_s17 + $0x17ac] ss:$28 sps:$4 sm:$0xff]  }
 0xc94   :  { %17588 = vmatprep.mubr.bf16.mxu0 %v31509_v7  ;;  %17885 = vmatpush1.bf16.msra.mxu1 %v24431_v60  ;;  %v24500_v60 = vld [vmem:[%s32825_s17 + $0x17a0] ss:$28 sps:$4 sm:$0xff]  }
 0xc95   :  { %17916 = vmatprep.mubr.bf16.mxu1 %v31509_v7  ;;  %17558 = vmatprep.subr.bf16.mxu0 %v24436_v46  ;;  %v24503_v46 = vld [vmem:[%s32825_s17 + $0x17a8] ss:$28 sps:$4 sm:$0xff]  }
 0xc96   :  { %17886 = vmatprep.subr.bf16.mxu1 %v24439_v5  ;;  %v24508_v5 = vld [vmem:[%s32825_s17 + $0x17dc] ss:$28 sps:$4 sm:$0xff]  }
 0xc97   :  { %17559 = vmatpush1.bf16.msra.mxu0 %v24434_v41  ;;  %v24511_v41 = vld [vmem:[%s32825_s17 + $0x17e4] ss:$28 sps:$4 sm:$0xff]  }
 0xc98   :  { %17887 = vmatpush1.bf16.msra.mxu1 %v24437_v42  ;;  %17560 = vmatprep.subr.bf16.mxu0 %v24442_v56  ;;  %v24506_v42 = vld [vmem:[%s32825_s17 + $0x17d8] ss:$28 sps:$4 sm:$0xff]   ;;  %v24509_v56 = vld [vmem:[%s32825_s17 + $0x17e0] ss:$28 sps:$4 sm:$0xff]  }
 0xc99   :  { %17888 = vmatprep.subr.bf16.mxu1 %v24445_v21  ;;  %v24514_v21 = vld [vmem:[%s32825_s17 + $0x1814] ss:$28 sps:$4 sm:$0xff]  }
 0xc9b   :  { %17561 = vmatpush1.bf16.msra.mxu0 %v24440_v50  ;;  %v24517_v50 = vld [vmem:[%s32825_s17 + $0x181c] ss:$28 sps:$4 sm:$0xff]  }
 0xc9c   :  { %17889 = vmatpush1.bf16.msra.mxu1 %v24443_v63  ;;  %17562 = vmatprep.subr.bf16.mxu0 %v24448_v44  ;;  %v24512_v63 = vld [vmem:[%s32825_s17 + $0x1810] ss:$28 sps:$4 sm:$0xff]   ;;  %v24515_v44 = vld [vmem:[%s32825_s17 + $0x1818] ss:$28 sps:$4 sm:$0xff]  }
 0xc9d   :  { %17890 = vmatprep.subr.bf16.mxu1 %v24451_v8  ;;  %v24520_v8 = vld [vmem:[%s32825_s17 + $0x184c] ss:$28 sps:$4 sm:$0xff]  }
 0xc9f   :  { %17563 = vmatpush1.bf16.msra.mxu0 %v24446_v59  ;;  %v24523_v59 = vld [vmem:[%s32825_s17 + $0x1854] ss:$28 sps:$4 sm:$0xff]  }
 0xca0   :  { %17891 = vmatpush1.bf16.msra.mxu1 %v24449_v37  ;;  %17564 = vmatprep.subr.bf16.mxu0 %v24454_v43  ;;  %v13194_v37 = vld [vmem:[%s32825_s17 + $0x1880] sm:$0xff]  ;;  %v13195_v43 = vld [vmem:[%s32825_s17 + $0x1888] sm:$0xff] }
 0xca1   :  { %17892 = vmatprep.subr.bf16.mxu1 %v24457_v30  ;;  %v24518_v30 = vld [vmem:[%s32825_s17 + $0x1848] ss:$28 sps:$4 sm:$0xff]  }
 0xca3   :  { %17565 = vmatpush1.bf16.msra.mxu0 %v24452_v18  ;;  %v12280_v18 = vmax.f32 %v30516_v13, 0.0 }
 0xca4   :  { %17893 = vmatpush1.bf16.msra.mxu1 %v24455_v52  ;;  %17566 = vmatprep.subr.bf16.mxu0 %v24460_v10  ;;  %v24521_v52 = vld [vmem:[%s32825_s17 + $0x1850] ss:$28 sps:$4 sm:$0xff]   ;;  %v20508_v10 = vcombine.high %v13194_v37, %v13194_v37 }
 0xca5   :  { %17894 = vmatprep.subr.bf16.mxu1 %v24463_v14  ;;  %v20507_v14 = vcombine.low %v13194_v37, %v13194_v37  ;;  %v24572_v37 = vld [vmem:[%s32825_s17 + $0x398] ss:$28 sps:$4 sm:$0xff]  }
 0xca7   :  { %17567 = vmatpush1.bf16.msra.mxu0 %v24458_v24  ;;  %v20510_v24 = vcombine.high %v13195_v43, %v13195_v43  ;;  %v17290_v13 = vsel %vm17288_vm7, %v20507_v14, 0  ;;  %v24581_v14 = vld [vmem:[%s32825_s17 + $0x5c8] ss:$28 sps:$4 sm:$0xff]  }
 0xca8   :  { %17895 = vmatpush1.bf16.msra.mxu1 %v24461_v38  ;;  %17568 = vmatprep.subr.bf16.mxu0 %v24466_v17  ;;  %v20509_v38 = vcombine.low %v13195_v43, %v13195_v43  ;;  %v31699_v17 = vpack.c.bf16 %v12280_v18, %v12280_v18  ;;  %v24575_v43 = vld [vmem:[%s32825_s17 + $0x20c] ss:$28 sps:$4 sm:$0xff]  }
 0xca9   :  { %17896 = vmatprep.subr.bf16.mxu1 %v24469_v12  ;;  %v24573_v18 = vld [vmem:[%s32825_s17 + $0x208] ss:$28 sps:$4 sm:$0xff]  }
 0xcaa   :  { %v17296_v12 = vsel %vm17288_vm7, %v20509_v38, 0  ;;  %v24582_v38 = vld [vmem:[%s32825_s17 + $0x408] ss:$28 sps:$4 sm:$0xff]  }
 0xcab   :  { %17569 = vmatpush1.bf16.msra.mxu0 %v24464_v9  ;;  %v24530_v9 = vld [vmem:[%s32825_s17 + $0x14] ss:$28 sps:$4 sm:$0xff]  }
 0xcac   :  { %17897 = vmatpush1.bf16.msra.mxu1 %v24467_v31  ;;  %17570 = vmatprep.subr.bf16.mxu0 %v24472_v54  ;;  %v24531_v31 = vld [vmem:[%s32825_s17 + $0x1d8] ss:$28 sps:$4 sm:$0xff]   ;;  %v33089_v54 = vmov 0  }
 0xcad   :  { %17898 = vmatprep.subr.bf16.mxu1 %v24475_v49  ;;  %v12282_v49 = vmax.f32 %v30444_v15, 0.0  ;;  %v24536_v15 = vld [vmem:[%s32825_s17 + $0x210] ss:$28 sps:$4 sm:$0xff]  }
 0xcaf   :  { %17571 = vmatpush1.bf16.msra.mxu0 %v24470_v58  ;;  %v24528_v58 = vld [vmem:[%s32825_s17 + $0x10] ss:$28 sps:$4 sm:$0xff]  }
 0xcb0   :  { %17899 = vmatpush1.bf16.msra.mxu1 %v24473_v28  ;;  %17572 = vmatprep.subr.bf16.mxu0 %v24478_v36  ;;  %v31719_v28 = vpack.c.bf16 %v12282_v49, %v12282_v49  ;;  %v24532_v36 = vld [vmem:[%s32825_s17 + $0x18] ss:$28 sps:$4 sm:$0xff]  }
 0xcb1   :  { %17900 = vmatprep.subr.bf16.mxu1 %v24481_v48  ;;  %v24535_v48 = vld [vmem:[%s32825_s17 + $0x4c] ss:$28 sps:$4 sm:$0xff]   ;;  %v24590_v49 = vld [vmem:[%s32825_s17 + $0x2b4] ss:$28 sps:$4 sm:$0xff]  }
 0xcb3   :  { %17573 = vmatpush1.bf16.msra.mxu0 %v24476_v57  ;;  %v24533_v57 = vld [vmem:[%s32825_s17 + $0x48] ss:$28 sps:$4 sm:$0xff]  }
 0xcb4   :  { %17901 = vmatpush1.bf16.msra.mxu1 %v24479_v6  ;;  %17574 = vmatprep.subr.bf16.mxu0 %v24484_v39  ;;  %v24537_v6 = vld [vmem:[%s32825_s17 + $0x50] ss:$28 sps:$4 sm:$0xff]   ;;  %v24540_v39 = vld [vmem:[%s32825_s17 + $0x84] ss:$28 sps:$4 sm:$0xff]  }
 0xcb5   :  { %17902 = vmatprep.subr.bf16.mxu1 %v24487_v45  ;;  %v24541_v45 = vld [vmem:[%s32825_s17 + $0x248] ss:$28 sps:$4 sm:$0xff]  }
 0xcb7   :  { %17575 = vmatpush1.bf16.msra.mxu0 %v24482_v62  ;;  %v24538_v62 = vld [vmem:[%s32825_s17 + $0x80] ss:$28 sps:$4 sm:$0xff]  }
 0xcb8   :  { %17903 = vmatpush1.bf16.msra.mxu1 %v24485_v27  ;;  %17576 = vmatprep.subr.bf16.mxu0 %v24490_v23  ;;  %v24542_v27 = vld [vmem:[%s32825_s17 + $0x88] ss:$28 sps:$4 sm:$0xff]   ;;  %v24546_v23 = vld [vmem:[%s32825_s17 + $0x280] ss:$28 sps:$4 sm:$0xff]  }
 0xcb9   :  { %17904 = vmatprep.subr.bf16.mxu1 %v24493_v19  ;;  %v24543_v19 = vld [vmem:[%s32825_s17 + $0xb8] ss:$28 sps:$4 sm:$0xff]  }
 0xcbb   :  { %17577 = vmatpush1.bf16.msra.mxu0 %v24488_v26  ;;  %v24547_v26 = vld [vmem:[%s32825_s17 + $0xc0] ss:$28 sps:$4 sm:$0xff]  }
 0xcbc   :  { %17905 = vmatpush1.bf16.msra.mxu1 %v24491_v11  ;;  %17578 = vmatprep.subr.bf16.mxu0 %v24496_v29  ;;  %v24550_v11 = vld [vmem:[%s32825_s17 + $0xf4] ss:$28 sps:$4 sm:$0xff]  }
 0xcbd   :  { %17906 = vmatprep.subr.bf16.mxu1 %v24499_v33  ;;  %v24551_v29 = vld [vmem:[%s32825_s17 + $0x2b8] ss:$28 sps:$4 sm:$0xff]   ;;  %v24548_v33 = vld [vmem:[%s32825_s17 + $0xf0] ss:$28 sps:$4 sm:$0xff]  }
 0xcbf   :  { %17579 = vmatpush1.bf16.msra.mxu0 %v24494_v0  ;;  %v24552_v0 = vld [vmem:[%s32825_s17 + $0xf8] ss:$28 sps:$4 sm:$0xff]  }
 0xcc0   :  { %17907 = vmatpush1.bf16.msra.mxu1 %v24497_v22  ;;  %17580 = vmatprep.subr.bf16.mxu0 %v24502_v34  ;;  %v24555_v22 = vld [vmem:[%s32825_s17 + $0x12c] ss:$28 sps:$4 sm:$0xff]  }
 0xcc1   :  { %17908 = vmatprep.subr.bf16.mxu1 %v24505_v47  ;;  %v24556_v34 = vld [vmem:[%s32825_s17 + $0x2f0] ss:$28 sps:$4 sm:$0xff]   ;;  %v24553_v47 = vld [vmem:[%s32825_s17 + $0x128] ss:$28 sps:$4 sm:$0xff]  }
 0xcc3   :  { %17581 = vmatpush1.bf16.msra.mxu0 %v24500_v60  ;;  %v24557_v60 = vld [vmem:[%s32825_s17 + $0x130] ss:$28 sps:$4 sm:$0xff]  }
 0xcc4   :  { %17909 = vmatpush1.bf16.msra.mxu1 %v24503_v46  ;;  %17582 = vmatprep.subr.bf16.mxu0 %v24508_v5  ;;  %v24560_v46 = vld [vmem:[%s32825_s17 + $0x164] ss:$28 sps:$4 sm:$0xff]  }
 0xcc5   :  { %17910 = vmatprep.subr.bf16.mxu1 %v24511_v41  ;;  %v24561_v5 = vld [vmem:[%s32825_s17 + $0x328] ss:$28 sps:$4 sm:$0xff]   ;;  %v24558_v41 = vld [vmem:[%s32825_s17 + $0x160] ss:$28 sps:$4 sm:$0xff]  }
 0xcc7   :  { %17583 = vmatpush1.bf16.msra.mxu0 %v24506_v42  ;;  %v24562_v42 = vld [vmem:[%s32825_s17 + $0x168] ss:$28 sps:$4 sm:$0xff]  }
 0xcc8   :  { %17911 = vmatpush1.bf16.msra.mxu1 %v24509_v56  ;;  %17584 = vmatprep.subr.bf16.mxu0 %v24514_v21  ;;  %v24565_v56 = vld [vmem:[%s32825_s17 + $0x19c] ss:$28 sps:$4 sm:$0xff]  }
 0xcc9   :  { %17912 = vmatprep.subr.bf16.mxu1 %v24517_v50  ;;  %v24566_v21 = vld [vmem:[%s32825_s17 + $0x360] ss:$28 sps:$4 sm:$0xff]   ;;  %v24563_v50 = vld [vmem:[%s32825_s17 + $0x198] ss:$28 sps:$4 sm:$0xff]  }
 0xccb   :  { %17585 = vmatpush1.bf16.msra.mxu0 %v24512_v63  ;;  %v24567_v63 = vld [vmem:[%s32825_s17 + $0x1a0] ss:$28 sps:$4 sm:$0xff]  }
 0xccc   :  { %17913 = vmatpush1.bf16.msra.mxu1 %v24515_v44  ;;  %17586 = vmatprep.subr.bf16.mxu0 %v24520_v8  ;;  %v24570_v44 = vld [vmem:[%s32825_s17 + $0x1d4] ss:$28 sps:$4 sm:$0xff]  }
 0xccd   :  { %17914 = vmatprep.subr.bf16.mxu1 %v24523_v59  ;;  %v24571_v8 = vld [vmem:[%s32825_s17 + $0x558] ss:$28 sps:$4 sm:$0xff]   ;;  %v24568_v59 = vld [vmem:[%s32825_s17 + $0x1d0] ss:$28 sps:$4 sm:$0xff]  }
 0xccf   :  { %17587 = vmatpush1.bf16.msra.mxu0 %v24518_v30  ;;  %v24576_v30 = vld [vmem:[%s32825_s17 + $0x590] ss:$28 sps:$4 sm:$0xff]  }
 0xcd0   :  { %17915 = vmatpush1.bf16.msra.mxu1 %v24521_v52  ;;  %20514 = vmatprep.subr.msk.bf16.mxu0 %vm17288_vm7, %v20508_v10  ;;  %v24577_v52 = vld [vmem:[%s32825_s17 + $0x3d0] ss:$28 sps:$4 sm:$0xff]   ;;  %v24580_v10 = vld [vmem:[%s32825_s17 + $0x244] ss:$28 sps:$4 sm:$0xff]  }
 0xcd1   :  { %20516 = vmatprep.subr.msk.bf16.mxu1 %vm17288_vm7, %v20510_v24  ;;  %v24578_v24 = vld [vmem:[%s32825_s17 + $0x240] ss:$28 sps:$4 sm:$0xff]  }
 0xcd2   :  { %17589 = vmatmul.mubr.bf16.vlgmr.msra.gmra.mrb[84].mxu0 %v31699_v17 }
 0xcd3   :  { %17917 = vmatmul.mubr.bf16.vlgmr.msra.gmra.mrb[92].mxu1 %v31699_v17  ;;  %17598 = vmatpush1.bf16.msra.mxu0 %v17290_v13  ;;  %v24585_v13 = vld [vmem:[%s32825_s17 + $0x27c] ss:$28 sps:$4 sm:$0xff]  }
 0xcd4   :  { %17926 = vmatpush1.bf16.msra.mxu1 %v17296_v12  ;;  %17629 = vmatprep.mubr.bf16.mxu0 %v33089_v54  ;;  %v24586_v12 = vld [vmem:[%s32825_s17 + $0x600] ss:$28 sps:$4 sm:$0xff]  }
 0xcd5   :  { %17957 = vmatprep.mubr.bf16.mxu1 %v33089_v54  ;;  %17966 = vmatprep.subr.bf16.mxu0 %v24530_v9  ;;  %v24583_v9 = vld [vmem:[%s32825_s17 + $0x278] ss:$28 sps:$4 sm:$0xff]  }
 0xcd6   :  { %21360 = vmatprep.subr.bf16.mxu1 %v24531_v31  ;;  %v24587_v31 = vld [vmem:[%s32825_s17 + $0x440] ss:$28 sps:$4 sm:$0xff]  }
 0xcde   :  { %20515 = vmatmul.mubr.msk.bf16.vlgmr.msra.gmra.mrb[84].mxu0 %vm9825_vm6, %v31719_v28 }
 0xcdf   :  { %20517 = vmatmul.mubr.msk.bf16.vlgmr.msra.gmra.mrb[92].mxu1 %vm9825_vm6, %v31719_v28  ;;  %17967 = vmatpush1.bf16.msra.mxu0 %v24528_v58  ;;  %v24591_v58 = vld [vmem:[%s32825_s17 + $0x638] ss:$28 sps:$4 sm:$0xff]  }
 0xce0   :  { %21361 = vmatpush3.bf16.msra.mxu1 %v24532_v36  ;;  %17998 = vmatprep.mubr.bf16.mxu0 %v30470_v32  ;;  %v24588_v36 = vld [vmem:[%s32825_s17 + $0x2b0] ss:$28 sps:$4 sm:$0xff]  }
 0xce1   :  { %18326 = vmatprep.mubr.bf16.mxu1 %v30470_v32  ;;  %17968 = vmatprep.subr.bf16.mxu0 %v24535_v48  ;;  %v24545_v32 = vld [vmem:[%s32825_s17 + $0xbc] ss:$28 sps:$4 sm:$0xff]  }
 0xce2   :  { %21362 = vmatprep.subr.bf16.mxu1 %v24536_v15  ;;  %v24592_v48 = vld [vmem:[%s32825_s17 + $0x478] ss:$28 sps:$4 sm:$0xff]   ;;  %v24595_v15 = vld [vmem:[%s32825_s17 + $0x2ec] ss:$28 sps:$4 sm:$0xff]  }
 0xce3   :  { %17969 = vmatpush1.bf16.msra.mxu0 %v24533_v57  ;;  %v24596_v57 = vld [vmem:[%s32825_s17 + $0x670] ss:$28 sps:$4 sm:$0xff]  }
 0xce4   :  { %21363 = vmatpush3.bf16.msra.mxu1 %v24537_v6  ;;  %17970 = vmatprep.subr.bf16.mxu0 %v24540_v39  ;;  %v24593_v6 = vld [vmem:[%s32825_s17 + $0x2e8] ss:$28 sps:$4 sm:$0xff]   ;;  %v24597_v39 = vld [vmem:[%s32825_s17 + $0x4b0] ss:$28 sps:$4 sm:$0xff]  }
 0xce5   :  { %21364 = vmatprep.subr.bf16.mxu1 %v24541_v45  ;;  %v24600_v45 = vld [vmem:[%s32825_s17 + $0x324] ss:$28 sps:$4 sm:$0xff]  }
 0xce7   :  { %17971 = vmatpush1.bf16.msra.mxu0 %v24538_v62  ;;  %v24601_v62 = vld [vmem:[%s32825_s17 + $0x6a8] ss:$28 sps:$4 sm:$0xff]  }
 0xce8   :  { %21365 = vmatpush3.bf16.msra.mxu1 %v24542_v27  ;;  %17972 = vmatprep.subr.bf16.mxu0 %v24545_v32  ;;  %v24598_v27 = vld [vmem:[%s32825_s17 + $0x320] ss:$28 sps:$4 sm:$0xff]   ;;  %v24602_v32 = vld [vmem:[%s32825_s17 + $0x4e8] ss:$28 sps:$4 sm:$0xff]  }
 0xce9   :  { %21366 = vmatprep.subr.bf16.mxu1 %v24546_v23  ;;  %v24605_v23 = vld [vmem:[%s32825_s17 + $0x35c] ss:$28 sps:$4 sm:$0xff]  }
 0xceb   :  { %17973 = vmatpush1.bf16.msra.mxu0 %v24543_v19  ;;  %v24606_v19 = vld [vmem:[%s32825_s17 + $0x6e0] ss:$28 sps:$4 sm:$0xff]  }
 0xcec   :  { %21367 = vmatpush3.bf16.msra.mxu1 %v24547_v26  ;;  %17974 = vmatprep.subr.bf16.mxu0 %v24550_v11  ;;  %v24603_v26 = vld [vmem:[%s32825_s17 + $0x358] ss:$28 sps:$4 sm:$0xff]   ;;  %v24607_v11 = vld [vmem:[%s32825_s17 + $0x520] ss:$28 sps:$4 sm:$0xff]  }
 0xced   :  { %21368 = vmatprep.subr.bf16.mxu1 %v24551_v29  ;;  %v24610_v29 = vld [vmem:[%s32825_s17 + $0x394] ss:$28 sps:$4 sm:$0xff]  }
 0xcef   :  { %17975 = vmatpush1.bf16.msra.mxu0 %v24548_v33  ;;  %v24611_v33 = vld [vmem:[%s32825_s17 + $0x8d8] ss:$28 sps:$4 sm:$0xff]  }
 0xcf0   :  { %21369 = vmatpush3.bf16.msra.mxu1 %v24552_v0  ;;  %17976 = vmatprep.subr.bf16.mxu0 %v24555_v22  ;;  %v24608_v0 = vld [vmem:[%s32825_s17 + $0x390] ss:$28 sps:$4 sm:$0xff]   ;;  %v24612_v22 = vld [vmem:[%s32825_s17 + $0x718] ss:$28 sps:$4 sm:$0xff]  }
 0xcf1   :  { %21370 = vmatprep.subr.bf16.mxu1 %v24556_v34  ;;  %v24615_v34 = vld [vmem:[%s32825_s17 + $0x3cc] ss:$28 sps:$4 sm:$0xff]  }
 0xcf3   :  { %17977 = vmatpush1.bf16.msra.mxu0 %v24553_v47  ;;  %v24616_v47 = vld [vmem:[%s32825_s17 + $0x910] ss:$28 sps:$4 sm:$0xff]  }
 0xcf4   :  { %21371 = vmatpush3.bf16.msra.mxu1 %v24557_v60  ;;  %17978 = vmatprep.subr.bf16.mxu0 %v24560_v46  ;;  %v24613_v60 = vld [vmem:[%s32825_s17 + $0x3c8] ss:$28 sps:$4 sm:$0xff]   ;;  %v24617_v46 = vld [vmem:[%s32825_s17 + $0x750] ss:$28 sps:$4 sm:$0xff]  }
 0xcf5   :  { %21372 = vmatprep.subr.bf16.mxu1 %v24561_v5  ;;  %v24621_v5 = vld [vmem:[%s32825_s17 + $0x948] ss:$28 sps:$4 sm:$0xff]  }
 0xcf7   :  { %17979 = vmatpush1.bf16.msra.mxu0 %v24558_v41  ;;  %v24622_v41 = vld [vmem:[%s32825_s17 + $0x788] ss:$28 sps:$4 sm:$0xff]  }
 0xcf8   :  { %21373 = vmatpush3.bf16.msra.mxu1 %v24562_v42  ;;  %17980 = vmatprep.subr.bf16.mxu0 %v24565_v56  ;;  %v24625_v42 = vld [vmem:[%s32825_s17 + $0x43c] ss:$28 sps:$4 sm:$0xff]  }
 0xcf9   :  { %21374 = vmatprep.subr.bf16.mxu1 %v24566_v21  ;;  %v24626_v56 = vld [vmem:[%s32825_s17 + $0x980] ss:$28 sps:$4 sm:$0xff]   ;;  %v24623_v21 = vld [vmem:[%s32825_s17 + $0x438] ss:$28 sps:$4 sm:$0xff]  }
 0xcfb   :  { %17981 = vmatpush1.bf16.msra.mxu0 %v24563_v50  ;;  %v24627_v50 = vld [vmem:[%s32825_s17 + $0x7c0] ss:$28 sps:$4 sm:$0xff]  }
 0xcfc   :  { %21375 = vmatpush3.bf16.msra.mxu1 %v24567_v63  ;;  %17982 = vmatprep.subr.bf16.mxu0 %v24570_v44  ;;  %v24630_v63 = vld [vmem:[%s32825_s17 + $0x474] ss:$28 sps:$4 sm:$0xff]  }
 0xcfd   :  { %21382 = vmatprep.subr.bf16.mxu1 %v24571_v8  ;;  %v24631_v44 = vld [vmem:[%s32825_s17 + $0x9b8] ss:$28 sps:$4 sm:$0xff]   ;;  %v24628_v8 = vld [vmem:[%s32825_s17 + $0x470] ss:$28 sps:$4 sm:$0xff]  }
 0xcff   :  { %18327 = vmatmul.mubr.bf16.vlgmr.msra.gmra.mrb[96].mxu1 %v30480_v3  ;;  %17983 = vmatpush1.bf16.msra.mxu0 %v24568_v59  ;;  %v24632_v59 = vld [vmem:[%s32825_s17 + $0x7f8] ss:$28 sps:$4 sm:$0xff]  }
 0xd00   :  { %21383 = vmatpush3.bf16.msra.mxu1 %v24572_v37  ;;  %18366 = vmatprep.mubr.bf16.mxu1 %v30492_v25  ;;  %v24635_v37 = vld [vmem:[%s32825_s17 + $0x4ac] ss:$28 sps:$4 sm:$0xff]  }
 0xd01   :  { %17984 = vmatprep.subr.bf16.mxu0 %v24575_v43  ;;  %21384 = vmatprep.subr.bf16.mxu1 %v24576_v30  ;;  %v24636_v43 = vld [vmem:[%s32825_s17 + $0x9f0] ss:$28 sps:$4 sm:$0xff]   ;;  %v24633_v30 = vld [vmem:[%s32825_s17 + $0x4a8] ss:$28 sps:$4 sm:$0xff]  }
 0xd03   :  { %17985 = vmatpush1.bf16.msra.mxu0 %v24573_v18  ;;  %v24637_v18 = vld [vmem:[%s32825_s17 + $0x830] ss:$28 sps:$4 sm:$0xff]  }
 0xd04   :  { %21385 = vmatpush3.bf16.msra.mxu1 %v24577_v52  ;;  %17986 = vmatprep.subr.bf16.mxu0 %v24580_v10  ;;  %v24640_v52 = vld [vmem:[%s32825_s17 + $0x4e4] ss:$28 sps:$4 sm:$0xff]  }
 0xd05   :  { %21386 = vmatprep.subr.bf16.mxu1 %v24581_v14  ;;  %v24641_v10 = vld [vmem:[%s32825_s17 + $0xa28] ss:$28 sps:$4 sm:$0xff]   ;;  %v24638_v14 = vld [vmem:[%s32825_s17 + $0x4e0] ss:$28 sps:$4 sm:$0xff]  }
 0xd07   :  { %17987 = vmatpush1.bf16.msra.mxu0 %v24578_v24  ;;  %v24642_v24 = vld [vmem:[%s32825_s17 + $0x868] ss:$28 sps:$4 sm:$0xff]  }
 0xd08   :  { %21387 = vmatpush3.bf16.msra.mxu1 %v24582_v38  ;;  %17988 = vmatprep.subr.bf16.mxu0 %v24585_v13  ;;  %v24645_v38 = vld [vmem:[%s32825_s17 + $0x51c] ss:$28 sps:$4 sm:$0xff]  }
 0xd09   :  { %21388 = vmatprep.subr.bf16.mxu1 %v24586_v12  ;;  %v24646_v13 = vld [vmem:[%s32825_s17 + $0xa60] ss:$28 sps:$4 sm:$0xff]   ;;  %v24643_v12 = vld [vmem:[%s32825_s17 + $0x518] ss:$28 sps:$4 sm:$0xff]  }
 0xd0b   :  { %17989 = vmatpush1.bf16.msra.mxu0 %v24583_v9  ;;  %v24647_v9 = vld [vmem:[%s32825_s17 + $0x8a0] ss:$28 sps:$4 sm:$0xff]  }
 0xd0c   :  { %21389 = vmatpush3.bf16.msra.mxu1 %v24587_v31  ;;  %17990 = vmatprep.subr.bf16.mxu0 %v24590_v49  ;;  %v24650_v31 = vld [vmem:[%s32825_s17 + $0x554] ss:$28 sps:$4 sm:$0xff]  }
 0xd0d   :  { %21390 = vmatprep.subr.bf16.mxu1 %v24591_v58  ;;  %v24651_v49 = vld [vmem:[%s32825_s17 + $0xc58] ss:$28 sps:$4 sm:$0xff]   ;;  %v24648_v58 = vld [vmem:[%s32825_s17 + $0x550] ss:$28 sps:$4 sm:$0xff]  }
 0xd0f   :  { %17991 = vmatpush1.bf16.msra.mxu0 %v24588_v36  ;;  %v24652_v36 = vld [vmem:[%s32825_s17 + $0xa98] ss:$28 sps:$4 sm:$0xff]  }
 0xd10   :  { %21391 = vmatpush3.bf16.msra.mxu1 %v24592_v48  ;;  %17992 = vmatprep.subr.bf16.mxu0 %v24595_v15  ;;  %v24655_v48 = vld [vmem:[%s32825_s17 + $0x58c] ss:$28 sps:$4 sm:$0xff]  }
 0xd11   :  { %21392 = vmatprep.subr.bf16.mxu1 %v24596_v57  ;;  %v24656_v15 = vld [vmem:[%s32825_s17 + $0xc90] ss:$28 sps:$4 sm:$0xff]   ;;  %v24653_v57 = vld [vmem:[%s32825_s17 + $0x588] ss:$28 sps:$4 sm:$0xff]  }
 0xd13   :  { %17993 = vmatpush1.bf16.msra.mxu0 %v24593_v6  ;;  %v24657_v6 = vld [vmem:[%s32825_s17 + $0xad0] ss:$28 sps:$4 sm:$0xff]  }
 0xd14   :  { %21393 = vmatpush3.bf16.msra.mxu1 %v24597_v39  ;;  %17994 = vmatprep.subr.bf16.mxu0 %v24600_v45  ;;  %v24660_v39 = vld [vmem:[%s32825_s17 + $0x5c4] ss:$28 sps:$4 sm:$0xff]  }
 0xd15   :  { %21394 = vmatprep.subr.bf16.mxu1 %v24601_v62  ;;  %v24661_v45 = vld [vmem:[%s32825_s17 + $0xcc8] ss:$28 sps:$4 sm:$0xff]   ;;  %v24658_v62 = vld [vmem:[%s32825_s17 + $0x5c0] ss:$28 sps:$4 sm:$0xff]  }
 0xd17   :  { %17995 = vmatpush1.bf16.msra.mxu0 %v24598_v27  ;;  %v24662_v27 = vld [vmem:[%s32825_s17 + $0xb08] ss:$28 sps:$4 sm:$0xff]  }
 0xd18   :  { %21395 = vmatpush3.bf16.msra.mxu1 %v24602_v32  ;;  %17996 = vmatprep.subr.bf16.mxu0 %v24605_v23  ;;  %v24665_v32 = vld [vmem:[%s32825_s17 + $0x5fc] ss:$28 sps:$4 sm:$0xff]  }
 0xd19   :  { %21396 = vmatprep.subr.bf16.mxu1 %v24606_v19  ;;  %v24666_v23 = vld [vmem:[%s32825_s17 + $0xd00] ss:$28 sps:$4 sm:$0xff]   ;;  %v24663_v19 = vld [vmem:[%s32825_s17 + $0x5f8] ss:$28 sps:$4 sm:$0xff]  }
 0xd1b   :  { %17997 = vmatpush1.bf16.msra.mxu0 %v24603_v26  ;;  %v24667_v26 = vld [vmem:[%s32825_s17 + $0xb40] ss:$28 sps:$4 sm:$0xff]  }
 0xd1c   :  { %21397 = vmatpush3.bf16.msra.mxu1 %v24607_v11  ;;  %18007 = vmatprep.subr.bf16.mxu0 %v24610_v29  ;;  %v24670_v11 = vld [vmem:[%s32825_s17 + $0x634] ss:$28 sps:$4 sm:$0xff]  }
 0xd1d   :  { %21404 = vmatprep.subr.bf16.mxu1 %v24611_v33  ;;  %v24671_v29 = vld [vmem:[%s32825_s17 + $0xd38] ss:$28 sps:$4 sm:$0xff]   ;;  %v24668_v33 = vld [vmem:[%s32825_s17 + $0x630] ss:$28 sps:$4 sm:$0xff]  }
 0xd1e   :  { %17999 = vmatmul.mubr.bf16.vlgmr.msra.gmra.mrb[88].mxu0 %v30480_v3  ;;  %v24620_v3 = vld [vmem:[%s32825_s17 + $0x404] ss:$28 sps:$4 sm:$0xff]  }
 0xd1f   :  { %18367 = vmatmul.mubr.bf16.vlgmr.msra.gmra.mrb[100].mxu1 %v30693_v20  ;;  %18008 = vmatpush1.bf16.msra.mxu0 %v24608_v0  ;;  %v24672_v0 = vld [vmem:[%s32825_s17 + $0xb78] ss:$28 sps:$4 sm:$0xff]  }
 0xd20   :  { %18039 = vmatprep.mubr.bf16.mxu0 %v30492_v25  ;;  %21405 = vmatpush3.bf16.msra.mxu1 %v24612_v22  ;;  %v24618_v25 = vld [vmem:[%s32825_s17 + $0x400] ss:$28 sps:$4 sm:$0xff]   ;;  %v24675_v22 = vld [vmem:[%s32825_s17 + $0x66c] ss:$28 sps:$4 sm:$0xff]  }
 0xd21   :  { %18406 = vmatprep.mubr.bf16.mxu1 %v30698_v61  ;;  %18009 = vmatprep.subr.bf16.mxu0 %v24615_v34  ;;  %v24676_v34 = vld [vmem:[%s32825_s17 + $0xd70] ss:$28 sps:$4 sm:$0xff]  }
 0xd22   :  { %21406 = vmatprep.subr.bf16.mxu1 %v24616_v47  ;;  %v24673_v47 = vld [vmem:[%s32825_s17 + $0x668] ss:$28 sps:$4 sm:$0xff]  }
 0xd23   :  { %18010 = vmatpush1.bf16.msra.mxu0 %v24613_v60  ;;  %v24677_v60 = vld [vmem:[%s32825_s17 + $0xbb0] ss:$28 sps:$4 sm:$0xff]  }
 0xd24   :  { %21407 = vmatpush3.bf16.msra.mxu1 %v24617_v46  ;;  %18011 = vmatprep.subr.bf16.mxu0 %v24620_v3  ;;  %v24680_v46 = vld [vmem:[%s32825_s17 + $0x6a4] ss:$28 sps:$4 sm:$0xff]  }
 0xd25   :  { %21408 = vmatprep.subr.bf16.mxu1 %v24621_v5  ;;  %v24681_v3 = vld [vmem:[%s32825_s17 + $0xda8] ss:$28 sps:$4 sm:$0xff]   ;;  %v24678_v5 = vld [vmem:[%s32825_s17 + $0x6a0] ss:$28 sps:$4 sm:$0xff]  }
 0xd27   :  { %18012 = vmatpush1.bf16.msra.mxu0 %v24618_v25  ;;  %v24682_v25 = vld [vmem:[%s32825_s17 + $0xbe8] ss:$28 sps:$4 sm:$0xff]  }
 0xd28   :  { %21409 = vmatpush3.bf16.msra.mxu1 %v24622_v41  ;;  %18013 = vmatprep.subr.bf16.mxu0 %v24625_v42  ;;  %v24685_v41 = vld [vmem:[%s32825_s17 + $0x6dc] ss:$28 sps:$4 sm:$0xff]  }
 0xd29   :  { %21410 = vmatprep.subr.bf16.mxu1 %v24626_v56  ;;  %v24686_v42 = vld [vmem:[%s32825_s17 + $0xde0] ss:$28 sps:$4 sm:$0xff]   ;;  %v24683_v56 = vld [vmem:[%s32825_s17 + $0x6d8] ss:$28 sps:$4 sm:$0xff]  }
 0xd2b   :  { %18014 = vmatpush1.bf16.msra.mxu0 %v24623_v21  ;;  %v24687_v21 = vld [vmem:[%s32825_s17 + $0xc20] ss:$28 sps:$4 sm:$0xff]  }
 0xd2c   :  { %21411 = vmatpush3.bf16.msra.mxu1 %v24627_v50  ;;  %18015 = vmatprep.subr.bf16.mxu0 %v24630_v63  ;;  %v24690_v50 = vld [vmem:[%s32825_s17 + $0x714] ss:$28 sps:$4 sm:$0xff]  }
 0xd2d   :  { %21412 = vmatprep.subr.bf16.mxu1 %v24631_v44  ;;  %v24691_v63 = vld [vmem:[%s32825_s17 + $0xfd8] ss:$28 sps:$4 sm:$0xff]   ;;  %v24688_v44 = vld [vmem:[%s32825_s17 + $0x710] ss:$28 sps:$4 sm:$0xff]  }
 0xd2f   :  { %18016 = vmatpush1.bf16.msra.mxu0 %v24628_v8  ;;  %v24692_v8 = vld [vmem:[%s32825_s17 + $0xe18] ss:$28 sps:$4 sm:$0xff]  }
 0xd30   :  { %21413 = vmatpush3.bf16.msra.mxu1 %v24632_v59  ;;  %18017 = vmatprep.subr.bf16.mxu0 %v24635_v37  ;;  %v24695_v59 = vld [vmem:[%s32825_s17 + $0x74c] ss:$28 sps:$4 sm:$0xff]  }
 0xd31   :  { %21414 = vmatprep.subr.bf16.mxu1 %v24636_v43  ;;  %v24696_v37 = vld [vmem:[%s32825_s17 + $0x1010] ss:$28 sps:$4 sm:$0xff]   ;;  %v24693_v43 = vld [vmem:[%s32825_s17 + $0x748] ss:$28 sps:$4 sm:$0xff]  }
 0xd33   :  { %18018 = vmatpush1.bf16.msra.mxu0 %v24633_v30  ;;  %v24697_v30 = vld [vmem:[%s32825_s17 + $0xe50] ss:$28 sps:$4 sm:$0xff]  }
 0xd34   :  { %21415 = vmatpush3.bf16.msra.mxu1 %v24637_v18  ;;  %18019 = vmatprep.subr.bf16.mxu0 %v24640_v52  ;;  %v24701_v18 = vld [vmem:[%s32825_s17 + $0x1048] ss:$28 sps:$4 sm:$0xff]  }
 0xd35   :  { %21416 = vmatprep.subr.bf16.mxu1 %v24641_v10  ;;  %v24702_v52 = vld [vmem:[%s32825_s17 + $0xe88] ss:$28 sps:$4 sm:$0xff]   ;;  %v24705_v10 = vld [vmem:[%s32825_s17 + $0x7bc] ss:$28 sps:$4 sm:$0xff]  }
 0xd37   :  { %18020 = vmatpush1.bf16.msra.mxu0 %v24638_v14  ;;  %v24706_v14 = vld [vmem:[%s32825_s17 + $0x1080] ss:$28 sps:$4 sm:$0xff]  }
 0xd38   :  { %21417 = vmatpush3.bf16.msra.mxu1 %v24642_v24  ;;  %18021 = vmatprep.subr.bf16.mxu0 %v24645_v38  ;;  %v24703_v24 = vld [vmem:[%s32825_s17 + $0x7b8] ss:$28 sps:$4 sm:$0xff]   ;;  %v24707_v38 = vld [vmem:[%s32825_s17 + $0xec0] ss:$28 sps:$4 sm:$0xff]  }
 0xd39   :  { %21418 = vmatprep.subr.bf16.mxu1 %v24646_v13  ;;  %v24710_v13 = vld [vmem:[%s32825_s17 + $0x7f4] ss:$28 sps:$4 sm:$0xff]  }
 0xd3b   :  { %18022 = vmatpush1.bf16.msra.mxu0 %v24643_v12  ;;  %v24711_v12 = vld [vmem:[%s32825_s17 + $0x10b8] ss:$28 sps:$4 sm:$0xff]  }
 0xd3c   :  { %21419 = vmatpush3.bf16.msra.mxu1 %v24647_v9  ;;  %18023 = vmatprep.subr.bf16.mxu0 %v24650_v31  ;;  %v24708_v9 = vld [vmem:[%s32825_s17 + $0x7f0] ss:$28 sps:$4 sm:$0xff]   ;;  %v24712_v31 = vld [vmem:[%s32825_s17 + $0xef8] ss:$28 sps:$4 sm:$0xff]  }
 0xd3d   :  { %21426 = vmatprep.subr.bf16.mxu1 %v24651_v49  ;;  %v24715_v49 = vld [vmem:[%s32825_s17 + $0x82c] ss:$28 sps:$4 sm:$0xff]  }
 0xd3f   :  { %18407 = vmatmul.mubr.bf16.vlgmr.msra.gmra.mrb[104].mxu1 %v30895_v16  ;;  %18024 = vmatpush1.bf16.msra.mxu0 %v24648_v58  ;;  %v24716_v58 = vld [vmem:[%s32825_s17 + $0x10f0] ss:$28 sps:$4 sm:$0xff]  }
 0xd40   :  { %21427 = vmatpush3.bf16.msra.mxu1 %v24652_v36  ;;  %18446 = vmatprep.mubr.bf16.mxu1 %v30903_v55  ;;  %v24713_v36 = vld [vmem:[%s32825_s17 + $0x828] ss:$28 sps:$4 sm:$0xff]  }
 0xd41   :  { %18025 = vmatprep.subr.bf16.mxu0 %v24655_v48  ;;  %21428 = vmatprep.subr.bf16.mxu1 %v24656_v15  ;;  %v24717_v48 = vld [vmem:[%s32825_s17 + $0xf30] ss:$28 sps:$4 sm:$0xff]   ;;  %v24720_v15 = vld [vmem:[%s32825_s17 + $0x864] ss:$28 sps:$4 sm:$0xff]  }
 0xd43   :  { %18026 = vmatpush1.bf16.msra.mxu0 %v24653_v57  ;;  %v24721_v57 = vld [vmem:[%s32825_s17 + $0x1128] ss:$28 sps:$4 sm:$0xff]  }
 0xd44   :  { %21429 = vmatpush3.bf16.msra.mxu1 %v24657_v6  ;;  %18027 = vmatprep.subr.bf16.mxu0 %v24660_v39  ;;  %v24718_v6 = vld [vmem:[%s32825_s17 + $0x860] ss:$28 sps:$4 sm:$0xff]   ;;  %v24722_v39 = vld [vmem:[%s32825_s17 + $0xf68] ss:$28 sps:$4 sm:$0xff]  }
 0xd45   :  { %21430 = vmatprep.subr.bf16.mxu1 %v24661_v45  ;;  %v24725_v45 = vld [vmem:[%s32825_s17 + $0x89c] ss:$28 sps:$4 sm:$0xff]  }
 0xd47   :  { %18028 = vmatpush1.bf16.msra.mxu0 %v24658_v62  ;;  %v24726_v62 = vld [vmem:[%s32825_s17 + $0x1160] ss:$28 sps:$4 sm:$0xff]  }
 0xd48   :  { %21431 = vmatpush3.bf16.msra.mxu1 %v24662_v27  ;;  %18029 = vmatprep.subr.bf16.mxu0 %v24665_v32  ;;  %v24723_v27 = vld [vmem:[%s32825_s17 + $0x898] ss:$28 sps:$4 sm:$0xff]   ;;  %v24727_v32 = vld [vmem:[%s32825_s17 + $0xfa0] ss:$28 sps:$4 sm:$0xff]  }
 0xd49   :  { %21432 = vmatprep.subr.bf16.mxu1 %v24666_v23  ;;  %v24730_v23 = vld [vmem:[%s32825_s17 + $0x8d4] ss:$28 sps:$4 sm:$0xff]  }
 0xd4b   :  { %18030 = vmatpush1.bf16.msra.mxu0 %v24663_v19  ;;  %v24731_v19 = vld [vmem:[%s32825_s17 + $0x1358] ss:$28 sps:$4 sm:$0xff]  }
 0xd4c   :  { %21433 = vmatpush3.bf16.msra.mxu1 %v24667_v26  ;;  %18031 = vmatprep.subr.bf16.mxu0 %v24670_v11  ;;  %v24728_v26 = vld [vmem:[%s32825_s17 + $0x8d0] ss:$28 sps:$4 sm:$0xff]   ;;  %v24732_v11 = vld [vmem:[%s32825_s17 + $0x1198] ss:$28 sps:$4 sm:$0xff]  }
 0xd4d   :  { %21434 = vmatprep.subr.bf16.mxu1 %v24671_v29  ;;  %v24735_v29 = vld [vmem:[%s32825_s17 + $0x90c] ss:$28 sps:$4 sm:$0xff]  }
 0xd4f   :  { %18032 = vmatpush1.bf16.msra.mxu0 %v24668_v33  ;;  %v24736_v33 = vld [vmem:[%s32825_s17 + $0x1390] ss:$28 sps:$4 sm:$0xff]  }
 0xd50   :  { %21435 = vmatpush3.bf16.msra.mxu1 %v24672_v0  ;;  %18033 = vmatprep.subr.bf16.mxu0 %v24675_v22  ;;  %v24733_v0 = vld [vmem:[%s32825_s17 + $0x908] ss:$28 sps:$4 sm:$0xff]   ;;  %v24737_v22 = vld [vmem:[%s32825_s17 + $0x11d0] ss:$28 sps:$4 sm:$0xff]  }
 0xd51   :  { %21436 = vmatprep.subr.bf16.mxu1 %v24676_v34  ;;  %v24740_v34 = vld [vmem:[%s32825_s17 + $0x944] ss:$28 sps:$4 sm:$0xff]  }
 0xd53   :  { %18034 = vmatpush1.bf16.msra.mxu0 %v24673_v47  ;;  %v24741_v47 = vld [vmem:[%s32825_s17 + $0x13c8] ss:$28 sps:$4 sm:$0xff]  }
 0xd54   :  { %21437 = vmatpush3.bf16.msra.mxu1 %v24677_v60  ;;  %18035 = vmatprep.subr.bf16.mxu0 %v24680_v46  ;;  %v24738_v60 = vld [vmem:[%s32825_s17 + $0x940] ss:$28 sps:$4 sm:$0xff]   ;;  %v24742_v46 = vld [vmem:[%s32825_s17 + $0x1208] ss:$28 sps:$4 sm:$0xff]  }
 0xd55   :  { %21438 = vmatprep.subr.bf16.mxu1 %v24681_v3  ;;  %v24745_v3 = vld [vmem:[%s32825_s17 + $0x97c] ss:$28 sps:$4 sm:$0xff]  }
 0xd57   :  { %18036 = vmatpush1.bf16.msra.mxu0 %v24678_v5  ;;  %v24746_v5 = vld [vmem:[%s32825_s17 + $0x1400] ss:$28 sps:$4 sm:$0xff]  }
 0xd58   :  { %21439 = vmatpush3.bf16.msra.mxu1 %v24682_v25  ;;  %18037 = vmatprep.subr.bf16.mxu0 %v24685_v41  ;;  %v24743_v25 = vld [vmem:[%s32825_s17 + $0x978] ss:$28 sps:$4 sm:$0xff]   ;;  %v24747_v41 = vld [vmem:[%s32825_s17 + $0x1240] ss:$28 sps:$4 sm:$0xff]  }
 0xd59   :  { %21440 = vmatprep.subr.bf16.mxu1 %v24686_v42  ;;  %v24750_v42 = vld [vmem:[%s32825_s17 + $0x9b4] ss:$28 sps:$4 sm:$0xff]  }
 0xd5b   :  { %18038 = vmatpush1.bf16.msra.mxu0 %v24683_v56  ;;  %v24751_v56 = vld [vmem:[%s32825_s17 + $0x1438] ss:$28 sps:$4 sm:$0xff]  }
 0xd5c   :  { %21441 = vmatpush3.bf16.msra.mxu1 %v24687_v21  ;;  %18048 = vmatprep.subr.bf16.mxu0 %v24690_v50  ;;  %v24748_v21 = vld [vmem:[%s32825_s17 + $0x9b0] ss:$28 sps:$4 sm:$0xff]   ;;  %v24752_v50 = vld [vmem:[%s32825_s17 + $0x1278] ss:$28 sps:$4 sm:$0xff]  }
 0xd5d   :  { %21448 = vmatprep.subr.bf16.mxu1 %v24691_v63  ;;  %v24755_v63 = vld [vmem:[%s32825_s17 + $0x9ec] ss:$28 sps:$4 sm:$0xff]  }
 0xd5e   :  { %18040 = vmatmul.mubr.bf16.vlgmr.msra.gmra.mrb[88].mxu0 %v30693_v20  ;;  %v24700_v20 = vld [vmem:[%s32825_s17 + $0x784] ss:$28 sps:$4 sm:$0xff]  }
 0xd5f   :  { %18447 = vmatmul.mubr.bf16.vlgmr.msra.gmra.mrb[108].mxu1 %v31097_v35  ;;  %18049 = vmatpush1.bf16.msra.mxu0 %v24688_v44  ;;  %v24756_v44 = vld [vmem:[%s32825_s17 + $0x1470] ss:$28 sps:$4 sm:$0xff]  }
 0xd60   :  { %18080 = vmatprep.mubr.bf16.mxu0 %v30698_v61  ;;  %21449 = vmatpush3.bf16.msra.mxu1 %v24692_v8  ;;  %v24698_v61 = vld [vmem:[%s32825_s17 + $0x780] ss:$28 sps:$4 sm:$0xff]   ;;  %v24753_v8 = vld [vmem:[%s32825_s17 + $0x9e8] ss:$28 sps:$4 sm:$0xff]  }
 0xd61   :  { %18486 = vmatprep.mubr.bf16.mxu1 %v31105_v2  ;;  %18050 = vmatprep.subr.bf16.mxu0 %v24695_v59  ;;  %v24757_v59 = vld [vmem:[%s32825_s17 + $0x12b0] ss:$28 sps:$4 sm:$0xff]  }
 0xd62   :  { %21450 = vmatprep.subr.bf16.mxu1 %v24696_v37  ;;  %v24760_v37 = vld [vmem:[%s32825_s17 + $0xa24] ss:$28 sps:$4 sm:$0xff]  }
 0xd63   :  { %18051 = vmatpush1.bf16.msra.mxu0 %v24693_v43  ;;  %v24761_v43 = vld [vmem:[%s32825_s17 + $0x14a8] ss:$28 sps:$4 sm:$0xff]  }
 0xd64   :  { %21451 = vmatpush3.bf16.msra.mxu1 %v24697_v30  ;;  %18052 = vmatprep.subr.bf16.mxu0 %v24700_v20  ;;  %v24758_v30 = vld [vmem:[%s32825_s17 + $0xa20] ss:$28 sps:$4 sm:$0xff]   ;;  %v24762_v20 = vld [vmem:[%s32825_s17 + $0x12e8] ss:$28 sps:$4 sm:$0xff]  }
 0xd65   :  { %21452 = vmatprep.subr.bf16.mxu1 %v24701_v18  ;;  %v24765_v18 = vld [vmem:[%s32825_s17 + $0xa5c] ss:$28 sps:$4 sm:$0xff]  }
 0xd67   :  { %18053 = vmatpush1.bf16.msra.mxu0 %v24698_v61  ;;  %v24766_v61 = vld [vmem:[%s32825_s17 + $0x14e0] ss:$28 sps:$4 sm:$0xff]  }
 0xd68   :  { %21453 = vmatpush3.bf16.msra.mxu1 %v24702_v52  ;;  %18054 = vmatprep.subr.bf16.mxu0 %v24705_v10  ;;  %v24763_v52 = vld [vmem:[%s32825_s17 + $0xa58] ss:$28 sps:$4 sm:$0xff]   ;;  %v24767_v10 = vld [vmem:[%s32825_s17 + $0x1320] ss:$28 sps:$4 sm:$0xff]  }
 0xd69   :  { %21454 = vmatprep.subr.bf16.mxu1 %v24706_v14  ;;  %v24770_v14 = vld [vmem:[%s32825_s17 + $0xa94] ss:$28 sps:$4 sm:$0xff]  }
 0xd6b   :  { %18055 = vmatpush1.bf16.msra.mxu0 %v24703_v24  ;;  %v24771_v24 = vld [vmem:[%s32825_s17 + $0x16d8] ss:$28 sps:$4 sm:$0xff]  }
 0xd6c   :  { %21455 = vmatpush3.bf16.msra.mxu1 %v24707_v38  ;;  %18056 = vmatprep.subr.bf16.mxu0 %v24710_v13  ;;  %v24768_v38 = vld [vmem:[%s32825_s17 + $0xa90] ss:$28 sps:$4 sm:$0xff]   ;;  %v24772_v13 = vld [vmem:[%s32825_s17 + $0x1518] ss:$28 sps:$4 sm:$0xff]  }
 0xd6d   :  { %21456 = vmatprep.subr.bf16.mxu1 %v24711_v12  ;;  %v24775_v12 = vld [vmem:[%s32825_s17 + $0xacc] ss:$28 sps:$4 sm:$0xff]  }
 0xd6f   :  { %18057 = vmatpush1.bf16.msra.mxu0 %v24708_v9  ;;  %v24776_v9 = vld [vmem:[%s32825_s17 + $0x1710] ss:$28 sps:$4 sm:$0xff]  }
 0xd70   :  { %21457 = vmatpush3.bf16.msra.mxu1 %v24712_v31  ;;  %18058 = vmatprep.subr.bf16.mxu0 %v24715_v49  ;;  %v24773_v31 = vld [vmem:[%s32825_s17 + $0xac8] ss:$28 sps:$4 sm:$0xff]   ;;  %v24777_v49 = vld [vmem:[%s32825_s17 + $0x1550] ss:$28 sps:$4 sm:$0xff]  }
 0xd71   :  { %21458 = vmatprep.subr.bf16.mxu1 %v24716_v58  ;;  %v24781_v58 = vld [vmem:[%s32825_s17 + $0x1748] ss:$28 sps:$4 sm:$0xff]  }
 0xd73   :  { %18059 = vmatpush1.bf16.msra.mxu0 %v24713_v36  ;;  %v24782_v36 = vld [vmem:[%s32825_s17 + $0x1588] ss:$28 sps:$4 sm:$0xff]  }
 0xd74   :  { %21459 = vmatpush3.bf16.msra.mxu1 %v24717_v48  ;;  %18060 = vmatprep.subr.bf16.mxu0 %v24720_v15  ;;  %v24785_v48 = vld [vmem:[%s32825_s17 + $0xb3c] ss:$28 sps:$4 sm:$0xff]  }
 0xd75   :  { %21460 = vmatprep.subr.bf16.mxu1 %v24721_v57  ;;  %v24786_v15 = vld [vmem:[%s32825_s17 + $0x1780] ss:$28 sps:$4 sm:$0xff]   ;;  %v24783_v57 = vld [vmem:[%s32825_s17 + $0xb38] ss:$28 sps:$4 sm:$0xff]  }
 0xd77   :  { %18061 = vmatpush1.bf16.msra.mxu0 %v24718_v6  ;;  %v24787_v6 = vld [vmem:[%s32825_s17 + $0x15c0] ss:$28 sps:$4 sm:$0xff]  }
 0xd78   :  { %21461 = vmatpush3.bf16.msra.mxu1 %v24722_v39  ;;  %18062 = vmatprep.subr.bf16.mxu0 %v24725_v45  ;;  %v24790_v39 = vld [vmem:[%s32825_s17 + $0xb74] ss:$28 sps:$4 sm:$0xff]  }
 0xd79   :  { %21462 = vmatprep.subr.bf16.mxu1 %v24726_v62  ;;  %v24791_v45 = vld [vmem:[%s32825_s17 + $0x17b8] ss:$28 sps:$4 sm:$0xff]   ;;  %v24788_v62 = vld [vmem:[%s32825_s17 + $0xb70] ss:$28 sps:$4 sm:$0xff]  }
 0xd7b   :  { %18063 = vmatpush1.bf16.msra.mxu0 %v24723_v27  ;;  %v32372_v27 = vld [vmem:[%s32826_s18] sm:$0x7f] }
 0xd7c   :  { %21463 = vmatpush3.bf16.msra.mxu1 %v24727_v32  ;;  %18064 = vmatprep.subr.bf16.mxu0 %v24730_v23  ;;  %v24792_v32 = vld [vmem:[%s32825_s17 + $0x15f8] ss:$28 sps:$4 sm:$0xff]   ;;  %v24795_v23 = vld [vmem:[%s32825_s17 + $0xbac] ss:$28 sps:$4 sm:$0xff]  }
 0xd7d   :  { %21470 = vmatprep.subr.bf16.mxu1 %v24731_v19  ;;  %v24796_v19 = vld [vmem:[%s32825_s17 + $0x17f0] ss:$28 sps:$4 sm:$0xff]  }
 0xd7f   :  { %18487 = vmatmul.mubr.bf16.vlgmr.msra.gmra.mrb[112].mxu1 %v31299_v4  ;;  %18065 = vmatpush1.bf16.msra.mxu0 %v24728_v26  ;;  %v13203_v26 = vrot.slane %v32372_v27, %v33087_v1  ;;  %v24797_v1 = vld [vmem:[%s32825_s17 + $0x1630] ss:$28 sps:$4 sm:$0xff]  }
 0xd80   :  { %21471 = vmatpush3.bf16.msra.mxu1 %v24732_v11  ;;  %18526 = vmatprep.mubr.bf16.mxu1 %v31307_v53  ;;  %v33090_v11 = vld [vmem:[#allocation8_spill] sm:$0xff] }
 0xd81   :  { %18066 = vmatprep.subr.bf16.mxu0 %v24735_v29  ;;  %21472 = vmatprep.subr.bf16.mxu1 %v24736_v33  ;;  %v13211_v29 = vrot.slane %v32372_v27, %v33090_v11  ;;  %v24793_v33 = vld [vmem:[%s32825_s17 + $0xba8] ss:$28 sps:$4 sm:$0xff]   ;;  %v24821_v11 = vld [vmem:[%s32825_s17 + $0xd30] ss:$28 sps:$4 sm:$0xff]  }
 0xd83   :  { %18067 = vmatpush1.bf16.msra.mxu0 %v24733_v0  ;;  %v33091_v0 = vld [vmem:[#allocation7_spill] sm:$0xff] }
 0xd84   :  { %21473 = vmatpush3.bf16.msra.mxu1 %v24737_v22  ;;  %18068 = vmatprep.subr.bf16.mxu0 %v24740_v34  ;;  %v13207_v22 = vrot.slane %v32372_v27, %v33091_v0  ;;  %v33092_v34 = vld [vmem:[#allocation9_spill] sm:$0xff] }
 0xd85   :  { %21474 = vmatprep.subr.bf16.mxu1 %v24741_v47  ;;  %v13215_v47 = vrot.slane %v32372_v27, %v33092_v34 }
 0xd87   :  { %18069 = vmatpush1.bf16.msra.mxu0 %v24738_v60  ;;  %v24800_v60 = vld [vmem:[%s32825_s17 + $0xbe4] ss:$28 sps:$4 sm:$0xff]  }
 0xd88   :  { %21475 = vmatpush3.bf16.msra.mxu1 %v24742_v46  ;;  %18070 = vmatprep.subr.bf16.mxu0 %v24745_v3  ;;  %v24801_v3 = vld [vmem:[%s32825_s17 + $0x1828] ss:$28 sps:$4 sm:$0xff]  }
 0xd89   :  { %21476 = vmatprep.subr.bf16.mxu1 %v24746_v5 }
 0xd8b   :  { %18071 = vmatpush1.bf16.msra.mxu0 %v24743_v25 }
 0xd8c   :  { %21477 = vmatpush3.bf16.msra.mxu1 %v24747_v41  ;;  %18072 = vmatprep.subr.bf16.mxu0 %v24750_v42  ;;  %v24798_v42 = vld [vmem:[%s32825_s17 + $0xbe0] ss:$28 sps:$4 sm:$0xff]  }
 0xd8d   :  { %21478 = vmatprep.subr.bf16.mxu1 %v24751_v56 }
 0xd8f   :  { %18073 = vmatpush1.bf16.msra.mxu0 %v24748_v21 }
 0xd90   :  { %21479 = vmatpush3.bf16.msra.mxu1 %v24752_v50  ;;  %18074 = vmatprep.subr.bf16.mxu0 %v24755_v63 }
 0xd91   :  { %21480 = vmatprep.subr.bf16.mxu1 %v24756_v44  ;;  %v24802_v44 = vld [vmem:[%s32825_s17 + $0x1668] ss:$28 sps:$4 sm:$0xff]  }
 0xd93   :  { %18075 = vmatpush1.bf16.msra.mxu0 %v24753_v8  ;;  %v24805_v8 = vld [vmem:[%s32825_s17 + $0xc1c] ss:$28 sps:$4 sm:$0xff]  }
 0xd94   :  { %21481 = vmatpush3.bf16.msra.mxu1 %v24757_v59  ;;  %18076 = vmatprep.subr.bf16.mxu0 %v24760_v37 }
 0xd95   :  { %21482 = vmatprep.subr.bf16.mxu1 %v24761_v43 }
 0xd97   :  { %18077 = vmatpush1.bf16.msra.mxu0 %v24758_v30 }
 0xd98   :  { %21483 = vmatpush3.bf16.msra.mxu1 %v24762_v20  ;;  %18078 = vmatprep.subr.bf16.mxu0 %v24765_v18  ;;  %v24806_v20 = vld [vmem:[%s32825_s17 + $0x1860] ss:$28 sps:$4 sm:$0xff]  }
 0xd99   :  { %21484 = vmatprep.subr.bf16.mxu1 %v24766_v61 }
 0xd9b   :  { %18079 = vmatpush1.bf16.msra.mxu0 %v24763_v52 }
 0xd9c   :  { %21485 = vmatpush3.bf16.msra.mxu1 %v24767_v10  ;;  %18089 = vmatprep.subr.bf16.mxu0 %v24770_v14  ;;  %v24803_v14 = vld [vmem:[%s32825_s17 + $0xc18] ss:$28 sps:$4 sm:$0xff]  }
 0xd9d   :  { %21492 = vmatprep.subr.bf16.mxu1 %v24771_v24  ;;  %v24807_v24 = vld [vmem:[%s32825_s17 + $0x16a0] ss:$28 sps:$4 sm:$0xff]  }
 0xd9e   :  { %18081 = vmatmul.mubr.bf16.vlgmr.msra.gmra.mrb[88].mxu0 %v30895_v16  ;;  %v24780_v16 = vld [vmem:[%s32825_s17 + $0xb04] ss:$28 sps:$4 sm:$0xff]  }
 0xd9f   :  { %18527 = vmatmul.mubr.bf16.vlgmr.msra.gmra.mrb[116].mxu1 %v31501_v40  ;;  %18090 = vmatpush1.bf16.msra.mxu0 %v24768_v38  ;;  %v24810_v38 = vld [vmem:[%s32825_s17 + $0xc54] ss:$28 sps:$4 sm:$0xff]  }
 0xda0   :  { %18121 = vmatprep.mubr.bf16.mxu0 %v30903_v55  ;;  %21493 = vmatpush3.bf16.msra.mxu1 %v24772_v13  ;;  %v24778_v55 = vld [vmem:[%s32825_s17 + $0xb00] ss:$28 sps:$4 sm:$0xff]   ;;  %v24814_v13 = vld [vmem:[%s32825_s17 + $0x1898] ss:$0 sps:$4 sm:$0xff]  }
 0xda1   :  { %18566 = vmatprep.mubr.bf16.mxu1 %v31509_v7  ;;  %18091 = vmatprep.subr.bf16.mxu0 %v24775_v12  ;;  %v24808_v12 = vld [vmem:[%s32825_s17 + $0xc50] ss:$28 sps:$4 sm:$0xff]  }
 0xda2   :  { %21494 = vmatprep.subr.bf16.mxu1 %v24776_v9  ;;  %v24813_v9 = vld [vmem:[%s32825_s17 + $0xc8c] ss:$28 sps:$4 sm:$0xff]  }
 0xda3   :  { %18092 = vmatpush1.bf16.msra.mxu0 %v24773_v31  ;;  %v17308_v31 = vsel %vm17288_vm7, %v24814_v13, 0  ;;  %v24848_v13 = vld [vmem:[%s32825_s17 + $0xf28] ss:$28 sps:$4 sm:$0xff]  }
 0xda4   :  { %21495 = vmatpush3.bf16.msra.mxu1 %v24777_v49  ;;  %18093 = vmatprep.subr.bf16.mxu0 %v24780_v16  ;;  %v24811_v49 = vld [vmem:[%s32825_s17 + $0xc88] ss:$28 sps:$4 sm:$0xff]  }
 0xda5   :  { %21496 = vmatprep.subr.bf16.mxu1 %v24781_v58  ;;  %v24817_v58 = vld [vmem:[%s32825_s17 + $0xcc4] ss:$28 sps:$4 sm:$0xff]  }
 0xda7   :  { %18094 = vmatpush1.bf16.msra.mxu0 %v24778_v55 }
 0xda8   :  { %21497 = vmatpush3.bf16.msra.mxu1 %v24782_v36  ;;  %18095 = vmatprep.subr.bf16.mxu0 %v24785_v48 }
 0xda9   :  { %21498 = vmatprep.subr.bf16.mxu1 %v24786_v15 }
 0xdab   :  { %18096 = vmatpush1.bf16.msra.mxu0 %v24783_v57 }
 0xdac   :  { %21499 = vmatpush3.bf16.msra.mxu1 %v24787_v6  ;;  %18097 = vmatprep.subr.bf16.mxu0 %v24790_v39  ;;  %v24815_v39 = vld [vmem:[%s32825_s17 + $0xcc0] ss:$28 sps:$4 sm:$0xff]  }
 0xdad   :  { %21500 = vmatprep.subr.bf16.mxu1 %v24791_v45 }
 0xdaf   :  { %18098 = vmatpush1.bf16.msra.mxu0 %v24788_v62  ;;  %v24820_v62 = vld [vmem:[%s32825_s17 + $0xcfc] ss:$28 sps:$4 sm:$0xff]  }
 0xdb0   :  { %21501 = vmatpush3.bf16.msra.mxu1 %v24792_v32  ;;  %18099 = vmatprep.subr.bf16.mxu0 %v24795_v23  ;;  %v24818_v23 = vld [vmem:[%s32825_s17 + $0xcf8] ss:$28 sps:$4 sm:$0xff]  }
 0xdb1   :  { %v17631_v46 = vpop.f32.mrb[84].mxu0  ;;  %21502 = vmatprep.subr.bf16.mxu1 %v24796_v19  ;;  %v24823_v19 = vld [vmem:[%s32825_s17 + $0xd34] ss:$28 sps:$4 sm:$0xff]  }
 0xdb2   :  { %v22254_v5 = vadd.f32 %v17631_v46, %v13203_v26  ;;  %v17959_v25 = vpop.f32.mrb[92].mxu1  ;;  %v17633_v41 = vpop.f32.mrb[85].mxu0  ;;  %v24829_v46 = vld [vmem:[%s32825_s17 + $0xda4] ss:$28 sps:$4 sm:$0xff]  }
 0xdb3   :  { %v22256_v56 = vadd.f32 %v17959_v25, %v13211_v29  ;;  %v22255_v21 = vadd.f32 %v17633_v41, %v13207_v22  ;;  %v17961_v50 = vpop.f32.mrb[93].mxu1  ;;  %18100 = vmatpush1.bf16.msra.mxu0 %v24793_v33  ;;  %v17635_v63 = vpop.f32.mrb[86].mxu0  ;;  %v24826_v29 = vld [vmem:[%s32825_s17 + $0xd6c] ss:$28 sps:$4 sm:$0xff]   ;;  %v33093_v22 = vld [vmem:[#allocation5_spill] sm:$0xff] }
 0xdb4   :  { %v20521_v59 = vmul.f32 -1.442695, %v22254_v5  ;;  %v22257_v37 = vadd.f32 %v17961_v50, %v13215_v47  ;;  %21503 = vmatpush3.bf16.msra.mxu1 %v24797_v1  ;;  %v17963_v43 = vpop.f32.mrb[94].mxu1  ;;  %v17636_v30 = vpop.f32.mrb[87].mxu0  ;;  %18101 = vmatprep.subr.bf16.mxu0 %v24800_v60  ;;  %v24824_v1 = vld [vmem:[%s32825_s17 + $0xd68] ss:$28 sps:$4 sm:$0xff]  }
 0xdb5   :  { %v20523_v18 = vmul.f32 -1.442695, %v22256_v56  ;;  %v20522_v61 = vmul.f32 -1.442695, %v22255_v21  ;;  %v17964_v52 = vpop.f32.mrb[95].mxu1  ;;  %21504 = vmatprep.subr.bf16.mxu1 %v24801_v3 }
 0xdb6   :  { %24991 = vpow2.f32 %v20521_v59  ;;  %v20524_v10 = vmul.f32 -1.442695, %v22257_v37  ;;  %v24827_v56 = vld [vmem:[%s32825_s17 + $0xda0] ss:$28 sps:$4 sm:$0xff]   ;;  %v24830_v37 = vld [vmem:[%s32825_s17 + $0xdd8] ss:$28 sps:$4 sm:$0xff]  }
 0xdb7   :  { %24993 = vpow2.f32 %v20523_v18  ;;  %18102 = vmatpush1.bf16.msra.mxu0 %v24798_v42  ;;  %v24835_v43 = vld [vmem:[%s32825_s17 + $0xe14] ss:$28 sps:$4 sm:$0xff]   ;;  %v24836_v18 = vld [vmem:[%s32825_s17 + $0xe48] ss:$28 sps:$4 sm:$0xff]   ;;  %v24839_v52 = vld [vmem:[%s32825_s17 + $0xe80] ss:$28 sps:$4 sm:$0xff]  }
 0xdb8   :  { %24995 = vpow2.f32 %v20522_v61  ;;  %21505 = vmatpush3.bf16.msra.mxu1 %v24802_v44  ;;  %18103 = vmatprep.subr.bf16.mxu0 %v24805_v8  ;;  %v24832_v44 = vld [vmem:[%s32825_s17 + $0xddc] ss:$28 sps:$4 sm:$0xff]   ;;  %v24833_v30 = vld [vmem:[%s32825_s17 + $0xe10] ss:$28 sps:$4 sm:$0xff]   ;;  %v24841_v61 = vld [vmem:[%s32825_s17 + $0xe84] ss:$28 sps:$4 sm:$0xff]  }
 0xdb9   :  { %24997 = vpow2.f32 %v20524_v10  ;;  %21506 = vmatprep.subr.bf16.mxu1 %v24806_v20  ;;  %v24838_v20 = vld [vmem:[%s32825_s17 + $0xe4c] ss:$28 sps:$4 sm:$0xff]   ;;  %v24847_v10 = vld [vmem:[%s32825_s17 + $0xef4] ss:$28 sps:$4 sm:$0xff]  }
 0xdbb   :  { %18104 = vmatpush1.bf16.msra.mxu0 %v24803_v14  ;;  %v24845_v14 = vld [vmem:[%s32825_s17 + $0xef0] ss:$28 sps:$4 sm:$0xff]  }
 0xdbc   :  { %21507 = vmatpush3.bf16.msra.mxu1 %v24807_v24  ;;  %18105 = vmatprep.subr.bf16.mxu0 %v24810_v38  ;;  %v13226_v24 = vsub.s32 6, %v33093_v22  ;;  %v24850_v38 = vld [vmem:[%s32825_s17 + $0xf2c] ss:$28 sps:$4 sm:$0xff]  }
 0xdbd   :  { %21570 = vmatprep.subr.bf16.mxu1 %v32997_v51 }
 0xdbf   :  { %18567 = vmatmul.mubr.bf16.vlgmr.msra.gmra.mrb[120].mxu1 %v31699_v17  ;;  %18106 = vmatpush1.bf16.msra.mxu0 %v24808_v12  ;;  %v13227_v12 = vrot.slane %v32372_v27, %v13226_v24 }
 0xdc0   :  { %v24992_v16 = vpop.eup %24991  ;;  %18107 = vmatprep.subr.bf16.mxu0 %v24813_v9  ;;  %21571 = vmatpush3.bf16.msra.mxu1 %v17308_v31  ;;  %v24853_v9 = vld [vmem:[%s32825_s17 + $0xf64] ss:$28 sps:$4 sm:$0xff]  }
 0xdc1   :  { %v24994_v55 = vpop.eup %24993  ;;  %v18635_v36 = vadd.f32 1.0, %v24992_v16  ;;  %21572 = vmatprep.mubr.msk.bf16.mxu1 %vm25045_vm2, %v32997_v51  ;;  %v25047_v51 = vmov 1983009808   ;;  %v24851_v16 = vld [vmem:[%s32825_s17 + $0xf60] ss:$28 sps:$4 sm:$0xff]  }
 0xdc2   :  { %v24996_v48 = vpop.eup %24995  ;;  %v18637_v15 = vadd.f32 1.0, %v24994_v55  ;;  %v18666_v32 = vunpack.c.l.s4 %v25047_v51  ;;  %v24860_v51 = vld [vmem:[%s32825_s17 + $0x1008] ss:$28 sps:$4 sm:$0xff]  }
 0xdc3   :  { %v24998_v57 = vpop.eup %24997  ;;  %24999 = vrcp.f32 %v18635_v36  ;;  %v18636_v6 = vadd.f32 1.0, %v24996_v48  ;;  %18108 = vmatpush1.bf16.msra.mxu0 %v24811_v49  ;;  %v24856_v48 = vld [vmem:[%s32825_s17 + $0xf9c] ss:$28 sps:$4 sm:$0xff]  }
 0xdc4   :  { %25001 = vrcp.f32 %v18637_v15  ;;  %v18638_v45 = vadd.f32 1.0, %v24998_v57  ;;  %18109 = vmatprep.subr.bf16.mxu0 %v24817_v58  ;;  %v18667_v26 = vunpack.c.0.s8 %v18666_v32  ;;  %v24865_v32 = vld [vmem:[%s32825_s17 + $0x1044] ss:$28 sps:$4 sm:$0xff]  }
 0xdc5   :  { %25003 = vrcp.f32 %v18636_v6  ;;  %v24854_v6 = vld [vmem:[%s32825_s17 + $0xf98] ss:$28 sps:$4 sm:$0xff]  }
 0xdc6   :  { %25005 = vrcp.f32 %v18638_v45  ;;  %v32465_v34 = vsub.s32 %v18667_v26, %v33093_v22  ;;  %v24857_v45 = vld [vmem:[%s32825_s17 + $0xfd0] ss:$28 sps:$4 sm:$0xff]   ;;  %v24866_v26 = vld [vmem:[%s32825_s17 + $0x1078] ss:$28 sps:$4 sm:$0xff]  }
 0xdc7   :  { %21573 = vmatmul.mubr.msk.bf16.vlgmr.msra.gmra.mrb[124].mxu1 %vm9825_vm6, %v31719_v28  ;;  %18110 = vmatpush1.bf16.msra.mxu0 %v24815_v39  ;;  %v24859_v39 = vld [vmem:[%s32825_s17 + $0xfd4] ss:$28 sps:$4 sm:$0xff]  }
 0xdc8   :  { %18111 = vmatprep.subr.bf16.mxu0 %v24820_v62  ;;  %v24862_v62 = vld [vmem:[%s32825_s17 + $0x100c] ss:$28 sps:$4 sm:$0xff]  }
 0xdcb   :  { %18112 = vmatpush1.bf16.msra.mxu0 %v24818_v23  ;;  %v24863_v23 = vld [vmem:[%s32825_s17 + $0x1040] ss:$28 sps:$4 sm:$0xff]  }
 0xdcc   :  { %18113 = vmatprep.subr.bf16.mxu0 %v24823_v19  ;;  %v24868_v19 = vld [vmem:[%s32825_s17 + $0x107c] ss:$28 sps:$4 sm:$0xff]  }
 0xdcd   :  { %v25000_v33 = vpop.eup %24999 }
 0xdce   :  { %v25002_v0 = vpop.eup %25001 }
 0xdcf   :  { %v25004_v47 = vpop.eup %25003  ;;  %18114 = vmatpush1.bf16.msra.mxu0 %v24821_v11  ;;  %v24871_v11 = vld [vmem:[%s32825_s17 + $0x10b4] ss:$28 sps:$4 sm:$0xff]  }
 0xdd0   :  { %v25006_v60 = vpop.eup %25005  ;;  %18115 = vmatprep.subr.bf16.mxu0 %v24826_v29  ;;  %v18663_v3 = vcombine.low %v25000_v33, %v25004_v47  ;;  %v24869_v29 = vld [vmem:[%s32825_s17 + $0x10b0] ss:$28 sps:$4 sm:$0xff]   ;;  %v24877_v47 = vld [vmem:[%s32825_s17 + $0x1124] ss:$28 sps:$4 sm:$0xff]  }
 0xdd1   :  { %v18664_v5 = vcombine.low %v25002_v0, %v25006_v60  ;;  %v24874_v33 = vld [vmem:[%s32825_s17 + $0x10ec] ss:$28 sps:$4 sm:$0xff]  }
 0xdd2   :  { %v21376_v25 = vpop.f32.mrb[96].mxu1  ;;  %v18671_v41 = vrot.slane %v18663_v3, %v32465_v34  ;;  %v24872_v0 = vld [vmem:[%s32825_s17 + $0x10e8] ss:$28 sps:$4 sm:$0xff]  }
 0xdd3   :  { %v21377_v42 = vpop.f32.mrb[97].mxu1  ;;  %18116 = vmatpush1.bf16.msra.mxu0 %v24824_v1  ;;  %v18678_v21 = vrot.slane %v18664_v5, %v32465_v34 }
 0xdd4   :  { %v21378_v50 = vadd.f32 %v21377_v42, %v21376_v25  ;;  %v21379_v63 = vpop.f32.mrb[98].mxu1  ;;  %18117 = vmatprep.subr.bf16.mxu0 %v24829_v46  ;;  %v24875_v46 = vld [vmem:[%s32825_s17 + $0x1120] ss:$28 sps:$4 sm:$0xff]  }
 0xdd5   :  { %v21380_v8 = vpop.f32.mrb[99].mxu1  ;;  %v18679_v59 = vcombine.low %v18671_v41, %v18678_v21  ;;  %v24880_v25 = vld [vmem:[%s32825_s17 + $0x115c] ss:$28 sps:$4 sm:$0xff]   ;;  %v24883_v21 = vld [vmem:[%s32825_s17 + $0x1194] ss:$28 sps:$4 sm:$0xff]  }
 0xdd6   :  { %v18329_v58 = vadd.f32 %v21378_v50, %v13227_v12  ;;  %v24881_v50 = vld [vmem:[%s32825_s17 + $0x1190] ss:$28 sps:$4 sm:$0xff]   ;;  %v24889_v8 = vld [vmem:[%s32825_s17 + $0x1204] ss:$28 sps:$4 sm:$0xff]  }
 0xdd7   :  { %18118 = vmatpush1.bf16.msra.mxu0 %v24827_v56  ;;  %18698 = vst [vmem:[#allocation2] sm:$0xff] %v18679_v59  ;;  %v24878_v56 = vld [vmem:[%s32825_s17 + $0x1158] ss:$28 sps:$4 sm:$0xff]   ;;  %v24886_v63 = vld [vmem:[%s32825_s17 + $0x11cc] ss:$28 sps:$4 sm:$0xff]  }
 0xdd8   :  { %18119 = vmatprep.subr.bf16.mxu0 %v24832_v44  ;;  %v24884_v44 = vld [vmem:[%s32825_s17 + $0x11c8] ss:$28 sps:$4 sm:$0xff]   ;;  %v24887_v59 = vld [vmem:[%s32825_s17 + $0x1200] ss:$28 sps:$4 sm:$0xff]   ;;  %v24907_v12 = vld [vmem:[%s32825_s17 + $0x1354] ss:$28 sps:$4 sm:$0xff]  }
 0xddb   :  { %18120 = vmatpush1.bf16.msra.mxu0 %v24830_v37  ;;  %v24895_v37 = vld [vmem:[%s32825_s17 + $0x1274] ss:$28 sps:$4 sm:$0xff]  }
 0xddc   :  { %18130 = vmatprep.subr.bf16.mxu0 %v24835_v43  ;;  %v24893_v43 = vld [vmem:[%s32825_s17 + $0x1270] ss:$28 sps:$4 sm:$0xff]  }
 0xdde   :  { %18122 = vmatmul.mubr.bf16.vlgmr.msra.gmra.mrb[88].mxu0 %v31097_v35  ;;  %v24844_v35 = vld [vmem:[%s32825_s17 + $0xebc] ss:$28 sps:$4 sm:$0xff]  }
 0xddf   :  { %18131 = vmatpush1.bf16.msra.mxu0 %v24833_v30  ;;  %18162 = vmatprep.mubr.bf16.mxu0 %v31105_v2  ;;  %v24842_v2 = vld [vmem:[%s32825_s17 + $0xeb8] ss:$28 sps:$4 sm:$0xff]   ;;  %v24898_v30 = vld [vmem:[%s32825_s17 + $0x12ac] ss:$28 sps:$4 sm:$0xff]  }
 0xde0   :  { %18132 = vmatprep.subr.bf16.mxu0 %v24838_v20  ;;  %v24896_v20 = vld [vmem:[%s32825_s17 + $0x12a8] ss:$28 sps:$4 sm:$0xff]  }
 0xde3   :  { %18133 = vmatpush1.bf16.msra.mxu0 %v24836_v18  ;;  %v24901_v18 = vld [vmem:[%s32825_s17 + $0x12e4] ss:$28 sps:$4 sm:$0xff]  }
 0xde4   :  { %18134 = vmatprep.subr.bf16.mxu0 %v24841_v61 }
 0xde7   :  { %18135 = vmatpush1.bf16.msra.mxu0 %v24839_v52 }
 0xde8   :  { %18136 = vmatprep.subr.bf16.mxu0 %v24844_v35  ;;  %v24899_v35 = vld [vmem:[%s32825_s17 + $0x12e0] ss:$28 sps:$4 sm:$0xff]  }
 0xdeb   :  { %18137 = vmatpush1.bf16.msra.mxu0 %v24842_v2 }
 0xdec   :  { %18138 = vmatprep.subr.bf16.mxu0 %v24847_v10 }
 0xdef   :  { %18139 = vmatpush1.bf16.msra.mxu0 %v24845_v14  ;;  %v24904_v14 = vld [vmem:[%s32825_s17 + $0x131c] ss:$28 sps:$4 sm:$0xff]  }
 0xdf0   :  { %18140 = vmatprep.subr.bf16.mxu0 %v24850_v38 }
 0xdf2   :  { %v21398_v31 = vpop.f32.mrb[100].mxu1 }
 0xdf3   :  { %v21399_v49 = vpop.f32.mrb[101].mxu1  ;;  %18141 = vmatpush1.bf16.msra.mxu0 %v24848_v13  ;;  %v24902_v13 = vld [vmem:[%s32825_s17 + $0x1318] ss:$28 sps:$4 sm:$0xff]  }
 0xdf4   :  { %v21400_v55 = vadd.f32 %v21399_v49, %v21398_v31  ;;  %v21401_v36 = vpop.f32.mrb[102].mxu1  ;;  %18142 = vmatprep.subr.bf16.mxu0 %v24853_v9  ;;  %v24905_v9 = vld [vmem:[%s32825_s17 + $0x1350] ss:$28 sps:$4 sm:$0xff]   ;;  %v24908_v49 = vld [vmem:[%s32825_s17 + $0x1388] ss:$28 sps:$4 sm:$0xff]  }
 0xdf5   :  { %v21402_v15 = vpop.f32.mrb[103].mxu1  ;;  %v24910_v31 = vld [vmem:[%s32825_s17 + $0x138c] ss:$28 sps:$4 sm:$0xff]   ;;  %v24914_v36 = vld [vmem:[%s32825_s17 + $0x13f8] ss:$28 sps:$4 sm:$0xff]  }
 0xdf6   :  { %v18369_v57 = vadd.f32 %v21400_v55, %v18329_v58  ;;  %v24911_v58 = vld [vmem:[%s32825_s17 + $0x13c0] ss:$28 sps:$4 sm:$0xff]   ;;  %v24917_v15 = vld [vmem:[%s32825_s17 + $0x1430] ss:$28 sps:$4 sm:$0xff]  }
 0xdf7   :  { %18143 = vmatpush1.bf16.msra.mxu0 %v24851_v16  ;;  %v24913_v16 = vld [vmem:[%s32825_s17 + $0x13c4] ss:$28 sps:$4 sm:$0xff]   ;;  %v24916_v55 = vld [vmem:[%s32825_s17 + $0x13fc] ss:$28 sps:$4 sm:$0xff]  }
 0xdf8   :  { %18144 = vmatprep.subr.bf16.mxu0 %v24856_v48  ;;  %v24919_v48 = vld [vmem:[%s32825_s17 + $0x1434] ss:$28 sps:$4 sm:$0xff]  }
 0xdfb   :  { %18145 = vmatpush1.bf16.msra.mxu0 %v24854_v6  ;;  %v24920_v6 = vld [vmem:[%s32825_s17 + $0x1468] ss:$28 sps:$4 sm:$0xff]  }
 0xdfc   :  { %18146 = vmatprep.subr.bf16.mxu0 %v24859_v39  ;;  %v24925_v39 = vld [vmem:[%s32825_s17 + $0x14a4] ss:$28 sps:$4 sm:$0xff]  }
 0xdff   :  { %18147 = vmatpush1.bf16.msra.mxu0 %v24857_v45 }
 0xe00   :  { %18148 = vmatprep.subr.bf16.mxu0 %v24862_v62 }
 0xe03   :  { %18149 = vmatpush1.bf16.msra.mxu0 %v24860_v51  ;;  %v24923_v51 = vld [vmem:[%s32825_s17 + $0x14a0] ss:$28 sps:$4 sm:$0xff]  }
 0xe04   :  { %18150 = vmatprep.subr.bf16.mxu0 %v24865_v32 }
 0xe07   :  { %18151 = vmatpush1.bf16.msra.mxu0 %v24863_v23 }
 0xe08   :  { %18152 = vmatprep.subr.bf16.mxu0 %v24868_v19  ;;  %v24928_v19 = vld [vmem:[%s32825_s17 + $0x14dc] ss:$28 sps:$4 sm:$0xff]  }
 0xe0b   :  { %18153 = vmatpush1.bf16.msra.mxu0 %v24866_v26 }
 0xe0c   :  { %18154 = vmatprep.subr.bf16.mxu0 %v24871_v11 }
 0xe0f   :  { %18155 = vmatpush1.bf16.msra.mxu0 %v24869_v29  ;;  %v24926_v29 = vld [vmem:[%s32825_s17 + $0x14d8] ss:$28 sps:$4 sm:$0xff]  }
 0xe10   :  { %18156 = vmatprep.subr.bf16.mxu0 %v24874_v33  ;;  %v24931_v33 = vld [vmem:[%s32825_s17 + $0x1514] ss:$28 sps:$4 sm:$0xff]  }
 0xe12   :  { %v21420_v1 = vpop.f32.mrb[104].mxu1 }
 0xe13   :  { %v21421_v60 = vpop.f32.mrb[105].mxu1  ;;  %18157 = vmatpush1.bf16.msra.mxu0 %v24872_v0  ;;  %v24929_v0 = vld [vmem:[%s32825_s17 + $0x1510] ss:$28 sps:$4 sm:$0xff]  }
 0xe14   :  { %v21422_v3 = vadd.f32 %v21421_v60, %v21420_v1  ;;  %v21423_v5 = vpop.f32.mrb[106].mxu1  ;;  %18158 = vmatprep.subr.bf16.mxu0 %v24877_v47  ;;  %v24934_v47 = vld [vmem:[%s32825_s17 + $0x154c] ss:$28 sps:$4 sm:$0xff]   ;;  %v24937_v60 = vld [vmem:[%s32825_s17 + $0x1584] ss:$28 sps:$4 sm:$0xff]  }
 0xe15   :  { %v21424_v41 = vpop.f32.mrb[107].mxu1  ;;  %v24932_v1 = vld [vmem:[%s32825_s17 + $0x1548] ss:$28 sps:$4 sm:$0xff]   ;;  %v24941_v5 = vld [vmem:[%s32825_s17 + $0x15f0] ss:$28 sps:$4 sm:$0xff]  }
 0xe16   :  { %v18409_v42 = vadd.f32 %v21422_v3, %v18369_v57  ;;  %v24922_v57 = vld [vmem:[%s32825_s17 + $0x146c] ss:$28 sps:$4 sm:$0xff]   ;;  %v24943_v3 = vld [vmem:[%s32825_s17 + $0x15f4] ss:$28 sps:$4 sm:$0xff]  }
 0xe17   :  { %18159 = vmatpush1.bf16.msra.mxu0 %v24875_v46  ;;  %v24935_v46 = vld [vmem:[%s32825_s17 + $0x1580] ss:$28 sps:$4 sm:$0xff]   ;;  %v24944_v41 = vld [vmem:[%s32825_s17 + $0x1628] ss:$28 sps:$4 sm:$0xff]  }
 0xe18   :  { %18160 = vmatprep.subr.bf16.mxu0 %v24880_v25  ;;  %v24946_v25 = vld [vmem:[%s32825_s17 + $0x162c] ss:$28 sps:$4 sm:$0xff]  }
 0xe1b   :  { %18161 = vmatpush1.bf16.msra.mxu0 %v24878_v56 }
 0xe1c   :  { %18171 = vmatprep.subr.bf16.mxu0 %v24883_v21 }
 0xe1e   :  { %18163 = vmatmul.mubr.bf16.vlgmr.msra.gmra.mrb[88].mxu0 %v31299_v4  ;;  %v24892_v4 = vld [vmem:[%s32825_s17 + $0x123c] ss:$28 sps:$4 sm:$0xff]  }
 0xe1f   :  { %18172 = vmatpush1.bf16.msra.mxu0 %v24881_v50  ;;  %18203 = vmatprep.mubr.bf16.mxu0 %v31307_v53  ;;  %v24890_v53 = vld [vmem:[%s32825_s17 + $0x1238] ss:$28 sps:$4 sm:$0xff]   ;;  %v24947_v50 = vld [vmem:[%s32825_s17 + $0x1660] ss:$28 sps:$4 sm:$0xff]  }
 0xe20   :  { %18173 = vmatprep.subr.bf16.mxu0 %v24886_v63 }
 0xe23   :  { %18174 = vmatpush1.bf16.msra.mxu0 %v24884_v44 }
 0xe24   :  { %18175 = vmatprep.subr.bf16.mxu0 %v24889_v8  ;;  %v24952_v8 = vld [vmem:[%s32825_s17 + $0x169c] ss:$28 sps:$4 sm:$0xff]  }
 0xe27   :  { %18176 = vmatpush1.bf16.msra.mxu0 %v24887_v59 }
 0xe28   :  { %18177 = vmatprep.subr.bf16.mxu0 %v24892_v4 }
 0xe2b   :  { %18178 = vmatpush1.bf16.msra.mxu0 %v24890_v53  ;;  %v24950_v53 = vld [vmem:[%s32825_s17 + $0x1698] ss:$28 sps:$4 sm:$0xff]  }
 0xe2c   :  { %18179 = vmatprep.subr.bf16.mxu0 %v24895_v37  ;;  %v24955_v37 = vld [vmem:[%s32825_s17 + $0x16d4] ss:$28 sps:$4 sm:$0xff]  }
 0xe2f   :  { %18180 = vmatpush1.bf16.msra.mxu0 %v24893_v43  ;;  %v24953_v43 = vld [vmem:[%s32825_s17 + $0x16d0] ss:$28 sps:$4 sm:$0xff]  }
 0xe30   :  { %18181 = vmatprep.subr.bf16.mxu0 %v24898_v30  ;;  %v24958_v30 = vld [vmem:[%s32825_s17 + $0x170c] ss:$28 sps:$4 sm:$0xff]  }
 0xe32   :  { %v21442_v61 = vpop.f32.mrb[108].mxu1 }
 0xe33   :  { %v21443_v52 = vpop.f32.mrb[109].mxu1  ;;  %18182 = vmatpush1.bf16.msra.mxu0 %v24896_v20  ;;  %v24956_v20 = vld [vmem:[%s32825_s17 + $0x1708] ss:$28 sps:$4 sm:$0xff]  }
 0xe34   :  { %v21444_v2 = vadd.f32 %v21443_v52, %v21442_v61  ;;  %v21445_v10 = vpop.f32.mrb[110].mxu1  ;;  %18183 = vmatprep.subr.bf16.mxu0 %v24901_v18  ;;  %v24961_v18 = vld [vmem:[%s32825_s17 + $0x1744] ss:$28 sps:$4 sm:$0xff]   ;;  %v24964_v52 = vld [vmem:[%s32825_s17 + $0x177c] ss:$28 sps:$4 sm:$0xff]  }
 0xe35   :  { %v21446_v24 = vpop.f32.mrb[111].mxu1  ;;  %v24959_v61 = vld [vmem:[%s32825_s17 + $0x1740] ss:$28 sps:$4 sm:$0xff]   ;;  %v24965_v10 = vld [vmem:[%s32825_s17 + $0x17b0] ss:$28 sps:$4 sm:$0xff]  }
 0xe36   :  { %v18449_v38 = vadd.f32 %v21444_v2, %v18409_v42  ;;  %v24949_v42 = vld [vmem:[%s32825_s17 + $0x1664] ss:$28 sps:$4 sm:$0xff]   ;;  %v24967_v2 = vld [vmem:[%s32825_s17 + $0x17b4] ss:$28 sps:$4 sm:$0xff]  }
 0xe37   :  { %18184 = vmatpush1.bf16.msra.mxu0 %v24899_v35  ;;  %v24962_v35 = vld [vmem:[%s32825_s17 + $0x1778] ss:$28 sps:$4 sm:$0xff]   ;;  %v24968_v24 = vld [vmem:[%s32825_s17 + $0x17e8] ss:$28 sps:$4 sm:$0xff]  }
 0xe38   :  { %18185 = vmatprep.subr.bf16.mxu0 %v24904_v14  ;;  %v24970_v14 = vld [vmem:[%s32825_s17 + $0x17ec] ss:$28 sps:$4 sm:$0xff]  }
 0xe3b   :  { %18186 = vmatpush1.bf16.msra.mxu0 %v24902_v13 }
 0xe3c   :  { %18187 = vmatprep.subr.bf16.mxu0 %v24907_v12 }
 0xe3f   :  { %18188 = vmatpush1.bf16.msra.mxu0 %v24905_v9  ;;  %v24971_v9 = vld [vmem:[%s32825_s17 + $0x1820] ss:$28 sps:$4 sm:$0xff]  }
 0xe40   :  { %18189 = vmatprep.subr.bf16.mxu0 %v24910_v31 }
 0xe43   :  { %18190 = vmatpush1.bf16.msra.mxu0 %v24908_v49 }
 0xe44   :  { %18191 = vmatprep.subr.bf16.mxu0 %v24913_v16  ;;  %v24976_v16 = vld [vmem:[%s32825_s17 + $0x185c] ss:$28 sps:$4 sm:$0xff]  }
 0xe47   :  { %18192 = vmatpush1.bf16.msra.mxu0 %v24911_v58 }
 0xe48   :  { %18193 = vmatprep.subr.bf16.mxu0 %v24916_v55  ;;  %v13196_v55 = vld [vmem:[%s32825_s17 + $0x1890] sm:$0xff] }
 0xe4b   :  { %18194 = vmatpush1.bf16.msra.mxu0 %v24914_v36 }
 0xe4c   :  { %18195 = vmatprep.subr.bf16.mxu0 %v24919_v48  ;;  %v24974_v48 = vld [vmem:[%s32825_s17 + $0x1858] ss:$28 sps:$4 sm:$0xff]  }
 0xe4f   :  { %18196 = vmatpush1.bf16.msra.mxu0 %v24917_v15  ;;  %v20512_v15 = vcombine.high %v13196_v55, %v13196_v55 }
 0xe50   :  { %18197 = vmatprep.subr.bf16.mxu0 %v24922_v57  ;;  %v20511_v57 = vcombine.low %v13196_v55, %v13196_v55 }
 0xe52   :  { %v21464_v45 = vpop.f32.mrb[112].mxu1 }
 0xe53   :  { %v21465_v62 = vpop.f32.mrb[113].mxu1  ;;  %18198 = vmatpush1.bf16.msra.mxu0 %v24920_v6 }
 0xe54   :  { %v21466_v32 = vadd.f32 %v21465_v62, %v21464_v45  ;;  %v21467_v23 = vpop.f32.mrb[114].mxu1  ;;  %18199 = vmatprep.subr.bf16.mxu0 %v24925_v39 }
 0xe55   :  { %v21468_v26 = vpop.f32.mrb[115].mxu1  ;;  %v13218_v23 = vsub.s32 4, %v33093_v22 }
 0xe56   :  { %v18489_v11 = vadd.f32 %v21466_v32, %v18449_v38  ;;  %v24973_v38 = vld [vmem:[%s32825_s17 + $0x1824] ss:$28 sps:$4 sm:$0xff]  }
 0xe57   :  { %18200 = vmatpush1.bf16.msra.mxu0 %v24923_v51  ;;  %v17302_v51 = vsel %vm17288_vm7, %v20511_v57, 0 }
 0xe58   :  { %18201 = vmatprep.subr.bf16.mxu0 %v24928_v19  ;;  %v13222_v19 = vsub.s32 5, %v33093_v22 }
 0xe5b   :  { %18202 = vmatpush1.bf16.msra.mxu0 %v24926_v29  ;;  %v13223_v29 = vrot.slane %v32372_v27, %v13222_v19 }
 0xe5c   :  { %18212 = vmatprep.subr.bf16.mxu0 %v24931_v33 }
 0xe5e   :  { %18204 = vmatmul.mubr.bf16.vlgmr.msra.gmra.mrb[88].mxu0 %v31501_v40  ;;  %v24940_v40 = vld [vmem:[%s32825_s17 + $0x15bc] ss:$28 sps:$4 sm:$0xff]  }
 0xe5f   :  { %18213 = vmatpush1.bf16.msra.mxu0 %v24929_v0  ;;  %18244 = vmatprep.mubr.bf16.mxu0 %v31509_v7  ;;  %v24938_v7 = vld [vmem:[%s32825_s17 + $0x15b8] ss:$28 sps:$4 sm:$0xff]   ;;  %s25048_s17 = smov [#allocation2]  }
 0xe60   :  { %18214 = vmatprep.subr.bf16.mxu0 %v24934_v47  ;;  %s18710_s6 = sshll.u32 %s25048_s17, 4  ;;  %s18711_s6 = int_to_ptr.vmem [resolvable:$true] %s18710_s6 }
 0xe61   :  { %s25019_s5 = scalar_lea.vmem %s18711_s6, 224  ;;  %p25024_p1 = scmp.lt.s32.totalorder %s18711_s6, %s18711_s6 }
 0xe62   :  { %p25020_p0 = scmp.ne.s32.totalorder %s18711_s6, %s25019_s5  ;;  %p25025_p2 = scmp.lt.s32.totalorder %s25019_s5, %s25019_s5 }
 0xe63   :  { %18215 = vmatpush1.bf16.msra.mxu0 %v24932_v1 }
 0xe64   :  { %18216 = vmatprep.subr.bf16.mxu0 %v24937_v60  ;;  %p25026_p3 = por %p25025_p2, %p25024_p1 }
 0xe66   :  { %p25027_p4 = pnand %p25026_p3, %p25020_p0 }
 0xe67   :  { %18217 = vmatpush1.bf16.msra.mxu0 %v24935_v46 }
 0xe68   :  { %18218 = vmatprep.subr.bf16.mxu0 %v24940_v40 }
 0xe6b   :  { %18219 = vmatpush1.bf16.msra.mxu0 %v24938_v7 }
 0xe6c   :  { %18220 = vmatprep.subr.bf16.mxu0 %v24943_v3 }
 0xe6f   :  { %18221 = vmatpush1.bf16.msra.mxu0 %v24941_v5 }
 0xe70   :  { %18222 = vmatprep.subr.bf16.mxu0 %v24946_v25 }
 0xe72   :  { %v21486_v56 = vpop.f32.mrb[116].mxu1 }
 0xe73   :  { %v21487_v21 = vpop.f32.mrb[117].mxu1  ;;  %18223 = vmatpush1.bf16.msra.mxu0 %v24944_v41 }
 0xe74   :  { %v21488_v63 = vadd.f32 %v21487_v21, %v21486_v56  ;;  %v21489_v44 = vpop.f32.mrb[118].mxu1  ;;  %18224 = vmatprep.subr.bf16.mxu0 %v24949_v42 }
 0xe75   :  { %v21490_v59 = vpop.f32.mrb[119].mxu1 }
 0xe76   :  { %v18529_v4 = vadd.f32 %v21488_v63, %v18489_v11  ;;  %v13219_v11 = vrot.slane %v32372_v27, %v13218_v23 }
 0xe77   :  { %18225 = vmatpush1.bf16.msra.mxu0 %v24947_v50 }
 0xe78   :  { %18226 = vmatprep.subr.bf16.mxu0 %v24952_v8 }
 0xe7b   :  { %18227 = vmatpush1.bf16.msra.mxu0 %v24950_v53 }
 0xe7c   :  { %18228 = vmatprep.subr.bf16.mxu0 %v24955_v37 }
 0xe7f   :  { %18229 = vmatpush1.bf16.msra.mxu0 %v24953_v43 }
 0xe80   :  { %18230 = vmatprep.subr.bf16.mxu0 %v24958_v30 }
 0xe83   :  { %18231 = vmatpush1.bf16.msra.mxu0 %v24956_v20 }
 0xe84   :  { %18232 = vmatprep.subr.bf16.mxu0 %v24961_v18 }
 0xe87   :  { %18233 = vmatpush1.bf16.msra.mxu0 %v24959_v61 }
 0xe88   :  { %18234 = vmatprep.subr.bf16.mxu0 %v24964_v52 }
 0xe8b   :  { %18235 = vmatpush1.bf16.msra.mxu0 %v24962_v35 }
 0xe8c   :  { %18236 = vmatprep.subr.bf16.mxu0 %v24967_v2 }
 0xe8f   :  { %18237 = vmatpush1.bf16.msra.mxu0 %v24965_v10 }
 0xe90   :  { %18238 = vmatprep.subr.bf16.mxu0 %v24970_v14 }
 0xe92   :  { %v21508_v13 = vpop.f32.mrb[120].mxu1 }
 0xe93   :  { %v21509_v12 = vpop.f32.mrb[121].mxu1  ;;  %18239 = vmatpush1.bf16.msra.mxu0 %v24968_v24 }
 0xe94   :  { %v21510_v31 = vadd.f32 %v21509_v12, %v21508_v13  ;;  %v21511_v49 = vpop.f32.mrb[122].mxu1  ;;  %18240 = vmatprep.subr.bf16.mxu0 %v24973_v38 }
 0xe95   :  { %v21512_v58 = vpop.f32.mrb[123].mxu1 }
 0xe96   :  { %v18569_v36 = vadd.f32 %v21510_v31, %v18529_v4 }
 0xe97   :  { %18241 = vmatpush1.bf16.msra.mxu0 %v24971_v9 }
 0xe98   :  { %18242 = vmatprep.subr.bf16.mxu0 %v24976_v16 }
 0xe9a   :  { %v18608_v6 = vpop.f32.mrb[124].mxu1 }
 0xe9b   :  { %v18609_v39 = vadd.f32 %v18608_v6, %v18569_v36  ;;  %v21574_v45 = vpop.f32.mrb[125].mxu1  ;;  %18243 = vmatpush1.bf16.msra.mxu0 %v24974_v48 }
 0xe9c   :  { %v18611_v62 = vpop.f32.mrb[126].mxu1  ;;  %20518 = vmatprep.subr.msk.bf16.mxu0 %vm17288_vm7, %v20512_v15 }
 0xe9d   :  { %v21575_v32 = vpop.f32.mrb[127].mxu1  ;;  %v20527_v26 = vmul.f32 -1.442695, %v18609_v39 }
 0xe9e   :  { %18245 = vmatmul.mubr.bf16.vlgmr.msra.gmra.mrb[88].mxu0 %v31699_v17 }
 0xe9f   :  { %18254 = vmatpush1.bf16.msra.mxu0 %v17302_v51  ;;  %18285 = vmatprep.mubr.bf16.mxu0 %v33089_v54  ;;  %25007 = vpow2.f32 %v20527_v26 }
 0xeaa   :  { %20519 = vmatmul.mubr.msk.bf16.vlgmr.msra.gmra.mrb[88].mxu0 %vm9825_vm6, %v31719_v28  ;;  %v25008_v28 = vpop.eup %25007 }
 0xeab   :  { %v18641_v40 = vadd.f32 1.0, %v25008_v28 }
 0xf7d   :  { %v18287_v33 = vpop.f32.mrb[88].mxu0 }
 0xf7e   :  { %v22258_v0 = vadd.f32 %v18287_v33, %v13219_v11  ;;  %v18289_v47 = vpop.f32.mrb[89].mxu0 }
 0xf7f   :  { %v22259_v17 = vadd.f32 %v18289_v47, %v13223_v29  ;;  %v18291_v1 = vpop.f32.mrb[90].mxu0 }
 0xf80   :  { %v20525_v60 = vmul.f32 -1.442695, %v22258_v0  ;;  %v18292_v54 = vpop.f32.mrb[91].mxu0 }
 0xf81   :  { %v20526_v46 = vmul.f32 -1.442695, %v22259_v17 }
 0xf82   :  { %25009 = vpow2.f32 %v20525_v60 }
 0xf83   :  { %25011 = vpow2.f32 %v20526_v46 }
 0xf84   :  { %25013 = vrcp.f32 %v18641_v40 }
 0xf8c   :  { %v25010_v7 = vpop.eup %25009 }
 0xf8d   :  { %v25012_v22 = vpop.eup %25011  ;;  %v18639_v3 = vadd.f32 1.0, %v25010_v7 }
 0xf8e   :  { %v18640_v5 = vadd.f32 1.0, %v25012_v22  ;;  %v25014_v27 = vpop.eup %25013 }
 0xf8f   :  { %25015 = vrcp.f32 %v18639_v3  ;;  %v18694_v21 = vrot.slane %v25014_v27, %v32465_v34 }
 0xf90   :  { %25017 = vrcp.f32 %v18640_v5 }
 0xf99   :  { %v25016_v25 = vpop.eup %25015 }
 0xf9a   :  { %v25018_v41 = vpop.eup %25017 }
 0xf9b   :  { %v18680_v42 = vcombine.low %v25016_v25, %v25018_v41 }
 0xf9d   :  { %v18687_v56 = vrot.slane %v18680_v42, %v32465_v34 }
 0xf9f   :  { %v18695_v50 = vcombine.low %v18687_v56, %v18694_v21 }
 0xfa1   :  { %18703 = vst.msk [vmem:[#allocation2 + $0x8] sm:$0x3f] %vm18702_vm11, %v18695_v50 }
 0xfa2   :  { %25030 = shalt.err (!%p25027_p4)
}
 0xfa3   :  { %s25031_s20 = scalar_lea.hbm %s32827_s19, 224 }
 0xfa4   :  { %p25032_p5 = scmp.ne.s32.totalorder %s32827_s19, %s25031_s20  ;;  %p25035_p6 = scmp.lt.u32.totalorder %s25031_s20, %s32827_s19 }
 0xfa6   :  { %p25037_p7 = pnand %p25035_p6, %p25032_p5 }
 0xfa8   :  { %25040 = shalt.err (!%p25037_p7)
}
 0xfa9   :  { %18713 = dma.vmem_to_hbm [thread:$0]  %s18711_s6, 224, %s32827_s19, [#allocation3]  }
 0xfaa   :  { %25041 = dma.done.wait [#allocation3], 224  }
 0xfab   :  { %25042 = vsyncadd [#allocation3], 4294967072 }
 0xfac   :  { %18717 = vsyncpa [#allocation3], 1 }

</bundles_post_ra>
